<compile_context>
chip_gen: v7x
topology: tpu7x:2x2x1
jax: 0.10.0
libtpu: 0.0.40
codegen_flags: <defaults>
</compile_context>

<pallas_src>
import functools

import jax
import jax.numpy as jnp
from jax.experimental import pallas as pl
from jax.experimental.pallas import tpu as pltpu

_EPS = 1e-5
_BLOCK_CFG = ((4, 1, 0), (4, 2, 1), (4, 2, 1), (4, 2, 1))   # (k, s, p) per block
_FINAL_CFG = (4, 2, 1)


# ----------------------------- Pallas kernels -----------------------------

def _gemm_kernel(x_ref, w_ref, o_ref):
    # bf16 x bf16 -> f32 accumulation on the MXU.
    o_ref[...] = jnp.dot(x_ref[...], w_ref[...],
                         preferred_element_type=jnp.float32)


def _bn_relu_gemm_kernel(x_ref, s_ref, g_ref, b_ref, w_ref, o_ref, *,
                         inv_m, eps):
    # Fused prologue: training-mode BatchNorm (precomputed sum/sumsq stats) +
    # ReLU on the f32 input tile, cast to bf16, then one MXU matmul with the
    # packed deconv weight (Cin, k*k*Cout).
    x = x_ref[...]                                   # (tm, Cin) f32
    mean = s_ref[0:1, :] * inv_m                     # (1, Cin)
    var = s_ref[1:2, :] * inv_m - mean * mean        # biased batch variance
    xn = (x - mean) * jax.lax.rsqrt(var + eps) * g_ref[...] + b_ref[...]
    xn = jnp.maximum(xn, 0.0).astype(jnp.bfloat16)
    o_ref[...] = jnp.dot(xn, w_ref[...], preferred_element_type=jnp.float32)


def _bn_stats_kernel(x_ref, o_ref):
    # Accumulate per-channel sum / sum-of-squares across the M grid axis
    # (output block is resident across the grid -> accumulator pattern).
    @pl.when(pl.program_id(0) == 0)
    def _():
        o_ref[...] = jnp.zeros_like(o_ref)
    x = x_ref[...]
    s = jnp.sum(x, axis=0, keepdims=True)
    ss = jnp.sum(x * x, axis=0, keepdims=True)
    o_ref[...] += jnp.concatenate([s, ss], axis=0)


def _bias_tanh_kernel(x_ref, b_ref, o_ref):
    # Elementwise bias + tanh on a lane-dense (rows, OW*Cpad) view (f32).
    o_ref[...] = jnp.tanh(x_ref[...] + b_ref[...])


# ----------------------------- Pallas wrappers -----------------------------

def _pick_tm(m, ncols):
    """Row tile: divides m, multiple of 8 (or == m), keeps the f32 output tile
    around <= 4 MiB, and gives >= 2 grid steps when m >= 64 (v7x megacore)."""
    if m <= 8 or m % 8:
        return m                      # whole-array block (legal: equals full dims)
    budget = max(8, (4 * 1024 * 1024) // (4 * max(ncols, 1)))
    cap = min(m, 2048, budget)
    if m >= 64:
        cap = min(cap, m // 2)
    tm = max(8, (cap // 8) * 8)
    while m % tm:
        tm -= 8
    return tm


def pallas_gemm(x_bf16, w_bf16):
    m, k = x_bf16.shape
    n = w_bf16.shape[1]
    tm = _pick_tm(m, n)
    return pl.pallas_call(
        _gemm_kernel,
        out_shape=jax.ShapeDtypeStruct((m, n), jnp.float32),
        grid=(m // tm,),
        in_specs=[pl.BlockSpec((tm, k), lambda i: (i, 0)),
                  pl.BlockSpec((k, n), lambda i: (0, 0))],
        out_specs=pl.BlockSpec((tm, n), lambda i: (i, 0)),
        compiler_params=pltpu.CompilerParams(
            dimension_semantics=("parallel",)),
    )(x_bf16, w_bf16)


def pallas_bn_relu_gemm(x_raw, stats, gamma, beta, w_bf16):
    m, k = x_raw.shape
    n = w_bf16.shape[1]
    tm = _pick_tm(m, n)
    kern = functools.partial(_bn_relu_gemm_kernel, inv_m=1.0 / m, eps=_EPS)
    return pl.pallas_call(
        kern,
        out_shape=jax.ShapeDtypeStruct((m, n), jnp.float32),
        grid=(m // tm,),
        in_specs=[pl.BlockSpec((tm, k), lambda i: (i, 0)),
                  pl.BlockSpec((2, k), lambda i: (0, 0)),
                  pl.BlockSpec((1, k), lambda i: (0, 0)),
                  pl.BlockSpec((1, k), lambda i: (0, 0)),
                  pl.BlockSpec((k, n), lambda i: (0, 0))],
        out_specs=pl.BlockSpec((tm, n), lambda i: (i, 0)),
        compiler_params=pltpu.CompilerParams(
            dimension_semantics=("parallel",)),
    )(x_raw, stats, gamma.reshape(1, k), beta.reshape(1, k), w_bf16)


def pallas_bn_stats(x):
    m, c = x.shape
    tm = _pick_tm(m, c)
    return pl.pallas_call(
        _bn_stats_kernel,
        out_shape=jax.ShapeDtypeStruct((2, c), jnp.float32),
        grid=(m // tm,),
        in_specs=[pl.BlockSpec((tm, c), lambda i: (i, 0))],
        out_specs=pl.BlockSpec((2, c), lambda i: (0, 0)),
        compiler_params=pltpu.CompilerParams(
            dimension_semantics=("arbitrary",)),
    )(x)


def pallas_bias_tanh(x2d, bias_row):
    m, n = x2d.shape
    tm = _pick_tm(m, n)
    return pl.pallas_call(
        _bias_tanh_kernel,
        out_shape=jax.ShapeDtypeStruct((m, n), jnp.float32),
        grid=(m // tm,),
        in_specs=[pl.BlockSpec((tm, n), lambda i: (i, 0)),
                  pl.BlockSpec((1, n), lambda i: (0, 0))],
        out_specs=pl.BlockSpec((tm, n), lambda i: (i, 0)),
        compiler_params=pltpu.CompilerParams(
            dimension_semantics=("parallel",)),
    )(x2d, bias_row)


# ------------------------ GEMM + col2im ConvTranspose ----------------------
# TODO(synk): the col2im overlap-add below is dense XLA glue (pad/add/stack/
# reshape/slice); a strided cross-lane scatter has no clean Pallas equivalent.

def _overlap_add(g, s):
    """g: (A, H, B, K, C) -> (A, L, B, C) with out[a, s*h + i, b, c] += g[a, h, b, i, c],
    L = (H-1)*s + K.  Implemented with per-phase padded adds + interleave (no scatter)."""
    a, h, b, k, c = g.shape
    l = (h - 1) * s + k
    lp = -(-l // s)
    phases = []
    for r in range(s):
        ph = jnp.zeros((a, lp, b, c), g.dtype)
        for q, i in enumerate(range(r, k, s)):
            ph = ph.at[:, q:q + h].add(g[:, :, :, i, :])
        phases.append(ph)
    out = jnp.stack(phases, axis=2).reshape(a, lp * s, b, c)
    return out[:, :l]


def _col2im(g, n, h, w, k, s, p, c):
    """g: (n*h*w, k*k*c) GEMM output (tap layout (i, j, c)) -> (n, oh, ow, c)."""
    oh = (h - 1) * s - 2 * p + k
    ow = (w - 1) * s - 2 * p + k
    t = g.reshape(n, h, w, k, k * c)
    t = _overlap_add(t, s)[:, p:p + oh]          # rows:  (n, oh, w, k*c)
    t = t.reshape(n * oh, w, 1, k, c)
    t = _overlap_add(t, s)[:, p:p + ow]          # cols:  (n*oh, ow, 1, c)
    return t.reshape(n, oh, ow, c)


def _round8(c):
    return -(-c // 8) * 8


def _pack_wmat(w_pt, cin_pad, cout_pad):
    """PyTorch ConvTranspose2d weight (Cin, Cout, k, k) -> bf16 (cin_pad, k*k*cout_pad)
    with column layout (i, j, cout); zero-padded so the GEMM output is lane-dense."""
    cin, cout, k, _ = w_pt.shape
    wp = jnp.pad(w_pt, ((0, cin_pad - cin), (0, cout_pad - cout), (0, 0), (0, 0)))
    return wp.transpose(0, 2, 3, 1).reshape(cin_pad, k * k * cout_pad).astype(
        jnp.bfloat16)


# ------------------------------- Generator --------------------------------

def generator_forward(x_nchw, params):
    """x: (N, channels_noise, 1, 1) NCHW float32 -> (N, channels_img, 64, 64)."""
    n, cn, h, w = x_nchw.shape
    x_flat = jnp.transpose(x_nchw, (0, 2, 3, 1)).reshape(n * h * w, cn)

    # ---- block 1: plain GEMM on the (bf16-cast) noise ----
    w1, g1, b1 = params["blocks"][0]
    k, s, p = _BLOCK_CFG[0]
    cout = w1.shape[1]
    cpad = _round8(cout)
    gemm = pallas_gemm(x_flat.astype(jnp.bfloat16), _pack_wmat(w1, cn, cpad))
    raw = _col2im(gemm, n, h, w, k, s, p, cpad)
    h, w = raw.shape[1], raw.shape[2]
    raw_flat = raw.reshape(n * h * w, cpad)
    carry = (raw_flat,
             pallas_bn_stats(raw_flat),
             jnp.pad(g1, (0, cpad - cout)),
             jnp.pad(b1, (0, cpad - cout)),
             cpad)

    # ---- blocks 2..4: previous block's BN+ReLU fused into this GEMM ----
    for (wi, gi, bi), (k, s, p) in zip(params["blocks"][1:], _BLOCK_CFG[1:]):
        x_prev, stats, gamma, beta, cin_pad = carry
        cout = wi.shape[1]
        cpad = _round8(cout)
        gemm = pallas_bn_relu_gemm(x_prev, stats, gamma, beta,
                                   _pack_wmat(wi, cin_pad, cpad))
        raw = _col2im(gemm, n, h, w, k, s, p, cpad)
        h, w = raw.shape[1], raw.shape[2]
        raw_flat = raw.reshape(n * h * w, cpad)
        carry = (raw_flat,
                 pallas_bn_stats(raw_flat),
                 jnp.pad(gi, (0, cpad - cout)),
                 jnp.pad(bi, (0, cpad - cout)),
                 cpad)

    # ---- final layer: block-4 BN+ReLU fused into the GEMM, then bias+tanh ----
    x_prev, stats, gamma, beta, cin_pad = carry
    wf, bf = params["final_w"], params["final_b"]
    k, s, p = _FINAL_CFG
    cimg = wf.shape[1]
    cpad = _round8(cimg)                    # pad 3 -> 8 so KKC = 128 (lane-dense)
    gemm = pallas_bn_relu_gemm(x_prev, stats, gamma, beta,
                               _pack_wmat(wf, cin_pad, cpad))
    y = _col2im(gemm, n, h, w, k, s, p, cpad)          # (N, OH, OW, cpad)
    oh, ow = y.shape[1], y.shape[2]
    bias_row = jnp.tile(jnp.pad(bf, (0, cpad - cimg)), ow).reshape(1, ow * cpad)
    y = pallas_bias_tanh(y.reshape(n * oh, ow * cpad), bias_row)
    y = y.reshape(n, oh, ow, cpad)[..., :cimg]
    return jnp.transpose(y, (0, 3, 1, 2))              # back to NCHW at boundary


def init_params(key, channels_noise, channels_img, features_g):
    layer_defs = [
        (channels_noise,   features_g * 16),
        (features_g * 16,  features_g * 8),
        (features_g * 8,   features_g * 4),
        (features_g * 4,   features_g * 2),
    ]
    blocks = []
    for cin, cout in layer_defs:
        key, wk = jax.random.split(key)
        wgt = jax.random.normal(wk, (cin, cout, 4, 4), jnp.float32) * 0.02
        blocks.append((wgt,
                       jnp.ones((cout,), jnp.float32),
                       jnp.zeros((cout,), jnp.float32)))
    key, wk, bk = jax.random.split(key, 3)
    final_w = jax.random.normal(
        wk, (features_g * 2, channels_img, 4, 4), jnp.float32) * 0.02
    final_b = jax.random.normal(bk, (channels_img,), jnp.float32) * 0.02
    return {"blocks": blocks, "final_w": final_w, "final_b": final_b}


# ------------------------- pure-JAX f32 reference --------------------------
# TODO(synk): BatchNorm running_mean/running_var buffer updates (train-mode
# side effect of nn.BatchNorm2d) are not modeled; normalization math matches.

def _ref_conv_transpose(x_nhwc, w_pt, k, s, p):
    w_hwio = jnp.flip(w_pt, axis=(2, 3)).transpose(2, 3, 0, 1)
    return jax.lax.conv_general_dilated(
        x_nhwc, w_hwio, window_strides=(1, 1),
        padding=[(k - 1 - p, k - 1 - p)] * 2,
        lhs_dilation=(s, s),
        dimension_numbers=("NHWC", "HWIO", "NHWC"),
        precision=jax.lax.Precision.HIGHEST)


def reference_forward(x_nchw, params):
    x = jnp.transpose(x_nchw, (0, 2, 3, 1))
    for (wgt, g, b), (k, s, p) in zip(params["blocks"], _BLOCK_CFG):
        x = _ref_conv_transpose(x, wgt, k, s, p)
        m = jnp.mean(x, axis=(0, 1, 2))
        v = jnp.mean(jnp.square(x - m), axis=(0, 1, 2))
        x = jnp.maximum((x - m) * jax.lax.rsqrt(v + _EPS) * g + b, 0.0)
    k, s, p = _FINAL_CFG
    x = _ref_conv_transpose(x, params["final_w"], k, s, p) + params["final_b"]
    return jnp.transpose(jnp.tanh(x), (0, 3, 1, 2))


if __name__ == "__main__":
    key = jax.random.PRNGKey(0)
    n, channels_noise, channels_img, features_g = 2, 32, 3, 8

    pkey, xkey = jax.random.split(key)
    params = init_params(pkey, channels_noise, channels_img, features_g)
    x = jax.random.normal(xkey, (n, channels_noise, 1, 1), jnp.float32)

    out = jax.block_until_ready(jax.jit(generator_forward)(x, params))

    assert out.shape == (n, channels_img, 64, 64), out.shape
    assert bool(jnp.all(jnp.isfinite(out)))
    assert bool(jnp.all(jnp.abs(out) <= 1.0))          # tanh range

    ref = jax.block_until_ready(jax.jit(reference_forward)(x, params))
    err = float(jnp.max(jnp.abs(out - ref)))
    assert err < 1e-1, f"max |pallas - reference| = {err}"
    print("KERNEL_OK")
</pallas_src>

<mosaic_0001>
module attributes {stable_mosaic.version = 11 : i64} {
  func.func @_gemm_kernel(%arg0: i32, %arg1: memref<2x32xbf16, #tpu.memory_space<vmem>>, %arg2: memref<32x2048xbf16, #tpu.memory_space<vmem>>, %arg3: memref<2x2048xf32, #tpu.memory_space<vmem>>) attributes {dimension_semantics = [#tpu.dimension_semantics<parallel>], iteration_bounds = array<i64: 1>, scalar_prefetch = 0 : i64, scratch_operands = 0 : i64, tpu.core_type = #tpu.core_type<tc>, window_params = [{transform_indices = @transform_0, window_bounds = array<i64: 2, 32>}, {pipeline_mode = #tpu.pipeline_mode<synchronous>, transform_indices = @transform_1, window_bounds = array<i64: 32, 2048>}, {transform_indices = @transform_2, window_bounds = array<i64: 2, 2048>}]} {
    %c0 = arith.constant 0 : index
    %c0_0 = arith.constant 0 : index
    %0 = vector.load %arg1[%c0, %c0_0] : memref<2x32xbf16, #tpu.memory_space<vmem>>, vector<2x32xbf16>
    %c0_1 = arith.constant 0 : index
    %c0_2 = arith.constant 0 : index
    %1 = vector.load %arg2[%c0_1, %c0_2] : memref<32x2048xbf16, #tpu.memory_space<vmem>>, vector<32x2048xbf16>
    %cst = arith.constant dense<0.000000e+00> : vector<2x2048xf32>
    %2 = tpu.matmul %0, %1, %cst {dimension_numbers = #tpu.dot_dimension_numbers<[1], [0], [0], [1], [0, 0, 1, 1], [], []>} : vector<2x32xbf16>, vector<32x2048xbf16>, vector<2x2048xf32> -> vector<2x2048xf32>
    %c0_3 = arith.constant 0 : index
    %c0_4 = arith.constant 0 : index
    %3 = vector.load %arg3[%c0_3, %c0_4] : memref<2x2048xf32, #tpu.memory_space<vmem>>, vector<2x2048xf32>
    tpu.vector_store %arg3[%c0_3, %c0_4], %2 {strides = array<i32>} : memref<2x2048xf32, #tpu.memory_space<vmem>>, vector<2x2048xf32>,
    return
  }
  func.func @transform_0(%arg0: i32) -> (i32, i32) {
    %c0_i32 = arith.constant 0 : i32
    %c0_i32_0 = arith.constant 0 : i32
    return %arg0, %c0_i32 : i32, i32
  }
  func.func @transform_1(%arg0: i32) -> (i32, i32) {
    %c0_i32 = arith.constant 0 : i32
    %c0_i32_0 = arith.constant 0 : i32
    %c0_i32_1 = arith.constant 0 : i32
    return %c0_i32, %c0_i32_0 : i32, i32
  }
  func.func @transform_2(%arg0: i32) -> (i32, i32) {
    %c0_i32 = arith.constant 0 : i32
    %c0_i32_0 = arith.constant 0 : i32
    return %arg0, %c0_i32 : i32, i32
  }
}

module attributes {stable_mosaic.version = 11 : i64} {
  func.func @_bn_stats_kernel(%arg0: i32, %arg1: memref<32x128xf32, #tpu.memory_space<vmem>>, %arg2: memref<2x128xf32, #tpu.memory_space<vmem>>) attributes {dimension_semantics = [#tpu.dimension_semantics<arbitrary>], iteration_bounds = array<i64: 1>, scalar_prefetch = 0 : i64, scratch_operands = 0 : i64, tpu.core_type = #tpu.core_type<tc>, window_params = [{transform_indices = @transform_0, window_bounds = array<i64: 32, 128>}, {pipeline_mode = #tpu.pipeline_mode<synchronous>, transform_indices = @transform_1, window_bounds = array<i64: 2, 128>}]} {
    %c0_i32 = arith.constant 0 : i32
    %0 = arith.cmpi eq, %arg0, %c0_i32 : i32
    %1 = arith.extui %0 : i1 to i32
    %c0_i32_0 = arith.constant 0 : i32
    %2 = arith.cmpi ne, %1, %c0_i32_0 : i32
    scf.if %2 {
      %cst_7 = arith.constant 0.000000e+00 : f32
      %13 = vector.broadcast %cst_7 : f32 to vector<2x128xf32>
      %c0_8 = arith.constant 0 : index
      %c0_9 = arith.constant 0 : index
      %14 = vector.load %arg2[%c0_8, %c0_9] : memref<2x128xf32, #tpu.memory_space<vmem>>, vector<2x128xf32>
      tpu.vector_store %arg2[%c0_8, %c0_9], %13 {strides = array<i32>} : memref<2x128xf32, #tpu.memory_space<vmem>>, vector<2x128xf32>,
    } else {
    }
    %c0 = arith.constant 0 : index
    %c0_1 = arith.constant 0 : index
    %3 = vector.load %arg1[%c0, %c0_1] : memref<32x128xf32, #tpu.memory_space<vmem>>, vector<32x128xf32>
    %cst = arith.constant dense<0.000000e+00> : vector<128xf32>
    %4 = vector.multi_reduction <add>, %3, %cst [0] : vector<32x128xf32> to vector<128xf32>
    %5 = vector.shape_cast %4 : vector<128xf32> to vector<1x128xf32>
    %6 = arith.mulf %3, %3 : vector<32x128xf32>
    %cst_2 = arith.constant dense<0.000000e+00> : vector<128xf32>
    %7 = vector.multi_reduction <add>, %6, %cst_2 [0] : vector<32x128xf32> to vector<128xf32>
    %8 = vector.shape_cast %7 : vector<128xf32> to vector<1x128xf32>
    %c0_3 = arith.constant 0 : index
    %c0_4 = arith.constant 0 : index
    %9 = vector.load %arg2[%c0_3, %c0_4] : memref<2x128xf32, #tpu.memory_space<vmem>>, vector<2x128xf32>
    %10 = tpu.concatenate %5, %8 in 0 : vector<1x128xf32>, vector<1x128xf32> -> vector<2x128xf32>
    %11 = arith.addf %9, %10 : vector<2x128xf32>
    %c0_5 = arith.constant 0 : index
    %c0_6 = arith.constant 0 : index
    %12 = vector.load %arg2[%c0_5, %c0_6] : memref<2x128xf32, #tpu.memory_space<vmem>>, vector<2x128xf32>
    tpu.vector_store %arg2[%c0_5, %c0_6], %11 {strides = array<i32>} : memref<2x128xf32, #tpu.memory_space<vmem>>, vector<2x128xf32>,
    return
  }
  func.func @transform_0(%arg0: i32) -> (i32, i32) {
    %c0_i32 = arith.constant 0 : i32
    %c0_i32_0 = arith.constant 0 : i32
    return %arg0, %c0_i32 : i32, i32
  }
  func.func @transform_1(%arg0: i32) -> (i32, i32) {
    %c0_i32 = arith.constant 0 : i32
    %c0_i32_0 = arith.constant 0 : i32
    %c0_i32_1 = arith.constant 0 : i32
    return %c0_i32, %c0_i32_0 : i32, i32
  }
}

module attributes {stable_mosaic.version = 11 : i64} {
  func.func @_bn_relu_gemm_kernel(%arg0: i32, %arg1: memref<32x128xf32, #tpu.memory_space<vmem>>, %arg2: memref<2x128xf32, #tpu.memory_space<vmem>>, %arg3: memref<1x128xf32, #tpu.memory_space<vmem>>, %arg4: memref<1x128xf32, #tpu.memory_space<vmem>>, %arg5: memref<128x1024xbf16, #tpu.memory_space<vmem>>, %arg6: memref<32x1024xf32, #tpu.memory_space<vmem>>) attributes {dimension_semantics = [#tpu.dimension_semantics<parallel>], iteration_bounds = array<i64: 1>, scalar_prefetch = 0 : i64, scratch_operands = 0 : i64, tpu.core_type = #tpu.core_type<tc>, window_params = [{transform_indices = @transform_0, window_bounds = array<i64: 32, 128>}, {pipeline_mode = #tpu.pipeline_mode<synchronous>, transform_indices = @transform_1, window_bounds = array<i64: 2, 128>}, {pipeline_mode = #tpu.pipeline_mode<synchronous>, transform_indices = @transform_2, window_bounds = array<i64: 1, 128>}, {pipeline_mode = #tpu.pipeline_mode<synchronous>, transform_indices = @transform_3, window_bounds = array<i64: 1, 128>}, {pipeline_mode = #tpu.pipeline_mode<synchronous>, transform_indices = @transform_4, window_bounds = array<i64: 128, 1024>}, {transform_indices = @transform_5, window_bounds = array<i64: 32, 1024>}]} {
    %c0 = arith.constant 0 : index
    %c0_0 = arith.constant 0 : index
    %0 = vector.load %arg1[%c0, %c0_0] : memref<32x128xf32, #tpu.memory_space<vmem>>, vector<32x128xf32>
    %c0_1 = arith.constant 0 : index
    %c0_2 = arith.constant 0 : index
    %1 = vector.load %arg2[%c0_1, %c0_2] : memref<2x128xf32, #tpu.memory_space<vmem>>, vector<1x128xf32>
    %cst = arith.constant 3.125000e-02 : f32
    %2 = vector.broadcast %cst : f32 to vector<1x128xf32>
    %3 = arith.mulf %1, %2 : vector<1x128xf32>
    %c1 = arith.constant 1 : index
    %c0_3 = arith.constant 0 : index
    %4 = vector.load %arg2[%c1, %c0_3] : memref<2x128xf32, #tpu.memory_space<vmem>>, vector<1x128xf32>
    %cst_4 = arith.constant 3.125000e-02 : f32
    %5 = vector.broadcast %cst_4 : f32 to vector<1x128xf32>
    %6 = arith.mulf %4, %5 : vector<1x128xf32>
    %7 = arith.mulf %3, %3 : vector<1x128xf32>
    %8 = arith.subf %6, %7 : vector<1x128xf32>
    %9 = vector.broadcast %3 : vector<1x128xf32> to vector<32x128xf32>
    %10 = arith.subf %0, %9 : vector<32x128xf32>
    %cst_5 = arith.constant 9.99999974E-6 : f32
    %11 = vector.broadcast %cst_5 : f32 to vector<1x128xf32>
    %12 = arith.addf %8, %11 : vector<1x128xf32>
    %13 = math.rsqrt %12 : vector<1x128xf32>
    %14 = vector.broadcast %13 : vector<1x128xf32> to vector<32x128xf32>
    %15 = arith.mulf %10, %14 : vector<32x128xf32>
    %c0_6 = arith.constant 0 : index
    %c0_7 = arith.constant 0 : index
    %16 = vector.load %arg3[%c0_6, %c0_7] : memref<1x128xf32, #tpu.memory_space<vmem>>, vector<1x128xf32>
    %17 = vector.broadcast %16 : vector<1x128xf32> to vector<32x128xf32>
    %18 = arith.mulf %15, %17 : vector<32x128xf32>
    %c0_8 = arith.constant 0 : index
    %c0_9 = arith.constant 0 : index
    %19 = vector.load %arg4[%c0_8, %c0_9] : memref<1x128xf32, #tpu.memory_space<vmem>>, vector<1x128xf32>
    %20 = vector.broadcast %19 : vector<1x128xf32> to vector<32x128xf32>
    %21 = arith.addf %18, %20 : vector<32x128xf32>
    %cst_10 = arith.constant 0.000000e+00 : f32
    %22 = vector.broadcast %cst_10 : f32 to vector<32x128xf32>
    %23 = arith.maximumf %21, %22 : vector<32x128xf32>
    %24 = arith.truncf %23 : vector<32x128xf32> to vector<32x128xbf16>
    %c0_11 = arith.constant 0 : index
    %c0_12 = arith.constant 0 : index
    %25 = vector.load %arg5[%c0_11, %c0_12] : memref<128x1024xbf16, #tpu.memory_space<vmem>>, vector<128x1024xbf16>
    %cst_13 = arith.constant dense<0.000000e+00> : vector<32x1024xf32>
    %26 = tpu.matmul %24, %25, %cst_13 {dimension_numbers = #tpu.dot_dimension_numbers<[1], [0], [0], [1], [0, 0, 1, 1], [], []>} : vector<32x128xbf16>, vector<128x1024xbf16>, vector<32x1024xf32> -> vector<32x1024xf32>
    %c0_14 = arith.constant 0 : index
    %c0_15 = arith.constant 0 : index
    %27 = vector.load %arg6[%c0_14, %c0_15] : memref<32x1024xf32, #tpu.memory_space<vmem>>, vector<32x1024xf32>
    tpu.vector_store %arg6[%c0_14, %c0_15], %26 {strides = array<i32>} : memref<32x1024xf32, #tpu.memory_space<vmem>>, vector<32x1024xf32>,
    return
  }
  func.func @transform_0(%arg0: i32) -> (i32, i32) {
    %c0_i32 = arith.constant 0 : i32
    %c0_i32_0 = arith.constant 0 : i32
    return %arg0, %c0_i32 : i32, i32
  }
  func.func @transform_1(%arg0: i32) -> (i32, i32) {
    %c0_i32 = arith.constant 0 : i32
    %c0_i32_0 = arith.constant 0 : i32
    %c0_i32_1 = arith.constant 0 : i32
    return %c0_i32, %c0_i32_0 : i32, i32
  }
  func.func @transform_2(%arg0: i32) -> (i32, i32) {
    %c0_i32 = arith.constant 0 : i32
    %c0_i32_0 = arith.constant 0 : i32
    %c0_i32_1 = arith.constant 0 : i32
    return %c0_i32, %c0_i32_0 : i32, i32
  }
  func.func @transform_3(%arg0: i32) -> (i32, i32) {
    %c0_i32 = arith.constant 0 : i32
    %c0_i32_0 = arith.constant 0 : i32
    %c0_i32_1 = arith.constant 0 : i32
    return %c0_i32, %c0_i32_0 : i32, i32
  }
  func.func @transform_4(%arg0: i32) -> (i32, i32) {
    %c0_i32 = arith.constant 0 : i32
    %c0_i32_0 = arith.constant 0 : i32
    %c0_i32_1 = arith.constant 0 : i32
    return %c0_i32, %c0_i32_0 : i32, i32
  }
  func.func @transform_5(%arg0: i32) -> (i32, i32) {
    %c0_i32 = arith.constant 0 : i32
    %c0_i32_0 = arith.constant 0 : i32
    return %arg0, %c0_i32 : i32, i32
  }
}

module attributes {stable_mosaic.version = 11 : i64} {
  func.func @_bn_stats_kernel(%arg0: i32, %arg1: memref<64x64xf32, #tpu.memory_space<vmem>>, %arg2: memref<2x64xf32, #tpu.memory_space<vmem>>) attributes {dimension_semantics = [#tpu.dimension_semantics<arbitrary>], iteration_bounds = array<i64: 2>, scalar_prefetch = 0 : i64, scratch_operands = 0 : i64, tpu.core_type = #tpu.core_type<tc>, window_params = [{transform_indices = @transform_0, window_bounds = array<i64: 64, 64>}, {pipeline_mode = #tpu.pipeline_mode<synchronous>, transform_indices = @transform_1, window_bounds = array<i64: 2, 64>}]} {
    %c0_i32 = arith.constant 0 : i32
    %0 = arith.cmpi eq, %arg0, %c0_i32 : i32
    %1 = arith.extui %0 : i1 to i32
    %c0_i32_0 = arith.constant 0 : i32
    %2 = arith.cmpi ne, %1, %c0_i32_0 : i32
    scf.if %2 {
      %cst_7 = arith.constant 0.000000e+00 : f32
      %13 = vector.broadcast %cst_7 : f32 to vector<2x64xf32>
      %c0_8 = arith.constant 0 : index
      %c0_9 = arith.constant 0 : index
      %14 = vector.load %arg2[%c0_8, %c0_9] : memref<2x64xf32, #tpu.memory_space<vmem>>, vector<2x64xf32>
      tpu.vector_store %arg2[%c0_8, %c0_9], %13 {strides = array<i32>} : memref<2x64xf32, #tpu.memory_space<vmem>>, vector<2x64xf32>,
    } else {
    }
    %c0 = arith.constant 0 : index
    %c0_1 = arith.constant 0 : index
    %3 = vector.load %arg1[%c0, %c0_1] : memref<64x64xf32, #tpu.memory_space<vmem>>, vector<64x64xf32>
    %cst = arith.constant dense<0.000000e+00> : vector<64xf32>
    %4 = vector.multi_reduction <add>, %3, %cst [0] : vector<64x64xf32> to vector<64xf32>
    %5 = vector.shape_cast %4 : vector<64xf32> to vector<1x64xf32>
    %6 = arith.mulf %3, %3 : vector<64x64xf32>
    %cst_2 = arith.constant dense<0.000000e+00> : vector<64xf32>
    %7 = vector.multi_reduction <add>, %6, %cst_2 [0] : vector<64x64xf32> to vector<64xf32>
    %8 = vector.shape_cast %7 : vector<64xf32> to vector<1x64xf32>
    %c0_3 = arith.constant 0 : index
    %c0_4 = arith.constant 0 : index
    %9 = vector.load %arg2[%c0_3, %c0_4] : memref<2x64xf32, #tpu.memory_space<vmem>>, vector<2x64xf32>
    %10 = tpu.concatenate %5, %8 in 0 : vector<1x64xf32>, vector<1x64xf32> -> vector<2x64xf32>
    %11 = arith.addf %9, %10 : vector<2x64xf32>
    %c0_5 = arith.constant 0 : index
    %c0_6 = arith.constant 0 : index
    %12 = vector.load %arg2[%c0_5, %c0_6] : memref<2x64xf32, #tpu.memory_space<vmem>>, vector<2x64xf32>
    tpu.vector_store %arg2[%c0_5, %c0_6], %11 {strides = array<i32>} : memref<2x64xf32, #tpu.memory_space<vmem>>, vector<2x64xf32>,
    return
  }
  func.func @transform_0(%arg0: i32) -> (i32, i32) {
    %c0_i32 = arith.constant 0 : i32
    %c0_i32_0 = arith.constant 0 : i32
    return %arg0, %c0_i32 : i32, i32
  }
  func.func @transform_1(%arg0: i32) -> (i32, i32) {
    %c0_i32 = arith.constant 0 : i32
    %c0_i32_0 = arith.constant 0 : i32
    %c0_i32_1 = arith.constant 0 : i32
    return %c0_i32, %c0_i32_0 : i32, i32
  }
}

module attributes {stable_mosaic.version = 11 : i64} {
  func.func @_bn_relu_gemm_kernel(%arg0: i32, %arg1: memref<64x64xf32, #tpu.memory_space<vmem>>, %arg2: memref<2x64xf32, #tpu.memory_space<vmem>>, %arg3: memref<1x64xf32, #tpu.memory_space<vmem>>, %arg4: memref<1x64xf32, #tpu.memory_space<vmem>>, %arg5: memref<64x512xbf16, #tpu.memory_space<vmem>>, %arg6: memref<64x512xf32, #tpu.memory_space<vmem>>) attributes {dimension_semantics = [#tpu.dimension_semantics<parallel>], iteration_bounds = array<i64: 2>, scalar_prefetch = 0 : i64, scratch_operands = 0 : i64, tpu.core_type = #tpu.core_type<tc>, window_params = [{transform_indices = @transform_0, window_bounds = array<i64: 64, 64>}, {pipeline_mode = #tpu.pipeline_mode<synchronous>, transform_indices = @transform_1, window_bounds = array<i64: 2, 64>}, {pipeline_mode = #tpu.pipeline_mode<synchronous>, transform_indices = @transform_2, window_bounds = array<i64: 1, 64>}, {pipeline_mode = #tpu.pipeline_mode<synchronous>, transform_indices = @transform_3, window_bounds = array<i64: 1, 64>}, {pipeline_mode = #tpu.pipeline_mode<synchronous>, transform_indices = @transform_4, window_bounds = array<i64: 64, 512>}, {transform_indices = @transform_5, window_bounds = array<i64: 64, 512>}]} {
    %c0 = arith.constant 0 : index
    %c0_0 = arith.constant 0 : index
    %0 = vector.load %arg1[%c0, %c0_0] : memref<64x64xf32, #tpu.memory_space<vmem>>, vector<64x64xf32>
    %c0_1 = arith.constant 0 : index
    %c0_2 = arith.constant 0 : index
    %1 = vector.load %arg2[%c0_1, %c0_2] : memref<2x64xf32, #tpu.memory_space<vmem>>, vector<1x64xf32>
    %cst = arith.constant 7.812500e-03 : f32
    %2 = vector.broadcast %cst : f32 to vector<1x64xf32>
    %3 = arith.mulf %1, %2 : vector<1x64xf32>
    %c1 = arith.constant 1 : index
    %c0_3 = arith.constant 0 : index
    %4 = vector.load %arg2[%c1, %c0_3] : memref<2x64xf32, #tpu.memory_space<vmem>>, vector<1x64xf32>
    %cst_4 = arith.constant 7.812500e-03 : f32
    %5 = vector.broadcast %cst_4 : f32 to vector<1x64xf32>
    %6 = arith.mulf %4, %5 : vector<1x64xf32>
    %7 = arith.mulf %3, %3 : vector<1x64xf32>
    %8 = arith.subf %6, %7 : vector<1x64xf32>
    %9 = vector.broadcast %3 : vector<1x64xf32> to vector<64x64xf32>
    %10 = arith.subf %0, %9 : vector<64x64xf32>
    %cst_5 = arith.constant 9.99999974E-6 : f32
    %11 = vector.broadcast %cst_5 : f32 to vector<1x64xf32>
    %12 = arith.addf %8, %11 : vector<1x64xf32>
    %13 = math.rsqrt %12 : vector<1x64xf32>
    %14 = vector.broadcast %13 : vector<1x64xf32> to vector<64x64xf32>
    %15 = arith.mulf %10, %14 : vector<64x64xf32>
    %c0_6 = arith.constant 0 : index
    %c0_7 = arith.constant 0 : index
    %16 = vector.load %arg3[%c0_6, %c0_7] : memref<1x64xf32, #tpu.memory_space<vmem>>, vector<1x64xf32>
    %17 = vector.broadcast %16 : vector<1x64xf32> to vector<64x64xf32>
    %18 = arith.mulf %15, %17 : vector<64x64xf32>
    %c0_8 = arith.constant 0 : index
    %c0_9 = arith.constant 0 : index
    %19 = vector.load %arg4[%c0_8, %c0_9] : memref<1x64xf32, #tpu.memory_space<vmem>>, vector<1x64xf32>
    %20 = vector.broadcast %19 : vector<1x64xf32> to vector<64x64xf32>
    %21 = arith.addf %18, %20 : vector<64x64xf32>
    %cst_10 = arith.constant 0.000000e+00 : f32
    %22 = vector.broadcast %cst_10 : f32 to vector<64x64xf32>
    %23 = arith.maximumf %21, %22 : vector<64x64xf32>
    %24 = arith.truncf %23 : vector<64x64xf32> to vector<64x64xbf16>
    %c0_11 = arith.constant 0 : index
    %c0_12 = arith.constant 0 : index
    %25 = vector.load %arg5[%c0_11, %c0_12] : memref<64x512xbf16, #tpu.memory_space<vmem>>, vector<64x512xbf16>
    %cst_13 = arith.constant dense<0.000000e+00> : vector<64x512xf32>
    %26 = tpu.matmul %24, %25, %cst_13 {dimension_numbers = #tpu.dot_dimension_numbers<[1], [0], [0], [1], [0, 0, 1, 1], [], []>} : vector<64x64xbf16>, vector<64x512xbf16>, vector<64x512xf32> -> vector<64x512xf32>
    %c0_14 = arith.constant 0 : index
    %c0_15 = arith.constant 0 : index
    %27 = vector.load %arg6[%c0_14, %c0_15] : memref<64x512xf32, #tpu.memory_space<vmem>>, vector<64x512xf32>
    tpu.vector_store %arg6[%c0_14, %c0_15], %26 {strides = array<i32>} : memref<64x512xf32, #tpu.memory_space<vmem>>, vector<64x512xf32>,
    return
  }
  func.func @transform_0(%arg0: i32) -> (i32, i32) {
    %c0_i32 = arith.constant 0 : i32
    %c0_i32_0 = arith.constant 0 : i32
    return %arg0, %c0_i32 : i32, i32
  }
  func.func @transform_1(%arg0: i32) -> (i32, i32) {
    %c0_i32 = arith.constant 0 : i32
    %c0_i32_0 = arith.constant 0 : i32
    %c0_i32_1 = arith.constant 0 : i32
    return %c0_i32, %c0_i32_0 : i32, i32
  }
  func.func @transform_2(%arg0: i32) -> (i32, i32) {
    %c0_i32 = arith.constant 0 : i32
    %c0_i32_0 = arith.constant 0 : i32
    %c0_i32_1 = arith.constant 0 : i32
    return %c0_i32, %c0_i32_0 : i32, i32
  }
  func.func @transform_3(%arg0: i32) -> (i32, i32) {
    %c0_i32 = arith.constant 0 : i32
    %c0_i32_0 = arith.constant 0 : i32
    %c0_i32_1 = arith.constant 0 : i32
    return %c0_i32, %c0_i32_0 : i32, i32
  }
  func.func @transform_4(%arg0: i32) -> (i32, i32) {
    %c0_i32 = arith.constant 0 : i32
    %c0_i32_0 = arith.constant 0 : i32
    %c0_i32_1 = arith.constant 0 : i32
    return %c0_i32, %c0_i32_0 : i32, i32
  }
  func.func @transform_5(%arg0: i32) -> (i32, i32) {
    %c0_i32 = arith.constant 0 : i32
    %c0_i32_0 = arith.constant 0 : i32
    return %arg0, %c0_i32 : i32, i32
  }
}

module attributes {stable_mosaic.version = 11 : i64} {
  func.func @_bn_stats_kernel(%arg0: i32, %arg1: memref<256x32xf32, #tpu.memory_space<vmem>>, %arg2: memref<2x32xf32, #tpu.memory_space<vmem>>) attributes {dimension_semantics = [#tpu.dimension_semantics<arbitrary>], iteration_bounds = array<i64: 2>, scalar_prefetch = 0 : i64, scratch_operands = 0 : i64, tpu.core_type = #tpu.core_type<tc>, window_params = [{transform_indices = @transform_0, window_bounds = array<i64: 256, 32>}, {pipeline_mode = #tpu.pipeline_mode<synchronous>, transform_indices = @transform_1, window_bounds = array<i64: 2, 32>}]} {
    %c0_i32 = arith.constant 0 : i32
    %0 = arith.cmpi eq, %arg0, %c0_i32 : i32
    %1 = arith.extui %0 : i1 to i32
    %c0_i32_0 = arith.constant 0 : i32
    %2 = arith.cmpi ne, %1, %c0_i32_0 : i32
    scf.if %2 {
      %cst_7 = arith.constant 0.000000e+00 : f32
      %13 = vector.broadcast %cst_7 : f32 to vector<2x32xf32>
      %c0_8 = arith.constant 0 : index
      %c0_9 = arith.constant 0 : index
      %14 = vector.load %arg2[%c0_8, %c0_9] : memref<2x32xf32, #tpu.memory_space<vmem>>, vector<2x32xf32>
      tpu.vector_store %arg2[%c0_8, %c0_9], %13 {strides = array<i32>} : memref<2x32xf32, #tpu.memory_space<vmem>>, vector<2x32xf32>,
    } else {
    }
    %c0 = arith.constant 0 : index
    %c0_1 = arith.constant 0 : index
    %3 = vector.load %arg1[%c0, %c0_1] : memref<256x32xf32, #tpu.memory_space<vmem>>, vector<256x32xf32>
    %cst = arith.constant dense<0.000000e+00> : vector<32xf32>
    %4 = vector.multi_reduction <add>, %3, %cst [0] : vector<256x32xf32> to vector<32xf32>
    %5 = vector.shape_cast %4 : vector<32xf32> to vector<1x32xf32>
    %6 = arith.mulf %3, %3 : vector<256x32xf32>
    %cst_2 = arith.constant dense<0.000000e+00> : vector<32xf32>
    %7 = vector.multi_reduction <add>, %6, %cst_2 [0] : vector<256x32xf32> to vector<32xf32>
    %8 = vector.shape_cast %7 : vector<32xf32> to vector<1x32xf32>
    %c0_3 = arith.constant 0 : index
    %c0_4 = arith.constant 0 : index
    %9 = vector.load %arg2[%c0_3, %c0_4] : memref<2x32xf32, #tpu.memory_space<vmem>>, vector<2x32xf32>
    %10 = tpu.concatenate %5, %8 in 0 : vector<1x32xf32>, vector<1x32xf32> -> vector<2x32xf32>
    %11 = arith.addf %9, %10 : vector<2x32xf32>
    %c0_5 = arith.constant 0 : index
    %c0_6 = arith.constant 0 : index
    %12 = vector.load %arg2[%c0_5, %c0_6] : memref<2x32xf32, #tpu.memory_space<vmem>>, vector<2x32xf32>
    tpu.vector_store %arg2[%c0_5, %c0_6], %11 {strides = array<i32>} : memref<2x32xf32, #tpu.memory_space<vmem>>, vector<2x32xf32>,
    return
  }
  func.func @transform_0(%arg0: i32) -> (i32, i32) {
    %c0_i32 = arith.constant 0 : i32
    %c0_i32_0 = arith.constant 0 : i32
    return %arg0, %c0_i32 : i32, i32
  }
  func.func @transform_1(%arg0: i32) -> (i32, i32) {
    %c0_i32 = arith.constant 0 : i32
    %c0_i32_0 = arith.constant 0 : i32
    %c0_i32_1 = arith.constant 0 : i32
    return %c0_i32, %c0_i32_0 : i32, i32
  }
}

module attributes {stable_mosaic.version = 11 : i64} {
  func.func @_bn_relu_gemm_kernel(%arg0: i32, %arg1: memref<256x32xf32, #tpu.memory_space<vmem>>, %arg2: memref<2x32xf32, #tpu.memory_space<vmem>>, %arg3: memref<1x32xf32, #tpu.memory_space<vmem>>, %arg4: memref<1x32xf32, #tpu.memory_space<vmem>>, %arg5: memref<32x256xbf16, #tpu.memory_space<vmem>>, %arg6: memref<256x256xf32, #tpu.memory_space<vmem>>) attributes {dimension_semantics = [#tpu.dimension_semantics<parallel>], iteration_bounds = array<i64: 2>, scalar_prefetch = 0 : i64, scratch_operands = 0 : i64, tpu.core_type = #tpu.core_type<tc>, window_params = [{transform_indices = @transform_0, window_bounds = array<i64: 256, 32>}, {pipeline_mode = #tpu.pipeline_mode<synchronous>, transform_indices = @transform_1, window_bounds = array<i64: 2, 32>}, {pipeline_mode = #tpu.pipeline_mode<synchronous>, transform_indices = @transform_2, window_bounds = array<i64: 1, 32>}, {pipeline_mode = #tpu.pipeline_mode<synchronous>, transform_indices = @transform_3, window_bounds = array<i64: 1, 32>}, {pipeline_mode = #tpu.pipeline_mode<synchronous>, transform_indices = @transform_4, window_bounds = array<i64: 32, 256>}, {transform_indices = @transform_5, window_bounds = array<i64: 256, 256>}]} {
    %c0 = arith.constant 0 : index
    %c0_0 = arith.constant 0 : index
    %0 = vector.load %arg1[%c0, %c0_0] : memref<256x32xf32, #tpu.memory_space<vmem>>, vector<256x32xf32>
    %c0_1 = arith.constant 0 : index
    %c0_2 = arith.constant 0 : index
    %1 = vector.load %arg2[%c0_1, %c0_2] : memref<2x32xf32, #tpu.memory_space<vmem>>, vector<1x32xf32>
    %cst = arith.constant 0.001953125 : f32
    %2 = vector.broadcast %cst : f32 to vector<1x32xf32>
    %3 = arith.mulf %1, %2 : vector<1x32xf32>
    %c1 = arith.constant 1 : index
    %c0_3 = arith.constant 0 : index
    %4 = vector.load %arg2[%c1, %c0_3] : memref<2x32xf32, #tpu.memory_space<vmem>>, vector<1x32xf32>
    %cst_4 = arith.constant 0.001953125 : f32
    %5 = vector.broadcast %cst_4 : f32 to vector<1x32xf32>
    %6 = arith.mulf %4, %5 : vector<1x32xf32>
    %7 = arith.mulf %3, %3 : vector<1x32xf32>
    %8 = arith.subf %6, %7 : vector<1x32xf32>
    %9 = vector.broadcast %3 : vector<1x32xf32> to vector<256x32xf32>
    %10 = arith.subf %0, %9 : vector<256x32xf32>
    %cst_5 = arith.constant 9.99999974E-6 : f32
    %11 = vector.broadcast %cst_5 : f32 to vector<1x32xf32>
    %12 = arith.addf %8, %11 : vector<1x32xf32>
    %13 = math.rsqrt %12 : vector<1x32xf32>
    %14 = vector.broadcast %13 : vector<1x32xf32> to vector<256x32xf32>
    %15 = arith.mulf %10, %14 : vector<256x32xf32>
    %c0_6 = arith.constant 0 : index
    %c0_7 = arith.constant 0 : index
    %16 = vector.load %arg3[%c0_6, %c0_7] : memref<1x32xf32, #tpu.memory_space<vmem>>, vector<1x32xf32>
    %17 = vector.broadcast %16 : vector<1x32xf32> to vector<256x32xf32>
    %18 = arith.mulf %15, %17 : vector<256x32xf32>
    %c0_8 = arith.constant 0 : index
    %c0_9 = arith.constant 0 : index
    %19 = vector.load %arg4[%c0_8, %c0_9] : memref<1x32xf32, #tpu.memory_space<vmem>>, vector<1x32xf32>
    %20 = vector.broadcast %19 : vector<1x32xf32> to vector<256x32xf32>
    %21 = arith.addf %18, %20 : vector<256x32xf32>
    %cst_10 = arith.constant 0.000000e+00 : f32
    %22 = vector.broadcast %cst_10 : f32 to vector<256x32xf32>
    %23 = arith.maximumf %21, %22 : vector<256x32xf32>
    %24 = arith.truncf %23 : vector<256x32xf32> to vector<256x32xbf16>
    %c0_11 = arith.constant 0 : index
    %c0_12 = arith.constant 0 : index
    %25 = vector.load %arg5[%c0_11, %c0_12] : memref<32x256xbf16, #tpu.memory_space<vmem>>, vector<32x256xbf16>
    %cst_13 = arith.constant dense<0.000000e+00> : vector<256x256xf32>
    %26 = tpu.matmul %24, %25, %cst_13 {dimension_numbers = #tpu.dot_dimension_numbers<[1], [0], [0], [1], [0, 0, 1, 1], [], []>} : vector<256x32xbf16>, vector<32x256xbf16>, vector<256x256xf32> -> vector<256x256xf32>
    %c0_14 = arith.constant 0 : index
    %c0_15 = arith.constant 0 : index
    %27 = vector.load %arg6[%c0_14, %c0_15] : memref<256x256xf32, #tpu.memory_space<vmem>>, vector<256x256xf32>
    tpu.vector_store %arg6[%c0_14, %c0_15], %26 {strides = array<i32>} : memref<256x256xf32, #tpu.memory_space<vmem>>, vector<256x256xf32>,
    return
  }
  func.func @transform_0(%arg0: i32) -> (i32, i32) {
    %c0_i32 = arith.constant 0 : i32
    %c0_i32_0 = arith.constant 0 : i32
    return %arg0, %c0_i32 : i32, i32
  }
  func.func @transform_1(%arg0: i32) -> (i32, i32) {
    %c0_i32 = arith.constant 0 : i32
    %c0_i32_0 = arith.constant 0 : i32
    %c0_i32_1 = arith.constant 0 : i32
    return %c0_i32, %c0_i32_0 : i32, i32
  }
  func.func @transform_2(%arg0: i32) -> (i32, i32) {
    %c0_i32 = arith.constant 0 : i32
    %c0_i32_0 = arith.constant 0 : i32
    %c0_i32_1 = arith.constant 0 : i32
    return %c0_i32, %c0_i32_0 : i32, i32
  }
  func.func @transform_3(%arg0: i32) -> (i32, i32) {
    %c0_i32 = arith.constant 0 : i32
    %c0_i32_0 = arith.constant 0 : i32
    %c0_i32_1 = arith.constant 0 : i32
    return %c0_i32, %c0_i32_0 : i32, i32
  }
  func.func @transform_4(%arg0: i32) -> (i32, i32) {
    %c0_i32 = arith.constant 0 : i32
    %c0_i32_0 = arith.constant 0 : i32
    %c0_i32_1 = arith.constant 0 : i32
    return %c0_i32, %c0_i32_0 : i32, i32
  }
  func.func @transform_5(%arg0: i32) -> (i32, i32) {
    %c0_i32 = arith.constant 0 : i32
    %c0_i32_0 = arith.constant 0 : i32
    return %arg0, %c0_i32 : i32, i32
  }
}

module attributes {stable_mosaic.version = 11 : i64} {
  func.func @_bn_stats_kernel(%arg0: i32, %arg1: memref<1024x16xf32, #tpu.memory_space<vmem>>, %arg2: memref<2x16xf32, #tpu.memory_space<vmem>>) attributes {dimension_semantics = [#tpu.dimension_semantics<arbitrary>], iteration_bounds = array<i64: 2>, scalar_prefetch = 0 : i64, scratch_operands = 0 : i64, tpu.core_type = #tpu.core_type<tc>, window_params = [{transform_indices = @transform_0, window_bounds = array<i64: 1024, 16>}, {pipeline_mode = #tpu.pipeline_mode<synchronous>, transform_indices = @transform_1, window_bounds = array<i64: 2, 16>}]} {
    %c0_i32 = arith.constant 0 : i32
    %0 = arith.cmpi eq, %arg0, %c0_i32 : i32
    %1 = arith.extui %0 : i1 to i32
    %c0_i32_0 = arith.constant 0 : i32
    %2 = arith.cmpi ne, %1, %c0_i32_0 : i32
    scf.if %2 {
      %cst_7 = arith.constant 0.000000e+00 : f32
      %13 = vector.broadcast %cst_7 : f32 to vector<2x16xf32>
      %c0_8 = arith.constant 0 : index
      %c0_9 = arith.constant 0 : index
      %14 = vector.load %arg2[%c0_8, %c0_9] : memref<2x16xf32, #tpu.memory_space<vmem>>, vector<2x16xf32>
      tpu.vector_store %arg2[%c0_8, %c0_9], %13 {strides = array<i32>} : memref<2x16xf32, #tpu.memory_space<vmem>>, vector<2x16xf32>,
    } else {
    }
    %c0 = arith.constant 0 : index
    %c0_1 = arith.constant 0 : index
    %3 = vector.load %arg1[%c0, %c0_1] : memref<1024x16xf32, #tpu.memory_space<vmem>>, vector<1024x16xf32>
    %cst = arith.constant dense<0.000000e+00> : vector<16xf32>
    %4 = vector.multi_reduction <add>, %3, %cst [0] : vector<1024x16xf32> to vector<16xf32>
    %5 = vector.shape_cast %4 : vector<16xf32> to vector<1x16xf32>
    %6 = arith.mulf %3, %3 : vector<1024x16xf32>
    %cst_2 = arith.constant dense<0.000000e+00> : vector<16xf32>
    %7 = vector.multi_reduction <add>, %6, %cst_2 [0] : vector<1024x16xf32> to vector<16xf32>
    %8 = vector.shape_cast %7 : vector<16xf32> to vector<1x16xf32>
    %c0_3 = arith.constant 0 : index
    %c0_4 = arith.constant 0 : index
    %9 = vector.load %arg2[%c0_3, %c0_4] : memref<2x16xf32, #tpu.memory_space<vmem>>, vector<2x16xf32>
    %10 = tpu.concatenate %5, %8 in 0 : vector<1x16xf32>, vector<1x16xf32> -> vector<2x16xf32>
    %11 = arith.addf %9, %10 : vector<2x16xf32>
    %c0_5 = arith.constant 0 : index
    %c0_6 = arith.constant 0 : index
    %12 = vector.load %arg2[%c0_5, %c0_6] : memref<2x16xf32, #tpu.memory_space<vmem>>, vector<2x16xf32>
    tpu.vector_store %arg2[%c0_5, %c0_6], %11 {strides = array<i32>} : memref<2x16xf32, #tpu.memory_space<vmem>>, vector<2x16xf32>,
    return
  }
  func.func @transform_0(%arg0: i32) -> (i32, i32) {
    %c0_i32 = arith.constant 0 : i32
    %c0_i32_0 = arith.constant 0 : i32
    return %arg0, %c0_i32 : i32, i32
  }
  func.func @transform_1(%arg0: i32) -> (i32, i32) {
    %c0_i32 = arith.constant 0 : i32
    %c0_i32_0 = arith.constant 0 : i32
    %c0_i32_1 = arith.constant 0 : i32
    return %c0_i32, %c0_i32_0 : i32, i32
  }
}

module attributes {stable_mosaic.version = 11 : i64} {
  func.func @_bn_relu_gemm_kernel(%arg0: i32, %arg1: memref<1024x16xf32, #tpu.memory_space<vmem>>, %arg2: memref<2x16xf32, #tpu.memory_space<vmem>>, %arg3: memref<1x16xf32, #tpu.memory_space<vmem>>, %arg4: memref<1x16xf32, #tpu.memory_space<vmem>>, %arg5: memref<16x128xbf16, #tpu.memory_space<vmem>>, %arg6: memref<1024x128xf32, #tpu.memory_space<vmem>>) attributes {dimension_semantics = [#tpu.dimension_semantics<parallel>], iteration_bounds = array<i64: 2>, scalar_prefetch = 0 : i64, scratch_operands = 0 : i64, tpu.core_type = #tpu.core_type<tc>, window_params = [{transform_indices = @transform_0, window_bounds = array<i64: 1024, 16>}, {pipeline_mode = #tpu.pipeline_mode<synchronous>, transform_indices = @transform_1, window_bounds = array<i64: 2, 16>}, {pipeline_mode = #tpu.pipeline_mode<synchronous>, transform_indices = @transform_2, window_bounds = array<i64: 1, 16>}, {pipeline_mode = #tpu.pipeline_mode<synchronous>, transform_indices = @transform_3, window_bounds = array<i64: 1, 16>}, {pipeline_mode = #tpu.pipeline_mode<synchronous>, transform_indices = @transform_4, window_bounds = array<i64: 16, 128>}, {transform_indices = @transform_5, window_bounds = array<i64: 1024, 128>}]} {
    %c0 = arith.constant 0 : index
    %c0_0 = arith.constant 0 : index
    %0 = vector.load %arg1[%c0, %c0_0] : memref<1024x16xf32, #tpu.memory_space<vmem>>, vector<1024x16xf32>
    %c0_1 = arith.constant 0 : index
    %c0_2 = arith.constant 0 : index
    %1 = vector.load %arg2[%c0_1, %c0_2] : memref<2x16xf32, #tpu.memory_space<vmem>>, vector<1x16xf32>
    %cst = arith.constant 4.8828125E-4 : f32
    %2 = vector.broadcast %cst : f32 to vector<1x16xf32>
    %3 = arith.mulf %1, %2 : vector<1x16xf32>
    %c1 = arith.constant 1 : index
    %c0_3 = arith.constant 0 : index
    %4 = vector.load %arg2[%c1, %c0_3] : memref<2x16xf32, #tpu.memory_space<vmem>>, vector<1x16xf32>
    %cst_4 = arith.constant 4.8828125E-4 : f32
    %5 = vector.broadcast %cst_4 : f32 to vector<1x16xf32>
    %6 = arith.mulf %4, %5 : vector<1x16xf32>
    %7 = arith.mulf %3, %3 : vector<1x16xf32>
    %8 = arith.subf %6, %7 : vector<1x16xf32>
    %9 = vector.broadcast %3 : vector<1x16xf32> to vector<1024x16xf32>
    %10 = arith.subf %0, %9 : vector<1024x16xf32>
    %cst_5 = arith.constant 9.99999974E-6 : f32
    %11 = vector.broadcast %cst_5 : f32 to vector<1x16xf32>
    %12 = arith.addf %8, %11 : vector<1x16xf32>
    %13 = math.rsqrt %12 : vector<1x16xf32>
    %14 = vector.broadcast %13 : vector<1x16xf32> to vector<1024x16xf32>
    %15 = arith.mulf %10, %14 : vector<1024x16xf32>
    %c0_6 = arith.constant 0 : index
    %c0_7 = arith.constant 0 : index
    %16 = vector.load %arg3[%c0_6, %c0_7] : memref<1x16xf32, #tpu.memory_space<vmem>>, vector<1x16xf32>
    %17 = vector.broadcast %16 : vector<1x16xf32> to vector<1024x16xf32>
    %18 = arith.mulf %15, %17 : vector<1024x16xf32>
    %c0_8 = arith.constant 0 : index
    %c0_9 = arith.constant 0 : index
    %19 = vector.load %arg4[%c0_8, %c0_9] : memref<1x16xf32, #tpu.memory_space<vmem>>, vector<1x16xf32>
    %20 = vector.broadcast %19 : vector<1x16xf32> to vector<1024x16xf32>
    %21 = arith.addf %18, %20 : vector<1024x16xf32>
    %cst_10 = arith.constant 0.000000e+00 : f32
    %22 = vector.broadcast %cst_10 : f32 to vector<1024x16xf32>
    %23 = arith.maximumf %21, %22 : vector<1024x16xf32>
    %24 = arith.truncf %23 : vector<1024x16xf32> to vector<1024x16xbf16>
    %c0_11 = arith.constant 0 : index
    %c0_12 = arith.constant 0 : index
    %25 = vector.load %arg5[%c0_11, %c0_12] : memref<16x128xbf16, #tpu.memory_space<vmem>>, vector<16x128xbf16>
    %cst_13 = arith.constant dense<0.000000e+00> : vector<1024x128xf32>
    %26 = tpu.matmul %24, %25, %cst_13 {dimension_numbers = #tpu.dot_dimension_numbers<[1], [0], [0], [1], [0, 0, 1, 1], [], []>} : vector<1024x16xbf16>, vector<16x128xbf16>, vector<1024x128xf32> -> vector<1024x128xf32>
    %c0_14 = arith.constant 0 : index
    %c0_15 = arith.constant 0 : index
    %27 = vector.load %arg6[%c0_14, %c0_15] : memref<1024x128xf32, #tpu.memory_space<vmem>>, vector<1024x128xf32>
    tpu.vector_store %arg6[%c0_14, %c0_15], %26 {strides = array<i32>} : memref<1024x128xf32, #tpu.memory_space<vmem>>, vector<1024x128xf32>,
    return
  }
  func.func @transform_0(%arg0: i32) -> (i32, i32) {
    %c0_i32 = arith.constant 0 : i32
    %c0_i32_0 = arith.constant 0 : i32
    return %arg0, %c0_i32 : i32, i32
  }
  func.func @transform_1(%arg0: i32) -> (i32, i32) {
    %c0_i32 = arith.constant 0 : i32
    %c0_i32_0 = arith.constant 0 : i32
    %c0_i32_1 = arith.constant 0 : i32
    return %c0_i32, %c0_i32_0 : i32, i32
  }
  func.func @transform_2(%arg0: i32) -> (i32, i32) {
    %c0_i32 = arith.constant 0 : i32
    %c0_i32_0 = arith.constant 0 : i32
    %c0_i32_1 = arith.constant 0 : i32
    return %c0_i32, %c0_i32_0 : i32, i32
  }
  func.func @transform_3(%arg0: i32) -> (i32, i32) {
    %c0_i32 = arith.constant 0 : i32
    %c0_i32_0 = arith.constant 0 : i32
    %c0_i32_1 = arith.constant 0 : i32
    return %c0_i32, %c0_i32_0 : i32, i32
  }
  func.func @transform_4(%arg0: i32) -> (i32, i32) {
    %c0_i32 = arith.constant 0 : i32
    %c0_i32_0 = arith.constant 0 : i32
    %c0_i32_1 = arith.constant 0 : i32
    return %c0_i32, %c0_i32_0 : i32, i32
  }
  func.func @transform_5(%arg0: i32) -> (i32, i32) {
    %c0_i32 = arith.constant 0 : i32
    %c0_i32_0 = arith.constant 0 : i32
    return %arg0, %c0_i32 : i32, i32
  }
}

module attributes {stable_mosaic.version = 11 : i64} {
  func.func @_bias_tanh_kernel(%arg0: i32, %arg1: memref<64x512xf32, #tpu.memory_space<vmem>>, %arg2: memref<1x512xf32, #tpu.memory_space<vmem>>, %arg3: memref<64x512xf32, #tpu.memory_space<vmem>>) attributes {dimension_semantics = [#tpu.dimension_semantics<parallel>], iteration_bounds = array<i64: 2>, scalar_prefetch = 0 : i64, scratch_operands = 0 : i64, tpu.core_type = #tpu.core_type<tc>, window_params = [{transform_indices = @transform_0, window_bounds = array<i64: 64, 512>}, {pipeline_mode = #tpu.pipeline_mode<synchronous>, transform_indices = @transform_1, window_bounds = array<i64: 1, 512>}, {transform_indices = @transform_2, window_bounds = array<i64: 64, 512>}]} {
    %c0 = arith.constant 0 : index
    %c0_0 = arith.constant 0 : index
    %0 = vector.load %arg1[%c0, %c0_0] : memref<64x512xf32, #tpu.memory_space<vmem>>, vector<64x512xf32>
    %c0_1 = arith.constant 0 : index
    %c0_2 = arith.constant 0 : index
    %1 = vector.load %arg2[%c0_1, %c0_2] : memref<1x512xf32, #tpu.memory_space<vmem>>, vector<1x512xf32>
    %2 = vector.broadcast %1 : vector<1x512xf32> to vector<64x512xf32>
    %3 = arith.addf %0, %2 : vector<64x512xf32>
    %4 = math.tanh %3 : vector<64x512xf32>
    %c0_3 = arith.constant 0 : index
    %c0_4 = arith.constant 0 : index
    %5 = vector.load %arg3[%c0_3, %c0_4] : memref<64x512xf32, #tpu.memory_space<vmem>>, vector<64x512xf32>
    tpu.vector_store %arg3[%c0_3, %c0_4], %4 {strides = array<i32>} : memref<64x512xf32, #tpu.memory_space<vmem>>, vector<64x512xf32>,
    return
  }
  func.func @transform_0(%arg0: i32) -> (i32, i32) {
    %c0_i32 = arith.constant 0 : i32
    %c0_i32_0 = arith.constant 0 : i32
    return %arg0, %c0_i32 : i32, i32
  }
  func.func @transform_1(%arg0: i32) -> (i32, i32) {
    %c0_i32 = arith.constant 0 : i32
    %c0_i32_0 = arith.constant 0 : i32
    %c0_i32_1 = arith.constant 0 : i32
    return %c0_i32, %c0_i32_0 : i32, i32
  }
  func.func @transform_2(%arg0: i32) -> (i32, i32) {
    %c0_i32 = arith.constant 0 : i32
    %c0_i32_0 = arith.constant 0 : i32
    return %arg0, %c0_i32 : i32, i32
  }
}

</mosaic_0001>

<bundles_post_ra>
// kernel: generator_forward.11
= control target key start
LH: loop header
LB: loop body
LE: loop exit
PB: predicated region body
PF: predicated region fallthrough
CT: control target
= control target key end

     0   :  { %v49_v0 = vmov 0.0   ;;  %vm40_vm0 = vcmask 1040384   ;;  %s81_s1 = inlined_call_operand.vmem [shape: f32[2,128], index: 1, kind: output, shape index: {}]   ;;  %s82_s0 = inlined_call_operand.vmem [shape: f32[32,128], index: 0, kind: input, shape index: {}]  }
   0x1   :  { %12 = vst [vmem:[%s81_s1] sm:$0x3] %v49_v0  ;;  %v13_v1 = vld [vmem:[%s82_s0] sm:$0xff]  ;;  %v14_v2 = vld [vmem:[%s82_s0 + $0x8] sm:$0xff]  ;;  %v15_v3 = vld [vmem:[%s82_s0 + $0x10] sm:$0xff] }
   0x2   :  { %v16_v4 = vld [vmem:[%s82_s0 + $0x18] sm:$0xff]  ;;  %v17_v5 = vadd.f32 %v14_v2, %v13_v1  ;;  %v26_v6 = vmul.f32 %v13_v1, %v13_v1  ;;  %v27_v7 = vmul.f32 %v14_v2, %v14_v2  ;;  %v28_v8 = vmul.f32 %v15_v3, %v15_v3 }
   0x3   :  { %v29_v10 = vmul.f32 %v16_v4, %v16_v4 }
   0x4   :  { %v18_v9 = vadd.f32 %v17_v5, %v15_v3  ;;  %v30_v11 = vadd.f32 %v27_v7, %v26_v6 }
   0x6   :  { %v19_v12 = vadd.f32 %v18_v9, %v16_v4  ;;  %v31_v13 = vadd.f32 %v30_v11, %v28_v8 }
   0x8   :  { %v20_v14 = vrot.slane %v19_v12, 4  ;;  %v32_v15 = vadd.f32 %v31_v13, %v29_v10  ;;  %v39_v27 = vld [vmem:[%s81_s1] sm:$0x3] }
   0xa   :  { %v21_v16 = vadd.f32 %v20_v14, %v19_v12  ;;  %v33_v17 = vrot.slane %v32_v15, 4 }
   0xc   :  { %v22_v18 = vrot.slane %v21_v16, 2  ;;  %v34_v19 = vadd.f32 %v33_v17, %v32_v15 }
   0xe   :  { %v23_v20 = vadd.f32 %v22_v18, %v21_v16  ;;  %v35_v21 = vrot.slane %v34_v19, 2 }
  0x10   :  { %v24_v22 = vrot.slane %v23_v20, 1  ;;  %v36_v23 = vadd.f32 %v35_v21, %v34_v19 }
  0x12   :  { %v25_v24 = vadd.f32 %v24_v22, %v23_v20  ;;  %v37_v25 = vrot.slane %v36_v23, 1 }
  0x14   :  { %v38_v26 = vadd.f32 %v37_v25, %v36_v23 }
  0x16   :  { %v41_v28 = vsel %vm40_vm0, %v25_v24, %v38_v26 }
  0x17   :  { %v42_v29 = vadd.f32 %v41_v28, %v39_v27 }
  0x19   :  { %43 = vst [vmem:[%s81_s1] sm:$0x3] %v42_v29 }

// kernel: generator_forward.10
= control target key start
LH: loop header
LB: loop body
LE: loop exit
PB: predicated region body
PF: predicated region fallthrough
CT: control target
= control target key end

     0   :  { %v675_v3 = vmov 0   ;;  %vm205_vm0 = vcmask 261120   ;;  %s829_s1 = inlined_call_operand.vmem [shape: bf16[32,2048], index: 1, kind: input, shape index: {}]   ;;  %s830_s0 = inlined_call_operand.vmem [shape: bf16[2,32], index: 0, kind: input, shape index: {}]   ;;  %s831_s2 = inlined_call_operand.vmem [shape: f32[2,2048], index: 2, kind: output, shape index: {}]  }
   0x1   :  { %v13_v0 = vld [vmem:[%s829_s1] sm:$0xff]  ;;  %v14_v2 = vld [vmem:[%s829_s1 + $0x8] sm:$0xff]  ;;  %241 = vmatprep.mubr.bf16.mxu0 %v675_v3  ;;  %282 = vmatprep.mubr.bf16.mxu1 %v675_v3  ;;  %v15_v15 = vld [vmem:[%s829_s1 + $0x10] sm:$0xff] }
   0x2   :  { %v21_v1 = vld [vmem:[%s829_s1 + $0x40] sm:$0xff]  ;;  %v22_v5 = vld [vmem:[%s829_s1 + $0x48] sm:$0xff]  ;;  %v23_v16 = vld [vmem:[%s829_s1 + $0x50] sm:$0xff] }
   0x3   :  { %v634_v4 = vcombine.high %v13_v0, %v21_v1  ;;  %v633_v6 = vcombine.low %v13_v0, %v21_v1  ;;  %v29_v7 = vld [vmem:[%s829_s1 + $0x80] sm:$0xff]  ;;  %v636_v9 = vcombine.high %v14_v2, %v22_v5  ;;  %v635_v10 = vcombine.low %v14_v2, %v22_v5  ;;  %v30_v12 = vld [vmem:[%s829_s1 + $0x88] sm:$0xff]  ;;  %v16_v17 = vld [vmem:[%s829_s1 + $0x18] sm:$0xff] }
   0x4   :  { %v37_v8 = vld [vmem:[%s829_s1 + $0xc0] sm:$0xff]  ;;  %v38_v13 = vld [vmem:[%s829_s1 + $0xc8] sm:$0xff]  ;;  %v24_v19 = vld [vmem:[%s829_s1 + $0x58] sm:$0xff]  ;;  %v638_v21 = vcombine.high %v15_v15, %v23_v16  ;;  %v637_v28 = vcombine.low %v15_v15, %v23_v16  ;;  %v676_v2 = vmov 1983009808   ;;  %v558_v5 = vlaneseq }
   0x5   :  { %v650_v11 = vcombine.high %v29_v7, %v37_v8  ;;  %209 = vmatprep.subr.bf16.mxu0 %v634_v4  ;;  %v652_v14 = vcombine.high %v30_v12, %v38_v13  ;;  %250 = vmatprep.subr.bf16.mxu1 %v636_v9  ;;  %v649_v18 = vcombine.low %v29_v7, %v37_v8  ;;  %v31_v23 = vld [vmem:[%s829_s1 + $0x90] sm:$0xff]  ;;  %v32_v25 = vld [vmem:[%s829_s1 + $0x98] sm:$0xff]  ;;  %v745_v27 = vld [vmem:[%s830_s0] sm:$0x1]  ;;  %v556_v4 = vunpack.c.l.s4 %v676_v2 }
   0x6   :  { %210 = vmatpush1.bf16.msra.mxu0 %v633_v6  ;;  %251 = vmatpush1.bf16.msra.mxu1 %v635_v10  ;;  %v651_v20 = vcombine.low %v30_v12, %v38_v13  ;;  %v640_v22 = vcombine.high %v16_v17, %v24_v19  ;;  %v39_v24 = vld [vmem:[%s829_s1 + $0xd0] sm:$0xff]  ;;  %v40_v26 = vld [vmem:[%s829_s1 + $0xd8] sm:$0xff]  ;;  %v639_v29 = vcombine.low %v16_v17, %v24_v19  ;;  %v17_v32 = vld [vmem:[%s829_s1 + $0x20] sm:$0xff]  ;;  %v559_v7 = vshrl.u32 %v558_v5, 7 }
   0x7   :  { %211 = vmatprep.subr.bf16.mxu0 %v650_v11  ;;  %252 = vmatprep.subr.bf16.mxu1 %v652_v14  ;;  %v654_v30 = vcombine.high %v31_v23, %v39_v24  ;;  %v656_v31 = vcombine.high %v32_v25, %v40_v26  ;;  %v25_v33 = vld [vmem:[%s829_s1 + $0x60] sm:$0xff]  ;;  %v18_v34 = vld [vmem:[%s829_s1 + $0x28] sm:$0xff]  ;;  %v653_v36 = vcombine.low %v31_v23, %v39_v24  ;;  %v19_v48 = vld [vmem:[%s829_s1 + $0x30] sm:$0xff]  ;;  %v557_v6 = vunpack.c.0.s8 %v556_v4 }
   0x8   :  { %v26_v35 = vld [vmem:[%s829_s1 + $0x68] sm:$0xff]  ;;  %v655_v37 = vcombine.low %v32_v25, %v40_v26  ;;  %v642_v38 = vcombine.high %v17_v32, %v25_v33  ;;  %v33_v40 = vld [vmem:[%s829_s1 + $0xa0] sm:$0xff]  ;;  %v641_v44 = vcombine.low %v17_v32, %v25_v33  ;;  %v27_v49 = vld [vmem:[%s829_s1 + $0x70] sm:$0xff] }
   0x9   :  { %v644_v39 = vcombine.high %v18_v34, %v26_v35  ;;  %v41_v41 = vld [vmem:[%s829_s1 + $0xe0] sm:$0xff]  ;;  %v34_v42 = vld [vmem:[%s829_s1 + $0xa8] sm:$0xff]  ;;  %v643_v45 = vcombine.low %v18_v34, %v26_v35  ;;  %v20_v50 = vld [vmem:[%s829_s1 + $0x38] sm:$0xff]  ;;  %v646_v54 = vcombine.high %v19_v48, %v27_v49  ;;  %v645_v60 = vcombine.low %v19_v48, %v27_v49 }
   0xa   :  { %212 = vmatpush1.bf16.msra.mxu0 %v649_v18  ;;  %253 = vmatpush1.bf16.msra.mxu1 %v651_v20  ;;  %v42_v43 = vld [vmem:[%s829_s1 + $0xe8] sm:$0xff]  ;;  %v658_v46 = vcombine.high %v33_v40, %v41_v41  ;;  %v28_v51 = vld [vmem:[%s829_s1 + $0x78] sm:$0xff]  ;;  %v657_v52 = vcombine.low %v33_v40, %v41_v41  ;;  %v35_v56 = vld [vmem:[%s829_s1 + $0xb0] sm:$0xff]  ;;  %v560_v9 = vsub.s32 %v557_v6, %v559_v7 }
   0xb   :  { %291 = vmatprep.subr.bf16.mxu0 %v638_v21  ;;  %332 = vmatprep.subr.bf16.mxu1 %v640_v22  ;;  %v660_v47 = vcombine.high %v34_v42, %v42_v43  ;;  %v659_v53 = vcombine.low %v34_v42, %v42_v43  ;;  %v648_v55 = vcombine.high %v20_v50, %v28_v51  ;;  %v43_v57 = vld [vmem:[%s829_s1 + $0xf0] sm:$0xff]  ;;  %v36_v58 = vld [vmem:[%s829_s1 + $0xb8] sm:$0xff] }
   0xc   :  { %v44_v59 = vld [vmem:[%s829_s1 + $0xf8] sm:$0xff]  ;;  %v647_v61 = vcombine.low %v20_v50, %v28_v51  ;;  %v662_v62 = vcombine.high %v35_v56, %v43_v57  ;;  %v661_v0 = vcombine.low %v35_v56, %v43_v57 }
   0xd   :  { %665 = vmatmul.mubr.msk.bf16.vlgmr.msra.gmra.mrb[0].mxu0 %vm205_vm0, %v745_v27  ;;  %666 = vmatmul.mubr.msk.bf16.vlgmr.msra.gmra.mrb[0].mxu1 %vm205_vm0, %v745_v27  ;;  %v664_v63 = vcombine.high %v36_v58, %v44_v59  ;;  %v663_v1 = vcombine.low %v36_v58, %v44_v59 }
   0xe   :  { %292 = vmatpush1.bf16.msra.mxu0 %v637_v28  ;;  %333 = vmatpush1.bf16.msra.mxu1 %v639_v29 }
   0xf   :  { %293 = vmatprep.subr.bf16.mxu0 %v654_v30  ;;  %334 = vmatprep.subr.bf16.mxu1 %v656_v31 }
  0x10   :  { %323 = vmatprep.mubr.bf16.mxu0 %v675_v3  ;;  %364 = vmatprep.mubr.bf16.mxu1 %v675_v3 }
  0x12   :  { %294 = vmatpush1.bf16.msra.mxu0 %v653_v36  ;;  %335 = vmatpush1.bf16.msra.mxu1 %v655_v37 }
  0x13   :  { %373 = vmatprep.subr.bf16.mxu0 %v642_v38  ;;  %414 = vmatprep.subr.bf16.mxu1 %v644_v39 }
  0x15   :  { %667 = vmatmul.mubr.msk.bf16.vlgmr.msra.gmra.mrb[4].mxu0 %vm205_vm0, %v745_v27  ;;  %668 = vmatmul.mubr.msk.bf16.vlgmr.msra.gmra.mrb[4].mxu1 %vm205_vm0, %v745_v27 }
  0x16   :  { %374 = vmatpush1.bf16.msra.mxu0 %v641_v44  ;;  %415 = vmatpush1.bf16.msra.mxu1 %v643_v45 }
  0x17   :  { %375 = vmatprep.subr.bf16.mxu0 %v658_v46  ;;  %416 = vmatprep.subr.bf16.mxu1 %v660_v47 }
  0x18   :  { %405 = vmatprep.mubr.bf16.mxu0 %v675_v3  ;;  %446 = vmatprep.mubr.bf16.mxu1 %v675_v3 }
  0x1a   :  { %376 = vmatpush1.bf16.msra.mxu0 %v657_v52  ;;  %417 = vmatpush1.bf16.msra.mxu1 %v659_v53 }
  0x1b   :  { %455 = vmatprep.subr.bf16.mxu0 %v646_v54  ;;  %496 = vmatprep.subr.bf16.mxu1 %v648_v55 }
  0x1d   :  { %669 = vmatmul.mubr.msk.bf16.vlgmr.msra.gmra.mrb[8].mxu0 %vm205_vm0, %v745_v27  ;;  %670 = vmatmul.mubr.msk.bf16.vlgmr.msra.gmra.mrb[8].mxu1 %vm205_vm0, %v745_v27 }
  0x1e   :  { %456 = vmatpush1.bf16.msra.mxu0 %v645_v60  ;;  %497 = vmatpush1.bf16.msra.mxu1 %v647_v61 }
  0x1f   :  { %457 = vmatprep.subr.bf16.mxu0 %v662_v62  ;;  %498 = vmatprep.subr.bf16.mxu1 %v664_v63 }
  0x20   :  { %487 = vmatprep.mubr.bf16.mxu0 %v675_v3  ;;  %528 = vmatprep.mubr.bf16.mxu1 %v675_v3 }
  0x22   :  { %458 = vmatpush1.bf16.msra.mxu0 %v661_v0  ;;  %499 = vmatpush1.bf16.msra.mxu1 %v663_v1 }
  0x25   :  { %671 = vmatmul.mubr.msk.bf16.vlgmr.msra.gmra.mrb[12].mxu0 %vm205_vm0, %v745_v27  ;;  %672 = vmatmul.mubr.msk.bf16.vlgmr.msra.gmra.mrb[12].mxu1 %vm205_vm0, %v745_v27 }
  0xe0   :  { %v243_v8 = vpop.f32.mrb[0].mxu0  ;;  %v284_v10 = vpop.f32.mrb[0].mxu1 }
  0xe1   :  { %v245_v11 = vpop.f32.mrb[1].mxu0  ;;  %v286_v13 = vpop.f32.mrb[1].mxu1 }
  0xe2   :  { %v553_v12 = vcombine.low %v243_v8, %v245_v11  ;;  %v247_v3 = vpop.f32.mrb[2].mxu0  ;;  %v554_v14 = vcombine.low %v284_v10, %v286_v13  ;;  %v288_v15 = vpop.f32.mrb[2].mxu1 }
  0xe3   :  { %v248_v16 = vpop.f32.mrb[3].mxu0  ;;  %v289_v18 = vpop.f32.mrb[3].mxu1 }
  0xe4   :  { %v561_v17 = vrot.slane %v553_v12, %v560_v9  ;;  %v568_v19 = vrot.slane %v554_v14, %v560_v9 }
  0xe6   :  { %v569_v20 = vcombine.low %v561_v17, %v568_v19 }
  0xe8   :  { %v325_v21 = vpop.f32.mrb[4].mxu0  ;;  %625 = vst [vmem:[%s831_s2] sm:$0xff] %v569_v20  ;;  %v366_v22 = vpop.f32.mrb[4].mxu1 }
  0xe9   :  { %v327_v23 = vpop.f32.mrb[5].mxu0  ;;  %v368_v25 = vpop.f32.mrb[5].mxu1 }
  0xea   :  { %v570_v24 = vcombine.low %v325_v21, %v327_v23  ;;  %v329_v26 = vpop.f32.mrb[6].mxu0  ;;  %v571_v27 = vcombine.low %v366_v22, %v368_v25  ;;  %v370_v28 = vpop.f32.mrb[6].mxu1 }
  0xeb   :  { %v330_v29 = vpop.f32.mrb[7].mxu0  ;;  %v371_v31 = vpop.f32.mrb[7].mxu1 }
  0xec   :  { %v578_v30 = vrot.slane %v570_v24, %v560_v9  ;;  %v585_v32 = vrot.slane %v571_v27, %v560_v9 }
  0xee   :  { %v586_v33 = vcombine.low %v578_v30, %v585_v32 }
  0xf0   :  { %v407_v34 = vpop.f32.mrb[8].mxu0  ;;  %626 = vst [vmem:[%s831_s2 + $0x8] sm:$0xff] %v586_v33  ;;  %v448_v35 = vpop.f32.mrb[8].mxu1 }
  0xf1   :  { %v409_v36 = vpop.f32.mrb[9].mxu0  ;;  %v450_v38 = vpop.f32.mrb[9].mxu1 }
  0xf2   :  { %v587_v37 = vcombine.low %v407_v34, %v409_v36  ;;  %v411_v39 = vpop.f32.mrb[10].mxu0  ;;  %v588_v40 = vcombine.low %v448_v35, %v450_v38  ;;  %v452_v41 = vpop.f32.mrb[10].mxu1 }
  0xf3   :  { %v412_v42 = vpop.f32.mrb[11].mxu0  ;;  %v453_v44 = vpop.f32.mrb[11].mxu1 }
  0xf4   :  { %v595_v43 = vrot.slane %v587_v37, %v560_v9  ;;  %v602_v45 = vrot.slane %v588_v40, %v560_v9 }
  0xf6   :  { %v603_v46 = vcombine.low %v595_v43, %v602_v45 }
  0xf8   :  { %v489_v47 = vpop.f32.mrb[12].mxu0  ;;  %627 = vst [vmem:[%s831_s2 + $0x10] sm:$0xff] %v603_v46  ;;  %v530_v48 = vpop.f32.mrb[12].mxu1 }
  0xf9   :  { %v491_v49 = vpop.f32.mrb[13].mxu0  ;;  %v532_v51 = vpop.f32.mrb[13].mxu1 }
  0xfa   :  { %v604_v50 = vcombine.low %v489_v47, %v491_v49  ;;  %v493_v52 = vpop.f32.mrb[14].mxu0  ;;  %v605_v53 = vcombine.low %v530_v48, %v532_v51  ;;  %v534_v54 = vpop.f32.mrb[14].mxu1 }
  0xfb   :  { %v494_v55 = vpop.f32.mrb[15].mxu0  ;;  %v535_v57 = vpop.f32.mrb[15].mxu1 }
  0xfc   :  { %v612_v56 = vrot.slane %v604_v50, %v560_v9  ;;  %v619_v58 = vrot.slane %v605_v53, %v560_v9 }
  0xfe   :  { %v620_v59 = vcombine.low %v612_v56, %v619_v58 }
 0x100   :  { %628 = vst [vmem:[%s831_s2 + $0x18] sm:$0xff] %v620_v59 }

// kernel: generator_forward.12
= control target key start
LH: loop header
LB: loop body
LE: loop exit
PB: predicated region body
PF: predicated region fallthrough
CT: control target
= control target key end

     0   :  { %v778_v3 = vmov 0   ;;  %v31_v42 = vlaneseq  ;;  %s1145_s4 = inlined_call_operand.vmem [shape: bf16[128,1024], index: 4, kind: input, shape index: {}]   ;;  %s1146_s1 = inlined_call_operand.vmem [shape: f32[2,128], index: 1, kind: input, shape index: {}]   ;;  %s1147_s0 = inlined_call_operand.vmem [shape: f32[32,128], index: 0, kind: input, shape index: {}]   ;;  %s1148_s2 = inlined_call_operand.vmem [shape: f32[1,128], index: 2, kind: input, shape index: {}]   ;;  %s1149_s3 = inlined_call_operand.vmem [shape: f32[1,128], index: 3, kind: input, shape index: {}]   ;;  %s1150_s5 = inlined_call_operand.vmem [shape: f32[32,1024], index: 5, kind: output, shape index: {}]  }
   0x1   :  { %v77_v0 = vld [vmem:[%s1145_s4] sm:$0xff]  ;;  %v78_v2 = vld [vmem:[%s1145_s4 + $0x8] sm:$0xff]  ;;  %493 = vmatprep.mubr.bf16.mxu0 %v778_v3  ;;  %546 = vmatprep.mubr.bf16.mxu1 %v778_v3 }
   0x2   :  { %v81_v1 = vld [vmem:[%s1145_s4 + $0x20] sm:$0xff]  ;;  %v82_v5 = vld [vmem:[%s1145_s4 + $0x28] sm:$0xff]  ;;  %v32_v53 = vshrl.u32 %v31_v42, 7  ;;  %v91_v42 = vld [vmem:[%s1145_s4 + $0x70] sm:$0xff] }
   0x3   :  { %v712_v4 = vcombine.high %v77_v0, %v81_v1  ;;  %v711_v6 = vcombine.low %v77_v0, %v81_v1  ;;  %v85_v7 = vld [vmem:[%s1145_s4 + $0x40] sm:$0xff]  ;;  %v714_v9 = vcombine.high %v78_v2, %v82_v5  ;;  %v713_v10 = vcombine.low %v78_v2, %v82_v5  ;;  %v86_v12 = vld [vmem:[%s1145_s4 + $0x48] sm:$0xff] }
   0x4   :  { %v89_v8 = vld [vmem:[%s1145_s4 + $0x60] sm:$0xff]  ;;  %v90_v13 = vld [vmem:[%s1145_s4 + $0x68] sm:$0xff]  ;;  %v33_v63 = vsub.s32 0, %v32_v53 }
   0x5   :  { %v720_v11 = vcombine.high %v85_v7, %v89_v8  ;;  %v93_v14 = vld [vmem:[%s1145_s4 + $0x80] sm:$0xff]  ;;  %461 = vmatprep.subr.bf16.mxu0 %v712_v4  ;;  %v722_v15 = vcombine.high %v86_v12, %v90_v13  ;;  %v94_v17 = vld [vmem:[%s1145_s4 + $0x88] sm:$0xff]  ;;  %514 = vmatprep.subr.bf16.mxu1 %v714_v9  ;;  %v719_v19 = vcombine.low %v85_v7, %v89_v8 }
   0x6   :  { %v97_v16 = vld [vmem:[%s1145_s4 + $0xa0] sm:$0xff]  ;;  %v98_v18 = vld [vmem:[%s1145_s4 + $0xa8] sm:$0xff]  ;;  %462 = vmatpush1.bf16.msra.mxu0 %v711_v6  ;;  %515 = vmatpush1.bf16.msra.mxu1 %v713_v10  ;;  %v721_v20 = vcombine.low %v86_v12, %v90_v13  ;;  %v916_v10 = vld [vmem:[%s1145_s4 + $0x10] sm:$0xff] }
   0x7   :  { %463 = vmatprep.subr.bf16.mxu0 %v720_v11  ;;  %v728_v21 = vcombine.high %v93_v14, %v97_v16  ;;  %516 = vmatprep.subr.bf16.mxu1 %v722_v15  ;;  %v730_v22 = vcombine.high %v94_v17, %v98_v18  ;;  %v101_v23 = vld [vmem:[%s1145_s4 + $0xc0] sm:$0xff]  ;;  %v102_v25 = vld [vmem:[%s1145_s4 + $0xc8] sm:$0xff]  ;;  %v727_v27 = vcombine.low %v93_v14, %v97_v16  ;;  %v83_v11 = vld [vmem:[%s1145_s4 + $0x30] sm:$0xff] }
   0x8   :  { %v105_v24 = vld [vmem:[%s1145_s4 + $0xe0] sm:$0xff]  ;;  %v106_v26 = vld [vmem:[%s1145_s4 + $0xe8] sm:$0xff]  ;;  %v729_v28 = vcombine.low %v94_v17, %v98_v18  ;;  %v23_v15 = vld [vmem:[%s1147_s0 + $0x10] sm:$0xff] }
   0x9   :  { %v736_v29 = vcombine.high %v101_v23, %v105_v24  ;;  %v738_v30 = vcombine.high %v102_v25, %v106_v26  ;;  %v109_v31 = vld [vmem:[%s1145_s4 + $0x100] sm:$0xff]  ;;  %v110_v33 = vld [vmem:[%s1145_s4 + $0x108] sm:$0xff]  ;;  %v735_v37 = vcombine.low %v101_v23, %v105_v24  ;;  %v737_v40 = vcombine.low %v102_v25, %v106_v26  ;;  %v80_v16 = vld [vmem:[%s1145_s4 + $0x18] sm:$0xff] }
   0xa   :  { %464 = vmatpush1.bf16.msra.mxu0 %v719_v19  ;;  %517 = vmatpush1.bf16.msra.mxu1 %v721_v20  ;;  %v113_v32 = vld [vmem:[%s1145_s4 + $0x120] sm:$0xff]  ;;  %v114_v34 = vld [vmem:[%s1145_s4 + $0x128] sm:$0xff]  ;;  %v84_v17 = vld [vmem:[%s1145_s4 + $0x38] sm:$0xff] }
   0xb   :  { %465 = vmatprep.subr.bf16.mxu0 %v728_v21  ;;  %518 = vmatprep.subr.bf16.mxu1 %v730_v22  ;;  %v25_v35 = vld [vmem:[%s1146_s1] sm:$0x1]  ;;  %v27_v36 = vld [vmem:[%s1146_s1 + $0x1] sm:$0x1]  ;;  %v744_v41 = vcombine.high %v109_v31, %v113_v32  ;;  %v746_v43 = vcombine.high %v110_v33, %v114_v34  ;;  %v118_v47 = vld [vmem:[%s1145_s4 + $0x148] sm:$0xff]  ;;  %v743_v49 = vcombine.low %v109_v31, %v113_v32 }
   0xc   :  { %v26_v38 = vmul.f32 0.03125, %v25_v35  ;;  %v28_v39 = vmul.f32 0.03125, %v27_v36  ;;  %v117_v44 = vld [vmem:[%s1145_s4 + $0x140] sm:$0xff]  ;;  %v122_v48 = vld [vmem:[%s1145_s4 + $0x168] sm:$0xff]  ;;  %v745_v51 = vcombine.low %v110_v33, %v114_v34  ;;  %v24_v18 = vld [vmem:[%s1147_s0 + $0x18] sm:$0xff]  ;;  %v716_v21 = vcombine.high %v916_v10, %v83_v11 }
   0xd   :  { %v121_v45 = vld [vmem:[%s1145_s4 + $0x160] sm:$0xff]  ;;  %v754_v54 = vcombine.high %v118_v47, %v122_v48  ;;  %v126_v58 = vld [vmem:[%s1145_s4 + $0x188] sm:$0xff]  ;;  %v753_v61 = vcombine.low %v118_v47, %v122_v48  ;;  %v718_v26 = vcombine.high %v80_v16, %v84_v17 }
   0xe   :  { %466 = vmatpush1.bf16.msra.mxu0 %v727_v27  ;;  %519 = vmatpush1.bf16.msra.mxu1 %v729_v28  ;;  %v29_v46 = vmul.f32 %v26_v38, %v26_v38  ;;  %v752_v52 = vcombine.high %v117_v44, %v121_v45  ;;  %v125_v55 = vld [vmem:[%s1145_s4 + $0x180] sm:$0xff]  ;;  %v130_v59 = vld [vmem:[%s1145_s4 + $0x1a8] sm:$0xff]  ;;  %v751_v60 = vcombine.low %v117_v44, %v121_v45  ;;  %v92_v44 = vld [vmem:[%s1145_s4 + $0x78] sm:$0xff] }
   0xf   :  { %467 = vmatprep.subr.bf16.mxu0 %v736_v29  ;;  %520 = vmatprep.subr.bf16.mxu1 %v738_v30  ;;  %v129_v56 = vld [vmem:[%s1145_s4 + $0x1a0] sm:$0xff]  ;;  %v762_v0 = vcombine.high %v126_v58, %v130_v59  ;;  %v134_v4 = vld [vmem:[%s1145_s4 + $0x1c8] sm:$0xff]  ;;  %v761_v7 = vcombine.low %v126_v58, %v130_v59  ;;  %v34_v9 = vrot.slane %v26_v38, %v33_v63 }
  0x10   :  { %v30_v50 = vsub.f32 %v28_v39, %v29_v46  ;;  %v760_v62 = vcombine.high %v125_v55, %v129_v56  ;;  %v133_v1 = vld [vmem:[%s1145_s4 + $0x1c0] sm:$0xff]  ;;  %v138_v5 = vld [vmem:[%s1145_s4 + $0x1e8] sm:$0xff]  ;;  %v759_v6 = vcombine.low %v125_v55, %v129_v56  ;;  %v99_v55 = vld [vmem:[%s1145_s4 + $0xb0] sm:$0xff] }
  0x11   :  { %v137_v2 = vld [vmem:[%s1145_s4 + $0x1e0] sm:$0xff]  ;;  %v770_v12 = vcombine.high %v134_v4, %v138_v5  ;;  %v22_v14 = vld [vmem:[%s1147_s0 + $0x8] sm:$0xff]  ;;  %v769_v20 = vcombine.low %v134_v4, %v138_v5  ;;  %v37_v24 = vsub.f32 %v23_v15, %v34_v9  ;;  %v38_v27 = vsub.f32 %v24_v18, %v34_v9  ;;  %v96_v56 = vld [vmem:[%s1145_s4 + $0x98] sm:$0xff] }
  0x12   :  { %468 = vmatpush1.bf16.msra.mxu0 %v735_v37  ;;  %521 = vmatpush1.bf16.msra.mxu1 %v737_v40  ;;  %v39_v57 = vadd.f32 1e-05, %v30_v50  ;;  %v768_v8 = vcombine.high %v133_v1, %v137_v2  ;;  %v21_v13 = vld [vmem:[%s1147_s0] sm:$0xff]  ;;  %v767_v19 = vcombine.low %v133_v1, %v137_v2  ;;  %v36_v23 = vsub.f32 %v22_v14, %v34_v9  ;;  %v107_v1 = vld [vmem:[%s1145_s4 + $0xf0] sm:$0xff]  ;;  %v104_v2 = vld [vmem:[%s1145_s4 + $0xd8] sm:$0xff] }
  0x13   :  { %469 = vmatprep.subr.bf16.mxu0 %v744_v41  ;;  %522 = vmatprep.subr.bf16.mxu1 %v746_v43  ;;  %v35_v22 = vsub.f32 %v21_v13, %v34_v9  ;;  %v709_v29 = vld [vmem:[%s1148_s2] ss:$0 sm:$0xff]  ;;  %v87_v41 = vld [vmem:[%s1145_s4 + $0x50] sm:$0xff]  ;;  %v88_v43 = vld [vmem:[%s1145_s4 + $0x58] sm:$0xff]  ;;  %v717_v50 = vcombine.low %v80_v16, %v84_v17 }
  0x14   :  { %776 = vrsqrt.f32 %v39_v57  ;;  %v710_v33 = vld [vmem:[%s1149_s3] ss:$0 sm:$0xff]  ;;  %v726_v53 = vcombine.high %v88_v43, %v92_v44  ;;  %v100_v57 = vld [vmem:[%s1145_s4 + $0xb8] sm:$0xff]  ;;  %v119_v18 = vld [vmem:[%s1145_s4 + $0x150] sm:$0xff] }
  0x15   :  { %v108_v4 = vld [vmem:[%s1145_s4 + $0xf8] sm:$0xff] }
  0x16   :  { %470 = vmatpush1.bf16.msra.mxu0 %v743_v49  ;;  %523 = vmatpush1.bf16.msra.mxu1 %v745_v51  ;;  %v715_v49 = vcombine.low %v916_v10, %v83_v11  ;;  %v742_v9 = vcombine.high %v104_v2, %v108_v4  ;;  %v111_v10 = vld [vmem:[%s1145_s4 + $0x110] sm:$0xff]  ;;  %v116_v13 = vld [vmem:[%s1145_s4 + $0x138] sm:$0xff]  ;;  %v741_v15 = vcombine.low %v104_v2, %v108_v4 }
  0x17   :  { %471 = vmatprep.subr.bf16.mxu0 %v752_v52  ;;  %524 = vmatprep.subr.bf16.mxu1 %v754_v54  ;;  %v724_v52 = vcombine.high %v87_v41, %v91_v42  ;;  %v95_v54 = vld [vmem:[%s1145_s4 + $0x90] sm:$0xff] }
  0x18   :  { %v115_v11 = vld [vmem:[%s1145_s4 + $0x130] sm:$0xff] }
  0x19   :  { %v748_v16 = vcombine.high %v111_v10, %v115_v11 }
  0x1a   :  { %472 = vmatpush1.bf16.msra.mxu0 %v751_v60  ;;  %525 = vmatpush1.bf16.msra.mxu1 %v753_v61  ;;  %v723_v60 = vcombine.low %v87_v41, %v91_v42  ;;  %v725_v61 = vcombine.low %v88_v43, %v92_v44 }
  0x1b   :  { %473 = vmatprep.subr.bf16.mxu0 %v760_v62  ;;  %526 = vmatprep.subr.bf16.mxu1 %v762_v0  ;;  %v732_v62 = vcombine.high %v95_v54, %v99_v55  ;;  %v103_v0 = vld [vmem:[%s1145_s4 + $0xd0] sm:$0xff] }
  0x1c   :  { %v739_v14 = vcombine.low %v103_v0, %v107_v1 }
  0x1e   :  { %474 = vmatpush1.bf16.msra.mxu0 %v759_v6  ;;  %527 = vmatpush1.bf16.msra.mxu1 %v761_v7  ;;  %v777_v25 = vpop.eup %776  ;;  %v731_v6 = vcombine.low %v95_v54, %v99_v55  ;;  %v733_v7 = vcombine.low %v96_v56, %v100_v57 }
  0x1f   :  { %475 = vmatprep.subr.bf16.mxu0 %v768_v8  ;;  %528 = vmatprep.subr.bf16.mxu1 %v770_v12  ;;  %v44_v28 = vrot.slane %v777_v25, %v33_v63  ;;  %v734_v63 = vcombine.high %v96_v56, %v100_v57  ;;  %v740_v8 = vcombine.high %v103_v0, %v107_v1  ;;  %v112_v12 = vld [vmem:[%s1145_s4 + $0x118] sm:$0xff] }
  0x20   :  { %v750_v17 = vcombine.high %v112_v12, %v116_v13 }
  0x21   :  { %v45_v30 = vmul.f32 %v44_v28, %v35_v22  ;;  %v46_v31 = vmul.f32 %v44_v28, %v36_v23  ;;  %v47_v32 = vmul.f32 %v44_v28, %v37_v24  ;;  %v48_v34 = vmul.f32 %v44_v28, %v38_v27  ;;  %v131_v27 = vld [vmem:[%s1145_s4 + $0x1b0] sm:$0xff]  ;;  %v128_v28 = vld [vmem:[%s1145_s4 + $0x198] sm:$0xff] }
  0x22   :  { %476 = vmatpush1.bf16.msra.mxu0 %v767_v19  ;;  %529 = vmatpush1.bf16.msra.mxu1 %v769_v20  ;;  %v123_v19 = vld [vmem:[%s1145_s4 + $0x170] sm:$0xff]  ;;  %v120_v20 = vld [vmem:[%s1145_s4 + $0x158] sm:$0xff]  ;;  %v747_v22 = vcombine.low %v111_v10, %v115_v11  ;;  %v749_v23 = vcombine.low %v112_v12, %v116_v13 }
  0x23   :  { %567 = vmatprep.subr.bf16.mxu0 %v716_v21  ;;  %620 = vmatprep.subr.bf16.mxu1 %v718_v26  ;;  %v56_v35 = vmul.f32 %v709_v29, %v45_v30  ;;  %v57_v36 = vmul.f32 %v709_v29, %v46_v31  ;;  %v58_v37 = vmul.f32 %v709_v29, %v47_v32  ;;  %v124_v21 = vld [vmem:[%s1145_s4 + $0x178] sm:$0xff]  ;;  %v127_v26 = vld [vmem:[%s1145_s4 + $0x190] sm:$0xff] }
  0x24   :  { %v59_v38 = vmul.f32 %v709_v29, %v48_v34  ;;  %v756_v24 = vcombine.high %v119_v18, %v123_v19  ;;  %v758_v25 = vcombine.high %v120_v20, %v124_v21  ;;  %v132_v29 = vld [vmem:[%s1145_s4 + $0x1b8] sm:$0xff]  ;;  %v755_v30 = vcombine.low %v119_v18, %v123_v19  ;;  %v135_v34 = vld [vmem:[%s1145_s4 + $0x1d0] sm:$0xff] }
  0x25   :  { %v67_v39 = vadd.f32 %v710_v33, %v56_v35  ;;  %v68_v40 = vadd.f32 %v710_v33, %v57_v36  ;;  %v69_v47 = vadd.f32 %v710_v33, %v58_v37  ;;  %v757_v31 = vcombine.low %v120_v20, %v124_v21  ;;  %v139_v35 = vld [vmem:[%s1145_s4 + $0x1f0] sm:$0xff]  ;;  %v136_v36 = vld [vmem:[%s1145_s4 + $0x1d8] sm:$0xff] }
  0x26   :  { %v70_v48 = vadd.f32 %v710_v33, %v59_v38  ;;  %v764_v32 = vcombine.high %v127_v26, %v131_v27  ;;  %v766_v33 = vcombine.high %v128_v28, %v132_v29  ;;  %v140_v37 = vld [vmem:[%s1145_s4 + $0x1f8] sm:$0xff]  ;;  %v763_v38 = vcombine.low %v127_v26, %v131_v27 }
  0x27   :  { %v71_v45 = vmax.f32 %v67_v39, 0.0  ;;  %v72_v46 = vmax.f32 %v68_v40, 0.0  ;;  %v73_v58 = vmax.f32 %v69_v47, 0.0  ;;  %v765_v39 = vcombine.low %v128_v28, %v132_v29 }
  0x28   :  { %v74_v59 = vmax.f32 %v70_v48, 0.0  ;;  %v772_v40 = vcombine.high %v135_v34, %v139_v35  ;;  %v774_v41 = vcombine.high %v136_v36, %v140_v37  ;;  %v771_v42 = vcombine.low %v135_v34, %v139_v35 }
  0x29   :  { %v959_v51 = vpack.c.bf16 %v72_v46, %v71_v45  ;;  %v773_v43 = vcombine.low %v136_v36, %v140_v37 }
  0x2a   :  { %v989_v5 = vpack.c.bf16 %v74_v59, %v73_v58 }
  0x2b   :  { %494 = vmatmul.mubr.bf16.vlgmr.msra.gmra.mrb[0].mxu0 %v959_v51  ;;  %547 = vmatmul.mubr.bf16.vlgmr.msra.gmra.mrb[0].mxu1 %v959_v51 }
  0x2c   :  { %568 = vmatpush1.bf16.msra.mxu0 %v715_v49  ;;  %621 = vmatpush1.bf16.msra.mxu1 %v717_v50 }
  0x2d   :  { %569 = vmatprep.subr.bf16.mxu0 %v724_v52  ;;  %622 = vmatprep.subr.bf16.mxu1 %v726_v53 }
  0x2e   :  { %503 = vmatprep.mubr.bf16.mxu0 %v778_v3  ;;  %556 = vmatprep.mubr.bf16.mxu1 %v778_v3 }
  0x30   :  { %570 = vmatpush1.bf16.msra.mxu0 %v723_v60  ;;  %623 = vmatpush1.bf16.msra.mxu1 %v725_v61 }
  0x31   :  { %571 = vmatprep.subr.bf16.mxu0 %v732_v62  ;;  %624 = vmatprep.subr.bf16.mxu1 %v734_v63 }
  0x33   :  { %504 = vmatmul.mubr.bf16.gmra.mrb[4].mxu0 %v989_v5  ;;  %557 = vmatmul.mubr.bf16.gmra.mrb[4].mxu1 %v989_v5 }
  0x34   :  { %572 = vmatpush1.bf16.msra.mxu0 %v731_v6  ;;  %625 = vmatpush1.bf16.msra.mxu1 %v733_v7 }
  0x35   :  { %573 = vmatprep.subr.bf16.mxu0 %v740_v8  ;;  %626 = vmatprep.subr.bf16.mxu1 %v742_v9 }
  0x36   :  { %599 = vmatprep.mubr.bf16.mxu0 %v778_v3  ;;  %652 = vmatprep.mubr.bf16.mxu1 %v778_v3 }
  0x38   :  { %574 = vmatpush1.bf16.msra.mxu0 %v739_v14  ;;  %627 = vmatpush1.bf16.msra.mxu1 %v741_v15 }
  0x39   :  { %575 = vmatprep.subr.bf16.mxu0 %v748_v16  ;;  %628 = vmatprep.subr.bf16.mxu1 %v750_v17 }
  0x3c   :  { %576 = vmatpush1.bf16.msra.mxu0 %v747_v22  ;;  %629 = vmatpush1.bf16.msra.mxu1 %v749_v23 }
  0x3d   :  { %577 = vmatprep.subr.bf16.mxu0 %v756_v24  ;;  %630 = vmatprep.subr.bf16.mxu1 %v758_v25 }
  0x40   :  { %578 = vmatpush1.bf16.msra.mxu0 %v755_v30  ;;  %631 = vmatpush1.bf16.msra.mxu1 %v757_v31 }
  0x41   :  { %579 = vmatprep.subr.bf16.mxu0 %v764_v32  ;;  %632 = vmatprep.subr.bf16.mxu1 %v766_v33 }
  0x44   :  { %580 = vmatpush1.bf16.msra.mxu0 %v763_v38  ;;  %633 = vmatpush1.bf16.msra.mxu1 %v765_v39 }
  0x45   :  { %581 = vmatprep.subr.bf16.mxu0 %v772_v40  ;;  %634 = vmatprep.subr.bf16.mxu1 %v774_v41 }
  0x48   :  { %582 = vmatpush1.bf16.msra.mxu0 %v771_v42  ;;  %635 = vmatpush1.bf16.msra.mxu1 %v773_v43 }
  0x4b   :  { %600 = vmatmul.mubr.bf16.vlgmr.msra.gmra.mrb[8].mxu0 %v959_v51  ;;  %653 = vmatmul.mubr.bf16.vlgmr.msra.gmra.mrb[8].mxu1 %v959_v51 }
  0x4c   :  { %609 = vmatprep.mubr.bf16.mxu0 %v778_v3  ;;  %662 = vmatprep.mubr.bf16.mxu1 %v778_v3 }
  0x53   :  { %610 = vmatmul.mubr.bf16.gmra.mrb[12].mxu0 %v989_v5  ;;  %663 = vmatmul.mubr.bf16.gmra.mrb[12].mxu1 %v989_v5 }
  0xfe   :  { %v495_v44 = vpop.f32.mrb[0].mxu0  ;;  %v548_v45 = vpop.f32.mrb[0].mxu1 }
  0xff   :  { %673 = vst [vmem:[%s1150_s5] sm:$0xff] %v495_v44  ;;  %675 = vst [vmem:[%s1150_s5 + $0x10] sm:$0xff] %v548_v45  ;;  %v497_v46 = vpop.f32.mrb[1].mxu0  ;;  %v550_v47 = vpop.f32.mrb[1].mxu1 }
 0x100   :  { %674 = vst [vmem:[%s1150_s5 + $0x8] sm:$0xff] %v497_v46  ;;  %676 = vst [vmem:[%s1150_s5 + $0x18] sm:$0xff] %v550_v47  ;;  %v499_v3 = vpop.f32.mrb[2].mxu0  ;;  %v552_v48 = vpop.f32.mrb[2].mxu1 }
 0x101   :  { %681 = vst [vmem:[%s1150_s5 + $0x40] sm:$0xff] %v499_v3  ;;  %683 = vst [vmem:[%s1150_s5 + $0x50] sm:$0xff] %v552_v48  ;;  %v501_v49 = vpop.f32.mrb[3].mxu0  ;;  %v554_v50 = vpop.f32.mrb[3].mxu1 }
 0x102   :  { %682 = vst [vmem:[%s1150_s5 + $0x48] sm:$0xff] %v501_v49  ;;  %684 = vst [vmem:[%s1150_s5 + $0x58] sm:$0xff] %v554_v50 }
 0x106   :  { %v505_v51 = vpop.f32.mrb[4].mxu0  ;;  %v558_v52 = vpop.f32.mrb[4].mxu1 }
 0x107   :  { %689 = vst [vmem:[%s1150_s5 + $0x80] sm:$0xff] %v505_v51  ;;  %691 = vst [vmem:[%s1150_s5 + $0x90] sm:$0xff] %v558_v52  ;;  %v507_v53 = vpop.f32.mrb[5].mxu0  ;;  %v560_v54 = vpop.f32.mrb[5].mxu1 }
 0x108   :  { %690 = vst [vmem:[%s1150_s5 + $0x88] sm:$0xff] %v507_v53  ;;  %692 = vst [vmem:[%s1150_s5 + $0x98] sm:$0xff] %v560_v54  ;;  %v509_v55 = vpop.f32.mrb[6].mxu0  ;;  %v562_v56 = vpop.f32.mrb[6].mxu1 }
 0x109   :  { %697 = vst [vmem:[%s1150_s5 + $0xc0] sm:$0xff] %v509_v55  ;;  %699 = vst [vmem:[%s1150_s5 + $0xd0] sm:$0xff] %v562_v56  ;;  %v511_v57 = vpop.f32.mrb[7].mxu0  ;;  %v564_v58 = vpop.f32.mrb[7].mxu1 }
 0x10a   :  { %698 = vst [vmem:[%s1150_s5 + $0xc8] sm:$0xff] %v511_v57  ;;  %700 = vst [vmem:[%s1150_s5 + $0xd8] sm:$0xff] %v564_v58 }
 0x11e   :  { %v601_v59 = vpop.f32.mrb[8].mxu0  ;;  %v654_v60 = vpop.f32.mrb[8].mxu1 }
 0x11f   :  { %677 = vst [vmem:[%s1150_s5 + $0x20] sm:$0xff] %v601_v59  ;;  %679 = vst [vmem:[%s1150_s5 + $0x30] sm:$0xff] %v654_v60  ;;  %v603_v61 = vpop.f32.mrb[9].mxu0  ;;  %v656_v62 = vpop.f32.mrb[9].mxu1 }
 0x120   :  { %678 = vst [vmem:[%s1150_s5 + $0x28] sm:$0xff] %v603_v61  ;;  %680 = vst [vmem:[%s1150_s5 + $0x38] sm:$0xff] %v656_v62  ;;  %v605_v63 = vpop.f32.mrb[10].mxu0  ;;  %v658_v0 = vpop.f32.mrb[10].mxu1 }
 0x121   :  { %685 = vst [vmem:[%s1150_s5 + $0x60] sm:$0xff] %v605_v63  ;;  %687 = vst [vmem:[%s1150_s5 + $0x70] sm:$0xff] %v658_v0  ;;  %v607_v1 = vpop.f32.mrb[11].mxu0  ;;  %v660_v2 = vpop.f32.mrb[11].mxu1 }
 0x122   :  { %686 = vst [vmem:[%s1150_s5 + $0x68] sm:$0xff] %v607_v1  ;;  %688 = vst [vmem:[%s1150_s5 + $0x78] sm:$0xff] %v660_v2 }
 0x126   :  { %v611_v4 = vpop.f32.mrb[12].mxu0  ;;  %v664_v5 = vpop.f32.mrb[12].mxu1 }
 0x127   :  { %693 = vst [vmem:[%s1150_s5 + $0xa0] sm:$0xff] %v611_v4  ;;  %695 = vst [vmem:[%s1150_s5 + $0xb0] sm:$0xff] %v664_v5  ;;  %v613_v6 = vpop.f32.mrb[13].mxu0  ;;  %v666_v7 = vpop.f32.mrb[13].mxu1 }
 0x128   :  { %694 = vst [vmem:[%s1150_s5 + $0xa8] sm:$0xff] %v613_v6  ;;  %696 = vst [vmem:[%s1150_s5 + $0xb8] sm:$0xff] %v666_v7  ;;  %v615_v8 = vpop.f32.mrb[14].mxu0  ;;  %v668_v9 = vpop.f32.mrb[14].mxu1 }
 0x129   :  { %701 = vst [vmem:[%s1150_s5 + $0xe0] sm:$0xff] %v615_v8  ;;  %703 = vst [vmem:[%s1150_s5 + $0xf0] sm:$0xff] %v668_v9  ;;  %v617_v10 = vpop.f32.mrb[15].mxu0  ;;  %v670_v11 = vpop.f32.mrb[15].mxu1 }
 0x12a   :  { %702 = vst [vmem:[%s1150_s5 + $0xe8] sm:$0xff] %v617_v10  ;;  %704 = vst [vmem:[%s1150_s5 + $0xf8] sm:$0xff] %v670_v11 }

// kernel: generator_forward.13
= control target key start
LH: loop header
LB: loop body
LE: loop exit
PB: predicated region body
PF: predicated region fallthrough
CT: control target
= control target key end

     0   :  { %s240_s6 = smov 0   ;;  %s289_s0 = inlined_call_operand.vmem [shape: f32[128,64], index: 0, kind: input, shape index: {}]   ;;  %s290_s1 = inlined_call_operand.vmem [shape: f32[2,64], index: 1, kind: output, shape index: {}]  }
   0x1 LB: > { %s203_s7 = sadd.s32 4294967295, %s227_s6   ;;  %p206_p0 = scmp.ge.s32.totalorder %s227_s6, 1  ;;  %s227_s6 = sphi %s240_s6, %s11_s6  }
   0x2   : > { %p83_p1 = scmp.lt.s32.totalorder %s227_s6, 3 }
   0x4   : > { %p84_p2 = pnand %p206_p0, %p83_p1 }
   0x5   : > { %s207_s8 = sshll.u32 (!%p84_p2), %s203_s7, 3  ;;  %p209_p4 = scmp.ne.s32.totalorder (!%p84_p2), %s203_s7, 0 }
   0x6   : > { %87 = sbr.rel (%p84_p2) target bundleno = 55 (0x37), region = 24  ;;  %p99_p3 = scmp.lt.s32.totalorder (!%p84_p2), %s207_s8, 15 }
   0xd   : > { %s292_s8 = smov (!%p99_p3, %s207_s8), 15  ;;  %107 = sbr.rel (%p209_p4) target bundleno = 20 (0x14), region = 28 }
   0xe   : > { %s208_s9 = sshll.u32 %s292_s8, 3  ;;  %vm108_vm0 = vcmask (!%p209_p4), 517120   ;;  %v229_v0 = vmov (!%p209_p4), 0.0  }
   0xf   : > { %s251_s12 = scalar_lea.vmem %s289_s0, %s208_s9  ;;  %109 = vst.msk [vmem:[%s290_s1] sm:$0x3] (!%p209_p4), %vm108_vm0, %v229_v0 }
  0x14 PF: > { %v110_v1 = vld [vmem:[%s251_s12] sm:$0xff]  ;;  %v111_v2 = vld [vmem:[%s251_s12 + $0x8] sm:$0xff]  ;;  %v112_v3 = vld [vmem:[%s251_s12 + $0x10] sm:$0xff]  ;;  %vm118_vm1 = vcmask 523264   ;;  %vm170_vm2 = vcmask 1040384   ;;  %vm173_vm3 = vcmask 517120  }
  0x15   : > { %v113_v4 = vld [vmem:[%s251_s12 + $0x18] sm:$0xff]  ;;  %v119_v5 = vsel %vm118_vm1, %v110_v1, 0.0  ;;  %v120_v6 = vsel %vm118_vm1, %v111_v2, 0.0  ;;  %v122_v7 = vsel %vm118_vm1, %v112_v3, 0.0  ;;  %v140_v8 = vmul.f32 %v110_v1, %v110_v1  ;;  %v114_v9 = vld [vmem:[%s251_s12 + $0x20] sm:$0xff]  ;;  %v115_v14 = vld [vmem:[%s251_s12 + $0x28] sm:$0xff] }
  0x16   : > { %v121_v10 = vadd.f32 %v120_v6, %v119_v5  ;;  %v124_v11 = vsel %vm118_vm1, %v113_v4, 0.0  ;;  %v141_v12 = vmul.f32 %v111_v2, %v111_v2  ;;  %v142_v13 = vmul.f32 %v112_v3, %v112_v3  ;;  %v116_v21 = vld [vmem:[%s251_s12 + $0x30] sm:$0xff]  ;;  %v117_v28 = vld [vmem:[%s251_s12 + $0x38] sm:$0xff]  ;;  %v169_v59 = vld [vmem:[%s290_s1] sm:$0x3] }
  0x17   : > { %v143_v16 = vmul.f32 %v113_v4, %v113_v4  ;;  %v126_v17 = vsel %vm118_vm1, %v114_v9, 0.0  ;;  %v144_v18 = vmul.f32 %v114_v9, %v114_v9  ;;  %v148_v19 = vsel %vm118_vm1, %v140_v8, 0.0 }
  0x18   : > { %v123_v15 = vadd.f32 %v122_v7, %v121_v10  ;;  %v149_v20 = vsel %vm118_vm1, %v141_v12, 0.0  ;;  %v151_v24 = vsel %vm118_vm1, %v142_v13, 0.0  ;;  %v128_v25 = vsel %vm118_vm1, %v115_v14, 0.0 }
  0x19   : > { %v150_v23 = vadd.f32 %v149_v20, %v148_v19  ;;  %v145_v26 = vmul.f32 %v115_v14, %v115_v14  ;;  %v153_v27 = vsel %vm118_vm1, %v143_v16, 0.0  ;;  %v130_v31 = vsel %vm118_vm1, %v116_v21, 0.0 }
  0x1a   : > { %v125_v22 = vadd.f32 %v124_v11, %v123_v15  ;;  %v146_v32 = vmul.f32 %v116_v21, %v116_v21  ;;  %v155_v33 = vsel %vm118_vm1, %v144_v18, 0.0  ;;  %v132_v36 = vsel %vm118_vm1, %v117_v28, 0.0 }
  0x1b   : > { %v152_v30 = vadd.f32 %v151_v24, %v150_v23  ;;  %v147_v37 = vmul.f32 %v117_v28, %v117_v28  ;;  %v157_v38 = vsel %vm118_vm1, %v145_v26, 0.0 }
  0x1c   : > { %v127_v29 = vadd.f32 %v126_v17, %v125_v22  ;;  %v159_v41 = vsel %vm118_vm1, %v146_v32, 0.0 }
  0x1d   : > { %v154_v35 = vadd.f32 %v153_v27, %v152_v30  ;;  %v161_v44 = vsel %vm118_vm1, %v147_v37, 0.0 }
  0x1e   : > { %v129_v34 = vadd.f32 %v128_v25, %v127_v29 }
  0x1f   : > { %v156_v40 = vadd.f32 %v155_v33, %v154_v35 }
  0x20   : > { %v131_v39 = vadd.f32 %v130_v31, %v129_v34 }
  0x21   : > { %v158_v43 = vadd.f32 %v157_v38, %v156_v40 }
  0x22   : > { %v133_v42 = vadd.f32 %v132_v36, %v131_v39 }
  0x23   : > { %v160_v46 = vadd.f32 %v159_v41, %v158_v43 }
  0x24   : > { %v134_v45 = vrot.slane %v133_v42, 4 }
  0x25   : > { %v162_v48 = vadd.f32 %v161_v44, %v160_v46 }
  0x26   : > { %v135_v47 = vadd.f32 %v134_v45, %v133_v42 }
  0x27   : > { %v163_v50 = vrot.slane %v162_v48, 4 }
  0x28   : > { %v136_v49 = vrot.slane %v135_v47, 2 }
  0x29   : > { %v164_v52 = vadd.f32 %v163_v50, %v162_v48 }
  0x2a   : > { %v137_v51 = vadd.f32 %v136_v49, %v135_v47 }
  0x2b   : > { %v165_v54 = vrot.slane %v164_v52, 2 }
  0x2c   : > { %v138_v53 = vrot.slane %v137_v51, 1 }
  0x2d   : > { %v166_v55 = vadd.f32 %v165_v54, %v164_v52 }
  0x2e   : > { %v139_v56 = vadd.f32 %v138_v53, %v137_v51 }
  0x2f   : > { %v167_v57 = vrot.slane %v166_v55, 1 }
  0x31   : > { %v168_v58 = vadd.f32 %v167_v57, %v166_v55 }
  0x33   : > { %v171_v60 = vsel %vm170_vm2, %v139_v56, %v168_v58 }
  0x34   : > { %v172_v61 = vadd.f32 %v171_v60, %v169_v59 }
  0x36   : > { %174 = vst.msk [vmem:[%s290_s1] sm:$0x3] %vm173_vm3, %v172_v61 }
  0x37 PF: > { %s11_s6 = sadd.s32 1, %s227_s6  }
  0x38   : > { %p8_p5 = scmp.ge.s32.totalorder %s11_s6, 4  }
  0x3a   :  { %10 = sbr.rel (!%p8_p5) target bundleno = 1 (0x1), region = 54 }

// kernel: generator_forward.14
= control target key start
LH: loop header
LB: loop body
LE: loop exit
PB: predicated region body
PF: predicated region fallthrough
CT: control target
= control target key end

     0   :  { %s771_s18 = smov 0   ;;  %s912_s0 = inlined_call_operand.vmem [shape: f32[128,64], index: 0, kind: input, shape index: {}]   ;;  %s913_s1 = inlined_call_operand.vmem [shape: f32[2,64], index: 1, kind: input, shape index: {}]   ;;  %s914_s2 = inlined_call_operand.vmem [shape: f32[1,64], index: 2, kind: input, shape index: {}]   ;;  %s915_s3 = inlined_call_operand.vmem [shape: f32[1,64], index: 3, kind: input, shape index: {}]   ;;  %s916_s4 = inlined_call_operand.vmem [shape: bf16[64,512], index: 4, kind: input, shape index: {}]   ;;  %s917_s5 = inlined_call_operand.vmem [shape: f32[128,512], index: 5, kind: output, shape index: {}]  }
   0x1 LB: > { %s658_s19 = sadd.s32 4294967295, %s738_s18   ;;  %p662_p0 = scmp.ge.s32.totalorder %s738_s18, 1  ;;  %s738_s18 = sphi %s771_s18, %s15_s18  }
   0x2   : > { %p188_p1 = scmp.lt.s32.totalorder %s738_s18, 3 }
   0x4   : > { %p189_p2 = pnand %p662_p0, %p188_p1 }
   0x5   : > { %v706_v0 = vld [vmem:[%s916_s4 + $0x4] ss:$16 sps:$4 sm:$0xff] (!%p189_p2)   ;;  %v708_v1 = vld [vmem:[%s916_s4 + $0xc] ss:$16 sps:$4 sm:$0xff] (!%p189_p2)   ;;  %v740_v2 = vmov (!%p189_p2), 0   ;;  %s663_s23 = sshll.u32 (!%p189_p2), %s658_s19, 3  ;;  %v245_v21 = vlaneseq (!%p189_p2) }
   0x6   : > { %192 = sbr.rel (%p189_p2) target bundleno = 282 (0x11a), region = 40  ;;  %454 = vmatprep.mubr.bf16.mxu0 (!%p189_p2), %v740_v2  ;;  %527 = vmatprep.mubr.bf16.mxu1 (!%p189_p2), %v740_v2  ;;  %v710_v3 = vld [vmem:[%s916_s4] ss:$16 sps:$4 sm:$0xff] (!%p189_p2)   ;;  %v711_v4 = vld [vmem:[%s916_s4 + $0x8] ss:$16 sps:$4 sm:$0xff] (!%p189_p2)   ;;  %p218_p3 = scmp.lt.s32.totalorder (!%p189_p2), %s663_s23, 15 }
   0x7   : > { %422 = vmatprep.subr.bf16.mxu0 (!%p189_p2), %v706_v0  ;;  %495 = vmatprep.subr.bf16.mxu1 (!%p189_p2), %v708_v1  ;;  %v712_v5 = vld [vmem:[%s916_s4 + $0x24] ss:$16 sps:$4 sm:$0xff] (!%p189_p2)   ;;  %v714_v6 = vld [vmem:[%s916_s4 + $0x2c] ss:$16 sps:$4 sm:$0xff] (!%p189_p2)   ;;  %v716_v7 = vld [vmem:[%s916_s4 + $0x20] ss:$16 sps:$4 sm:$0xff] (!%p189_p2)  }
   0x8   : > { %423 = vmatpush1.bf16.msra.mxu0 (!%p189_p2), %v710_v3  ;;  %496 = vmatpush1.bf16.msra.mxu1 (!%p189_p2), %v711_v4  ;;  %v717_v8 = vld [vmem:[%s916_s4 + $0x28] ss:$16 sps:$4 sm:$0xff] (!%p189_p2)   ;;  %v718_v9 = vld [vmem:[%s916_s4 + $0x44] ss:$16 sps:$4 sm:$0xff] (!%p189_p2)   ;;  %v720_v10 = vld [vmem:[%s916_s4 + $0x4c] ss:$16 sps:$4 sm:$0xff] (!%p189_p2)  }
   0x9   : > { %424 = vmatprep.subr.bf16.mxu0 (!%p189_p2), %v712_v5  ;;  %497 = vmatprep.subr.bf16.mxu1 (!%p189_p2), %v714_v6  ;;  %v722_v11 = vld [vmem:[%s916_s4 + $0x40] ss:$16 sps:$4 sm:$0xff] (!%p189_p2)   ;;  %v723_v12 = vld [vmem:[%s916_s4 + $0x48] ss:$16 sps:$4 sm:$0xff] (!%p189_p2)   ;;  %v724_v13 = vld [vmem:[%s916_s4 + $0x64] ss:$16 sps:$4 sm:$0xff] (!%p189_p2)  }
   0xa   : > { %v726_v14 = vld [vmem:[%s916_s4 + $0x6c] ss:$16 sps:$4 sm:$0xff] (!%p189_p2)   ;;  %v239_v15 = vld [vmem:[%s913_s1] sm:$0x1] (!%p189_p2)  ;;  %v241_v16 = vld [vmem:[%s913_s1 + $0x1] sm:$0x1] (!%p189_p2) }
   0xb   : > { %v728_v17 = vld [vmem:[%s916_s4 + $0x60] ss:$16 sps:$4 sm:$0xff] (!%p189_p2)   ;;  %v729_v18 = vld [vmem:[%s916_s4 + $0x68] ss:$16 sps:$4 sm:$0xff] (!%p189_p2)   ;;  %v240_v19 = vmul.f32 (!%p189_p2), 0.0078125, %v239_v15  ;;  %v242_v20 = vmul.f32 (!%p189_p2), 0.0078125, %v241_v16 }
   0xc   : > { %425 = vmatpush1.bf16.msra.mxu0 (!%p189_p2), %v716_v7  ;;  %498 = vmatpush1.bf16.msra.mxu1 (!%p189_p2), %v717_v8  ;;  %v246_v24 = vshrl.u32 (!%p189_p2), %v245_v21, 7  ;;  %v668_v40 = vld [vmem:[%s914_s2] ss:$0 sm:$0xff] (!%p189_p2)  ;;  %vm409_vm0 = vcmask (!%p189_p2), 523264  }
   0xd   : > { %426 = vmatprep.subr.bf16.mxu0 %v718_v9  ;;  %499 = vmatprep.subr.bf16.mxu1 %v720_v10  ;;  %v243_v22 = vmul.f32 %v240_v19, %v240_v19  ;;  %s919_s23 = smov (!%p218_p3, %s663_s23), 15  ;;  %v669_v45 = vld [vmem:[%s915_s3] ss:$0 sm:$0xff] }
   0xe   : > { %s664_s8 = sshll.u32 %s919_s23, 3  ;;  %v247_v26 = vsub.s32 0, %v246_v24  ;;  %s696_s16 = sshll.u32 %s919_s23, 5 }
   0xf   : > { %v244_v23 = vsub.f32 %v242_v20, %v243_v22  ;;  %s841_s11 = scalar_lea.vmem %s912_s0, %s664_s8  ;;  %s875_s21 = scalar_lea.vmem %s917_s5, %s696_s16 }
  0x10   : > { %427 = vmatpush1.bf16.msra.mxu0 %v722_v11  ;;  %500 = vmatpush1.bf16.msra.mxu1 %v723_v12  ;;  %v231_v27 = vld [vmem:[%s841_s11] sm:$0xff]  ;;  %v248_v28 = vrot.slane %v240_v19, %v247_v26  ;;  %v232_v29 = vld [vmem:[%s841_s11 + $0x8] sm:$0xff]  ;;  %v233_v30 = vld [vmem:[%s841_s11 + $0x10] sm:$0xff] }
  0x11   : > { %428 = vmatprep.subr.bf16.mxu0 %v724_v13  ;;  %501 = vmatprep.subr.bf16.mxu1 %v726_v14  ;;  %v257_v25 = vadd.f32 1e-05, %v244_v23  ;;  %v234_v31 = vld [vmem:[%s841_s11 + $0x18] sm:$0xff]  ;;  %v235_v38 = vld [vmem:[%s841_s11 + $0x20] sm:$0xff]  ;;  %v236_v39 = vld [vmem:[%s841_s11 + $0x28] sm:$0xff] }
  0x12   : > { %v249_v32 = vsub.f32 %v231_v27, %v248_v28  ;;  %v250_v33 = vsub.f32 %v232_v29, %v248_v28  ;;  %v251_v34 = vsub.f32 %v233_v30, %v248_v28  ;;  %v252_v35 = vsub.f32 %v234_v31, %v248_v28  ;;  %v237_v60 = vld [vmem:[%s841_s11 + $0x30] sm:$0xff]  ;;  %v238_v61 = vld [vmem:[%s841_s11 + $0x38] sm:$0xff] }
  0x13   : > { %730 = vrsqrt.f32 %v257_v25  ;;  %v253_v46 = vsub.f32 %v235_v38, %v248_v28  ;;  %v254_v47 = vsub.f32 %v236_v39, %v248_v28  ;;  %v255_v63 = vsub.f32 %v237_v60, %v248_v28 }
  0x14   : > { %429 = vmatpush1.bf16.msra.mxu0 %v728_v17  ;;  %502 = vmatpush1.bf16.msra.mxu1 %v729_v18  ;;  %v256_v0 = vsub.f32 %v238_v61, %v248_v28 }
  0x1d   : > { %v731_v36 = vpop.eup %730 }
  0x1e   : > { %v262_v37 = vrot.slane %v731_v36, %v247_v26 }
  0x20   : > { %v263_v41 = vmul.f32 %v262_v37, %v249_v32  ;;  %v264_v42 = vmul.f32 %v262_v37, %v250_v33  ;;  %v265_v43 = vmul.f32 %v262_v37, %v251_v34  ;;  %v266_v44 = vmul.f32 %v262_v37, %v252_v35 }
  0x21   : > { %v267_v54 = vmul.f32 %v262_v37, %v253_v46  ;;  %v268_v55 = vmul.f32 %v262_v37, %v254_v47  ;;  %v269_v6 = vmul.f32 %v262_v37, %v255_v63  ;;  %v270_v10 = vmul.f32 %v262_v37, %v256_v0 }
  0x22   : > { %v278_v48 = vmul.f32 %v668_v40, %v263_v41  ;;  %v279_v49 = vmul.f32 %v668_v40, %v264_v42  ;;  %v280_v50 = vmul.f32 %v668_v40, %v265_v43  ;;  %v281_v51 = vmul.f32 %v668_v40, %v266_v44 }
  0x23   : > { %v282_v4 = vmul.f32 %v668_v40, %v267_v54  ;;  %v283_v5 = vmul.f32 %v668_v40, %v268_v55  ;;  %v284_v13 = vmul.f32 %v668_v40, %v269_v6  ;;  %v285_v14 = vmul.f32 %v668_v40, %v270_v10 }
  0x24   : > { %v293_v52 = vadd.f32 %v669_v45, %v278_v48  ;;  %v294_v53 = vadd.f32 %v669_v45, %v279_v49  ;;  %v295_v58 = vadd.f32 %v669_v45, %v280_v50  ;;  %v296_v59 = vadd.f32 %v669_v45, %v281_v51 }
  0x25   : > { %v297_v8 = vadd.f32 %v669_v45, %v282_v4  ;;  %v298_v9 = vadd.f32 %v669_v45, %v283_v5  ;;  %v299_v16 = vadd.f32 %v669_v45, %v284_v13  ;;  %v300_v17 = vadd.f32 %v669_v45, %v285_v14 }
  0x26   : > { %v301_v56 = vmax.f32 %v293_v52, 0.0  ;;  %v302_v57 = vmax.f32 %v294_v53, 0.0  ;;  %v303_v1 = vmax.f32 %v295_v58, 0.0  ;;  %v304_v3 = vmax.f32 %v296_v59, 0.0 }
  0x27   : > { %v305_v11 = vmax.f32 %v297_v8, 0.0  ;;  %v306_v12 = vmax.f32 %v298_v9, 0.0  ;;  %v307_v18 = vmax.f32 %v299_v16, 0.0  ;;  %v308_v19 = vmax.f32 %v300_v17, 0.0 }
  0x28   : > { %v309_v62 = vpack.c.bf16 %v302_v57, %v301_v56  ;;  %v310_v7 = vpack.c.bf16 %v304_v3, %v303_v1 }
  0x29   : > { %v311_v15 = vpack.c.bf16 %v306_v12, %v305_v11  ;;  %v312_v20 = vpack.c.bf16 %v308_v19, %v307_v18 }
  0x2a   : > { %686 = vmatmul.mubr.msk.bf16.vlgmr.msra.gmra.mrb[0].mxu0 %vm409_vm0, %v309_v62  ;;  %690 = vmatmul.mubr.msk.bf16.vlgmr.msra.gmra.mrb[0].mxu1 %vm409_vm0, %v309_v62 }
  0x2b   : > { %464 = vmatprep.mubr.bf16.mxu0 %v740_v2  ;;  %537 = vmatprep.mubr.bf16.mxu1 %v740_v2 }
  0x32   : > { %687 = vmatmul.mubr.msk.bf16.gmra.mrb[4].mxu0 %vm409_vm0, %v310_v7  ;;  %691 = vmatmul.mubr.msk.bf16.gmra.mrb[4].mxu1 %vm409_vm0, %v310_v7 }
  0x33   : > { %474 = vmatprep.mubr.bf16.mxu0 %v740_v2  ;;  %547 = vmatprep.mubr.bf16.mxu1 %v740_v2 }
  0x3a   : > { %688 = vmatmul.mubr.msk.bf16.gmra.mrb[8].mxu0 %vm409_vm0, %v311_v15  ;;  %692 = vmatmul.mubr.msk.bf16.gmra.mrb[8].mxu1 %vm409_vm0, %v311_v15 }
  0x3b   : > { %484 = vmatprep.mubr.bf16.mxu0 %v740_v2  ;;  %557 = vmatprep.mubr.bf16.mxu1 %v740_v2 }
  0x42   : > { %689 = vmatmul.mubr.msk.bf16.gmra.mrb[12].mxu0 %vm409_vm0, %v312_v20  ;;  %693 = vmatmul.mubr.msk.bf16.gmra.mrb[12].mxu1 %vm409_vm0, %v312_v20 }
  0xfd   : > { %v456_v2 = vpop.f32.mrb[0].mxu0  ;;  %v529_v21 = vpop.f32.mrb[0].mxu1 }
  0xfe   : > { %568 = vst [vmem:[%s875_s21] sm:$0xff] %v456_v2  ;;  %570 = vst [vmem:[%s875_s21 + $0x10] sm:$0xff] %v529_v21  ;;  %v458_v22 = vpop.f32.mrb[1].mxu0  ;;  %v531_v23 = vpop.f32.mrb[1].mxu1 }
  0xff   : > { %569 = vst [vmem:[%s875_s21 + $0x8] sm:$0xff] %v458_v22  ;;  %571 = vst [vmem:[%s875_s21 + $0x18] sm:$0xff] %v531_v23  ;;  %v460_v24 = vpop.f32.mrb[2].mxu0  ;;  %v533_v25 = vpop.f32.mrb[2].mxu1 }
 0x100   : > { %572 = vst [vmem:[%s875_s21 + $0x20] sm:$0xff] %v460_v24  ;;  %574 = vst [vmem:[%s875_s21 + $0x30] sm:$0xff] %v533_v25  ;;  %v462_v26 = vpop.f32.mrb[3].mxu0  ;;  %v535_v27 = vpop.f32.mrb[3].mxu1 }
 0x101   : > { %573 = vst [vmem:[%s875_s21 + $0x28] sm:$0xff] %v462_v26  ;;  %575 = vst [vmem:[%s875_s21 + $0x38] sm:$0xff] %v535_v27 }
 0x105   : > { %v466_v28 = vpop.f32.mrb[4].mxu0  ;;  %v539_v29 = vpop.f32.mrb[4].mxu1 }
 0x106   : > { %576 = vst [vmem:[%s875_s21 + $0x40] sm:$0xff] %v466_v28  ;;  %578 = vst [vmem:[%s875_s21 + $0x50] sm:$0xff] %v539_v29  ;;  %v468_v30 = vpop.f32.mrb[5].mxu0  ;;  %v541_v31 = vpop.f32.mrb[5].mxu1 }
 0x107   : > { %577 = vst [vmem:[%s875_s21 + $0x48] sm:$0xff] %v468_v30  ;;  %579 = vst [vmem:[%s875_s21 + $0x58] sm:$0xff] %v541_v31  ;;  %v470_v32 = vpop.f32.mrb[6].mxu0  ;;  %v543_v33 = vpop.f32.mrb[6].mxu1 }
 0x108   : > { %580 = vst [vmem:[%s875_s21 + $0x60] sm:$0xff] %v470_v32  ;;  %582 = vst [vmem:[%s875_s21 + $0x70] sm:$0xff] %v543_v33  ;;  %v472_v34 = vpop.f32.mrb[7].mxu0  ;;  %v545_v35 = vpop.f32.mrb[7].mxu1 }
 0x109   : > { %581 = vst [vmem:[%s875_s21 + $0x68] sm:$0xff] %v472_v34  ;;  %583 = vst [vmem:[%s875_s21 + $0x78] sm:$0xff] %v545_v35 }
 0x10d   : > { %v476_v36 = vpop.f32.mrb[8].mxu0  ;;  %v549_v37 = vpop.f32.mrb[8].mxu1 }
 0x10e   : > { %584 = vst [vmem:[%s875_s21 + $0x80] sm:$0xff] %v476_v36  ;;  %586 = vst [vmem:[%s875_s21 + $0x90] sm:$0xff] %v549_v37  ;;  %v478_v38 = vpop.f32.mrb[9].mxu0  ;;  %v551_v39 = vpop.f32.mrb[9].mxu1 }
 0x10f   : > { %585 = vst [vmem:[%s875_s21 + $0x88] sm:$0xff] %v478_v38  ;;  %587 = vst [vmem:[%s875_s21 + $0x98] sm:$0xff] %v551_v39  ;;  %v480_v40 = vpop.f32.mrb[10].mxu0  ;;  %v553_v41 = vpop.f32.mrb[10].mxu1 }
 0x110   : > { %588 = vst [vmem:[%s875_s21 + $0xa0] sm:$0xff] %v480_v40  ;;  %590 = vst [vmem:[%s875_s21 + $0xb0] sm:$0xff] %v553_v41  ;;  %v482_v42 = vpop.f32.mrb[11].mxu0  ;;  %v555_v43 = vpop.f32.mrb[11].mxu1 }
 0x111   : > { %589 = vst [vmem:[%s875_s21 + $0xa8] sm:$0xff] %v482_v42  ;;  %591 = vst [vmem:[%s875_s21 + $0xb8] sm:$0xff] %v555_v43 }
 0x115   : > { %v486_v44 = vpop.f32.mrb[12].mxu0  ;;  %v559_v45 = vpop.f32.mrb[12].mxu1 }
 0x116   : > { %592 = vst [vmem:[%s875_s21 + $0xc0] sm:$0xff] %v486_v44  ;;  %594 = vst [vmem:[%s875_s21 + $0xd0] sm:$0xff] %v559_v45  ;;  %v488_v46 = vpop.f32.mrb[13].mxu0  ;;  %v561_v47 = vpop.f32.mrb[13].mxu1 }
 0x117   : > { %593 = vst [vmem:[%s875_s21 + $0xc8] sm:$0xff] %v488_v46  ;;  %595 = vst [vmem:[%s875_s21 + $0xd8] sm:$0xff] %v561_v47  ;;  %v490_v48 = vpop.f32.mrb[14].mxu0  ;;  %v563_v49 = vpop.f32.mrb[14].mxu1 }
 0x118   : > { %596 = vst [vmem:[%s875_s21 + $0xe0] sm:$0xff] %v490_v48  ;;  %598 = vst [vmem:[%s875_s21 + $0xf0] sm:$0xff] %v563_v49  ;;  %v492_v50 = vpop.f32.mrb[15].mxu0  ;;  %v565_v51 = vpop.f32.mrb[15].mxu1 }
 0x119   : > { %597 = vst [vmem:[%s875_s21 + $0xe8] sm:$0xff] %v492_v50  ;;  %599 = vst [vmem:[%s875_s21 + $0xf8] sm:$0xff] %v565_v51 }
 0x11a PF: > { %s15_s18 = sadd.s32 1, %s738_s18  }
 0x11b   : > { %p12_p4 = scmp.ge.s32.totalorder %s15_s18, 4  }
 0x11d   :  { %14 = sbr.rel (!%p12_p4) target bundleno = 1 (0x1), region = 70 }

// kernel: generator_forward.15
= control target key start
LH: loop header
LB: loop body
LE: loop exit
PB: predicated region body
PF: predicated region fallthrough
CT: control target
= control target key end

     0   :  { %s384_s6 = smov 0   ;;  %s505_s0 = inlined_call_operand.vmem [shape: f32[512,32], index: 0, kind: input, shape index: {}]   ;;  %s506_s1 = inlined_call_operand.vmem [shape: f32[2,32], index: 1, kind: output, shape index: {}]  }
   0x1 LB: > { %s347_s7 = sadd.s32 4294967295, %s371_s6   ;;  %p350_p0 = scmp.ge.s32.totalorder %s371_s6, 1  ;;  %s371_s6 = sphi %s384_s6, %s11_s6  }
   0x2   : > { %p83_p1 = scmp.lt.s32.totalorder %s371_s6, 3 }
   0x4   : > { %p84_p2 = pnand %p350_p0, %p83_p1 }
   0x5   : > { %s351_s8 = sshll.u32 (!%p84_p2), %s347_s7, 5  ;;  %p353_p4 = scmp.ne.s32.totalorder (!%p84_p2), %s347_s7, 0 }
   0x6   : > { %87 = sbr.rel (%p84_p2) target bundleno = 105 (0x69), region = 24  ;;  %p99_p3 = scmp.lt.s32.totalorder (!%p84_p2), %s351_s8, 63 }
   0xd   : > { %s508_s8 = smov (!%p99_p3, %s351_s8), 63  ;;  %107 = sbr.rel (%p353_p4) target bundleno = 20 (0x14), region = 28 }
   0xe   : > { %s352_s9 = sshll.u32 %s508_s8, 3  ;;  %vm108_vm0 = vcmask (!%p353_p4), 254976   ;;  %v373_v0 = vmov (!%p353_p4), 0.0  }
   0xf   : > { %s395_s12 = scalar_lea.vmem %s505_s0, %s352_s9  ;;  %109 = vst.msk [vmem:[%s506_s1] sm:$0x3] (!%p353_p4), %vm108_vm0, %v373_v0 }
  0x14 PF: > { %v110_v1 = vld [vmem:[%s395_s12] sm:$0xff]  ;;  %v111_v2 = vld [vmem:[%s395_s12 + $0x8] sm:$0xff]  ;;  %v112_v3 = vld [vmem:[%s395_s12 + $0x10] sm:$0xff]  ;;  %vm142_vm1 = vcmask 261120   ;;  %vm314_vm2 = vcmask 1040384   ;;  %vm317_vm3 = vcmask 254976  }
  0x15   : > { %v143_v4 = vsel %vm142_vm1, %v110_v1, 0.0  ;;  %v144_v5 = vsel %vm142_vm1, %v111_v2, 0.0  ;;  %v146_v6 = vsel %vm142_vm1, %v112_v3, 0.0  ;;  %v113_v7 = vld [vmem:[%s395_s12 + $0x18] sm:$0xff]  ;;  %v114_v10 = vld [vmem:[%s395_s12 + $0x20] sm:$0xff]  ;;  %v115_v13 = vld [vmem:[%s395_s12 + $0x28] sm:$0xff]  ;;  %v212_v28 = vmul.f32 %v110_v1, %v110_v1 }
  0x16   : > { %v145_v8 = vadd.f32 %v144_v5, %v143_v4  ;;  %v148_v9 = vsel %vm142_vm1, %v113_v7, 0.0  ;;  %v150_v12 = vsel %vm142_vm1, %v114_v10, 0.0  ;;  %v152_v15 = vsel %vm142_vm1, %v115_v13, 0.0  ;;  %v116_v16 = vld [vmem:[%s395_s12 + $0x30] sm:$0xff]  ;;  %v117_v19 = vld [vmem:[%s395_s12 + $0x38] sm:$0xff]  ;;  %v118_v22 = vld [vmem:[%s395_s12 + $0x40] sm:$0xff] }
  0x17   : > { %v154_v18 = vsel %vm142_vm1, %v116_v16, 0.0  ;;  %v156_v21 = vsel %vm142_vm1, %v117_v19, 0.0  ;;  %v158_v24 = vsel %vm142_vm1, %v118_v22, 0.0  ;;  %v119_v25 = vld [vmem:[%s395_s12 + $0x48] sm:$0xff]  ;;  %v213_v29 = vmul.f32 %v111_v2, %v111_v2  ;;  %v120_v31 = vld [vmem:[%s395_s12 + $0x50] sm:$0xff]  ;;  %v121_v33 = vld [vmem:[%s395_s12 + $0x58] sm:$0xff] }
  0x18   : > { %v147_v11 = vadd.f32 %v146_v6, %v145_v8  ;;  %v160_v27 = vsel %vm142_vm1, %v119_v25, 0.0  ;;  %v214_v30 = vmul.f32 %v112_v3, %v112_v3  ;;  %v162_v34 = vsel %vm142_vm1, %v120_v31, 0.0  ;;  %v122_v42 = vld [vmem:[%s395_s12 + $0x60] sm:$0xff]  ;;  %v123_v48 = vld [vmem:[%s395_s12 + $0x68] sm:$0xff]  ;;  %v124_v54 = vld [vmem:[%s395_s12 + $0x70] sm:$0xff] }
  0x19   : > { %v215_v35 = vmul.f32 %v113_v7, %v113_v7  ;;  %v164_v37 = vsel %vm142_vm1, %v121_v33, 0.0  ;;  %v216_v38 = vmul.f32 %v114_v10, %v114_v10  ;;  %v244_v39 = vsel %vm142_vm1, %v212_v28, 0.0  ;;  %v125_v60 = vld [vmem:[%s395_s12 + $0x78] sm:$0xff]  ;;  %v126_v2 = vld [vmem:[%s395_s12 + $0x80] sm:$0xff]  ;;  %v127_v8 = vld [vmem:[%s395_s12 + $0x88] sm:$0xff] }
  0x1a   : > { %v149_v14 = vadd.f32 %v148_v9, %v147_v11  ;;  %v245_v40 = vsel %vm142_vm1, %v213_v29, 0.0  ;;  %v247_v41 = vsel %vm142_vm1, %v214_v30, 0.0  ;;  %v166_v45 = vsel %vm142_vm1, %v122_v42, 0.0 }
  0x1b   : > { %v246_v44 = vadd.f32 %v245_v40, %v244_v39  ;;  %v217_v46 = vmul.f32 %v115_v13, %v115_v13  ;;  %v249_v47 = vsel %vm142_vm1, %v215_v35, 0.0  ;;  %v168_v51 = vsel %vm142_vm1, %v123_v48, 0.0 }
  0x1c   : > { %v151_v17 = vadd.f32 %v150_v12, %v149_v14  ;;  %v218_v52 = vmul.f32 %v116_v16, %v116_v16  ;;  %v251_v53 = vsel %vm142_vm1, %v216_v38, 0.0  ;;  %v170_v57 = vsel %vm142_vm1, %v124_v54, 0.0  ;;  %v128_v14 = vld [vmem:[%s395_s12 + $0x90] sm:$0xff] }
  0x1d   : > { %v248_v50 = vadd.f32 %v247_v41, %v246_v44  ;;  %v219_v58 = vmul.f32 %v117_v19, %v117_v19  ;;  %v253_v59 = vsel %vm142_vm1, %v217_v46, 0.0  ;;  %v172_v63 = vsel %vm142_vm1, %v125_v60, 0.0  ;;  %v132_v38 = vld [vmem:[%s395_s12 + $0xb0] sm:$0xff]  ;;  %v133_v44 = vld [vmem:[%s395_s12 + $0xb8] sm:$0xff] }
  0x1e   : > { %v153_v20 = vadd.f32 %v152_v15, %v151_v17  ;;  %v220_v0 = vmul.f32 %v118_v22, %v118_v22  ;;  %v255_v1 = vsel %vm142_vm1, %v218_v52, 0.0  ;;  %v174_v5 = vsel %vm142_vm1, %v126_v2, 0.0 }
  0x1f   : > { %v250_v56 = vadd.f32 %v249_v47, %v248_v50  ;;  %v221_v6 = vmul.f32 %v119_v25, %v119_v25  ;;  %v257_v7 = vsel %vm142_vm1, %v219_v58, 0.0  ;;  %v176_v11 = vsel %vm142_vm1, %v127_v8, 0.0  ;;  %v134_v50 = vld [vmem:[%s395_s12 + $0xc0] sm:$0xff] }
  0x20   : > { %v155_v23 = vadd.f32 %v154_v18, %v153_v20  ;;  %v222_v12 = vmul.f32 %v120_v31, %v120_v31  ;;  %v259_v13 = vsel %vm142_vm1, %v220_v0, 0.0  ;;  %v178_v17 = vsel %vm142_vm1, %v128_v14, 0.0  ;;  %v129_v20 = vld [vmem:[%s395_s12 + $0x98] sm:$0xff] }
  0x21   : > { %v252_v62 = vadd.f32 %v251_v53, %v250_v56  ;;  %v223_v18 = vmul.f32 %v121_v33, %v121_v33  ;;  %v261_v19 = vsel %vm142_vm1, %v221_v6, 0.0  ;;  %v225_v30 = vmul.f32 %v123_v48, %v123_v48  ;;  %v135_v56 = vld [vmem:[%s395_s12 + $0xc8] sm:$0xff] }
  0x22   : > { %v157_v26 = vadd.f32 %v156_v21, %v155_v23  ;;  %v180_v23 = vsel %vm142_vm1, %v129_v20, 0.0  ;;  %v263_v25 = vsel %vm142_vm1, %v222_v12, 0.0  ;;  %v186_v41 = vsel %vm142_vm1, %v132_v38, 0.0 }
  0x23   : > { %v254_v4 = vadd.f32 %v253_v59, %v252_v62  ;;  %v265_v31 = vsel %vm142_vm1, %v223_v18, 0.0  ;;  %v188_v47 = vsel %vm142_vm1, %v133_v44, 0.0  ;;  %v228_v48 = vmul.f32 %v126_v2, %v126_v2  ;;  %v136_v62 = vld [vmem:[%s395_s12 + $0xd0] sm:$0xff] }
  0x24   : > { %v159_v32 = vadd.f32 %v158_v24, %v157_v26  ;;  %v224_v24 = vmul.f32 %v122_v42, %v122_v42  ;;  %v130_v26 = vld [vmem:[%s395_s12 + $0xa0] sm:$0xff]  ;;  %v227_v42 = vmul.f32 %v125_v60, %v125_v60  ;;  %v190_v53 = vsel %vm142_vm1, %v134_v50, 0.0 }
  0x25   : > { %v256_v10 = vadd.f32 %v255_v1, %v254_v4  ;;  %v182_v29 = vsel %vm142_vm1, %v130_v26, 0.0  ;;  %v192_v59 = vsel %vm142_vm1, %v135_v56, 0.0  ;;  %v230_v60 = vmul.f32 %v128_v14, %v128_v14  ;;  %v137_v4 = vld [vmem:[%s395_s12 + $0xd8] sm:$0xff] }
  0x26   : > { %v161_v36 = vadd.f32 %v160_v27, %v159_v32  ;;  %v131_v32 = vld [vmem:[%s395_s12 + $0xa8] sm:$0xff]  ;;  %v194_v1 = vsel %vm142_vm1, %v136_v62, 0.0  ;;  %v231_v2 = vmul.f32 %v129_v20, %v129_v20  ;;  %v234_v20 = vmul.f32 %v132_v38, %v132_v38 }
  0x27   : > { %v258_v16 = vadd.f32 %v257_v7, %v256_v10  ;;  %v184_v35 = vsel %vm142_vm1, %v131_v32, 0.0  ;;  %v196_v7 = vsel %vm142_vm1, %v137_v4, 0.0  ;;  %v138_v10 = vld [vmem:[%s395_s12 + $0xe0] sm:$0xff]  ;;  %v233_v14 = vmul.f32 %v131_v32, %v131_v32 }
  0x28   : > { %v163_v43 = vadd.f32 %v162_v34, %v161_v36  ;;  %v226_v36 = vmul.f32 %v124_v54, %v124_v54  ;;  %v229_v54 = vmul.f32 %v127_v8, %v127_v8  ;;  %v232_v8 = vmul.f32 %v130_v26, %v130_v26  ;;  %v140_v26 = vld [vmem:[%s395_s12 + $0xf0] sm:$0xff] }
  0x29   : > { %v260_v22 = vadd.f32 %v259_v13, %v258_v16  ;;  %v198_v13 = vsel %vm142_vm1, %v138_v10, 0.0  ;;  %v139_v16 = vld [vmem:[%s395_s12 + $0xe8] sm:$0xff] }
  0x2a   : > { %v165_v49 = vadd.f32 %v164_v37, %v163_v43  ;;  %v267_v37 = vsel %vm142_vm1, %v224_v24, 0.0  ;;  %v269_v43 = vsel %vm142_vm1, %v225_v30, 0.0  ;;  %v235_v24 = vmul.f32 %v133_v44, %v133_v44 }
  0x2b   : > { %v262_v28 = vadd.f32 %v261_v19, %v260_v22  ;;  %v200_v19 = vsel %vm142_vm1, %v139_v16, 0.0  ;;  %v236_v30 = vmul.f32 %v134_v50, %v134_v50 }
  0x2c   : > { %v167_v55 = vadd.f32 %v166_v45, %v165_v49  ;;  %v271_v49 = vsel %vm142_vm1, %v226_v36, 0.0 }
  0x2d   : > { %v264_v34 = vadd.f32 %v263_v25, %v262_v28  ;;  %v285_v25 = vsel %vm142_vm1, %v233_v14, 0.0 }
  0x2e   : > { %v169_v61 = vadd.f32 %v168_v51, %v167_v55  ;;  %v273_v55 = vsel %vm142_vm1, %v227_v42, 0.0  ;;  %v239_v42 = vmul.f32 %v137_v4, %v137_v4 }
  0x2f   : > { %v266_v40 = vadd.f32 %v265_v31, %v264_v34  ;;  %v287_v31 = vsel %vm142_vm1, %v234_v20, 0.0  ;;  %v289_v34 = vsel %vm142_vm1, %v235_v24, 0.0 }
  0x30   : > { %v171_v3 = vadd.f32 %v170_v57, %v169_v61  ;;  %v275_v61 = vsel %vm142_vm1, %v228_v48, 0.0  ;;  %v297_v50 = vsel %vm142_vm1, %v239_v42, 0.0 }
  0x31   : > { %v268_v46 = vadd.f32 %v267_v37, %v266_v40  ;;  %v291_v40 = vsel %vm142_vm1, %v236_v30, 0.0 }
  0x32   : > { %v173_v9 = vadd.f32 %v172_v63, %v171_v3  ;;  %v277_v3 = vsel %vm142_vm1, %v229_v54, 0.0 }
  0x33   : > { %v270_v52 = vadd.f32 %v269_v43, %v268_v46  ;;  %v240_v46 = vmul.f32 %v138_v10, %v138_v10 }
  0x34   : > { %v175_v15 = vadd.f32 %v174_v5, %v173_v9  ;;  %v279_v9 = vsel %vm142_vm1, %v230_v60, 0.0 }
  0x35   : > { %v272_v58 = vadd.f32 %v271_v49, %v270_v52  ;;  %v241_v49 = vmul.f32 %v139_v16, %v139_v16  ;;  %v299_v54 = vsel %vm142_vm1, %v240_v46, 0.0 }
  0x36   : > { %v177_v21 = vadd.f32 %v176_v11, %v175_v15  ;;  %v281_v15 = vsel %vm142_vm1, %v231_v2, 0.0 }
  0x37   : > { %v274_v0 = vadd.f32 %v273_v55, %v272_v58 }
  0x38   : > { %v179_v27 = vadd.f32 %v178_v17, %v177_v21  ;;  %v283_v21 = vsel %vm142_vm1, %v232_v8, 0.0 }
  0x39   : > { %v276_v6 = vadd.f32 %v275_v61, %v274_v0 }
  0x3a   : > { %v181_v33 = vadd.f32 %v180_v23, %v179_v27 }
  0x3b   : > { %v278_v12 = vadd.f32 %v277_v3, %v276_v6 }
  0x3c   : > { %v183_v39 = vadd.f32 %v182_v29, %v181_v33  ;;  %v202_v29 = vsel %vm142_vm1, %v140_v26, 0.0  ;;  %v237_v33 = vmul.f32 %v135_v56, %v135_v56 }
  0x3d   : > { %v280_v18 = vadd.f32 %v279_v9, %v278_v12 }
  0x3e   : > { %v185_v45 = vadd.f32 %v184_v35, %v183_v39  ;;  %v141_v35 = vld [vmem:[%s395_s12 + $0xf8] sm:$0xff]  ;;  %v238_v39 = vmul.f32 %v136_v62, %v136_v62  ;;  %v293_v43 = vsel %vm142_vm1, %v237_v33, 0.0 }
  0x3f   : > { %v282_v23 = vadd.f32 %v281_v15, %v280_v18  ;;  %v204_v38 = vsel %vm142_vm1, %v141_v35, 0.0  ;;  %v243_v56 = vmul.f32 %v141_v35, %v141_v35 }
  0x40   : > { %v187_v51 = vadd.f32 %v186_v41, %v185_v45 }
  0x41   : > { %v284_v28 = vadd.f32 %v283_v21, %v282_v23  ;;  %v305_v62 = vsel %vm142_vm1, %v243_v56, 0.0 }
  0x42   : > { %v189_v57 = vadd.f32 %v188_v47, %v187_v51  ;;  %v295_v47 = vsel %vm142_vm1, %v238_v39, 0.0 }
  0x43   : > { %v286_v32 = vadd.f32 %v285_v25, %v284_v28 }
  0x44   : > { %v191_v63 = vadd.f32 %v190_v53, %v189_v57  ;;  %v242_v53 = vmul.f32 %v140_v26, %v140_v26  ;;  %v301_v57 = vsel %vm142_vm1, %v241_v49, 0.0 }
  0x45   : > { %v288_v37 = vadd.f32 %v287_v31, %v286_v32 }
  0x46   : > { %v193_v5 = vadd.f32 %v192_v59, %v191_v63  ;;  %v303_v60 = vsel %vm142_vm1, %v242_v53, 0.0 }
  0x47   : > { %v290_v41 = vadd.f32 %v289_v34, %v288_v37 }
  0x48   : > { %v195_v11 = vadd.f32 %v194_v1, %v193_v5 }
  0x49   : > { %v292_v45 = vadd.f32 %v291_v40, %v290_v41 }
  0x4a   : > { %v197_v17 = vadd.f32 %v196_v7, %v195_v11  ;;  %v313_v11 = vld [vmem:[%s506_s1] sm:$0x3] }
  0x4b   : > { %v294_v48 = vadd.f32 %v293_v43, %v292_v45 }
  0x4c   : > { %v199_v22 = vadd.f32 %v198_v13, %v197_v17 }
  0x4d   : > { %v296_v52 = vadd.f32 %v295_v47, %v294_v48 }
  0x4e   : > { %v201_v27 = vadd.f32 %v200_v19, %v199_v22 }
  0x4f   : > { %v298_v55 = vadd.f32 %v297_v50, %v296_v52 }
  0x50   : > { %v203_v36 = vadd.f32 %v202_v29, %v201_v27 }
  0x51   : > { %v300_v59 = vadd.f32 %v299_v54, %v298_v55 }
  0x52   : > { %v205_v44 = vadd.f32 %v204_v38, %v203_v36 }
  0x53   : > { %v302_v61 = vadd.f32 %v301_v57, %v300_v59 }
  0x54   : > { %v206_v51 = vrot.slane %v205_v44, 4 }
  0x55   : > { %v304_v0 = vadd.f32 %v303_v60, %v302_v61 }
  0x56   : > { %v207_v58 = vadd.f32 %v206_v51, %v205_v44 }
  0x57   : > { %v306_v1 = vadd.f32 %v305_v62, %v304_v0 }
  0x58   : > { %v208_v63 = vrot.slane %v207_v58, 2 }
  0x59   : > { %v307_v3 = vrot.slane %v306_v1, 4 }
  0x5a   : > { %v209_v2 = vadd.f32 %v208_v63, %v207_v58 }
  0x5b   : > { %v308_v4 = vadd.f32 %v307_v3, %v306_v1 }
  0x5c   : > { %v210_v5 = vrot.slane %v209_v2, 1 }
  0x5d   : > { %v309_v6 = vrot.slane %v308_v4, 2 }
  0x5e   : > { %v211_v8 = vadd.f32 %v210_v5, %v209_v2 }
  0x5f   : > { %v310_v7 = vadd.f32 %v309_v6, %v308_v4 }
  0x61   : > { %v311_v9 = vrot.slane %v310_v7, 1 }
  0x63   : > { %v312_v10 = vadd.f32 %v311_v9, %v310_v7 }
  0x65   : > { %v315_v12 = vsel %vm314_vm2, %v211_v8, %v312_v10 }
  0x66   : > { %v316_v13 = vadd.f32 %v315_v12, %v313_v11 }
  0x68   : > { %318 = vst.msk [vmem:[%s506_s1] sm:$0x3] %vm317_vm3, %v316_v13 }
  0x69 PF: > { %s11_s6 = sadd.s32 1, %s371_s6  }
  0x6a   : > { %p8_p5 = scmp.ge.s32.totalorder %s11_s6, 4  }
  0x6c   :  { %10 = sbr.rel (!%p8_p5) target bundleno = 1 (0x1), region = 54 }

// kernel: generator_forward.16
= control target key start
LH: loop header
LB: loop body
LE: loop exit
PB: predicated region body
PF: predicated region fallthrough
CT: control target
= control target key end

     0   :  { %s952_s18 = smov 0   ;;  %s1265_s0 = inlined_call_operand.vmem [shape: f32[512,32], index: 0, kind: input, shape index: {}]   ;;  %s1266_s1 = inlined_call_operand.vmem [shape: f32[2,32], index: 1, kind: input, shape index: {}]   ;;  %s1267_s2 = inlined_call_operand.vmem [shape: f32[1,32], index: 2, kind: input, shape index: {}]   ;;  %s1268_s3 = inlined_call_operand.vmem [shape: f32[1,32], index: 3, kind: input, shape index: {}]   ;;  %s1269_s4 = inlined_call_operand.vmem [shape: bf16[32,256], index: 4, kind: input, shape index: {}]   ;;  %s1270_s5 = inlined_call_operand.vmem [shape: f32[512,256], index: 5, kind: output, shape index: {}]  }
   0x1 LB: > { %s857_s19 = sadd.s32 4294967295, %s919_s18   ;;  %p861_p0 = scmp.ge.s32.totalorder %s919_s18, 1  ;;  %s919_s18 = sphi %s952_s18, %s15_s18  }
   0x2   : > { %p188_p1 = scmp.lt.s32.totalorder %s919_s18, 3 }
   0x4   : > { %p189_p2 = pnand %p861_p0, %p188_p1 }
   0x5   : > { %v905_v0 = vld [vmem:[%s1269_s4 + $0x4] ss:$8 sps:$4 sm:$0xff] (!%p189_p2)   ;;  %s862_s22 = sshll.u32 (!%p189_p2), %s857_s19, 5  ;;  %v907_v1 = vld [vmem:[%s1269_s4] ss:$8 sps:$4 sm:$0xff] (!%p189_p2)   ;;  %v921_v2 = vmov (!%p189_p2), 0   ;;  %v269_v9 = vlaneseq (!%p189_p2) }
   0x6   : > { %192 = sbr.rel (%p189_p2) target bundleno = 310 (0x136), region = 40  ;;  %574 = vmatprep.mubr.bf16.mxu0 (!%p189_p2), %v921_v2  ;;  %654 = vmatprep.mubr.bf16.mxu1 (!%p189_p2), %v921_v2  ;;  %v908_v3 = vld [vmem:[%s1269_s4 + $0x14] ss:$8 sps:$4 sm:$0xff] (!%p189_p2)   ;;  %p218_p3 = scmp.lt.s32.totalorder (!%p189_p2), %s862_s22, 63  ;;  %v263_v4 = vld [vmem:[%s1266_s1] sm:$0x1] (!%p189_p2) }
   0x7   : > { %542 = vmatprep.subr.bf16.mxu0 (!%p189_p2), %v905_v0  ;;  %892 = vmatprep.subr.bf16.mxu1 (!%p189_p2), %v905_v0  ;;  %v910_v5 = vld [vmem:[%s1269_s4 + $0x10] ss:$8 sps:$4 sm:$0xff] (!%p189_p2)   ;;  %v264_v6 = vmul.f32 (!%p189_p2), 0.001953125, %v263_v4  ;;  %v265_v7 = vld [vmem:[%s1266_s1 + $0x1] sm:$0x1] (!%p189_p2)  ;;  %v270_v12 = vshrl.u32 (!%p189_p2), %v269_v9, 7 }
   0x8   : > { %543 = vmatpush1.bf16.msra.mxu0 (!%p189_p2), %v907_v1  ;;  %894 = vmatpush1.bf16.msra.mxu1 (!%p189_p2), %v907_v1  ;;  %v266_v8 = vmul.f32 (!%p189_p2), 0.001953125, %v265_v7  ;;  %v1015_v38 = vld [vmem:[%s1267_s2] ss:$0 sm:$0xff] (!%p189_p2)  ;;  %vm493_vm0 = vcmask (!%p189_p2), 261120  }
   0x9   : > { %544 = vmatprep.subr.bf16.mxu0 (!%p189_p2), %v908_v3  ;;  %893 = vmatprep.subr.bf16.mxu1 (!%p189_p2), %v908_v3  ;;  %v267_v10 = vmul.f32 (!%p189_p2), %v264_v6, %v264_v6  ;;  %v271_v14 = vsub.s32 (!%p189_p2), 0, %v270_v12  ;;  %v1028_v47 = vld [vmem:[%s1268_s3] ss:$0 sm:$0xff] (!%p189_p2) }
   0xb   : > { %v268_v11 = vsub.f32 (!%p189_p2), %v266_v8, %v267_v10  ;;  %v990_v17 = vrot.slane (!%p189_p2), %v264_v6, %v271_v14 }
   0xc   : > { %545 = vmatpush1.bf16.msra.mxu0 (!%p189_p2), %v910_v5  ;;  %895 = vmatpush1.bf16.msra.mxu1 (!%p189_p2), %v910_v5 }
   0xd   : > { %s1272_s22 = smov (!%p218_p3, %s862_s22), 63  ;;  %v305_v13 = vadd.f32 1e-05, %v268_v11 }
   0xe   : > { %s863_s8 = sshll.u32 %s1272_s22, 3  ;;  %s891_s16 = sshll.u32 %s1272_s22, 4 }
   0xf   : > { %911 = vrsqrt.f32 %v305_v13  ;;  %s986_s11 = scalar_lea.vmem %s1265_s0, %s863_s8  ;;  %s1196_s20 = scalar_lea.vmem %s1270_s5, %s891_s16 }
  0x10   : > { %v231_v15 = vld [vmem:[%s986_s11] sm:$0xff]  ;;  %v232_v16 = vld [vmem:[%s986_s11 + $0x8] sm:$0xff]  ;;  %v233_v20 = vld [vmem:[%s986_s11 + $0x10] sm:$0xff] }
  0x11   : > { %v247_v18 = vld [vmem:[%s986_s11 + $0x80] sm:$0xff]  ;;  %v248_v19 = vld [vmem:[%s986_s11 + $0x88] sm:$0xff]  ;;  %v234_v21 = vld [vmem:[%s986_s11 + $0x18] sm:$0xff]  ;;  %v273_v25 = vsub.f32 %v231_v15, %v990_v17  ;;  %v274_v26 = vsub.f32 %v232_v16, %v990_v17  ;;  %v275_v33 = vsub.f32 %v233_v20, %v990_v17 }
  0x12   : > { %v249_v22 = vld [vmem:[%s986_s11 + $0x90] sm:$0xff]  ;;  %v250_v23 = vld [vmem:[%s986_s11 + $0x98] sm:$0xff]  ;;  %v235_v24 = vld [vmem:[%s986_s11 + $0x20] sm:$0xff]  ;;  %v289_v27 = vsub.f32 %v247_v18, %v990_v17  ;;  %v290_v28 = vsub.f32 %v248_v19, %v990_v17  ;;  %v276_v34 = vsub.f32 %v234_v21, %v990_v17 }
  0x13   : > { %v236_v29 = vld [vmem:[%s986_s11 + $0x28] sm:$0xff]  ;;  %v251_v30 = vld [vmem:[%s986_s11 + $0xa0] sm:$0xff]  ;;  %v291_v35 = vsub.f32 %v249_v22, %v990_v17  ;;  %v292_v36 = vsub.f32 %v250_v23, %v990_v17  ;;  %v277_v39 = vsub.f32 %v235_v24, %v990_v17  ;;  %v237_v60 = vld [vmem:[%s986_s11 + $0x30] sm:$0xff] }
  0x14   : > { %v252_v31 = vld [vmem:[%s986_s11 + $0xa8] sm:$0xff]  ;;  %v278_v40 = vsub.f32 %v236_v29, %v990_v17  ;;  %v293_v41 = vsub.f32 %v251_v30, %v990_v17  ;;  %v238_v1 = vld [vmem:[%s986_s11 + $0x38] sm:$0xff]  ;;  %v253_v3 = vld [vmem:[%s986_s11 + $0xb0] sm:$0xff]  ;;  %v279_v13 = vsub.f32 %v237_v60, %v990_v17 }
  0x15   : > { %v294_v42 = vsub.f32 %v252_v31, %v990_v17  ;;  %v254_v4 = vld [vmem:[%s986_s11 + $0xb8] sm:$0xff]  ;;  %v295_v15 = vsub.f32 %v253_v3, %v990_v17 }
  0x16   : > { %v296_v16 = vsub.f32 %v254_v4, %v990_v17 }
  0x19   : > { %v912_v32 = vpop.eup %911 }
  0x1a   : > { %v1010_v37 = vrot.slane %v912_v32, %v271_v14  ;;  %v280_v14 = vsub.f32 %v238_v1, %v990_v17 }
  0x1c   : > { %v311_v43 = vmul.f32 %v1010_v37, %v273_v25  ;;  %v312_v44 = vmul.f32 %v1010_v37, %v274_v26  ;;  %v327_v45 = vmul.f32 %v1010_v37, %v289_v27  ;;  %v328_v46 = vmul.f32 %v1010_v37, %v290_v28 }
  0x1d   : > { %v313_v48 = vmul.f32 %v1010_v37, %v275_v33  ;;  %v314_v49 = vmul.f32 %v1010_v37, %v276_v34  ;;  %v329_v50 = vmul.f32 %v1010_v37, %v291_v35  ;;  %v330_v51 = vmul.f32 %v1010_v37, %v292_v36 }
  0x1e   : > { %v350_v52 = vmul.f32 %v1015_v38, %v311_v43  ;;  %v351_v53 = vmul.f32 %v1015_v38, %v312_v44  ;;  %v366_v54 = vmul.f32 %v1015_v38, %v327_v45  ;;  %v367_v55 = vmul.f32 %v1015_v38, %v328_v46  ;;  %v255_v46 = vld [vmem:[%s986_s11 + $0xc0] sm:$0xff] }
  0x1f   : > { %v352_v56 = vmul.f32 %v1015_v38, %v313_v48  ;;  %v353_v57 = vmul.f32 %v1015_v38, %v314_v49  ;;  %v368_v58 = vmul.f32 %v1015_v38, %v329_v50  ;;  %v369_v59 = vmul.f32 %v1015_v38, %v330_v51  ;;  %v256_v48 = vld [vmem:[%s986_s11 + $0xc8] sm:$0xff] }
  0x20   : > { %v389_v61 = vadd.f32 %v1028_v47, %v350_v52  ;;  %v390_v62 = vadd.f32 %v1028_v47, %v351_v53  ;;  %v405_v63 = vadd.f32 %v1028_v47, %v366_v54  ;;  %v406_v0 = vadd.f32 %v1028_v47, %v367_v55 }
  0x21   : > { %v391_v5 = vadd.f32 %v1028_v47, %v352_v56  ;;  %v392_v6 = vadd.f32 %v1028_v47, %v353_v57  ;;  %v407_v7 = vadd.f32 %v1028_v47, %v368_v58  ;;  %v408_v8 = vadd.f32 %v1028_v47, %v369_v59 }
  0x22   : > { %v421_v9 = vmax.f32 %v389_v61, 0.0  ;;  %v422_v10 = vmax.f32 %v390_v62, 0.0  ;;  %v437_v11 = vmax.f32 %v405_v63, 0.0  ;;  %v438_v12 = vmax.f32 %v406_v0, 0.0  ;;  %v241_v63 = vld [vmem:[%s986_s11 + $0x50] sm:$0xff] }
  0x23   : > { %v315_v20 = vmul.f32 %v1010_v37, %v277_v39  ;;  %v316_v21 = vmul.f32 %v1010_v37, %v278_v40  ;;  %v423_v22 = vmax.f32 %v391_v5, 0.0  ;;  %v424_v23 = vmax.f32 %v392_v6, 0.0  ;;  %v239_v40 = vld [vmem:[%s986_s11 + $0x40] sm:$0xff]  ;;  %v242_v5 = vld [vmem:[%s986_s11 + $0x58] sm:$0xff]  ;;  %v257_v6 = vld [vmem:[%s986_s11 + $0xd0] sm:$0xff] }
  0x24   : > { %v453_v18 = vpack.c.bf16 %v422_v10, %v421_v9  ;;  %v461_v19 = vpack.c.bf16 %v438_v12, %v437_v11  ;;  %v331_v24 = vmul.f32 %v1010_v37, %v293_v41  ;;  %v332_v25 = vmul.f32 %v1010_v37, %v294_v42  ;;  %v240_v41 = vld [vmem:[%s986_s11 + $0x48] sm:$0xff] }
  0x25   : > { %v439_v26 = vmax.f32 %v407_v7, 0.0  ;;  %v440_v27 = vmax.f32 %v408_v8, 0.0  ;;  %v354_v28 = vmul.f32 %v1015_v38, %v315_v20  ;;  %v355_v29 = vmul.f32 %v1015_v38, %v316_v21  ;;  %v258_v7 = vld [vmem:[%s986_s11 + $0xd8] sm:$0xff] }
  0x26   : > { %873 = vmatmul.mubr.msk.bf16.vlgmr.msra.gmra.mrb[0].mxu0 %vm493_vm0, %v453_v18  ;;  %881 = vmatmul.mubr.msk.bf16.vlgmr.msra.gmra.mrb[0].mxu1 %vm493_vm0, %v461_v19  ;;  %v370_v30 = vmul.f32 %v1015_v38, %v331_v24  ;;  %v371_v31 = vmul.f32 %v1015_v38, %v332_v25  ;;  %v317_v32 = vmul.f32 %v1010_v37, %v279_v13 }
  0x27   : > { %584 = vmatprep.mubr.bf16.mxu0 %v921_v2  ;;  %664 = vmatprep.mubr.bf16.mxu1 %v921_v2  ;;  %v318_v33 = vmul.f32 %v1010_v37, %v280_v14  ;;  %v454_v34 = vpack.c.bf16 %v424_v23, %v423_v22  ;;  %v393_v35 = vadd.f32 %v1028_v47, %v354_v28 }
  0x28   : > { %v394_v36 = vadd.f32 %v1028_v47, %v355_v29  ;;  %v333_v39 = vmul.f32 %v1010_v37, %v295_v15  ;;  %v462_v42 = vpack.c.bf16 %v440_v27, %v439_v26  ;;  %v409_v43 = vadd.f32 %v1028_v47, %v370_v30 }
  0x29   : > { %v410_v44 = vadd.f32 %v1028_v47, %v371_v31  ;;  %v334_v45 = vmul.f32 %v1010_v37, %v296_v16  ;;  %v356_v49 = vmul.f32 %v1015_v38, %v317_v32  ;;  %v357_v50 = vmul.f32 %v1015_v38, %v318_v33  ;;  %v243_v31 = vld [vmem:[%s986_s11 + $0x60] sm:$0xff]  ;;  %v244_v32 = vld [vmem:[%s986_s11 + $0x68] sm:$0xff] }
  0x2a   : > { %v281_v51 = vsub.f32 %v239_v40, %v990_v17  ;;  %v282_v52 = vsub.f32 %v240_v41, %v990_v17  ;;  %v425_v53 = vmax.f32 %v393_v35, 0.0  ;;  %v426_v54 = vmax.f32 %v394_v36, 0.0  ;;  %v260_v40 = vld [vmem:[%s986_s11 + $0xe8] sm:$0xff] }
  0x2b   : > { %v372_v55 = vmul.f32 %v1015_v38, %v333_v39  ;;  %v297_v56 = vsub.f32 %v255_v46, %v990_v17  ;;  %v441_v57 = vmax.f32 %v409_v43, 0.0  ;;  %v442_v58 = vmax.f32 %v410_v44, 0.0  ;;  %v259_v39 = vld [vmem:[%s986_s11 + $0xe0] sm:$0xff] }
  0x2c   : > { %v373_v59 = vmul.f32 %v1015_v38, %v334_v45  ;;  %v298_v60 = vsub.f32 %v256_v48, %v990_v17  ;;  %v395_v61 = vadd.f32 %v1028_v47, %v356_v49  ;;  %v396_v62 = vadd.f32 %v1028_v47, %v357_v50 }
  0x2d   : > { %v455_v0 = vpack.c.bf16 %v426_v54, %v425_v53  ;;  %v411_v1 = vadd.f32 %v1028_v47, %v372_v55  ;;  %v319_v3 = vmul.f32 %v1010_v37, %v281_v51  ;;  %v320_v4 = vmul.f32 %v1010_v37, %v282_v52 }
  0x2e   : > { %874 = vmatmul.mubr.msk.bf16.gmra.mrb[4].mxu0 %vm493_vm0, %v454_v34  ;;  %882 = vmatmul.mubr.msk.bf16.gmra.mrb[4].mxu1 %vm493_vm0, %v462_v42  ;;  %v463_v8 = vpack.c.bf16 %v442_v58, %v441_v57  ;;  %v412_v9 = vadd.f32 %v1028_v47, %v373_v59  ;;  %v335_v10 = vmul.f32 %v1010_v37, %v297_v56  ;;  %v427_v16 = vmax.f32 %v395_v61, 0.0 }
  0x2f   : > { %594 = vmatprep.mubr.bf16.mxu0 %v921_v2  ;;  %674 = vmatprep.mubr.bf16.mxu1 %v921_v2  ;;  %v336_v11 = vmul.f32 %v1010_v37, %v298_v60  ;;  %v283_v12 = vsub.f32 %v241_v63, %v990_v17  ;;  %v284_v13 = vsub.f32 %v242_v5, %v990_v17  ;;  %v428_v18 = vmax.f32 %v396_v62, 0.0  ;;  %v245_v60 = vld [vmem:[%s986_s11 + $0x70] sm:$0xff] }
  0x30   : > { %v299_v14 = vsub.f32 %v257_v6, %v990_v17  ;;  %v300_v15 = vsub.f32 %v258_v7, %v990_v17  ;;  %v358_v19 = vmul.f32 %v1015_v38, %v319_v3  ;;  %v359_v20 = vmul.f32 %v1015_v38, %v320_v4  ;;  %v261_v3 = vld [vmem:[%s986_s11 + $0xf0] sm:$0xff]  ;;  %v262_v4 = vld [vmem:[%s986_s11 + $0xf8] sm:$0xff] }
  0x31   : > { %v443_v21 = vmax.f32 %v411_v1, 0.0  ;;  %v444_v22 = vmax.f32 %v412_v9, 0.0  ;;  %v374_v23 = vmul.f32 %v1015_v38, %v335_v10  ;;  %v375_v24 = vmul.f32 %v1015_v38, %v336_v11  ;;  %v246_v1 = vld [vmem:[%s986_s11 + $0x78] sm:$0xff] }
  0x32   : > { %v321_v25 = vmul.f32 %v1010_v37, %v283_v12  ;;  %v322_v26 = vmul.f32 %v1010_v37, %v284_v13  ;;  %v456_v27 = vpack.c.bf16 %v428_v18, %v427_v16  ;;  %v397_v28 = vadd.f32 %v1028_v47, %v358_v19 }
  0x33   : > { %v398_v29 = vadd.f32 %v1028_v47, %v359_v20  ;;  %v337_v30 = vmul.f32 %v1010_v37, %v299_v14  ;;  %v464_v33 = vpack.c.bf16 %v444_v22, %v443_v21  ;;  %v413_v34 = vadd.f32 %v1028_v47, %v374_v23 }
  0x34   : > { %v414_v35 = vadd.f32 %v1028_v47, %v375_v24  ;;  %v338_v36 = vmul.f32 %v1010_v37, %v300_v15  ;;  %v360_v41 = vmul.f32 %v1015_v38, %v321_v25  ;;  %v361_v42 = vmul.f32 %v1015_v38, %v322_v26 }
  0x35   : > { %v285_v43 = vsub.f32 %v243_v31, %v990_v17  ;;  %v286_v44 = vsub.f32 %v244_v32, %v990_v17  ;;  %v429_v45 = vmax.f32 %v397_v28, 0.0  ;;  %v430_v46 = vmax.f32 %v398_v29, 0.0 }
  0x36   : > { %875 = vmatmul.mubr.msk.bf16.gmra.mrb[8].mxu0 %vm493_vm0, %v455_v0  ;;  %883 = vmatmul.mubr.msk.bf16.gmra.mrb[8].mxu1 %vm493_vm0, %v463_v8  ;;  %v376_v48 = vmul.f32 %v1015_v38, %v337_v30  ;;  %v301_v49 = vsub.f32 %v259_v39, %v990_v17  ;;  %v445_v50 = vmax.f32 %v413_v34, 0.0  ;;  %v446_v51 = vmax.f32 %v414_v35, 0.0 }
  0x37   : > { %604 = vmatprep.mubr.bf16.mxu0 %v921_v2  ;;  %684 = vmatprep.mubr.bf16.mxu1 %v921_v2  ;;  %v377_v52 = vmul.f32 %v1015_v38, %v338_v36  ;;  %v302_v53 = vsub.f32 %v260_v40, %v990_v17  ;;  %v399_v54 = vadd.f32 %v1028_v47, %v360_v41 }
  0x38   : > { %v400_v55 = vadd.f32 %v1028_v47, %v361_v42  ;;  %v323_v56 = vmul.f32 %v1010_v37, %v285_v43  ;;  %v457_v57 = vpack.c.bf16 %v430_v46, %v429_v45  ;;  %v415_v58 = vadd.f32 %v1028_v47, %v376_v48 }
  0x39   : > { %v324_v59 = vmul.f32 %v1010_v37, %v286_v44  ;;  %v465_v61 = vpack.c.bf16 %v446_v51, %v445_v50  ;;  %v416_v62 = vadd.f32 %v1028_v47, %v377_v52  ;;  %v339_v63 = vmul.f32 %v1010_v37, %v301_v49 }
  0x3a   : > { %v340_v0 = vmul.f32 %v1010_v37, %v302_v53  ;;  %v431_v5 = vmax.f32 %v399_v54, 0.0  ;;  %v432_v6 = vmax.f32 %v400_v55, 0.0  ;;  %v362_v7 = vmul.f32 %v1015_v38, %v323_v56 }
  0x3b   : > { %v287_v8 = vsub.f32 %v245_v60, %v990_v17  ;;  %v363_v9 = vmul.f32 %v1015_v38, %v324_v59  ;;  %v288_v10 = vsub.f32 %v246_v1, %v990_v17  ;;  %v303_v11 = vsub.f32 %v261_v3, %v990_v17 }
  0x3c   : > { %v304_v12 = vsub.f32 %v262_v4, %v990_v17  ;;  %v447_v13 = vmax.f32 %v415_v58, 0.0  ;;  %v448_v14 = vmax.f32 %v416_v62, 0.0  ;;  %v378_v15 = vmul.f32 %v1015_v38, %v339_v63 }
  0x3d   : > { %v379_v16 = vmul.f32 %v1015_v38, %v340_v0  ;;  %v458_v18 = vpack.c.bf16 %v432_v6, %v431_v5  ;;  %v401_v19 = vadd.f32 %v1028_v47, %v362_v7  ;;  %v402_v20 = vadd.f32 %v1028_v47, %v363_v9 }
  0x3e   : > { %876 = vmatmul.mubr.msk.bf16.gmra.mrb[12].mxu0 %vm493_vm0, %v456_v27  ;;  %884 = vmatmul.mubr.msk.bf16.gmra.mrb[12].mxu1 %vm493_vm0, %v464_v33  ;;  %v325_v17 = vmul.f32 %v1010_v37, %v287_v8  ;;  %v326_v21 = vmul.f32 %v1010_v37, %v288_v10  ;;  %v341_v22 = vmul.f32 %v1010_v37, %v303_v11 }
  0x3f   : > { %614 = vmatprep.mubr.bf16.mxu0 %v921_v2  ;;  %694 = vmatprep.mubr.bf16.mxu1 %v921_v2  ;;  %v466_v23 = vpack.c.bf16 %v448_v14, %v447_v13  ;;  %v417_v24 = vadd.f32 %v1028_v47, %v378_v15  ;;  %v418_v25 = vadd.f32 %v1028_v47, %v379_v16  ;;  %v433_v27 = vmax.f32 %v401_v19, 0.0 }
  0x40   : > { %v342_v26 = vmul.f32 %v1010_v37, %v304_v12  ;;  %v434_v28 = vmax.f32 %v402_v20, 0.0  ;;  %v364_v29 = vmul.f32 %v1015_v38, %v325_v17  ;;  %v365_v30 = vmul.f32 %v1015_v38, %v326_v21 }
  0x41   : > { %v449_v31 = vmax.f32 %v417_v24, 0.0  ;;  %v450_v32 = vmax.f32 %v418_v25, 0.0  ;;  %v380_v33 = vmul.f32 %v1015_v38, %v341_v22 }
  0x42   : > { %v381_v34 = vmul.f32 %v1015_v38, %v342_v26  ;;  %v403_v37 = vadd.f32 %v1028_v47, %v364_v29  ;;  %v404_v35 = vadd.f32 %v1028_v47, %v365_v30  ;;  %v459_v36 = vpack.c.bf16 %v434_v28, %v433_v27 }
  0x43   : > { %v467_v39 = vpack.c.bf16 %v450_v32, %v449_v31  ;;  %v419_v40 = vadd.f32 %v1028_v47, %v380_v33 }
  0x44   : > { %v420_v41 = vadd.f32 %v1028_v47, %v381_v34  ;;  %v435_v38 = vmax.f32 %v403_v37, 0.0  ;;  %v436_v42 = vmax.f32 %v404_v35, 0.0 }
  0x45   : > { %v451_v43 = vmax.f32 %v419_v40, 0.0 }
  0x46   : > { %877 = vmatmul.mubr.msk.bf16.gmra.mrb[16].mxu0 %vm493_vm0, %v457_v57  ;;  %885 = vmatmul.mubr.msk.bf16.gmra.mrb[16].mxu1 %vm493_vm0, %v465_v61  ;;  %v452_v44 = vmax.f32 %v420_v41, 0.0  ;;  %v460_v45 = vpack.c.bf16 %v436_v42, %v435_v38 }
  0x47   : > { %624 = vmatprep.mubr.bf16.mxu0 %v921_v2  ;;  %704 = vmatprep.mubr.bf16.mxu1 %v921_v2 }
  0x48   : > { %v468_v46 = vpack.c.bf16 %v452_v44, %v451_v43 }
  0x4e   : > { %878 = vmatmul.mubr.msk.bf16.gmra.mrb[20].mxu0 %vm493_vm0, %v458_v18  ;;  %886 = vmatmul.mubr.msk.bf16.gmra.mrb[20].mxu1 %vm493_vm0, %v466_v23 }
  0x4f   : > { %634 = vmatprep.mubr.bf16.mxu0 %v921_v2  ;;  %714 = vmatprep.mubr.bf16.mxu1 %v921_v2 }
  0x56   : > { %879 = vmatmul.mubr.msk.bf16.gmra.mrb[24].mxu0 %vm493_vm0, %v459_v36  ;;  %887 = vmatmul.mubr.msk.bf16.gmra.mrb[24].mxu1 %vm493_vm0, %v467_v39 }
  0x57   : > { %644 = vmatprep.mubr.bf16.mxu0 %v921_v2  ;;  %724 = vmatprep.mubr.bf16.mxu1 %v921_v2 }
  0x5e   : > { %880 = vmatmul.mubr.msk.bf16.gmra.mrb[28].mxu0 %vm493_vm0, %v460_v45  ;;  %888 = vmatmul.mubr.msk.bf16.gmra.mrb[28].mxu1 %vm493_vm0, %v468_v46 }
  0xf9   : > { %v576_v2 = vpop.f32.mrb[0].mxu0  ;;  %v656_v47 = vpop.f32.mrb[0].mxu1 }
  0xfa   : > { %735 = vst [vmem:[%s1196_s20] sm:$0xff] %v576_v2  ;;  %767 = vst [vmem:[%s1196_s20 + $0x100] sm:$0xff] %v656_v47  ;;  %v578_v48 = vpop.f32.mrb[1].mxu0  ;;  %v658_v49 = vpop.f32.mrb[1].mxu1 }
  0xfb   : > { %736 = vst [vmem:[%s1196_s20 + $0x8] sm:$0xff] %v578_v48  ;;  %768 = vst [vmem:[%s1196_s20 + $0x108] sm:$0xff] %v658_v49  ;;  %v580_v50 = vpop.f32.mrb[2].mxu0  ;;  %v660_v51 = vpop.f32.mrb[2].mxu1 }
  0xfc   : > { %737 = vst [vmem:[%s1196_s20 + $0x10] sm:$0xff] %v580_v50  ;;  %769 = vst [vmem:[%s1196_s20 + $0x110] sm:$0xff] %v660_v51  ;;  %v582_v52 = vpop.f32.mrb[3].mxu0  ;;  %v662_v53 = vpop.f32.mrb[3].mxu1 }
  0xfd   : > { %738 = vst [vmem:[%s1196_s20 + $0x18] sm:$0xff] %v582_v52  ;;  %770 = vst [vmem:[%s1196_s20 + $0x118] sm:$0xff] %v662_v53 }
 0x101   : > { %v586_v54 = vpop.f32.mrb[4].mxu0  ;;  %v666_v55 = vpop.f32.mrb[4].mxu1 }
 0x102   : > { %739 = vst [vmem:[%s1196_s20 + $0x20] sm:$0xff] %v586_v54  ;;  %771 = vst [vmem:[%s1196_s20 + $0x120] sm:$0xff] %v666_v55  ;;  %v588_v56 = vpop.f32.mrb[5].mxu0  ;;  %v668_v57 = vpop.f32.mrb[5].mxu1 }
 0x103   : > { %740 = vst [vmem:[%s1196_s20 + $0x28] sm:$0xff] %v588_v56  ;;  %772 = vst [vmem:[%s1196_s20 + $0x128] sm:$0xff] %v668_v57  ;;  %v590_v58 = vpop.f32.mrb[6].mxu0  ;;  %v670_v59 = vpop.f32.mrb[6].mxu1 }
 0x104   : > { %741 = vst [vmem:[%s1196_s20 + $0x30] sm:$0xff] %v590_v58  ;;  %773 = vst [vmem:[%s1196_s20 + $0x130] sm:$0xff] %v670_v59  ;;  %v592_v60 = vpop.f32.mrb[7].mxu0  ;;  %v672_v61 = vpop.f32.mrb[7].mxu1 }
 0x105   : > { %742 = vst [vmem:[%s1196_s20 + $0x38] sm:$0xff] %v592_v60  ;;  %774 = vst [vmem:[%s1196_s20 + $0x138] sm:$0xff] %v672_v61 }
 0x109   : > { %v596_v62 = vpop.f32.mrb[8].mxu0  ;;  %v676_v63 = vpop.f32.mrb[8].mxu1 }
 0x10a   : > { %743 = vst [vmem:[%s1196_s20 + $0x40] sm:$0xff] %v596_v62  ;;  %775 = vst [vmem:[%s1196_s20 + $0x140] sm:$0xff] %v676_v63  ;;  %v598_v0 = vpop.f32.mrb[9].mxu0  ;;  %v678_v1 = vpop.f32.mrb[9].mxu1 }
 0x10b   : > { %744 = vst [vmem:[%s1196_s20 + $0x48] sm:$0xff] %v598_v0  ;;  %776 = vst [vmem:[%s1196_s20 + $0x148] sm:$0xff] %v678_v1  ;;  %v600_v3 = vpop.f32.mrb[10].mxu0  ;;  %v680_v4 = vpop.f32.mrb[10].mxu1 }
 0x10c   : > { %745 = vst [vmem:[%s1196_s20 + $0x50] sm:$0xff] %v600_v3  ;;  %777 = vst [vmem:[%s1196_s20 + $0x150] sm:$0xff] %v680_v4  ;;  %v602_v5 = vpop.f32.mrb[11].mxu0  ;;  %v682_v6 = vpop.f32.mrb[11].mxu1 }
 0x10d   : > { %746 = vst [vmem:[%s1196_s20 + $0x58] sm:$0xff] %v602_v5  ;;  %778 = vst [vmem:[%s1196_s20 + $0x158] sm:$0xff] %v682_v6 }
 0x111   : > { %v606_v7 = vpop.f32.mrb[12].mxu0  ;;  %v686_v8 = vpop.f32.mrb[12].mxu1 }
 0x112   : > { %747 = vst [vmem:[%s1196_s20 + $0x60] sm:$0xff] %v606_v7  ;;  %779 = vst [vmem:[%s1196_s20 + $0x160] sm:$0xff] %v686_v8  ;;  %v608_v9 = vpop.f32.mrb[13].mxu0  ;;  %v688_v10 = vpop.f32.mrb[13].mxu1 }
 0x113   : > { %748 = vst [vmem:[%s1196_s20 + $0x68] sm:$0xff] %v608_v9  ;;  %780 = vst [vmem:[%s1196_s20 + $0x168] sm:$0xff] %v688_v10  ;;  %v610_v11 = vpop.f32.mrb[14].mxu0  ;;  %v690_v12 = vpop.f32.mrb[14].mxu1 }
 0x114   : > { %749 = vst [vmem:[%s1196_s20 + $0x70] sm:$0xff] %v610_v11  ;;  %781 = vst [vmem:[%s1196_s20 + $0x170] sm:$0xff] %v690_v12  ;;  %v612_v13 = vpop.f32.mrb[15].mxu0  ;;  %v692_v14 = vpop.f32.mrb[15].mxu1 }
 0x115   : > { %750 = vst [vmem:[%s1196_s20 + $0x78] sm:$0xff] %v612_v13  ;;  %782 = vst [vmem:[%s1196_s20 + $0x178] sm:$0xff] %v692_v14 }
 0x119   : > { %v616_v15 = vpop.f32.mrb[16].mxu0  ;;  %v696_v16 = vpop.f32.mrb[16].mxu1 }
 0x11a   : > { %751 = vst [vmem:[%s1196_s20 + $0x80] sm:$0xff] %v616_v15  ;;  %783 = vst [vmem:[%s1196_s20 + $0x180] sm:$0xff] %v696_v16  ;;  %v618_v18 = vpop.f32.mrb[17].mxu0  ;;  %v698_v19 = vpop.f32.mrb[17].mxu1 }
 0x11b   : > { %752 = vst [vmem:[%s1196_s20 + $0x88] sm:$0xff] %v618_v18  ;;  %784 = vst [vmem:[%s1196_s20 + $0x188] sm:$0xff] %v698_v19  ;;  %v620_v20 = vpop.f32.mrb[18].mxu0  ;;  %v700_v17 = vpop.f32.mrb[18].mxu1 }
 0x11c   : > { %753 = vst [vmem:[%s1196_s20 + $0x90] sm:$0xff] %v620_v20  ;;  %785 = vst [vmem:[%s1196_s20 + $0x190] sm:$0xff] %v700_v17  ;;  %v622_v21 = vpop.f32.mrb[19].mxu0  ;;  %v702_v22 = vpop.f32.mrb[19].mxu1 }
 0x11d   : > { %754 = vst [vmem:[%s1196_s20 + $0x98] sm:$0xff] %v622_v21  ;;  %786 = vst [vmem:[%s1196_s20 + $0x198] sm:$0xff] %v702_v22 }
 0x121   : > { %v626_v23 = vpop.f32.mrb[20].mxu0  ;;  %v706_v24 = vpop.f32.mrb[20].mxu1 }
 0x122   : > { %755 = vst [vmem:[%s1196_s20 + $0xa0] sm:$0xff] %v626_v23  ;;  %787 = vst [vmem:[%s1196_s20 + $0x1a0] sm:$0xff] %v706_v24  ;;  %v628_v25 = vpop.f32.mrb[21].mxu0  ;;  %v708_v26 = vpop.f32.mrb[21].mxu1 }
 0x123   : > { %756 = vst [vmem:[%s1196_s20 + $0xa8] sm:$0xff] %v628_v25  ;;  %788 = vst [vmem:[%s1196_s20 + $0x1a8] sm:$0xff] %v708_v26  ;;  %v630_v27 = vpop.f32.mrb[22].mxu0  ;;  %v710_v28 = vpop.f32.mrb[22].mxu1 }
 0x124   : > { %757 = vst [vmem:[%s1196_s20 + $0xb0] sm:$0xff] %v630_v27  ;;  %789 = vst [vmem:[%s1196_s20 + $0x1b0] sm:$0xff] %v710_v28  ;;  %v632_v29 = vpop.f32.mrb[23].mxu0  ;;  %v712_v30 = vpop.f32.mrb[23].mxu1 }
 0x125   : > { %758 = vst [vmem:[%s1196_s20 + $0xb8] sm:$0xff] %v632_v29  ;;  %790 = vst [vmem:[%s1196_s20 + $0x1b8] sm:$0xff] %v712_v30 }
 0x129   : > { %v636_v31 = vpop.f32.mrb[24].mxu0  ;;  %v716_v32 = vpop.f32.mrb[24].mxu1 }
 0x12a   : > { %759 = vst [vmem:[%s1196_s20 + $0xc0] sm:$0xff] %v636_v31  ;;  %791 = vst [vmem:[%s1196_s20 + $0x1c0] sm:$0xff] %v716_v32  ;;  %v638_v33 = vpop.f32.mrb[25].mxu0  ;;  %v718_v34 = vpop.f32.mrb[25].mxu1 }
 0x12b   : > { %760 = vst [vmem:[%s1196_s20 + $0xc8] sm:$0xff] %v638_v33  ;;  %792 = vst [vmem:[%s1196_s20 + $0x1c8] sm:$0xff] %v718_v34  ;;  %v640_v37 = vpop.f32.mrb[26].mxu0  ;;  %v720_v35 = vpop.f32.mrb[26].mxu1 }
 0x12c   : > { %761 = vst [vmem:[%s1196_s20 + $0xd0] sm:$0xff] %v640_v37  ;;  %793 = vst [vmem:[%s1196_s20 + $0x1d0] sm:$0xff] %v720_v35  ;;  %v642_v36 = vpop.f32.mrb[27].mxu0  ;;  %v722_v39 = vpop.f32.mrb[27].mxu1 }
 0x12d   : > { %762 = vst [vmem:[%s1196_s20 + $0xd8] sm:$0xff] %v642_v36  ;;  %794 = vst [vmem:[%s1196_s20 + $0x1d8] sm:$0xff] %v722_v39 }
 0x131   : > { %v646_v40 = vpop.f32.mrb[28].mxu0  ;;  %v726_v41 = vpop.f32.mrb[28].mxu1 }
 0x132   : > { %763 = vst [vmem:[%s1196_s20 + $0xe0] sm:$0xff] %v646_v40  ;;  %795 = vst [vmem:[%s1196_s20 + $0x1e0] sm:$0xff] %v726_v41  ;;  %v648_v38 = vpop.f32.mrb[29].mxu0  ;;  %v728_v42 = vpop.f32.mrb[29].mxu1 }
 0x133   : > { %764 = vst [vmem:[%s1196_s20 + $0xe8] sm:$0xff] %v648_v38  ;;  %796 = vst [vmem:[%s1196_s20 + $0x1e8] sm:$0xff] %v728_v42  ;;  %v650_v43 = vpop.f32.mrb[30].mxu0  ;;  %v730_v44 = vpop.f32.mrb[30].mxu1 }
 0x134   : > { %765 = vst [vmem:[%s1196_s20 + $0xf0] sm:$0xff] %v650_v43  ;;  %797 = vst [vmem:[%s1196_s20 + $0x1f0] sm:$0xff] %v730_v44  ;;  %v652_v45 = vpop.f32.mrb[31].mxu0  ;;  %v732_v46 = vpop.f32.mrb[31].mxu1 }
 0x135   : > { %766 = vst [vmem:[%s1196_s20 + $0xf8] sm:$0xff] %v652_v45  ;;  %798 = vst [vmem:[%s1196_s20 + $0x1f8] sm:$0xff] %v732_v46 }
 0x136 PF: > { %s15_s18 = sadd.s32 1, %s919_s18  }
 0x137   : > { %p12_p4 = scmp.ge.s32.totalorder %s15_s18, 4  }
 0x139   :  { %14 = sbr.rel (!%p12_p4) target bundleno = 1 (0x1), region = 70 }

// kernel: generator_forward.17
= control target key start
LH: loop header
LB: loop body
LE: loop exit
PB: predicated region body
PF: predicated region fallthrough
CT: control target
= control target key end

     0   :  { %s960_s6 = smov 0   ;;  %s1964_s0 = inlined_call_operand.vmem [shape: f32[2048,16], index: 0, kind: input, shape index: {}]   ;;  %s1965_s1 = inlined_call_operand.vmem [shape: f32[2,16], index: 1, kind: output, shape index: {}]  }
   0x1 LB: > { %s923_s7 = sadd.s32 4294967295, %s947_s6   ;;  %p926_p0 = scmp.ge.s32.totalorder %s947_s6, 1  ;;  %s947_s6 = sphi %s960_s6, %s11_s6  }
   0x2   : > { %p83_p1 = scmp.lt.s32.totalorder %s947_s6, 3 }
   0x4   : > { %p84_p2 = pnand %p926_p0, %p83_p1 }
   0x5   : > { %s927_s8 = sshll.u32 (!%p84_p2), %s923_s7, 7  ;;  %p929_p4 = scmp.ne.s32.totalorder (!%p84_p2), %s923_s7, 0 }
   0x6   : > { %87 = sbr.rel (%p84_p2) target bundleno = 332 (0x14c), region = 24  ;;  %p99_p3 = scmp.lt.s32.totalorder (!%p84_p2), %s927_s8, 255 }
   0xd   : > { %s1967_s8 = smov (!%p99_p3, %s927_s8), 255  ;;  %107 = sbr.rel (%p929_p4) target bundleno = 20 (0x14), region = 28 }
   0xe   : > { %s928_s9 = sshll.u32 %s1967_s8, 3  ;;  %vm108_vm0 = vcmask (!%p929_p4), 123904   ;;  %v949_v0 = vmov (!%p929_p4), 0.0  }
   0xf   : > { %s971_s12 = scalar_lea.vmem %s1964_s0, %s928_s9  ;;  %109 = vst.msk [vmem:[%s1965_s1] sm:$0x3] (!%p929_p4), %vm108_vm0, %v949_v0 }
  0x14 PF: > { %v977_v1 = vld [vmem:[%s971_s12] sm:$0xff]  ;;  %v980_v2 = vld [vmem:[%s971_s12 + $0x8] sm:$0xff]  ;;  %v983_v3 = vld [vmem:[%s971_s12 + $0x10] sm:$0xff]  ;;  %vm238_vm1 = vcmask 130048   ;;  %vm890_vm2 = vcmask 1040384   ;;  %vm893_vm3 = vcmask 123904  }
  0x15   : > { %v239_v4 = vsel %vm238_vm1, %v977_v1, 0.0  ;;  %v240_v5 = vsel %vm238_vm1, %v980_v2, 0.0  ;;  %v242_v6 = vsel %vm238_vm1, %v983_v3, 0.0  ;;  %v992_v7 = vld [vmem:[%s971_s12 + $0x18] sm:$0xff]  ;;  %v997_v10 = vld [vmem:[%s971_s12 + $0x20] sm:$0xff]  ;;  %v1002_v13 = vld [vmem:[%s971_s12 + $0x28] sm:$0xff] }
  0x16   : > { %v241_v8 = vadd.f32 %v240_v5, %v239_v4  ;;  %v244_v9 = vsel %vm238_vm1, %v992_v7, 0.0  ;;  %v246_v12 = vsel %vm238_vm1, %v997_v10, 0.0  ;;  %v248_v15 = vsel %vm238_vm1, %v1002_v13, 0.0  ;;  %v1007_v16 = vld [vmem:[%s971_s12 + $0x30] sm:$0xff]  ;;  %v1012_v19 = vld [vmem:[%s971_s12 + $0x38] sm:$0xff]  ;;  %v1017_v22 = vld [vmem:[%s971_s12 + $0x40] sm:$0xff] }
  0x17   : > { %v250_v18 = vsel %vm238_vm1, %v1007_v16, 0.0  ;;  %v252_v21 = vsel %vm238_vm1, %v1012_v19, 0.0  ;;  %v254_v24 = vsel %vm238_vm1, %v1017_v22, 0.0  ;;  %v1022_v25 = vld [vmem:[%s971_s12 + $0x48] sm:$0xff]  ;;  %v1027_v28 = vld [vmem:[%s971_s12 + $0x50] sm:$0xff]  ;;  %v1032_v31 = vld [vmem:[%s971_s12 + $0x58] sm:$0xff] }
  0x18   : > { %v243_v11 = vadd.f32 %v242_v6, %v241_v8  ;;  %v256_v27 = vsel %vm238_vm1, %v1022_v25, 0.0  ;;  %v258_v30 = vsel %vm238_vm1, %v1027_v28, 0.0  ;;  %v260_v33 = vsel %vm238_vm1, %v1032_v31, 0.0  ;;  %v1037_v34 = vld [vmem:[%s971_s12 + $0x60] sm:$0xff]  ;;  %v1042_v37 = vld [vmem:[%s971_s12 + $0x68] sm:$0xff]  ;;  %v1047_v40 = vld [vmem:[%s971_s12 + $0x70] sm:$0xff] }
  0x19   : > { %v262_v36 = vsel %vm238_vm1, %v1037_v34, 0.0  ;;  %v264_v39 = vsel %vm238_vm1, %v1042_v37, 0.0  ;;  %v266_v42 = vsel %vm238_vm1, %v1047_v40, 0.0  ;;  %v1052_v43 = vld [vmem:[%s971_s12 + $0x78] sm:$0xff]  ;;  %v1057_v46 = vld [vmem:[%s971_s12 + $0x80] sm:$0xff]  ;;  %v1062_v49 = vld [vmem:[%s971_s12 + $0x88] sm:$0xff] }
  0x1a   : > { %v245_v14 = vadd.f32 %v244_v9, %v243_v11  ;;  %v268_v45 = vsel %vm238_vm1, %v1052_v43, 0.0  ;;  %v270_v48 = vsel %vm238_vm1, %v1057_v46, 0.0  ;;  %v272_v51 = vsel %vm238_vm1, %v1062_v49, 0.0  ;;  %v1067_v52 = vld [vmem:[%s971_s12 + $0x90] sm:$0xff]  ;;  %v1072_v55 = vld [vmem:[%s971_s12 + $0x98] sm:$0xff]  ;;  %v1077_v58 = vld [vmem:[%s971_s12 + $0xa0] sm:$0xff] }
  0x1b   : > { %v274_v54 = vsel %vm238_vm1, %v1067_v52, 0.0  ;;  %v276_v57 = vsel %vm238_vm1, %v1072_v55, 0.0  ;;  %v278_v60 = vsel %vm238_vm1, %v1077_v58, 0.0  ;;  %v1082_v61 = vld [vmem:[%s971_s12 + $0xa8] sm:$0xff]  ;;  %v1087_v0 = vld [vmem:[%s971_s12 + $0xb0] sm:$0xff]  ;;  %v1092_v6 = vld [vmem:[%s971_s12 + $0xb8] sm:$0xff] }
  0x1c   : > { %v247_v17 = vadd.f32 %v246_v12, %v245_v14  ;;  %v280_v63 = vsel %vm238_vm1, %v1082_v61, 0.0  ;;  %v282_v5 = vsel %vm238_vm1, %v1087_v0, 0.0  ;;  %v284_v9 = vsel %vm238_vm1, %v1092_v6, 0.0  ;;  %v1097_v11 = vld [vmem:[%s971_s12 + $0xc0] sm:$0xff] }
  0x1d   : > { %v286_v14 = vsel %vm238_vm1, %v1097_v11, 0.0 }
  0x1e   : > { %v249_v20 = vadd.f32 %v248_v15, %v247_v17  ;;  %v1102_v15 = vld [vmem:[%s971_s12 + $0xc8] sm:$0xff] }
  0x20   : > { %v251_v23 = vadd.f32 %v250_v18, %v249_v20  ;;  %v288_v18 = vsel %vm238_vm1, %v1102_v15, 0.0  ;;  %v1107_v20 = vld [vmem:[%s971_s12 + $0xd0] sm:$0xff] }
  0x22   : > { %v253_v26 = vadd.f32 %v252_v21, %v251_v23  ;;  %v290_v23 = vsel %vm238_vm1, %v1107_v20, 0.0 }
  0x24   : > { %v255_v29 = vadd.f32 %v254_v24, %v253_v26  ;;  %v500_v24 = vmul.f32 %v977_v1, %v977_v1  ;;  %v501_v26 = vmul.f32 %v980_v2, %v980_v2  ;;  %v504_v1 = vmul.f32 %v997_v10, %v997_v10 }
  0x25   : > { %v505_v10 = vmul.f32 %v1002_v13, %v1002_v13 }
  0x26   : > { %v257_v32 = vadd.f32 %v256_v27, %v255_v29  ;;  %v502_v27 = vmul.f32 %v983_v3, %v983_v3  ;;  %v1118_v29 = vld [vmem:[%s971_s12 + $0xd8] sm:$0xff]  ;;  %v628_v3 = vsel %vm238_vm1, %v500_v24, 0.0 }
  0x28   : > { %v259_v35 = vadd.f32 %v258_v30, %v257_v32  ;;  %v292_v32 = vsel %vm238_vm1, %v1118_v29, 0.0 }
  0x2a   : > { %v261_v38 = vadd.f32 %v260_v33, %v259_v35  ;;  %v503_v33 = vmul.f32 %v992_v7, %v992_v7  ;;  %v1125_v35 = vld [vmem:[%s971_s12 + $0xe0] sm:$0xff] }
  0x2b   : > { %v294_v2 = vsel %vm238_vm1, %v1125_v35, 0.0 }
  0x2c   : > { %v263_v41 = vadd.f32 %v262_v36, %v261_v38  ;;  %v629_v38 = vsel %vm238_vm1, %v501_v26, 0.0 }
  0x2d   : > { %v630_v7 = vadd.f32 %v629_v38, %v628_v3  ;;  %v1191_v3 = vld [vmem:[%s971_s12 + $0x120] sm:$0xff] }
  0x2e   : > { %v265_v44 = vadd.f32 %v264_v39, %v263_v41  ;;  %v631_v39 = vsel %vm238_vm1, %v502_v27, 0.0  ;;  %v1135_v41 = vld [vmem:[%s971_s12 + $0xe8] sm:$0xff]  ;;  %v510_v27 = vmul.f32 %v1027_v28, %v1027_v28  ;;  %v310_v28 = vsel %vm238_vm1, %v1191_v3, 0.0 }
  0x30   : > { %v267_v47 = vadd.f32 %v266_v42, %v265_v44  ;;  %v296_v44 = vsel %vm238_vm1, %v1135_v41, 0.0 }
  0x32   : > { %v269_v50 = vadd.f32 %v268_v45, %v267_v47  ;;  %v633_v45 = vsel %vm238_vm1, %v503_v33, 0.0  ;;  %v1143_v47 = vld [vmem:[%s971_s12 + $0xf0] sm:$0xff] }
  0x34   : > { %v271_v53 = vadd.f32 %v270_v48, %v269_v50  ;;  %v632_v50 = vadd.f32 %v631_v39, %v630_v7  ;;  %v647_v7 = vsel %vm238_vm1, %v510_v27, 0.0 }
  0x36   : > { %v273_v56 = vadd.f32 %v272_v51, %v271_v53  ;;  %v298_v51 = vsel %vm238_vm1, %v1143_v47, 0.0  ;;  %v506_v53 = vmul.f32 %v1007_v16, %v1007_v16 }
  0x38   : > { %v275_v59 = vadd.f32 %v274_v54, %v273_v56  ;;  %v635_v54 = vsel %vm238_vm1, %v504_v1, 0.0  ;;  %v1151_v56 = vld [vmem:[%s971_s12 + $0xf8] sm:$0xff]  ;;  %v511_v1 = vmul.f32 %v1032_v31, %v1032_v31 }
  0x39   : > { %v300_v13 = vsel %vm238_vm1, %v1151_v56, 0.0 }
  0x3a   : > { %v277_v62 = vadd.f32 %v276_v57, %v275_v59  ;;  %v634_v59 = vadd.f32 %v633_v45, %v632_v50  ;;  %v649_v50 = vsel %vm238_vm1, %v511_v1, 0.0 }
  0x3c   : > { %v279_v4 = vadd.f32 %v278_v60, %v277_v62  ;;  %v507_v60 = vmul.f32 %v1012_v19, %v1012_v19  ;;  %v637_v62 = vsel %vm238_vm1, %v505_v10, 0.0 }
  0x3e   : > { %v281_v8 = vadd.f32 %v280_v63, %v279_v4  ;;  %v1159_v63 = vld [vmem:[%s971_s12 + $0x100] sm:$0xff] }
  0x3f   : > { %v302_v16 = vsel %vm238_vm1, %v1159_v63, 0.0 }
  0x40   : > { %v283_v12 = vadd.f32 %v282_v5, %v281_v8  ;;  %v636_v5 = vadd.f32 %v635_v54, %v634_v59  ;;  %v508_v8 = vmul.f32 %v1017_v22, %v1017_v22 }
  0x42   : > { %v285_v17 = vadd.f32 %v284_v9, %v283_v12  ;;  %v639_v9 = vsel %vm238_vm1, %v506_v53, 0.0  ;;  %v1167_v12 = vld [vmem:[%s971_s12 + $0x108] sm:$0xff] }
  0x43   : > { %v304_v19 = vsel %vm238_vm1, %v1167_v12, 0.0 }
  0x44   : > { %v287_v21 = vadd.f32 %v286_v14, %v285_v17  ;;  %v638_v17 = vadd.f32 %v637_v62, %v636_v5 }
  0x46   : > { %v289_v30 = vadd.f32 %v288_v18, %v287_v21  ;;  %v509_v18 = vmul.f32 %v1022_v25, %v1022_v25  ;;  %v641_v21 = vsel %vm238_vm1, %v507_v60, 0.0  ;;  %v640_v26 = vadd.f32 %v639_v9, %v638_v17 }
  0x48   : > { %v291_v36 = vadd.f32 %v290_v23, %v289_v30  ;;  %v1175_v23 = vld [vmem:[%s971_s12 + $0x110] sm:$0xff]  ;;  %v643_v30 = vsel %vm238_vm1, %v508_v8, 0.0 }
  0x49   : > { %v306_v22 = vsel %vm238_vm1, %v1175_v23, 0.0 }
  0x4a   : > { %v293_v42 = vadd.f32 %v292_v32, %v291_v36  ;;  %v1183_v32 = vld [vmem:[%s971_s12 + $0x118] sm:$0xff]  ;;  %v642_v36 = vadd.f32 %v641_v21, %v640_v26 }
  0x4b   : > { %v308_v25 = vsel %vm238_vm1, %v1183_v32, 0.0 }
  0x4c   : > { %v295_v48 = vadd.f32 %v294_v2, %v293_v42  ;;  %v645_v2 = vsel %vm238_vm1, %v509_v18, 0.0  ;;  %v644_v39 = vadd.f32 %v643_v30, %v642_v36  ;;  %v512_v42 = vmul.f32 %v1037_v34, %v1037_v34 }
  0x4e   : > { %v297_v57 = vadd.f32 %v296_v44, %v295_v48  ;;  %v1199_v44 = vld [vmem:[%s971_s12 + $0x128] sm:$0xff]  ;;  %v646_v45 = vadd.f32 %v645_v2, %v644_v39  ;;  %v513_v48 = vmul.f32 %v1042_v37, %v1042_v37  ;;  %v651_v59 = vsel %vm238_vm1, %v512_v42, 0.0 }
  0x4f   : > { %v312_v31 = vsel %vm238_vm1, %v1199_v44, 0.0 }
  0x50   : > { %v299_v4 = vadd.f32 %v298_v51, %v297_v57  ;;  %v1207_v51 = vld [vmem:[%s971_s12 + $0x130] sm:$0xff]  ;;  %v648_v54 = vadd.f32 %v647_v7, %v646_v45  ;;  %v514_v57 = vmul.f32 %v1047_v40, %v1047_v40  ;;  %v653_v5 = vsel %vm238_vm1, %v513_v48, 0.0 }
  0x51   : > { %v314_v34 = vsel %vm238_vm1, %v1207_v51, 0.0 }
  0x52   : > { %v301_v14 = vadd.f32 %v300_v13, %v299_v4  ;;  %v1215_v13 = vld [vmem:[%s971_s12 + $0x138] sm:$0xff]  ;;  %v650_v62 = vadd.f32 %v649_v50, %v648_v54  ;;  %v515_v4 = vmul.f32 %v1052_v43, %v1052_v43  ;;  %v655_v17 = vsel %vm238_vm1, %v514_v57, 0.0 }
  0x53   : > { %v316_v37 = vsel %vm238_vm1, %v1215_v13, 0.0 }
  0x54   : > { %v303_v24 = vadd.f32 %v302_v16, %v301_v14  ;;  %v1223_v16 = vld [vmem:[%s971_s12 + $0x140] sm:$0xff]  ;;  %v652_v9 = vadd.f32 %v651_v59, %v650_v62  ;;  %v516_v14 = vmul.f32 %v1057_v46, %v1057_v46  ;;  %v657_v26 = vsel %vm238_vm1, %v515_v4, 0.0 }
  0x55   : > { %v318_v40 = vsel %vm238_vm1, %v1223_v16, 0.0 }
  0x56   : > { %v305_v33 = vadd.f32 %v304_v19, %v303_v24  ;;  %v1231_v19 = vld [vmem:[%s971_s12 + $0x148] sm:$0xff]  ;;  %v654_v21 = vadd.f32 %v653_v5, %v652_v9  ;;  %v517_v24 = vmul.f32 %v1062_v49, %v1062_v49  ;;  %v659_v36 = vsel %vm238_vm1, %v516_v14, 0.0 }
  0x57   : > { %v320_v43 = vsel %vm238_vm1, %v1231_v19, 0.0 }
  0x58   : > { %v307_v38 = vadd.f32 %v306_v22, %v305_v33  ;;  %v1239_v22 = vld [vmem:[%s971_s12 + $0x150] sm:$0xff]  ;;  %v656_v30 = vadd.f32 %v655_v17, %v654_v21  ;;  %v518_v33 = vmul.f32 %v1067_v52, %v1067_v52  ;;  %v661_v39 = vsel %vm238_vm1, %v517_v24, 0.0 }
  0x59   : > { %v322_v46 = vsel %vm238_vm1, %v1239_v22, 0.0 }
  0x5a   : > { %v309_v10 = vadd.f32 %v308_v25, %v307_v38  ;;  %v1247_v25 = vld [vmem:[%s971_s12 + $0x158] sm:$0xff]  ;;  %v658_v2 = vadd.f32 %v657_v26, %v656_v30  ;;  %v519_v38 = vmul.f32 %v1072_v55, %v1072_v55  ;;  %v663_v45 = vsel %vm238_vm1, %v518_v33, 0.0 }
  0x5b   : > { %v324_v49 = vsel %vm238_vm1, %v1247_v25, 0.0 }
  0x5c   : > { %v311_v53 = vadd.f32 %v310_v28, %v309_v10  ;;  %v1255_v28 = vld [vmem:[%s971_s12 + $0x160] sm:$0xff]  ;;  %v660_v7 = vadd.f32 %v659_v36, %v658_v2  ;;  %v520_v10 = vmul.f32 %v1077_v58, %v1077_v58  ;;  %v665_v54 = vsel %vm238_vm1, %v519_v38, 0.0 }
  0x5d   : > { %v326_v52 = vsel %vm238_vm1, %v1255_v28, 0.0 }
  0x5e   : > { %v313_v60 = vadd.f32 %v312_v31, %v311_v53  ;;  %v1263_v31 = vld [vmem:[%s971_s12 + $0x168] sm:$0xff]  ;;  %v662_v50 = vadd.f32 %v661_v39, %v660_v7  ;;  %v521_v53 = vmul.f32 %v1082_v61, %v1082_v61  ;;  %v667_v62 = vsel %vm238_vm1, %v520_v10, 0.0 }
  0x5f   : > { %v328_v55 = vsel %vm238_vm1, %v1263_v31, 0.0 }
  0x60   : > { %v315_v8 = vadd.f32 %v314_v34, %v313_v60  ;;  %v1271_v34 = vld [vmem:[%s971_s12 + $0x170] sm:$0xff]  ;;  %v664_v59 = vadd.f32 %v663_v45, %v662_v50  ;;  %v522_v60 = vmul.f32 %v1087_v0, %v1087_v0  ;;  %v669_v9 = vsel %vm238_vm1, %v521_v53, 0.0 }
  0x61   : > { %v330_v58 = vsel %vm238_vm1, %v1271_v34, 0.0 }
  0x62   : > { %v317_v18 = vadd.f32 %v316_v37, %v315_v8  ;;  %v1279_v37 = vld [vmem:[%s971_s12 + $0x178] sm:$0xff]  ;;  %v666_v5 = vadd.f32 %v665_v54, %v664_v59  ;;  %v523_v8 = vmul.f32 %v1092_v6, %v1092_v6  ;;  %v671_v21 = vsel %vm238_vm1, %v522_v60, 0.0 }
  0x63   : > { %v332_v61 = vsel %vm238_vm1, %v1279_v37, 0.0 }
  0x64   : > { %v319_v27 = vadd.f32 %v318_v40, %v317_v18  ;;  %v1287_v40 = vld [vmem:[%s971_s12 + $0x180] sm:$0xff]  ;;  %v668_v17 = vadd.f32 %v667_v62, %v666_v5  ;;  %v524_v18 = vmul.f32 %v1097_v11, %v1097_v11  ;;  %v673_v30 = vsel %vm238_vm1, %v523_v8, 0.0 }
  0x65   : > { %v334_v0 = vsel %vm238_vm1, %v1287_v40, 0.0 }
  0x66   : > { %v321_v1 = vadd.f32 %v320_v43, %v319_v27  ;;  %v1295_v43 = vld [vmem:[%s971_s12 + $0x188] sm:$0xff]  ;;  %v670_v26 = vadd.f32 %v669_v9, %v668_v17  ;;  %v525_v27 = vmul.f32 %v1102_v15, %v1102_v15  ;;  %v675_v2 = vsel %vm238_vm1, %v524_v18, 0.0 }
  0x67   : > { %v336_v6 = vsel %vm238_vm1, %v1295_v43, 0.0 }
  0x68   : > { %v323_v42 = vadd.f32 %v322_v46, %v321_v1  ;;  %v1303_v46 = vld [vmem:[%s971_s12 + $0x190] sm:$0xff]  ;;  %v672_v36 = vadd.f32 %v671_v21, %v670_v26  ;;  %v526_v1 = vmul.f32 %v1107_v20, %v1107_v20  ;;  %v677_v7 = vsel %vm238_vm1, %v525_v27, 0.0 }
  0x69   : > { %v338_v11 = vsel %vm238_vm1, %v1303_v46, 0.0 }
  0x6a   : > { %v325_v48 = vadd.f32 %v324_v49, %v323_v42  ;;  %v1311_v49 = vld [vmem:[%s971_s12 + $0x198] sm:$0xff]  ;;  %v674_v39 = vadd.f32 %v673_v30, %v672_v36  ;;  %v527_v42 = vmul.f32 %v1118_v29, %v1118_v29  ;;  %v679_v50 = vsel %vm238_vm1, %v526_v1, 0.0 }
  0x6b   : > { %v340_v15 = vsel %vm238_vm1, %v1311_v49, 0.0 }
  0x6c   : > { %v327_v57 = vadd.f32 %v326_v52, %v325_v48  ;;  %v1319_v52 = vld [vmem:[%s971_s12 + $0x1a0] sm:$0xff]  ;;  %v676_v45 = vadd.f32 %v675_v2, %v674_v39  ;;  %v528_v48 = vmul.f32 %v1125_v35, %v1125_v35  ;;  %v681_v59 = vsel %vm238_vm1, %v527_v42, 0.0 }
  0x6d   : > { %v342_v20 = vsel %vm238_vm1, %v1319_v52, 0.0 }
  0x6e   : > { %v329_v4 = vadd.f32 %v328_v55, %v327_v57  ;;  %v1327_v55 = vld [vmem:[%s971_s12 + $0x1a8] sm:$0xff]  ;;  %v678_v54 = vadd.f32 %v677_v7, %v676_v45  ;;  %v529_v57 = vmul.f32 %v1135_v41, %v1135_v41  ;;  %v683_v5 = vsel %vm238_vm1, %v528_v48, 0.0 }
  0x6f   : > { %v344_v29 = vsel %vm238_vm1, %v1327_v55, 0.0 }
  0x70   : > { %v331_v14 = vadd.f32 %v330_v58, %v329_v4  ;;  %v1335_v58 = vld [vmem:[%s971_s12 + $0x1b0] sm:$0xff]  ;;  %v680_v62 = vadd.f32 %v679_v50, %v678_v54  ;;  %v530_v4 = vmul.f32 %v1143_v47, %v1143_v47  ;;  %v685_v17 = vsel %vm238_vm1, %v529_v57, 0.0 }
  0x71   : > { %v346_v35 = vsel %vm238_vm1, %v1335_v58, 0.0 }
  0x72   : > { %v333_v24 = vadd.f32 %v332_v61, %v331_v14  ;;  %v1343_v61 = vld [vmem:[%s971_s12 + $0x1b8] sm:$0xff]  ;;  %v682_v9 = vadd.f32 %v681_v59, %v680_v62  ;;  %v531_v14 = vmul.f32 %v1151_v56, %v1151_v56  ;;  %v687_v26 = vsel %vm238_vm1, %v530_v4, 0.0 }
  0x73   : > { %v348_v41 = vsel %vm238_vm1, %v1343_v61, 0.0 }
  0x74   : > { %v335_v33 = vadd.f32 %v334_v0, %v333_v24  ;;  %v1351_v0 = vld [vmem:[%s971_s12 + $0x1c0] sm:$0xff]  ;;  %v684_v21 = vadd.f32 %v683_v5, %v682_v9  ;;  %v532_v24 = vmul.f32 %v1159_v63, %v1159_v63  ;;  %v689_v36 = vsel %vm238_vm1, %v531_v14, 0.0 }
  0x75   : > { %v350_v47 = vsel %vm238_vm1, %v1351_v0, 0.0 }
  0x76   : > { %v337_v38 = vadd.f32 %v336_v6, %v335_v33  ;;  %v1359_v6 = vld [vmem:[%s971_s12 + $0x1c8] sm:$0xff]  ;;  %v686_v30 = vadd.f32 %v685_v17, %v684_v21  ;;  %v533_v33 = vmul.f32 %v1167_v12, %v1167_v12  ;;  %v691_v39 = vsel %vm238_vm1, %v532_v24, 0.0 }
  0x77   : > { %v352_v56 = vsel %vm238_vm1, %v1359_v6, 0.0 }
  0x78   : > { %v339_v10 = vadd.f32 %v338_v11, %v337_v38  ;;  %v1367_v11 = vld [vmem:[%s971_s12 + $0x1d0] sm:$0xff]  ;;  %v688_v2 = vadd.f32 %v687_v26, %v686_v30  ;;  %v534_v38 = vmul.f32 %v1175_v23, %v1175_v23  ;;  %v693_v45 = vsel %vm238_vm1, %v533_v33, 0.0 }
  0x79   : > { %v354_v63 = vsel %vm238_vm1, %v1367_v11, 0.0 }
  0x7a   : > { %v341_v53 = vadd.f32 %v340_v15, %v339_v10  ;;  %v1375_v15 = vld [vmem:[%s971_s12 + $0x1d8] sm:$0xff]  ;;  %v690_v7 = vadd.f32 %v689_v36, %v688_v2  ;;  %v535_v10 = vmul.f32 %v1183_v32, %v1183_v32  ;;  %v695_v54 = vsel %vm238_vm1, %v534_v38, 0.0 }
  0x7b   : > { %v356_v12 = vsel %vm238_vm1, %v1375_v15, 0.0 }
  0x7c   : > { %v343_v60 = vadd.f32 %v342_v20, %v341_v53  ;;  %v1383_v20 = vld [vmem:[%s971_s12 + $0x1e0] sm:$0xff]  ;;  %v692_v50 = vadd.f32 %v691_v39, %v690_v7  ;;  %v536_v53 = vmul.f32 %v1191_v3, %v1191_v3  ;;  %v697_v62 = vsel %vm238_vm1, %v535_v10, 0.0 }
  0x7d   : > { %v358_v23 = vsel %vm238_vm1, %v1383_v20, 0.0 }
  0x7e   : > { %v345_v8 = vadd.f32 %v344_v29, %v343_v60  ;;  %v1391_v29 = vld [vmem:[%s971_s12 + $0x1e8] sm:$0xff]  ;;  %v694_v59 = vadd.f32 %v693_v45, %v692_v50  ;;  %v537_v60 = vmul.f32 %v1199_v44, %v1199_v44  ;;  %v699_v9 = vsel %vm238_vm1, %v536_v53, 0.0 }
  0x7f   : > { %v360_v32 = vsel %vm238_vm1, %v1391_v29, 0.0 }
  0x80   : > { %v347_v18 = vadd.f32 %v346_v35, %v345_v8  ;;  %v1399_v35 = vld [vmem:[%s971_s12 + $0x1f0] sm:$0xff]  ;;  %v696_v5 = vadd.f32 %v695_v54, %v694_v59  ;;  %v538_v8 = vmul.f32 %v1207_v51, %v1207_v51  ;;  %v701_v21 = vsel %vm238_vm1, %v537_v60, 0.0 }
  0x81   : > { %v362_v3 = vsel %vm238_vm1, %v1399_v35, 0.0 }
  0x82   : > { %v349_v27 = vadd.f32 %v348_v41, %v347_v18  ;;  %v1407_v41 = vld [vmem:[%s971_s12 + $0x1f8] sm:$0xff]  ;;  %v698_v17 = vadd.f32 %v697_v62, %v696_v5  ;;  %v539_v18 = vmul.f32 %v1215_v13, %v1215_v13  ;;  %v703_v30 = vsel %vm238_vm1, %v538_v8, 0.0 }
  0x83   : > { %v364_v44 = vsel %vm238_vm1, %v1407_v41, 0.0 }
  0x84   : > { %v351_v1 = vadd.f32 %v350_v47, %v349_v27  ;;  %v1415_v47 = vld [vmem:[%s971_s12 + $0x200] sm:$0xff]  ;;  %v700_v26 = vadd.f32 %v699_v9, %v698_v17  ;;  %v540_v27 = vmul.f32 %v1223_v16, %v1223_v16  ;;  %v705_v2 = vsel %vm238_vm1, %v539_v18, 0.0 }
  0x85   : > { %v366_v51 = vsel %vm238_vm1, %v1415_v47, 0.0 }
  0x86   : > { %v353_v42 = vadd.f32 %v352_v56, %v351_v1  ;;  %v1423_v56 = vld [vmem:[%s971_s12 + $0x208] sm:$0xff]  ;;  %v702_v36 = vadd.f32 %v701_v21, %v700_v26  ;;  %v541_v1 = vmul.f32 %v1231_v19, %v1231_v19  ;;  %v707_v7 = vsel %vm238_vm1, %v540_v27, 0.0 }
  0x87   : > { %v368_v13 = vsel %vm238_vm1, %v1423_v56, 0.0 }
  0x88   : > { %v355_v48 = vadd.f32 %v354_v63, %v353_v42  ;;  %v1431_v63 = vld [vmem:[%s971_s12 + $0x210] sm:$0xff]  ;;  %v704_v39 = vadd.f32 %v703_v30, %v702_v36  ;;  %v542_v42 = vmul.f32 %v1239_v22, %v1239_v22  ;;  %v709_v50 = vsel %vm238_vm1, %v541_v1, 0.0 }
  0x89   : > { %v370_v16 = vsel %vm238_vm1, %v1431_v63, 0.0 }
  0x8a   : > { %v357_v57 = vadd.f32 %v356_v12, %v355_v48  ;;  %v1439_v12 = vld [vmem:[%s971_s12 + $0x218] sm:$0xff]  ;;  %v706_v45 = vadd.f32 %v705_v2, %v704_v39  ;;  %v543_v48 = vmul.f32 %v1247_v25, %v1247_v25  ;;  %v711_v59 = vsel %vm238_vm1, %v542_v42, 0.0 }
  0x8b   : > { %v372_v19 = vsel %vm238_vm1, %v1439_v12, 0.0 }
  0x8c   : > { %v359_v4 = vadd.f32 %v358_v23, %v357_v57  ;;  %v1447_v23 = vld [vmem:[%s971_s12 + $0x220] sm:$0xff]  ;;  %v708_v54 = vadd.f32 %v707_v7, %v706_v45  ;;  %v544_v57 = vmul.f32 %v1255_v28, %v1255_v28  ;;  %v713_v5 = vsel %vm238_vm1, %v543_v48, 0.0 }
  0x8d   : > { %v374_v22 = vsel %vm238_vm1, %v1447_v23, 0.0 }
  0x8e   : > { %v361_v14 = vadd.f32 %v360_v32, %v359_v4  ;;  %v1455_v32 = vld [vmem:[%s971_s12 + $0x228] sm:$0xff]  ;;  %v710_v62 = vadd.f32 %v709_v50, %v708_v54  ;;  %v545_v4 = vmul.f32 %v1263_v31, %v1263_v31  ;;  %v715_v17 = vsel %vm238_vm1, %v544_v57, 0.0 }
  0x8f   : > { %v376_v25 = vsel %vm238_vm1, %v1455_v32, 0.0 }
  0x90   : > { %v363_v24 = vadd.f32 %v362_v3, %v361_v14  ;;  %v1463_v3 = vld [vmem:[%s971_s12 + $0x230] sm:$0xff]  ;;  %v712_v9 = vadd.f32 %v711_v59, %v710_v62  ;;  %v546_v14 = vmul.f32 %v1271_v34, %v1271_v34  ;;  %v717_v26 = vsel %vm238_vm1, %v545_v4, 0.0 }
  0x91   : > { %v378_v28 = vsel %vm238_vm1, %v1463_v3, 0.0 }
  0x92   : > { %v365_v33 = vadd.f32 %v364_v44, %v363_v24  ;;  %v1471_v44 = vld [vmem:[%s971_s12 + $0x238] sm:$0xff]  ;;  %v714_v21 = vadd.f32 %v713_v5, %v712_v9  ;;  %v547_v24 = vmul.f32 %v1279_v37, %v1279_v37  ;;  %v719_v36 = vsel %vm238_vm1, %v546_v14, 0.0 }
  0x93   : > { %v380_v31 = vsel %vm238_vm1, %v1471_v44, 0.0 }
  0x94   : > { %v367_v38 = vadd.f32 %v366_v51, %v365_v33  ;;  %v1479_v51 = vld [vmem:[%s971_s12 + $0x240] sm:$0xff]  ;;  %v716_v30 = vadd.f32 %v715_v17, %v714_v21  ;;  %v548_v33 = vmul.f32 %v1287_v40, %v1287_v40  ;;  %v721_v39 = vsel %vm238_vm1, %v547_v24, 0.0 }
  0x95   : > { %v382_v34 = vsel %vm238_vm1, %v1479_v51, 0.0 }
  0x96   : > { %v369_v10 = vadd.f32 %v368_v13, %v367_v38  ;;  %v1487_v13 = vld [vmem:[%s971_s12 + $0x248] sm:$0xff]  ;;  %v718_v2 = vadd.f32 %v717_v26, %v716_v30  ;;  %v549_v38 = vmul.f32 %v1295_v43, %v1295_v43  ;;  %v723_v45 = vsel %vm238_vm1, %v548_v33, 0.0 }
  0x97   : > { %v384_v37 = vsel %vm238_vm1, %v1487_v13, 0.0 }
  0x98   : > { %v371_v53 = vadd.f32 %v370_v16, %v369_v10  ;;  %v1495_v16 = vld [vmem:[%s971_s12 + $0x250] sm:$0xff]  ;;  %v720_v7 = vadd.f32 %v719_v36, %v718_v2  ;;  %v550_v10 = vmul.f32 %v1303_v46, %v1303_v46  ;;  %v725_v54 = vsel %vm238_vm1, %v549_v38, 0.0 }
  0x99   : > { %v386_v40 = vsel %vm238_vm1, %v1495_v16, 0.0 }
  0x9a   : > { %v373_v60 = vadd.f32 %v372_v19, %v371_v53  ;;  %v1503_v19 = vld [vmem:[%s971_s12 + $0x258] sm:$0xff]  ;;  %v722_v50 = vadd.f32 %v721_v39, %v720_v7  ;;  %v551_v53 = vmul.f32 %v1311_v49, %v1311_v49  ;;  %v727_v62 = vsel %vm238_vm1, %v550_v10, 0.0 }
  0x9b   : > { %v388_v43 = vsel %vm238_vm1, %v1503_v19, 0.0 }
  0x9c   : > { %v375_v8 = vadd.f32 %v374_v22, %v373_v60  ;;  %v1511_v22 = vld [vmem:[%s971_s12 + $0x260] sm:$0xff]  ;;  %v724_v59 = vadd.f32 %v723_v45, %v722_v50  ;;  %v552_v60 = vmul.f32 %v1319_v52, %v1319_v52  ;;  %v729_v9 = vsel %vm238_vm1, %v551_v53, 0.0 }
  0x9d   : > { %v390_v46 = vsel %vm238_vm1, %v1511_v22, 0.0 }
  0x9e   : > { %v377_v18 = vadd.f32 %v376_v25, %v375_v8  ;;  %v1519_v25 = vld [vmem:[%s971_s12 + $0x268] sm:$0xff]  ;;  %v726_v5 = vadd.f32 %v725_v54, %v724_v59  ;;  %v553_v8 = vmul.f32 %v1327_v55, %v1327_v55  ;;  %v731_v21 = vsel %vm238_vm1, %v552_v60, 0.0 }
  0x9f   : > { %v392_v49 = vsel %vm238_vm1, %v1519_v25, 0.0 }
  0xa0   : > { %v379_v27 = vadd.f32 %v378_v28, %v377_v18  ;;  %v1527_v28 = vld [vmem:[%s971_s12 + $0x270] sm:$0xff]  ;;  %v728_v17 = vadd.f32 %v727_v62, %v726_v5  ;;  %v554_v18 = vmul.f32 %v1335_v58, %v1335_v58  ;;  %v733_v30 = vsel %vm238_vm1, %v553_v8, 0.0 }
  0xa1   : > { %v394_v52 = vsel %vm238_vm1, %v1527_v28, 0.0 }
  0xa2   : > { %v381_v1 = vadd.f32 %v380_v31, %v379_v27  ;;  %v1535_v31 = vld [vmem:[%s971_s12 + $0x278] sm:$0xff]  ;;  %v730_v26 = vadd.f32 %v729_v9, %v728_v17  ;;  %v555_v27 = vmul.f32 %v1343_v61, %v1343_v61  ;;  %v735_v2 = vsel %vm238_vm1, %v554_v18, 0.0 }
  0xa3   : > { %v396_v55 = vsel %vm238_vm1, %v1535_v31, 0.0 }
  0xa4   : > { %v383_v42 = vadd.f32 %v382_v34, %v381_v1  ;;  %v1543_v34 = vld [vmem:[%s971_s12 + $0x280] sm:$0xff]  ;;  %v732_v36 = vadd.f32 %v731_v21, %v730_v26  ;;  %v556_v1 = vmul.f32 %v1351_v0, %v1351_v0  ;;  %v737_v7 = vsel %vm238_vm1, %v555_v27, 0.0 }
  0xa5   : > { %v398_v58 = vsel %vm238_vm1, %v1543_v34, 0.0 }
  0xa6   : > { %v385_v48 = vadd.f32 %v384_v37, %v383_v42  ;;  %v1551_v37 = vld [vmem:[%s971_s12 + $0x288] sm:$0xff]  ;;  %v734_v39 = vadd.f32 %v733_v30, %v732_v36  ;;  %v557_v42 = vmul.f32 %v1359_v6, %v1359_v6  ;;  %v739_v50 = vsel %vm238_vm1, %v556_v1, 0.0 }
  0xa7   : > { %v400_v61 = vsel %vm238_vm1, %v1551_v37, 0.0 }
  0xa8   : > { %v387_v57 = vadd.f32 %v386_v40, %v385_v48  ;;  %v1559_v40 = vld [vmem:[%s971_s12 + $0x290] sm:$0xff]  ;;  %v736_v45 = vadd.f32 %v735_v2, %v734_v39  ;;  %v558_v48 = vmul.f32 %v1367_v11, %v1367_v11  ;;  %v741_v59 = vsel %vm238_vm1, %v557_v42, 0.0 }
  0xa9   : > { %v402_v0 = vsel %vm238_vm1, %v1559_v40, 0.0 }
  0xaa   : > { %v389_v4 = vadd.f32 %v388_v43, %v387_v57  ;;  %v1567_v43 = vld [vmem:[%s971_s12 + $0x298] sm:$0xff]  ;;  %v738_v54 = vadd.f32 %v737_v7, %v736_v45  ;;  %v559_v57 = vmul.f32 %v1375_v15, %v1375_v15  ;;  %v743_v5 = vsel %vm238_vm1, %v558_v48, 0.0 }
  0xab   : > { %v404_v6 = vsel %vm238_vm1, %v1567_v43, 0.0 }
  0xac   : > { %v391_v14 = vadd.f32 %v390_v46, %v389_v4  ;;  %v1575_v46 = vld [vmem:[%s971_s12 + $0x2a0] sm:$0xff]  ;;  %v740_v62 = vadd.f32 %v739_v50, %v738_v54  ;;  %v560_v4 = vmul.f32 %v1383_v20, %v1383_v20  ;;  %v745_v17 = vsel %vm238_vm1, %v559_v57, 0.0 }
  0xad   : > { %v406_v11 = vsel %vm238_vm1, %v1575_v46, 0.0 }
  0xae   : > { %v393_v24 = vadd.f32 %v392_v49, %v391_v14  ;;  %v1583_v49 = vld [vmem:[%s971_s12 + $0x2a8] sm:$0xff]  ;;  %v742_v9 = vadd.f32 %v741_v59, %v740_v62  ;;  %v561_v14 = vmul.f32 %v1391_v29, %v1391_v29  ;;  %v747_v26 = vsel %vm238_vm1, %v560_v4, 0.0 }
  0xaf   : > { %v408_v15 = vsel %vm238_vm1, %v1583_v49, 0.0 }
  0xb0   : > { %v395_v33 = vadd.f32 %v394_v52, %v393_v24  ;;  %v1591_v52 = vld [vmem:[%s971_s12 + $0x2b0] sm:$0xff]  ;;  %v744_v21 = vadd.f32 %v743_v5, %v742_v9  ;;  %v562_v24 = vmul.f32 %v1399_v35, %v1399_v35  ;;  %v749_v36 = vsel %vm238_vm1, %v561_v14, 0.0 }
  0xb1   : > { %v410_v20 = vsel %vm238_vm1, %v1591_v52, 0.0 }
  0xb2   : > { %v397_v38 = vadd.f32 %v396_v55, %v395_v33  ;;  %v1599_v55 = vld [vmem:[%s971_s12 + $0x2b8] sm:$0xff]  ;;  %v746_v30 = vadd.f32 %v745_v17, %v744_v21  ;;  %v563_v33 = vmul.f32 %v1407_v41, %v1407_v41  ;;  %v751_v39 = vsel %vm238_vm1, %v562_v24, 0.0 }
  0xb3   : > { %v412_v29 = vsel %vm238_vm1, %v1599_v55, 0.0 }
  0xb4   : > { %v399_v10 = vadd.f32 %v398_v58, %v397_v38  ;;  %v1607_v58 = vld [vmem:[%s971_s12 + $0x2c0] sm:$0xff]  ;;  %v748_v2 = vadd.f32 %v747_v26, %v746_v30  ;;  %v564_v38 = vmul.f32 %v1415_v47, %v1415_v47  ;;  %v753_v45 = vsel %vm238_vm1, %v563_v33, 0.0 }
  0xb5   : > { %v414_v35 = vsel %vm238_vm1, %v1607_v58, 0.0 }
  0xb6   : > { %v401_v53 = vadd.f32 %v400_v61, %v399_v10  ;;  %v1615_v61 = vld [vmem:[%s971_s12 + $0x2c8] sm:$0xff]  ;;  %v750_v7 = vadd.f32 %v749_v36, %v748_v2  ;;  %v565_v10 = vmul.f32 %v1423_v56, %v1423_v56  ;;  %v755_v54 = vsel %vm238_vm1, %v564_v38, 0.0 }
  0xb7   : > { %v416_v41 = vsel %vm238_vm1, %v1615_v61, 0.0 }
  0xb8   : > { %v403_v60 = vadd.f32 %v402_v0, %v401_v53  ;;  %v1623_v0 = vld [vmem:[%s971_s12 + $0x2d0] sm:$0xff]  ;;  %v752_v50 = vadd.f32 %v751_v39, %v750_v7  ;;  %v566_v53 = vmul.f32 %v1431_v63, %v1431_v63  ;;  %v757_v62 = vsel %vm238_vm1, %v565_v10, 0.0 }
  0xb9   : > { %v418_v47 = vsel %vm238_vm1, %v1623_v0, 0.0 }
  0xba   : > { %v405_v8 = vadd.f32 %v404_v6, %v403_v60  ;;  %v1631_v6 = vld [vmem:[%s971_s12 + $0x2d8] sm:$0xff]  ;;  %v754_v59 = vadd.f32 %v753_v45, %v752_v50  ;;  %v567_v60 = vmul.f32 %v1439_v12, %v1439_v12  ;;  %v759_v9 = vsel %vm238_vm1, %v566_v53, 0.0 }
  0xbb   : > { %v420_v56 = vsel %vm238_vm1, %v1631_v6, 0.0 }
  0xbc   : > { %v407_v18 = vadd.f32 %v406_v11, %v405_v8  ;;  %v1639_v11 = vld [vmem:[%s971_s12 + $0x2e0] sm:$0xff]  ;;  %v756_v5 = vadd.f32 %v755_v54, %v754_v59  ;;  %v568_v8 = vmul.f32 %v1447_v23, %v1447_v23  ;;  %v761_v21 = vsel %vm238_vm1, %v567_v60, 0.0 }
  0xbd   : > { %v422_v63 = vsel %vm238_vm1, %v1639_v11, 0.0 }
  0xbe   : > { %v409_v27 = vadd.f32 %v408_v15, %v407_v18  ;;  %v1647_v15 = vld [vmem:[%s971_s12 + $0x2e8] sm:$0xff]  ;;  %v758_v17 = vadd.f32 %v757_v62, %v756_v5  ;;  %v569_v18 = vmul.f32 %v1455_v32, %v1455_v32  ;;  %v763_v30 = vsel %vm238_vm1, %v568_v8, 0.0 }
  0xbf   : > { %v424_v12 = vsel %vm238_vm1, %v1647_v15, 0.0 }
  0xc0   : > { %v411_v1 = vadd.f32 %v410_v20, %v409_v27  ;;  %v1655_v20 = vld [vmem:[%s971_s12 + $0x2f0] sm:$0xff]  ;;  %v760_v26 = vadd.f32 %v759_v9, %v758_v17  ;;  %v570_v27 = vmul.f32 %v1463_v3, %v1463_v3  ;;  %v765_v2 = vsel %vm238_vm1, %v569_v18, 0.0 }
  0xc1   : > { %v426_v23 = vsel %vm238_vm1, %v1655_v20, 0.0 }
  0xc2   : > { %v413_v42 = vadd.f32 %v412_v29, %v411_v1  ;;  %v1663_v29 = vld [vmem:[%s971_s12 + $0x2f8] sm:$0xff]  ;;  %v762_v36 = vadd.f32 %v761_v21, %v760_v26  ;;  %v571_v1 = vmul.f32 %v1471_v44, %v1471_v44  ;;  %v767_v7 = vsel %vm238_vm1, %v570_v27, 0.0 }
  0xc3   : > { %v428_v32 = vsel %vm238_vm1, %v1663_v29, 0.0 }
  0xc4   : > { %v415_v48 = vadd.f32 %v414_v35, %v413_v42  ;;  %v1671_v35 = vld [vmem:[%s971_s12 + $0x300] sm:$0xff]  ;;  %v764_v39 = vadd.f32 %v763_v30, %v762_v36  ;;  %v572_v42 = vmul.f32 %v1479_v51, %v1479_v51  ;;  %v769_v50 = vsel %vm238_vm1, %v571_v1, 0.0 }
  0xc5   : > { %v430_v3 = vsel %vm238_vm1, %v1671_v35, 0.0 }
  0xc6   : > { %v417_v57 = vadd.f32 %v416_v41, %v415_v48  ;;  %v1679_v41 = vld [vmem:[%s971_s12 + $0x308] sm:$0xff]  ;;  %v766_v45 = vadd.f32 %v765_v2, %v764_v39  ;;  %v573_v48 = vmul.f32 %v1487_v13, %v1487_v13  ;;  %v771_v59 = vsel %vm238_vm1, %v572_v42, 0.0 }
  0xc7   : > { %v432_v44 = vsel %vm238_vm1, %v1679_v41, 0.0 }
  0xc8   : > { %v419_v4 = vadd.f32 %v418_v47, %v417_v57  ;;  %v1687_v47 = vld [vmem:[%s971_s12 + $0x310] sm:$0xff]  ;;  %v768_v54 = vadd.f32 %v767_v7, %v766_v45  ;;  %v574_v57 = vmul.f32 %v1495_v16, %v1495_v16  ;;  %v773_v5 = vsel %vm238_vm1, %v573_v48, 0.0 }
  0xc9   : > { %v434_v51 = vsel %vm238_vm1, %v1687_v47, 0.0 }
  0xca   : > { %v421_v14 = vadd.f32 %v420_v56, %v419_v4  ;;  %v1695_v56 = vld [vmem:[%s971_s12 + $0x318] sm:$0xff]  ;;  %v770_v62 = vadd.f32 %v769_v50, %v768_v54  ;;  %v575_v4 = vmul.f32 %v1503_v19, %v1503_v19  ;;  %v775_v17 = vsel %vm238_vm1, %v574_v57, 0.0 }
  0xcb   : > { %v436_v13 = vsel %vm238_vm1, %v1695_v56, 0.0 }
  0xcc   : > { %v423_v24 = vadd.f32 %v422_v63, %v421_v14  ;;  %v1703_v63 = vld [vmem:[%s971_s12 + $0x320] sm:$0xff]  ;;  %v772_v9 = vadd.f32 %v771_v59, %v770_v62  ;;  %v576_v14 = vmul.f32 %v1511_v22, %v1511_v22  ;;  %v777_v26 = vsel %vm238_vm1, %v575_v4, 0.0 }
  0xcd   : > { %v438_v16 = vsel %vm238_vm1, %v1703_v63, 0.0 }
  0xce   : > { %v425_v33 = vadd.f32 %v424_v12, %v423_v24  ;;  %v1711_v12 = vld [vmem:[%s971_s12 + $0x328] sm:$0xff]  ;;  %v774_v21 = vadd.f32 %v773_v5, %v772_v9  ;;  %v577_v24 = vmul.f32 %v1519_v25, %v1519_v25  ;;  %v779_v36 = vsel %vm238_vm1, %v576_v14, 0.0 }
  0xcf   : > { %v440_v19 = vsel %vm238_vm1, %v1711_v12, 0.0 }
  0xd0   : > { %v427_v38 = vadd.f32 %v426_v23, %v425_v33  ;;  %v1719_v23 = vld [vmem:[%s971_s12 + $0x330] sm:$0xff]  ;;  %v776_v30 = vadd.f32 %v775_v17, %v774_v21  ;;  %v578_v33 = vmul.f32 %v1527_v28, %v1527_v28  ;;  %v781_v39 = vsel %vm238_vm1, %v577_v24, 0.0 }
  0xd1   : > { %v442_v22 = vsel %vm238_vm1, %v1719_v23, 0.0 }
  0xd2   : > { %v429_v10 = vadd.f32 %v428_v32, %v427_v38  ;;  %v1727_v32 = vld [vmem:[%s971_s12 + $0x338] sm:$0xff]  ;;  %v778_v2 = vadd.f32 %v777_v26, %v776_v30  ;;  %v579_v38 = vmul.f32 %v1535_v31, %v1535_v31  ;;  %v783_v45 = vsel %vm238_vm1, %v578_v33, 0.0 }
  0xd3   : > { %v444_v25 = vsel %vm238_vm1, %v1727_v32, 0.0 }
  0xd4   : > { %v431_v53 = vadd.f32 %v430_v3, %v429_v10  ;;  %v1735_v3 = vld [vmem:[%s971_s12 + $0x340] sm:$0xff]  ;;  %v780_v7 = vadd.f32 %v779_v36, %v778_v2  ;;  %v580_v10 = vmul.f32 %v1543_v34, %v1543_v34  ;;  %v785_v54 = vsel %vm238_vm1, %v579_v38, 0.0 }
  0xd5   : > { %v446_v28 = vsel %vm238_vm1, %v1735_v3, 0.0  ;;  %v587_v2 = vmul.f32 %v1599_v55, %v1599_v55 }
  0xd6   : > { %v433_v60 = vadd.f32 %v432_v44, %v431_v53  ;;  %v1743_v44 = vld [vmem:[%s971_s12 + $0x348] sm:$0xff]  ;;  %v782_v50 = vadd.f32 %v781_v39, %v780_v7  ;;  %v581_v53 = vmul.f32 %v1551_v37, %v1551_v37  ;;  %v787_v62 = vsel %vm238_vm1, %v580_v10, 0.0 }
  0xd7   : > { %v448_v31 = vsel %vm238_vm1, %v1743_v44, 0.0  ;;  %v588_v7 = vmul.f32 %v1607_v58, %v1607_v58  ;;  %v589_v10 = vmul.f32 %v1615_v61, %v1615_v61  ;;  %v801_v55 = vsel %vm238_vm1, %v587_v2, 0.0 }
  0xd8   : > { %v435_v8 = vadd.f32 %v434_v51, %v433_v60  ;;  %v1751_v51 = vld [vmem:[%s971_s12 + $0x350] sm:$0xff]  ;;  %v784_v59 = vadd.f32 %v783_v45, %v782_v50  ;;  %v582_v60 = vmul.f32 %v1559_v40, %v1559_v40  ;;  %v789_v9 = vsel %vm238_vm1, %v581_v53, 0.0  ;;  %v1800_v45 = vld [vmem:[%s971_s12 + $0x378] sm:$0xff] }
  0xd9   : > { %v450_v34 = vsel %vm238_vm1, %v1751_v51, 0.0  ;;  %v590_v53 = vmul.f32 %v1623_v0, %v1623_v0  ;;  %v803_v58 = vsel %vm238_vm1, %v588_v7, 0.0  ;;  %v805_v61 = vsel %vm238_vm1, %v589_v10, 0.0 }
  0xda   : > { %v437_v18 = vadd.f32 %v436_v13, %v435_v8  ;;  %v1759_v13 = vld [vmem:[%s971_s12 + $0x358] sm:$0xff]  ;;  %v786_v5 = vadd.f32 %v785_v54, %v784_v59  ;;  %v583_v8 = vmul.f32 %v1567_v43, %v1567_v43  ;;  %v791_v21 = vsel %vm238_vm1, %v582_v60, 0.0  ;;  %v1811_v59 = vld [vmem:[%s971_s12 + $0x380] sm:$0xff] }
  0xdb   : > { %v452_v37 = vsel %vm238_vm1, %v1759_v13, 0.0  ;;  %v585_v43 = vmul.f32 %v1583_v49, %v1583_v49  ;;  %v807_v0 = vsel %vm238_vm1, %v590_v53, 0.0  ;;  %v600_v10 = vmul.f32 %v1703_v63, %v1703_v63 }
  0xdc   : > { %v439_v27 = vadd.f32 %v438_v16, %v437_v18  ;;  %v1767_v16 = vld [vmem:[%s971_s12 + $0x360] sm:$0xff]  ;;  %v788_v17 = vadd.f32 %v787_v62, %v786_v5  ;;  %v584_v18 = vmul.f32 %v1575_v46, %v1575_v46  ;;  %v793_v26 = vsel %vm238_vm1, %v583_v8, 0.0  ;;  %v1822_v8 = vld [vmem:[%s971_s12 + $0x388] sm:$0xff] }
  0xdd   : > { %v454_v40 = vsel %vm238_vm1, %v1767_v16, 0.0  ;;  %v586_v46 = vmul.f32 %v1591_v52, %v1591_v52  ;;  %v797_v49 = vsel %vm238_vm1, %v585_v43, 0.0  ;;  %v462_v62 = vsel %vm238_vm1, %v1811_v59, 0.0 }
  0xde   : > { %v441_v1 = vadd.f32 %v440_v19, %v439_v27  ;;  %v790_v24 = vadd.f32 %v789_v9, %v788_v17  ;;  %v1778_v27 = vld [vmem:[%s971_s12 + $0x368] sm:$0xff]  ;;  %v795_v36 = vsel %vm238_vm1, %v584_v18, 0.0  ;;  %v464_v17 = vsel %vm238_vm1, %v1822_v8, 0.0 }
  0xdf   : > { %v456_v33 = vsel %vm238_vm1, %v1778_v27, 0.0  ;;  %v799_v52 = vsel %vm238_vm1, %v586_v46, 0.0  ;;  %v1844_v46 = vld [vmem:[%s971_s12 + $0x398] sm:$0xff]  ;;  %v827_v63 = vsel %vm238_vm1, %v600_v10, 0.0 }
  0xe0   : > { %v443_v42 = vadd.f32 %v442_v22, %v441_v1  ;;  %v792_v22 = vadd.f32 %v791_v21, %v790_v24  ;;  %v595_v21 = vmul.f32 %v1663_v29, %v1663_v29  ;;  %v468_v2 = vsel %vm238_vm1, %v1844_v46, 0.0 }
  0xe2   : > { %v445_v48 = vadd.f32 %v444_v25, %v443_v42  ;;  %v794_v1 = vadd.f32 %v793_v26, %v792_v22  ;;  %v1789_v25 = vld [vmem:[%s971_s12 + $0x370] sm:$0xff]  ;;  %v817_v29 = vsel %vm238_vm1, %v595_v21, 0.0 }
  0xe3   : > { %v458_v42 = vsel %vm238_vm1, %v1789_v25, 0.0 }
  0xe4   : > { %v447_v57 = vadd.f32 %v446_v28, %v445_v48  ;;  %v796_v39 = vadd.f32 %v795_v36, %v794_v1 }
  0xe6   : > { %v449_v4 = vadd.f32 %v448_v31, %v447_v57  ;;  %v798_v28 = vadd.f32 %v797_v49, %v796_v39  ;;  %v460_v31 = vsel %vm238_vm1, %v1800_v45, 0.0  ;;  %v591_v57 = vmul.f32 %v1631_v6, %v1631_v6 }
  0xe7   : > { %v598_v49 = vmul.f32 %v1687_v47, %v1687_v47  ;;  %v599_v39 = vmul.f32 %v1695_v56, %v1695_v56 }
  0xe8   : > { %v451_v14 = vadd.f32 %v450_v34, %v449_v4  ;;  %v800_v50 = vadd.f32 %v799_v52, %v798_v28  ;;  %v592_v4 = vmul.f32 %v1639_v11, %v1639_v11  ;;  %v809_v6 = vsel %vm238_vm1, %v591_v57, 0.0 }
  0xe9   : > { %v823_v47 = vsel %vm238_vm1, %v598_v49, 0.0  ;;  %v825_v56 = vsel %vm238_vm1, %v599_v39, 0.0  ;;  %v611_v49 = vmul.f32 %v1800_v45, %v1800_v45  ;;  %v233_v45 = vld [vmem:[%s971_s12 + $0x3d8] sm:$0xff] }
  0xea   : > { %v453_v19 = vadd.f32 %v452_v37, %v451_v14  ;;  %v802_v54 = vadd.f32 %v801_v55, %v800_v50  ;;  %v593_v37 = vmul.f32 %v1647_v15, %v1647_v15  ;;  %v811_v11 = vsel %vm238_vm1, %v592_v4, 0.0  ;;  %v1866_v50 = vld [vmem:[%s971_s12 + $0x3a8] sm:$0xff] }
  0xeb   : > { %v849_v10 = vsel %vm238_vm1, %v611_v49, 0.0 }
  0xec   : > { %v455_v30 = vadd.f32 %v454_v40, %v453_v19  ;;  %v804_v60 = vadd.f32 %v803_v58, %v802_v54  ;;  %v594_v40 = vmul.f32 %v1655_v20, %v1655_v20  ;;  %v813_v15 = vsel %vm238_vm1, %v593_v37, 0.0  ;;  %v1833_v19 = vld [vmem:[%s971_s12 + $0x390] sm:$0xff] }
  0xed   : > { %v466_v26 = vsel %vm238_vm1, %v1833_v19, 0.0  ;;  %v472_v58 = vsel %vm238_vm1, %v1866_v50, 0.0  ;;  %v602_v54 = vmul.f32 %v1719_v23, %v1719_v23  ;;  %v605_v37 = vmul.f32 %v1743_v44, %v1743_v44  ;;  %v230_v44 = vld [vmem:[%s971_s12 + $0x3c0] sm:$0xff] }
  0xee   : > { %v457_v38 = vadd.f32 %v456_v33, %v455_v30  ;;  %v806_v5 = vadd.f32 %v805_v61, %v804_v60  ;;  %v596_v30 = vmul.f32 %v1671_v35, %v1671_v35  ;;  %v815_v20 = vsel %vm238_vm1, %v594_v40, 0.0 }
  0xef   : > { %v597_v33 = vmul.f32 %v1679_v41, %v1679_v41  ;;  %v603_v61 = vmul.f32 %v1727_v32, %v1727_v32  ;;  %v831_v23 = vsel %vm238_vm1, %v602_v54, 0.0  ;;  %v606_v40 = vmul.f32 %v1751_v51, %v1751_v51 }
  0xf0   : > { %v459_v48 = vadd.f32 %v458_v42, %v457_v38  ;;  %v808_v14 = vadd.f32 %v807_v0, %v806_v5  ;;  %v819_v35 = vsel %vm238_vm1, %v596_v30, 0.0  ;;  %v1855_v42 = vld [vmem:[%s971_s12 + $0x3a0] sm:$0xff]  ;;  %v604_v0 = vmul.f32 %v1735_v3, %v1735_v3 }
  0xf1   : > { %v821_v41 = vsel %vm238_vm1, %v597_v33, 0.0  ;;  %v470_v28 = vsel %vm238_vm1, %v1855_v42, 0.0  ;;  %v833_v32 = vsel %vm238_vm1, %v603_v61, 0.0  ;;  %v837_v21 = vsel %vm238_vm1, %v605_v37, 0.0 }
  0xf2   : > { %v461_v34 = vadd.f32 %v460_v31, %v459_v48  ;;  %v810_v18 = vadd.f32 %v809_v6, %v808_v14  ;;  %v601_v48 = vmul.f32 %v1711_v12, %v1711_v12  ;;  %v229_v6 = vld [vmem:[%s971_s12 + $0x3b8] sm:$0xff]  ;;  %v839_v30 = vsel %vm238_vm1, %v606_v40, 0.0 }
  0xf3   : > { %v616_v61 = vmul.f32 %v1855_v42, %v1855_v42 }
  0xf4   : > { %v463_v9 = vadd.f32 %v462_v62, %v461_v34  ;;  %v812_v43 = vadd.f32 %v811_v11, %v810_v18  ;;  %v829_v12 = vsel %vm238_vm1, %v601_v48, 0.0  ;;  %v1877_v34 = vld [vmem:[%s971_s12 + $0x3b0] sm:$0xff]  ;;  %v835_v11 = vsel %vm238_vm1, %v604_v0, 0.0 }
  0xf5   : > { %v474_v4 = vsel %vm238_vm1, %v1877_v34, 0.0  ;;  %v607_v18 = vmul.f32 %v1759_v13, %v1759_v13  ;;  %v231_v13 = vld [vmem:[%s971_s12 + $0x3c8] sm:$0xff]  ;;  %v484_v48 = vsel %vm238_vm1, %v233_v45, 0.0  ;;  %v859_v37 = vsel %vm238_vm1, %v616_v61, 0.0 }
  0xf6   : > { %v465_v24 = vadd.f32 %v464_v17, %v463_v9  ;;  %v814_v22 = vadd.f32 %v813_v15, %v812_v43  ;;  %v476_v17 = vsel %vm238_vm1, %v229_v6, 0.0  ;;  %v478_v43 = vsel %vm238_vm1, %v230_v44, 0.0 }
  0xf8   : > { %v467_v36 = vadd.f32 %v466_v26, %v465_v24  ;;  %v816_v1 = vadd.f32 %v815_v20, %v814_v22  ;;  %v608_v26 = vmul.f32 %v1767_v16, %v1767_v16  ;;  %v609_v20 = vmul.f32 %v1778_v27, %v1778_v27  ;;  %v232_v27 = vld [vmem:[%s971_s12 + $0x3d0] sm:$0xff] }
  0xf9   : > { %v841_v22 = vsel %vm238_vm1, %v607_v18, 0.0 }
  0xfa   : > { %v818_v38 = vadd.f32 %v817_v29, %v816_v1  ;;  %v469_v7 = vadd.f32 %v468_v2, %v467_v36  ;;  %v480_v36 = vsel %vm238_vm1, %v231_v13, 0.0  ;;  %v610_v1 = vmul.f32 %v1789_v25, %v1789_v25 }
  0xfb   : > { %v843_v2 = vsel %vm238_vm1, %v608_v26, 0.0 }
  0xfc   : > { %v820_v52 = vadd.f32 %v819_v35, %v818_v38  ;;  %v471_v31 = vadd.f32 %v470_v28, %v469_v7  ;;  %v845_v35 = vsel %vm238_vm1, %v609_v20, 0.0  ;;  %v612_v7 = vmul.f32 %v1811_v59, %v1811_v59 }
  0xfd   : > { %v613_v28 = vmul.f32 %v1822_v8, %v1822_v8  ;;  %v234_v8 = vld [vmem:[%s971_s12 + $0x3e0] sm:$0xff]  ;;  %v623_v20 = vmul.f32 %v233_v45, %v233_v45 }
  0xfe   : > { %v822_v55 = vadd.f32 %v821_v41, %v820_v52  ;;  %v473_v60 = vadd.f32 %v472_v58, %v471_v31  ;;  %v482_v41 = vsel %vm238_vm1, %v232_v27, 0.0  ;;  %v847_v52 = vsel %vm238_vm1, %v610_v1, 0.0 }
  0xff   : > { %v851_v31 = vsel %vm238_vm1, %v612_v7, 0.0  ;;  %v853_v58 = vsel %vm238_vm1, %v613_v28, 0.0 }
 0x100   : > { %v824_v53 = vadd.f32 %v823_v47, %v822_v55  ;;  %v475_v9 = vadd.f32 %v474_v4, %v473_v60  ;;  %v617_v60 = vmul.f32 %v1866_v50, %v1866_v50 }
 0x102   : > { %v826_v57 = vadd.f32 %v825_v56, %v824_v53  ;;  %v477_v15 = vadd.f32 %v476_v17, %v475_v9  ;;  %v614_v56 = vmul.f32 %v1833_v19, %v1833_v19  ;;  %v615_v53 = vmul.f32 %v1844_v46, %v1844_v46  ;;  %v235_v46 = vld [vmem:[%s971_s12 + $0x3e8] sm:$0xff] }
 0x103   : > { %v861_v9 = vsel %vm238_vm1, %v617_v60, 0.0  ;;  %v625_v1 = vmul.f32 %v235_v46, %v235_v46 }
 0x104   : > { %v828_v62 = vadd.f32 %v827_v63, %v826_v57  ;;  %v479_v33 = vadd.f32 %v478_v43, %v477_v15  ;;  %v486_v57 = vsel %vm238_vm1, %v234_v8, 0.0 }
 0x106   : > { %v830_v5 = vadd.f32 %v829_v12, %v828_v62  ;;  %v481_v38 = vadd.f32 %v480_v36, %v479_v33  ;;  %v855_v12 = vsel %vm238_vm1, %v614_v56, 0.0  ;;  %v857_v62 = vsel %vm238_vm1, %v615_v53, 0.0 }
 0x108   : > { %v832_v14 = vadd.f32 %v831_v23, %v830_v5  ;;  %v483_v47 = vadd.f32 %v482_v41, %v481_v38  ;;  %v488_v23 = vsel %vm238_vm1, %v235_v46, 0.0  ;;  %v618_v5 = vmul.f32 %v1877_v34, %v1877_v34 }
 0x109   : > { %v877_v41 = vsel %vm238_vm1, %v625_v1, 0.0 }
 0x10a   : > { %v834_v3 = vadd.f32 %v833_v32, %v832_v14  ;;  %v485_v54 = vadd.f32 %v484_v48, %v483_v47  ;;  %v619_v32 = vmul.f32 %v229_v6, %v229_v6  ;;  %v236_v14 = vld [vmem:[%s971_s12 + $0x3f0] sm:$0xff]  ;;  %v622_v6 = vmul.f32 %v232_v27, %v232_v27 }
 0x10b   : > { %v490_v40 = vsel %vm238_vm1, %v236_v14, 0.0 }
 0x10c   : > { %v836_v24 = vadd.f32 %v835_v11, %v834_v3  ;;  %v487_v4 = vadd.f32 %v486_v57, %v485_v54  ;;  %v620_v11 = vmul.f32 %v230_v44, %v230_v44  ;;  %v863_v3 = vsel %vm238_vm1, %v618_v5, 0.0  ;;  %v889_v57 = vld [vmem:[%s1965_s1] sm:$0x3] }
 0x10d   : > { %v865_v15 = vsel %vm238_vm1, %v619_v32, 0.0  ;;  %v871_v36 = vsel %vm238_vm1, %v622_v6, 0.0 }
 0x10e   : > { %v838_v51 = vadd.f32 %v837_v21, %v836_v24  ;;  %v489_v17 = vadd.f32 %v488_v23, %v487_v4  ;;  %v621_v21 = vmul.f32 %v231_v13, %v231_v13  ;;  %v237_v24 = vld [vmem:[%s971_s12 + $0x3f8] sm:$0xff] }
 0x10f   : > { %v492_v26 = vsel %vm238_vm1, %v237_v24, 0.0 }
 0x110   : > { %v840_v29 = vadd.f32 %v839_v30, %v838_v51  ;;  %v491_v34 = vadd.f32 %v490_v40, %v489_v17  ;;  %v867_v30 = vsel %vm238_vm1, %v620_v11, 0.0 }
 0x112   : > { %v842_v16 = vadd.f32 %v841_v22, %v840_v29  ;;  %v869_v22 = vsel %vm238_vm1, %v621_v21, 0.0  ;;  %v493_v33 = vadd.f32 %v492_v26, %v491_v34  ;;  %v624_v29 = vmul.f32 %v234_v8, %v234_v8 }
 0x114   : > { %v844_v39 = vadd.f32 %v843_v2, %v842_v16  ;;  %v873_v2 = vsel %vm238_vm1, %v623_v20, 0.0  ;;  %v494_v16 = vrot.slane %v493_v33, 4  ;;  %v875_v27 = vsel %vm238_vm1, %v624_v29, 0.0 }
 0x116   : > { %v846_v25 = vadd.f32 %v845_v35, %v844_v39  ;;  %v626_v35 = vmul.f32 %v236_v14, %v236_v14  ;;  %v627_v39 = vmul.f32 %v237_v24, %v237_v24  ;;  %v495_v7 = vadd.f32 %v494_v16, %v493_v33 }
 0x118   : > { %v848_v55 = vadd.f32 %v847_v52, %v846_v25  ;;  %v879_v25 = vsel %vm238_vm1, %v626_v35, 0.0  ;;  %v496_v45 = vrot.slane %v495_v7, 2 }
 0x11a   : > { %v850_v59 = vadd.f32 %v849_v10, %v848_v55  ;;  %v881_v10 = vsel %vm238_vm1, %v627_v39, 0.0  ;;  %v497_v48 = vadd.f32 %v496_v45, %v495_v7 }
 0x11c   : > { %v852_v63 = vadd.f32 %v851_v31, %v850_v59  ;;  %v498_v59 = vrot.slane %v497_v48, 1 }
 0x11e   : > { %v854_v19 = vadd.f32 %v853_v58, %v852_v63  ;;  %v499_v8 = vadd.f32 %v498_v59, %v497_v48 }
 0x120   : > { %v856_v0 = vadd.f32 %v855_v12, %v854_v19 }
 0x122   : > { %v858_v42 = vadd.f32 %v857_v62, %v856_v0 }
 0x124   : > { %v860_v50 = vadd.f32 %v859_v37, %v858_v42 }
 0x126   : > { %v862_v18 = vadd.f32 %v861_v9, %v860_v50 }
 0x128   : > { %v864_v43 = vadd.f32 %v863_v3, %v862_v18 }
 0x12a   : > { %v866_v51 = vadd.f32 %v865_v15, %v864_v43 }
 0x12c   : > { %v868_v44 = vadd.f32 %v867_v30, %v866_v51 }
 0x12e   : > { %v870_v13 = vadd.f32 %v869_v22, %v868_v44 }
 0x130   : > { %v872_v49 = vadd.f32 %v871_v36, %v870_v13 }
 0x132   : > { %v874_v38 = vadd.f32 %v873_v2, %v872_v49 }
 0x134   : > { %v876_v52 = vadd.f32 %v875_v27, %v874_v38 }
 0x136   : > { %v878_v28 = vadd.f32 %v877_v41, %v876_v52 }
 0x138   : > { %v880_v47 = vadd.f32 %v879_v25, %v878_v28 }
 0x13a   : > { %v882_v55 = vadd.f32 %v881_v10, %v880_v47 }
 0x13c   : > { %v883_v56 = vrot.slane %v882_v55, 4 }
 0x13e   : > { %v884_v31 = vadd.f32 %v883_v56, %v882_v55 }
 0x140   : > { %v885_v53 = vrot.slane %v884_v31, 2 }
 0x142   : > { %v886_v58 = vadd.f32 %v885_v53, %v884_v31 }
 0x144   : > { %v887_v54 = vrot.slane %v886_v58, 1 }
 0x146   : > { %v888_v63 = vadd.f32 %v887_v54, %v886_v58 }
 0x148   : > { %v891_v61 = vsel %vm890_vm2, %v499_v8, %v888_v63 }
 0x149   : > { %v892_v12 = vadd.f32 %v891_v61, %v889_v57 }
 0x14b   : > { %894 = vst.msk [vmem:[%s1965_s1] sm:$0x3] %vm893_vm3, %v892_v12 }
 0x14c PF: > { %s11_s6 = sadd.s32 1, %s947_s6  }
 0x14d   : > { %p8_p5 = scmp.ge.s32.totalorder %s11_s6, 4  }
 0x14f   :  { %10 = sbr.rel (!%p8_p5) target bundleno = 1 (0x1), region = 54 }

// kernel: generator_forward.18
= control target key start
LH: loop header
LB: loop body
LE: loop exit
PB: predicated region body
PF: predicated region fallthrough
CT: control target
= control target key end

     0   :  { %s2347_s18 = smov 0   ;;  %s3517_s0 = inlined_call_operand.vmem [shape: f32[2048,16], index: 0, kind: input, shape index: {}]   ;;  %s3518_s1 = inlined_call_operand.vmem [shape: f32[2,16], index: 1, kind: input, shape index: {}]   ;;  %s3519_s2 = inlined_call_operand.vmem [shape: f32[1,16], index: 2, kind: input, shape index: {}]   ;;  %s3520_s3 = inlined_call_operand.vmem [shape: f32[1,16], index: 3, kind: input, shape index: {}]   ;;  %s3521_s4 = inlined_call_operand.vmem [shape: bf16[16,128], index: 4, kind: input, shape index: {}]   ;;  %s3522_s5 = inlined_call_operand.vmem [shape: f32[2048,128], index: 5, kind: output, shape index: {}]  }
   0x1 LB: > { %s2021_s19 = sadd.s32 4294967295, %s2315_s18   ;;  %p2025_p0 = scmp.ge.s32.totalorder %s2315_s18, 1  ;;  %s2315_s18 = sphi %s2347_s18, %s15_s18  }
   0x2   : > { %p188_p1 = scmp.lt.s32.totalorder %s2315_s18, 3 }
   0x4   : > { %p189_p2 = pnand %p2025_p0, %p188_p1 }
   0x5   : > { %v2304_v0 = vld [vmem:[%s3521_s4] sm:$0xff] (!%p189_p2)   ;;  %s2026_s22 = sshll.u32 (!%p189_p2), %s2021_s19, 7  ;;  %v363_v1 = vlaneseq (!%p189_p2)  ;;  %vm1099_vm0 = vcmask (!%p189_p2), 130048  }
   0x6   : > { %192 = sbr.rel (%p189_p2) target bundleno = 425 (0x1a9), region = 40  ;;  %p217_p3 = scmp.lt.s32.totalorder (!%p189_p2), %s2026_s22, 255  ;;  %v357_v2 = vld [vmem:[%s3518_s1] sm:$0x1] (!%p189_p2)  ;;  %v359_v3 = vld [vmem:[%s3518_s1 + $0x1] sm:$0x1] (!%p189_p2)  ;;  %2164 = vmatprep.subr.bf16.mxu0 (!%p189_p2), %v2304_v0  ;;  %2294 = vmatprep.subr.bf16.mxu1 (!%p189_p2), %v2304_v0 }
   0x7   : > { %v358_v4 = vmul.f32 (!%p189_p2), 0.00048828125, %v357_v2  ;;  %v360_v5 = vmul.f32 (!%p189_p2), 0.00048828125, %v359_v3  ;;  %v2364_v6 = vshrl.u32 (!%p189_p2), %v363_v1, 7  ;;  %2165 = vmatpush3.bf16.msra.mxu0 (!%p189_p2), %v2304_v0  ;;  %2295 = vmatpush3.bf16.msra.mxu1 (!%p189_p2), %v2304_v0 }
   0x9   : > { %v361_v7 = vmul.f32 (!%p189_p2), %v358_v4, %v358_v4  ;;  %v365_v8 = vsub.s32 (!%p189_p2), 0, %v2364_v6  ;;  %v2605_v6 = vld [vmem:[%s3519_s2] ss:$0 sm:$0xff] (!%p189_p2) }
   0xb   : > { %v362_v9 = vsub.f32 (!%p189_p2), %v360_v5, %v361_v7  ;;  %v2385_v12 = vrot.slane (!%p189_p2), %v358_v4, %v365_v8 }
   0xd   : > { %s3561_s22 = smov (!%p217_p3, %s2026_s22), 255  ;;  %v495_v14 = vadd.f32 1e-05, %v362_v9 }
   0xe   : > { %s2027_s27 = sshll.u32 %s3561_s22, 3 }
   0xf   : > { %s2375_s30 = scalar_lea.vmem %s3517_s0, %s2027_s27  ;;  %2305 = vrsqrt.f32 %v495_v14  ;;  %s3384_s16 = scalar_lea.vmem %s3522_s5, %s2027_s27 }
  0x10   : > { %v2378_v10 = vld [vmem:[%s2375_s30] sm:$0xff]  ;;  %v2381_v11 = vld [vmem:[%s2375_s30 + $0x8] sm:$0xff]  ;;  %v2394_v16 = vld [vmem:[%s2375_s30 + $0x10] sm:$0xff] }
  0x11   : > { %v2388_v13 = vld [vmem:[%s2375_s30 + $0x200] sm:$0xff]  ;;  %v2391_v15 = vld [vmem:[%s2375_s30 + $0x208] sm:$0xff]  ;;  %v2397_v17 = vld [vmem:[%s2375_s30 + $0x18] sm:$0xff]  ;;  %v367_v24 = vsub.f32 %v2378_v10, %v2385_v12  ;;  %v368_v25 = vsub.f32 %v2381_v11, %v2385_v12  ;;  %v369_v31 = vsub.f32 %v2394_v16, %v2385_v12 }
  0x12   : > { %v2400_v18 = vld [vmem:[%s2375_s30 + $0x210] sm:$0xff]  ;;  %v2403_v19 = vld [vmem:[%s2375_s30 + $0x218] sm:$0xff]  ;;  %v2406_v20 = vld [vmem:[%s2375_s30 + $0x20] sm:$0xff]  ;;  %v431_v29 = vsub.f32 %v2388_v13, %v2385_v12  ;;  %v432_v30 = vsub.f32 %v2391_v15, %v2385_v12  ;;  %v370_v32 = vsub.f32 %v2397_v17, %v2385_v12 }
  0x13   : > { %v2409_v21 = vld [vmem:[%s2375_s30 + $0x28] sm:$0xff]  ;;  %v2412_v22 = vld [vmem:[%s2375_s30 + $0x220] sm:$0xff]  ;;  %v2422_v26 = vld [vmem:[%s2375_s30 + $0x30] sm:$0xff]  ;;  %v433_v36 = vsub.f32 %v2400_v18, %v2385_v12  ;;  %v434_v37 = vsub.f32 %v2403_v19, %v2385_v12 }
  0x14   : > { %v2415_v23 = vld [vmem:[%s2375_s30 + $0x228] sm:$0xff]  ;;  %v2425_v27 = vld [vmem:[%s2375_s30 + $0x38] sm:$0xff]  ;;  %v2428_v28 = vld [vmem:[%s2375_s30 + $0x230] sm:$0xff] }
  0x15   : > { %v2439_v33 = vld [vmem:[%s2375_s30 + $0x238] sm:$0xff]  ;;  %v2442_v34 = vld [vmem:[%s2375_s30 + $0x40] sm:$0xff]  ;;  %v2445_v35 = vld [vmem:[%s2375_s30 + $0x48] sm:$0xff] }
  0x16   : > { %v2456_v40 = vld [vmem:[%s2375_s30 + $0x240] sm:$0xff]  ;;  %v2459_v41 = vld [vmem:[%s2375_s30 + $0x248] sm:$0xff]  ;;  %v2462_v42 = vld [vmem:[%s2375_s30 + $0x50] sm:$0xff] }
  0x17   : > { %v2473_v47 = vld [vmem:[%s2375_s30 + $0x58] sm:$0xff]  ;;  %v2476_v48 = vld [vmem:[%s2375_s30 + $0x250] sm:$0xff]  ;;  %v2490_v54 = vld [vmem:[%s2375_s30 + $0x60] sm:$0xff] }
  0x18   : > { %v2479_v49 = vld [vmem:[%s2375_s30 + $0x258] sm:$0xff]  ;;  %v2493_v55 = vld [vmem:[%s2375_s30 + $0x68] sm:$0xff]  ;;  %v2496_v56 = vld [vmem:[%s2375_s30 + $0x260] sm:$0xff] }
  0x19   : > { %v2507_v61 = vld [vmem:[%s2375_s30 + $0x268] sm:$0xff]  ;;  %v2510_v62 = vld [vmem:[%s2375_s30 + $0x70] sm:$0xff]  ;;  %v2513_v63 = vld [vmem:[%s2375_s30 + $0x78] sm:$0xff]  ;;  %v2306_v53 = vpop.eup %2305 }
  0x1a   : > { %v2524_v4 = vld [vmem:[%s2375_s30 + $0x270] sm:$0xff]  ;;  %v2527_v5 = vld [vmem:[%s2375_s30 + $0x278] sm:$0xff]  ;;  %v2530_v7 = vld [vmem:[%s2375_s30 + $0x80] sm:$0xff]  ;;  %v2585_v46 = vrot.slane %v2306_v53, %v365_v8 }
  0x1b   : > { %v2541_v1 = vld [vmem:[%s2375_s30 + $0x88] sm:$0xff]  ;;  %v2544_v0 = vld [vmem:[%s2375_s30 + $0x280] sm:$0xff]  ;;  %v2558_v59 = vld [vmem:[%s2375_s30 + $0x90] sm:$0xff] }
  0x1c   : > { %v2547_v60 = vld [vmem:[%s2375_s30 + $0x288] sm:$0xff]  ;;  %v2561_v58 = vld [vmem:[%s2375_s30 + $0x98] sm:$0xff]  ;;  %v2564_v57 = vld [vmem:[%s2375_s30 + $0x290] sm:$0xff]  ;;  %v501_v9 = vmul.f32 %v2585_v46, %v367_v24  ;;  %v502_v43 = vmul.f32 %v2585_v46, %v368_v25  ;;  %v565_v53 = vmul.f32 %v2585_v46, %v431_v29  ;;  %v566_v14 = vmul.f32 %v2585_v46, %v432_v30 }
  0x1d   : > { %v2575_v52 = vld [vmem:[%s2375_s30 + $0x298] sm:$0xff]  ;;  %v2578_v51 = vld [vmem:[%s2375_s30 + $0xa0] sm:$0xff]  ;;  %v2581_v50 = vld [vmem:[%s2375_s30 + $0xa8] sm:$0xff]  ;;  %v503_v11 = vmul.f32 %v2585_v46, %v369_v31  ;;  %v504_v13 = vmul.f32 %v2585_v46, %v370_v32  ;;  %v567_v15 = vmul.f32 %v2585_v46, %v433_v36  ;;  %v568_v24 = vmul.f32 %v2585_v46, %v434_v37 }
  0x1e   : > { %v2594_v3 = vld [vmem:[%s2375_s30 + $0x2a0] sm:$0xff]  ;;  %v2597_v45 = vld [vmem:[%s2375_s30 + $0x2a8] sm:$0xff]  ;;  %v2600_v44 = vld [vmem:[%s2375_s30 + $0xb0] sm:$0xff]  ;;  %v636_v25 = vmul.f32 %v2605_v6, %v501_v9  ;;  %v637_v16 = vmul.f32 %v2605_v6, %v502_v43  ;;  %v700_v29 = vmul.f32 %v2605_v6, %v565_v53  ;;  %v701_v17 = vmul.f32 %v2605_v6, %v566_v14 }
  0x1f   : > { %v2634_v10 = vld [vmem:[%s3520_s3] ss:$0 sm:$0xff]  ;;  %v638_v30 = vmul.f32 %v2605_v6, %v503_v11  ;;  %v639_v31 = vmul.f32 %v2605_v6, %v504_v13  ;;  %v702_v18 = vmul.f32 %v2605_v6, %v567_v15  ;;  %v703_v32 = vmul.f32 %v2605_v6, %v568_v24 }
  0x20   : > { %v771_v19 = vadd.f32 %v2634_v10, %v636_v25  ;;  %v772_v36 = vadd.f32 %v2634_v10, %v637_v16  ;;  %v835_v37 = vadd.f32 %v2634_v10, %v700_v29  ;;  %v836_v43 = vadd.f32 %v2634_v10, %v701_v17 }
  0x21   : > { %v773_v9 = vadd.f32 %v2634_v10, %v638_v30  ;;  %v774_v14 = vadd.f32 %v2634_v10, %v639_v31  ;;  %v837_v53 = vadd.f32 %v2634_v10, %v702_v18  ;;  %v838_v11 = vadd.f32 %v2634_v10, %v703_v32 }
  0x22   : > { %v899_v13 = vmax.f32 %v771_v19, 0.0  ;;  %v900_v15 = vmax.f32 %v772_v36, 0.0  ;;  %v963_v2 = vmax.f32 %v835_v37, 0.0  ;;  %v964_v24 = vmax.f32 %v836_v43, 0.0 }
  0x23   : > { %v901_v8 = vmax.f32 %v773_v9, 0.0  ;;  %v902_v25 = vmax.f32 %v774_v14, 0.0  ;;  %v965_v39 = vmax.f32 %v837_v53, 0.0  ;;  %v966_v16 = vmax.f32 %v838_v11, 0.0 }
  0x24   : > { %v1027_v38 = vpack.c.bf16 %v900_v15, %v899_v13  ;;  %v1059_v29 = vpack.c.bf16 %v964_v24, %v963_v2  ;;  %v3523_v17 = vsub.f32 %v2406_v20, %v2385_v12  ;;  %v3524_v31 = vsub.f32 %v2409_v21, %v2385_v12 }
  0x25   : > { %v1028_v32 = vpack.c.bf16 %v902_v25, %v901_v8  ;;  %v1060_v19 = vpack.c.bf16 %v966_v16, %v965_v39  ;;  %v3525_v36 = vsub.f32 %v2412_v22, %v2385_v12  ;;  %v3526_v2 = vsub.f32 %v2415_v23, %v2385_v12 }
  0x26   : > { %v505_v30 = vmul.f32 %v2585_v46, %v3523_v17  ;;  %v506_v18 = vmul.f32 %v2585_v46, %v3524_v31  ;;  %2166 = vmatprep.mubr.msk.bf16.mxu0 %vm1099_vm0, %v1027_v38  ;;  %2230 = vmatprep.mubr.msk.bf16.mxu1 %vm1099_vm0, %v1059_v29  ;;  %v3527_v39 = vsub.f32 %v2422_v26, %v2385_v12 }
  0x27   : > { %v569_v37 = vmul.f32 %v2585_v46, %v3525_v36  ;;  %v570_v43 = vmul.f32 %v2585_v46, %v3526_v2  ;;  %2167 = vmatmul.mubr.msk.bf16.vlgmr.msra.gmra.mrb[0].mxu0 %vm1099_vm0, %v1028_v32  ;;  %2231 = vmatmul.mubr.msk.bf16.vlgmr.msra.gmra.mrb[0].mxu1 %vm1099_vm0, %v1060_v19  ;;  %v3528_v38 = vsub.f32 %v2425_v27, %v2385_v12 }
  0x28   : > { %v640_v20 = vmul.f32 %v2605_v6, %v505_v30  ;;  %v641_v21 = vmul.f32 %v2605_v6, %v506_v18  ;;  %v507_v22 = vmul.f32 %v2585_v46, %v3527_v39  ;;  %v3529_v11 = vsub.f32 %v2428_v28, %v2385_v12 }
  0x29   : > { %v704_v23 = vmul.f32 %v2605_v6, %v569_v37  ;;  %v705_v8 = vmul.f32 %v2605_v6, %v570_v43  ;;  %v508_v9 = vmul.f32 %v2585_v46, %v3528_v38  ;;  %v3530_v27 = vsub.f32 %v2439_v33, %v2385_v12 }
  0x2a   : > { %v775_v14 = vadd.f32 %v2634_v10, %v640_v20  ;;  %v776_v53 = vadd.f32 %v2634_v10, %v641_v21  ;;  %v642_v26 = vmul.f32 %v2605_v6, %v507_v22  ;;  %v571_v13 = vmul.f32 %v2585_v46, %v3529_v11 }
  0x2b   : > { %v839_v15 = vadd.f32 %v2634_v10, %v704_v23  ;;  %v840_v24 = vadd.f32 %v2634_v10, %v705_v8  ;;  %v643_v25 = vmul.f32 %v2605_v6, %v508_v9  ;;  %v572_v16 = vmul.f32 %v2585_v46, %v3530_v27 }
  0x2c   : > { %v903_v29 = vmax.f32 %v775_v14, 0.0  ;;  %v904_v17 = vmax.f32 %v776_v53, 0.0  ;;  %v777_v30 = vadd.f32 %v2634_v10, %v642_v26  ;;  %v706_v31 = vmul.f32 %v2605_v6, %v571_v13 }
  0x2d   : > { %v967_v28 = vmax.f32 %v839_v15, 0.0  ;;  %v968_v18 = vmax.f32 %v840_v24, 0.0  ;;  %v778_v32 = vadd.f32 %v2634_v10, %v643_v25  ;;  %v707_v19 = vmul.f32 %v2605_v6, %v572_v16 }
  0x2e   : > { %v1029_v36 = vpack.c.bf16 %v904_v17, %v903_v29  ;;  %v905_v37 = vmax.f32 %v777_v30, 0.0  ;;  %v841_v2 = vadd.f32 %v2634_v10, %v706_v31  ;;  %v3531_v33 = vsub.f32 %v2442_v34, %v2385_v12 }
  0x2f   : > { %v1061_v20 = vpack.c.bf16 %v968_v18, %v967_v28  ;;  %v906_v21 = vmax.f32 %v778_v32, 0.0  ;;  %v842_v39 = vadd.f32 %v2634_v10, %v707_v19  ;;  %v3532_v22 = vsub.f32 %v2445_v35, %v2385_v12 }
  0x30   : > { %v509_v43 = vmul.f32 %v2585_v46, %v3531_v33  ;;  %2170 = vmatprep.mubr.msk.bf16.mxu0 %vm1099_vm0, %v1029_v36  ;;  %v969_v8 = vmax.f32 %v841_v2, 0.0  ;;  %v3533_v9 = vsub.f32 %v2456_v40, %v2385_v12  ;;  %v3534_v14 = vsub.f32 %v2459_v41, %v2385_v12 }
  0x31   : > { %v510_v23 = vmul.f32 %v2585_v46, %v3532_v22  ;;  %2234 = vmatprep.mubr.msk.bf16.mxu1 %vm1099_vm0, %v1061_v20  ;;  %v1030_v35 = vpack.c.bf16 %v906_v21, %v905_v37  ;;  %v970_v26 = vmax.f32 %v842_v39, 0.0  ;;  %v3535_v13 = vsub.f32 %v2462_v42, %v2385_v12 }
  0x32   : > { %v644_v38 = vmul.f32 %v2605_v6, %v509_v43  ;;  %v573_v34 = vmul.f32 %v2585_v46, %v3533_v9  ;;  %v574_v53 = vmul.f32 %v2585_v46, %v3534_v14  ;;  %v3536_v41 = vsub.f32 %v2473_v47, %v2385_v12 }
  0x33   : > { %v645_v11 = vmul.f32 %v2605_v6, %v510_v23  ;;  %v511_v15 = vmul.f32 %v2585_v46, %v3535_v13  ;;  %2171 = vmatmul.mubr.msk.bf16.gmra.mrb[4].mxu0 %vm1099_vm0, %v1030_v35  ;;  %v1062_v16 = vpack.c.bf16 %v970_v26, %v969_v8  ;;  %v3537_v17 = vsub.f32 %v2476_v48, %v2385_v12 }
  0x34   : > { %v779_v40 = vadd.f32 %v2634_v10, %v644_v38  ;;  %v708_v24 = vmul.f32 %v2605_v6, %v573_v34  ;;  %v709_v25 = vmul.f32 %v2605_v6, %v574_v53  ;;  %v512_v27 = vmul.f32 %v2585_v46, %v3536_v41 }
  0x35   : > { %v780_v29 = vadd.f32 %v2634_v10, %v645_v11  ;;  %v646_v42 = vmul.f32 %v2605_v6, %v511_v15  ;;  %v575_v30 = vmul.f32 %v2585_v46, %v3537_v17  ;;  %2235 = vmatmul.mubr.msk.bf16.gmra.mrb[4].mxu1 %vm1099_vm0, %v1062_v16  ;;  %v3538_v36 = vsub.f32 %v2479_v49, %v2385_v12 }
  0x36   : > { %v907_v31 = vmax.f32 %v779_v40, 0.0  ;;  %v843_v28 = vadd.f32 %v2634_v10, %v708_v24  ;;  %v844_v18 = vadd.f32 %v2634_v10, %v709_v25  ;;  %v647_v47 = vmul.f32 %v2605_v6, %v512_v27 }
  0x37   : > { %v908_v32 = vmax.f32 %v780_v29, 0.0  ;;  %v781_v19 = vadd.f32 %v2634_v10, %v646_v42  ;;  %v576_v37 = vmul.f32 %v2585_v46, %v3538_v36  ;;  %v710_v48 = vmul.f32 %v2605_v6, %v575_v30 }
  0x38   : > { %v971_v2 = vmax.f32 %v843_v28, 0.0  ;;  %v972_v33 = vmax.f32 %v844_v18, 0.0  ;;  %v782_v43 = vadd.f32 %v2634_v10, %v647_v47  ;;  %v3539_v20 = vsub.f32 %v2490_v54, %v2385_v12 }
  0x39   : > { %v1031_v39 = vpack.c.bf16 %v908_v32, %v907_v31  ;;  %v909_v22 = vmax.f32 %v781_v19, 0.0  ;;  %v711_v23 = vmul.f32 %v2605_v6, %v576_v37  ;;  %v845_v8 = vadd.f32 %v2634_v10, %v710_v48 }
  0x3a   : > { %v513_v21 = vmul.f32 %v2585_v46, %v3539_v20  ;;  %v1063_v49 = vpack.c.bf16 %v972_v33, %v971_v2  ;;  %v910_v38 = vmax.f32 %v782_v43, 0.0  ;;  %v3540_v9 = vsub.f32 %v2493_v55, %v2385_v12 }
  0x3b   : > { %2174 = vmatprep.mubr.msk.bf16.mxu0 %vm1099_vm0, %v1031_v39  ;;  %v846_v54 = vadd.f32 %v2634_v10, %v711_v23  ;;  %v973_v53 = vmax.f32 %v845_v8, 0.0  ;;  %v3541_v35 = vsub.f32 %v2496_v56, %v2385_v12  ;;  %v3542_v11 = vsub.f32 %v2507_v61, %v2385_v12 }
  0x3c   : > { %v514_v34 = vmul.f32 %v2585_v46, %v3540_v9  ;;  %v648_v14 = vmul.f32 %v2605_v6, %v513_v21  ;;  %2238 = vmatprep.mubr.msk.bf16.mxu1 %vm1099_vm0, %v1063_v49  ;;  %v1032_v55 = vpack.c.bf16 %v910_v38, %v909_v22  ;;  %v3543_v24 = vsub.f32 %v2510_v62, %v2385_v12 }
  0x3d   : > { %v577_v26 = vmul.f32 %v2585_v46, %v3541_v35  ;;  %v578_v13 = vmul.f32 %v2585_v46, %v3542_v11  ;;  %v974_v56 = vmax.f32 %v846_v54, 0.0  ;;  %v3544_v61 = vsub.f32 %v2513_v63, %v2385_v12 }
  0x3e   : > { %v649_v15 = vmul.f32 %v2605_v6, %v514_v34  ;;  %v783_v40 = vadd.f32 %v2634_v10, %v648_v14  ;;  %v515_v25 = vmul.f32 %v2585_v46, %v3543_v24  ;;  %2175 = vmatmul.mubr.msk.bf16.gmra.mrb[8].mxu0 %vm1099_vm0, %v1032_v55  ;;  %v3545_v62 = vsub.f32 %v2524_v4, %v2385_v12 }
  0x3f   : > { %v712_v41 = vmul.f32 %v2605_v6, %v577_v26  ;;  %v713_v27 = vmul.f32 %v2605_v6, %v578_v13  ;;  %v516_v16 = vmul.f32 %v2585_v46, %v3544_v61  ;;  %v1064_v31 = vpack.c.bf16 %v974_v56, %v973_v53 }
  0x40   : > { %v784_v29 = vadd.f32 %v2634_v10, %v649_v15  ;;  %v911_v42 = vmax.f32 %v783_v40, 0.0  ;;  %v650_v17 = vmul.f32 %v2605_v6, %v515_v25  ;;  %v579_v30 = vmul.f32 %v2585_v46, %v3545_v62 }
  0x41   : > { %v847_v28 = vadd.f32 %v2634_v10, %v712_v41  ;;  %v848_v18 = vadd.f32 %v2634_v10, %v713_v27  ;;  %v651_v63 = vmul.f32 %v2605_v6, %v516_v16  ;;  %v3546_v19 = vsub.f32 %v2527_v5, %v2385_v12  ;;  %2239 = vmatmul.mubr.msk.bf16.gmra.mrb[8].mxu1 %vm1099_vm0, %v1064_v31 }
  0x42   : > { %v912_v47 = vmax.f32 %v784_v29, 0.0  ;;  %v785_v32 = vadd.f32 %v2634_v10, %v650_v17  ;;  %v714_v37 = vmul.f32 %v2605_v6, %v579_v30  ;;  %v3547_v33 = vsub.f32 %v2530_v7, %v2385_v12 }
  0x43   : > { %v580_v36 = vmul.f32 %v2585_v46, %v3546_v19  ;;  %v975_v4 = vmax.f32 %v847_v28, 0.0  ;;  %v976_v48 = vmax.f32 %v848_v18, 0.0  ;;  %v786_v2 = vadd.f32 %v2634_v10, %v651_v63 }
  0x44   : > { %v517_v43 = vmul.f32 %v2585_v46, %v3547_v33  ;;  %v1033_v20 = vpack.c.bf16 %v912_v47, %v911_v42  ;;  %v913_v21 = vmax.f32 %v785_v32, 0.0  ;;  %v849_v5 = vadd.f32 %v2634_v10, %v714_v37 }
  0x45   : > { %v715_v39 = vmul.f32 %v2605_v6, %v580_v36  ;;  %v1065_v22 = vpack.c.bf16 %v976_v48, %v975_v4  ;;  %v914_v23 = vmax.f32 %v786_v2, 0.0  ;;  %v3548_v8 = vsub.f32 %v2541_v1, %v2385_v12  ;;  %v252_v36 = vld [vmem:[%s2375_s30 + $0xb8] sm:$0xff] }
  0x46   : > { %v652_v38 = vmul.f32 %v2605_v6, %v517_v43  ;;  %2178 = vmatprep.mubr.msk.bf16.mxu0 %vm1099_vm0, %v1033_v20  ;;  %v977_v9 = vmax.f32 %v849_v5, 0.0  ;;  %v3549_v34 = vsub.f32 %v2544_v0, %v2385_v12  ;;  %v3550_v54 = vsub.f32 %v2547_v60, %v2385_v12  ;;  %v315_v5 = vld [vmem:[%s2375_s30 + $0x2b0] sm:$0xff] }
  0x47   : > { %v518_v49 = vmul.f32 %v2585_v46, %v3548_v8  ;;  %v850_v7 = vadd.f32 %v2634_v10, %v715_v39  ;;  %2242 = vmatprep.mubr.msk.bf16.mxu1 %vm1099_vm0, %v1065_v22  ;;  %v1034_v1 = vpack.c.bf16 %v914_v23, %v913_v21  ;;  %v3551_v11 = vsub.f32 %v2558_v59, %v2385_v12 }
  0x48   : > { %v581_v14 = vmul.f32 %v2585_v46, %v3549_v34  ;;  %v582_v53 = vmul.f32 %v2585_v46, %v3550_v54  ;;  %v787_v26 = vadd.f32 %v2634_v10, %v652_v38  ;;  %v3552_v60 = vsub.f32 %v2561_v58, %v2385_v12  ;;  %v316_v34 = vld [vmem:[%s2375_s30 + $0x2b8] sm:$0xff] }
  0x49   : > { %v653_v35 = vmul.f32 %v2605_v6, %v518_v49  ;;  %v519_v13 = vmul.f32 %v2585_v46, %v3551_v11  ;;  %v978_v0 = vmax.f32 %v850_v7, 0.0  ;;  %2179 = vmatmul.mubr.msk.bf16.gmra.mrb[12].mxu0 %vm1099_vm0, %v1034_v1  ;;  %v3553_v59 = vsub.f32 %v2564_v57, %v2385_v12 }
  0x4a   : > { %v716_v55 = vmul.f32 %v2605_v6, %v581_v14  ;;  %v717_v15 = vmul.f32 %v2605_v6, %v582_v53  ;;  %v520_v40 = vmul.f32 %v2585_v46, %v3552_v60  ;;  %v915_v25 = vmax.f32 %v787_v26, 0.0 }
  0x4b   : > { %v788_v24 = vadd.f32 %v2634_v10, %v653_v35  ;;  %v654_v56 = vmul.f32 %v2605_v6, %v519_v13  ;;  %v583_v41 = vmul.f32 %v2585_v46, %v3553_v59  ;;  %v1066_v27 = vpack.c.bf16 %v978_v0, %v977_v9  ;;  %v253_v35 = vld [vmem:[%s2375_s30 + $0xc0] sm:$0xff] }
  0x4c   : > { %v851_v61 = vadd.f32 %v2634_v10, %v716_v55  ;;  %v852_v58 = vadd.f32 %v2634_v10, %v717_v15  ;;  %v655_v16 = vmul.f32 %v2605_v6, %v520_v40  ;;  %v3554_v17 = vsub.f32 %v2575_v52, %v2385_v12  ;;  %v254_v40 = vld [vmem:[%s2375_s30 + $0xc8] sm:$0xff] }
  0x4d   : > { %v916_v29 = vmax.f32 %v788_v24, 0.0  ;;  %v789_v42 = vadd.f32 %v2634_v10, %v654_v56  ;;  %v718_v57 = vmul.f32 %v2605_v6, %v583_v41  ;;  %2243 = vmatmul.mubr.msk.bf16.gmra.mrb[12].mxu1 %vm1099_vm0, %v1066_v27  ;;  %v3555_v18 = vsub.f32 %v2578_v51, %v2385_v12  ;;  %v317_v41 = vld [vmem:[%s2375_s30 + $0x2c0] sm:$0xff] }
  0x4e   : > { %v584_v62 = vmul.f32 %v2585_v46, %v3554_v17  ;;  %v979_v30 = vmax.f32 %v851_v61, 0.0  ;;  %v980_v31 = vmax.f32 %v852_v58, 0.0  ;;  %v790_v28 = vadd.f32 %v2634_v10, %v655_v16 }
  0x4f   : > { %v521_v63 = vmul.f32 %v2585_v46, %v3555_v18  ;;  %v1035_v47 = vpack.c.bf16 %v916_v29, %v915_v25  ;;  %v917_v32 = vmax.f32 %v789_v42, 0.0  ;;  %v853_v19 = vadd.f32 %v2634_v10, %v718_v57  ;;  %v318_v29 = vld [vmem:[%s2375_s30 + $0x2c8] sm:$0xff]  ;;  %v255_v42 = vld [vmem:[%s2375_s30 + $0xd0] sm:$0xff] }
  0x50   : > { %v719_v52 = vmul.f32 %v2605_v6, %v584_v62  ;;  %v1067_v37 = vpack.c.bf16 %v980_v31, %v979_v30  ;;  %v918_v4 = vmax.f32 %v790_v28, 0.0  ;;  %v3556_v48 = vsub.f32 %v2581_v50, %v2385_v12 }
  0x51   : > { %v656_v33 = vmul.f32 %v2605_v6, %v521_v63  ;;  %2182 = vmatprep.mubr.msk.bf16.mxu0 %vm1099_vm0, %v1035_v47  ;;  %v981_v43 = vmax.f32 %v853_v19, 0.0  ;;  %v3557_v20 = vsub.f32 %v2594_v3, %v2385_v12  ;;  %v3558_v39 = vsub.f32 %v2597_v45, %v2385_v12  ;;  %v256_v47 = vld [vmem:[%s2375_s30 + $0xd8] sm:$0xff] }
  0x52   : > { %v522_v2 = vmul.f32 %v2585_v46, %v3556_v48  ;;  %v854_v51 = vadd.f32 %v2634_v10, %v719_v52  ;;  %2246 = vmatprep.mubr.msk.bf16.mxu1 %vm1099_vm0, %v1067_v37  ;;  %v1036_v22 = vpack.c.bf16 %v918_v4, %v917_v32  ;;  %v390_v49 = vsub.f32 %v252_v36, %v2385_v12  ;;  %v319_v37 = vld [vmem:[%s2375_s30 + $0x2d0] sm:$0xff] }
  0x53   : > { %v585_v21 = vmul.f32 %v2585_v46, %v3557_v20  ;;  %v586_v50 = vmul.f32 %v2585_v46, %v3558_v39  ;;  %v791_v8 = vadd.f32 %v2634_v10, %v656_v33  ;;  %v3559_v45 = vsub.f32 %v2600_v44, %v2385_v12  ;;  %v320_v39 = vld [vmem:[%s2375_s30 + $0x2d8] sm:$0xff] }
  0x54   : > { %v657_v23 = vmul.f32 %v2605_v6, %v522_v2  ;;  %v982_v38 = vmax.f32 %v854_v51, 0.0  ;;  %2183 = vmatmul.mubr.msk.bf16.gmra.mrb[16].mxu0 %vm1099_vm0, %v1036_v22  ;;  %v524_v53 = vmul.f32 %v2585_v46, %v390_v49  ;;  %v453_v1 = vsub.f32 %v315_v5, %v2385_v12 }
  0x55   : > { %v720_v3 = vmul.f32 %v2605_v6, %v585_v21  ;;  %v721_v7 = vmul.f32 %v2605_v6, %v586_v50  ;;  %v523_v9 = vmul.f32 %v2585_v46, %v3559_v45  ;;  %v919_v54 = vmax.f32 %v791_v8, 0.0 }
  0x56   : > { %v792_v14 = vadd.f32 %v2634_v10, %v657_v23  ;;  %v1068_v26 = vpack.c.bf16 %v982_v38, %v981_v43  ;;  %v659_v55 = vmul.f32 %v2605_v6, %v524_v53  ;;  %v454_v15 = vsub.f32 %v316_v34, %v2385_v12 }
  0x57   : > { %v855_v11 = vadd.f32 %v2634_v10, %v720_v3  ;;  %v856_v44 = vadd.f32 %v2634_v10, %v721_v7  ;;  %v658_v13 = vmul.f32 %v2605_v6, %v523_v9  ;;  %v587_v60 = vmul.f32 %v2585_v46, %v453_v1  ;;  %v257_v7 = vld [vmem:[%s2375_s30 + $0xe0] sm:$0xff] }
  0x58   : > { %v920_v0 = vmax.f32 %v792_v14, 0.0  ;;  %2247 = vmatmul.mubr.msk.bf16.gmra.mrb[16].mxu1 %vm1099_vm0, %v1068_v26  ;;  %v391_v59 = vsub.f32 %v253_v35, %v2385_v12  ;;  %v794_v61 = vadd.f32 %v2634_v10, %v659_v55  ;;  %v588_v58 = vmul.f32 %v2585_v46, %v454_v15  ;;  %v258_v26 = vld [vmem:[%s2375_s30 + $0xe8] sm:$0xff]  ;;  %v321_v55 = vld [vmem:[%s2375_s30 + $0x2e0] sm:$0xff] }
  0x59   : > { %v983_v24 = vmax.f32 %v855_v11, 0.0  ;;  %v984_v25 = vmax.f32 %v856_v44, 0.0  ;;  %v793_v56 = vadd.f32 %v2634_v10, %v658_v13  ;;  %v722_v16 = vmul.f32 %v2605_v6, %v587_v60 }
  0x5a   : > { %v1037_v27 = vpack.c.bf16 %v920_v0, %v919_v54  ;;  %v392_v57 = vsub.f32 %v254_v40, %v2385_v12  ;;  %v525_v30 = vmul.f32 %v2585_v46, %v391_v59  ;;  %v922_v31 = vmax.f32 %v794_v61, 0.0  ;;  %v259_v61 = vld [vmem:[%s2375_s30 + $0xf0] sm:$0xff] }
  0x5b   : > { %v1069_v17 = vpack.c.bf16 %v984_v25, %v983_v24  ;;  %v921_v62 = vmax.f32 %v793_v56, 0.0  ;;  %v723_v28 = vmul.f32 %v2605_v6, %v588_v58  ;;  %v857_v18 = vadd.f32 %v2634_v10, %v722_v16  ;;  %v322_v25 = vld [vmem:[%s2375_s30 + $0x2e8] sm:$0xff] }
  0x5c   : > { %2186 = vmatprep.mubr.msk.bf16.mxu0 %vm1099_vm0, %v1037_v27  ;;  %v455_v63 = vsub.f32 %v317_v41, %v2385_v12  ;;  %v526_v32 = vmul.f32 %v2585_v46, %v392_v57  ;;  %v660_v52 = vmul.f32 %v2605_v6, %v525_v30  ;;  %v456_v19 = vsub.f32 %v318_v29, %v2385_v12 }
  0x5d   : > { %2250 = vmatprep.mubr.msk.bf16.mxu1 %vm1099_vm0, %v1069_v17  ;;  %v393_v36 = vsub.f32 %v255_v42, %v2385_v12  ;;  %v1038_v4 = vpack.c.bf16 %v922_v31, %v921_v62  ;;  %v858_v48 = vadd.f32 %v2634_v10, %v723_v28  ;;  %v985_v2 = vmax.f32 %v857_v18, 0.0  ;;  %v260_v31 = vld [vmem:[%s2375_s30 + $0xf8] sm:$0xff]  ;;  %v323_v28 = vld [vmem:[%s2375_s30 + $0x2f0] sm:$0xff] }
  0x5e   : > { %v589_v33 = vmul.f32 %v2585_v46, %v455_v63  ;;  %v661_v51 = vmul.f32 %v2605_v6, %v526_v32  ;;  %v795_v43 = vadd.f32 %v2634_v10, %v660_v52  ;;  %v590_v20 = vmul.f32 %v2585_v46, %v456_v19 }
  0x5f   : > { %v394_v21 = vsub.f32 %v256_v47, %v2385_v12  ;;  %2187 = vmatmul.mubr.msk.bf16.gmra.mrb[20].mxu0 %vm1099_vm0, %v1038_v4  ;;  %v986_v50 = vmax.f32 %v858_v48, 0.0  ;;  %v527_v22 = vmul.f32 %v2585_v46, %v393_v36  ;;  %v457_v23 = vsub.f32 %v319_v37, %v2385_v12  ;;  %v324_v4 = vld [vmem:[%s2375_s30 + $0x2f8] sm:$0xff] }
  0x60   : > { %v724_v5 = vmul.f32 %v2605_v6, %v589_v33  ;;  %v796_v8 = vadd.f32 %v2634_v10, %v661_v51  ;;  %v923_v49 = vmax.f32 %v795_v43, 0.0  ;;  %v725_v38 = vmul.f32 %v2605_v6, %v590_v20  ;;  %v261_v43 = vld [vmem:[%s2375_s30 + $0x100] sm:$0xff] }
  0x61   : > { %v528_v3 = vmul.f32 %v2585_v46, %v394_v21  ;;  %v1070_v45 = vpack.c.bf16 %v986_v50, %v985_v2  ;;  %v662_v34 = vmul.f32 %v2605_v6, %v527_v22  ;;  %v458_v14 = vsub.f32 %v320_v39, %v2385_v12 }
  0x62   : > { %v859_v9 = vadd.f32 %v2634_v10, %v724_v5  ;;  %v924_v54 = vmax.f32 %v796_v8, 0.0  ;;  %v860_v53 = vadd.f32 %v2634_v10, %v725_v38  ;;  %v591_v35 = vmul.f32 %v2585_v46, %v457_v23 }
  0x63   : > { %v663_v1 = vmul.f32 %v2605_v6, %v528_v3  ;;  %2251 = vmatmul.mubr.msk.bf16.gmra.mrb[20].mxu1 %vm1099_vm0, %v1070_v45  ;;  %v797_v44 = vadd.f32 %v2634_v10, %v662_v34  ;;  %v592_v13 = vmul.f32 %v2585_v46, %v458_v14  ;;  %v395_v0 = vsub.f32 %v257_v7, %v2385_v12 }
  0x64   : > { %v987_v11 = vmax.f32 %v859_v9, 0.0  ;;  %v1039_v15 = vpack.c.bf16 %v924_v54, %v923_v49  ;;  %v988_v60 = vmax.f32 %v860_v53, 0.0  ;;  %v726_v24 = vmul.f32 %v2605_v6, %v591_v35  ;;  %v262_v49 = vld [vmem:[%s2375_s30 + $0x108] sm:$0xff]  ;;  %v325_v53 = vld [vmem:[%s2375_s30 + $0x300] sm:$0xff] }
  0x65   : > { %v798_v40 = vadd.f32 %v2634_v10, %v663_v1  ;;  %v925_v56 = vmax.f32 %v797_v44, 0.0  ;;  %v727_v59 = vmul.f32 %v2605_v6, %v592_v13  ;;  %v396_v41 = vsub.f32 %v258_v26, %v2385_v12  ;;  %v326_v44 = vld [vmem:[%s2375_s30 + $0x308] sm:$0xff] }
  0x66   : > { %v529_v27 = vmul.f32 %v2585_v46, %v395_v0  ;;  %2190 = vmatprep.mubr.msk.bf16.mxu0 %vm1099_vm0, %v1039_v15  ;;  %v1071_v58 = vpack.c.bf16 %v988_v60, %v987_v11  ;;  %v861_v29 = vadd.f32 %v2634_v10, %v726_v24  ;;  %v459_v42 = vsub.f32 %v321_v55, %v2385_v12  ;;  %v263_v60 = vld [vmem:[%s2375_s30 + $0x110] sm:$0xff] }
  0x67   : > { %v926_v16 = vmax.f32 %v798_v40, 0.0  ;;  %v862_v17 = vadd.f32 %v2634_v10, %v727_v59  ;;  %v530_v62 = vmul.f32 %v2585_v46, %v396_v41  ;;  %v460_v30 = vsub.f32 %v322_v25, %v2385_v12 }
  0x68   : > { %v664_v57 = vmul.f32 %v2605_v6, %v529_v27  ;;  %2254 = vmatprep.mubr.msk.bf16.mxu1 %vm1099_vm0, %v1071_v58  ;;  %v989_v63 = vmax.f32 %v861_v29, 0.0  ;;  %v593_v47 = vmul.f32 %v2585_v46, %v459_v42  ;;  %v397_v32 = vsub.f32 %v259_v61, %v2385_v12  ;;  %v264_v58 = vld [vmem:[%s2375_s30 + $0x118] sm:$0xff] }
  0x69   : > { %v1040_v18 = vpack.c.bf16 %v926_v16, %v925_v56  ;;  %v990_v52 = vmax.f32 %v862_v17, 0.0  ;;  %v665_v19 = vmul.f32 %v2605_v6, %v530_v62  ;;  %v594_v37 = vmul.f32 %v2585_v46, %v460_v30  ;;  %v327_v62 = vld [vmem:[%s2375_s30 + $0x310] sm:$0xff] }
  0x6a   : > { %v799_v36 = vadd.f32 %v2634_v10, %v664_v57  ;;  %v728_v48 = vmul.f32 %v2605_v6, %v593_v47  ;;  %v398_v2 = vsub.f32 %v260_v31, %v2385_v12  ;;  %v531_v33 = vmul.f32 %v2585_v46, %v397_v32 }
  0x6b   : > { %2191 = vmatmul.mubr.msk.bf16.gmra.mrb[24].mxu0 %vm1099_vm0, %v1040_v18  ;;  %v461_v51 = vsub.f32 %v323_v28, %v2385_v12  ;;  %v1072_v20 = vpack.c.bf16 %v990_v52, %v989_v63  ;;  %v800_v21 = vadd.f32 %v2634_v10, %v665_v19  ;;  %v729_v50 = vmul.f32 %v2605_v6, %v594_v37  ;;  %v328_v52 = vld [vmem:[%s2375_s30 + $0x318] sm:$0xff]  ;;  %v265_v19 = vld [vmem:[%s2375_s30 + $0x120] sm:$0xff] }
  0x6c   : > { %v927_v39 = vmax.f32 %v799_v36, 0.0  ;;  %v863_v5 = vadd.f32 %v2634_v10, %v728_v48  ;;  %v532_v22 = vmul.f32 %v2585_v46, %v398_v2  ;;  %v666_v23 = vmul.f32 %v2605_v6, %v531_v33 }
  0x6d   : > { %v462_v8 = vsub.f32 %v324_v4, %v2385_v12  ;;  %2255 = vmatmul.mubr.msk.bf16.gmra.mrb[24].mxu1 %vm1099_vm0, %v1072_v20  ;;  %v928_v38 = vmax.f32 %v800_v21, 0.0  ;;  %v864_v3 = vadd.f32 %v2634_v10, %v729_v50  ;;  %v595_v7 = vmul.f32 %v2585_v46, %v461_v51  ;;  %v266_v20 = vld [vmem:[%s2375_s30 + $0x128] sm:$0xff] }
  0x6e   : > { %v399_v45 = vsub.f32 %v261_v43, %v2385_v12  ;;  %v991_v9 = vmax.f32 %v863_v5, 0.0  ;;  %v667_v34 = vmul.f32 %v2605_v6, %v532_v22  ;;  %v801_v14 = vadd.f32 %v2634_v10, %v666_v23  ;;  %v329_v22 = vld [vmem:[%s2375_s30 + $0x320] sm:$0xff] }
  0x6f   : > { %v596_v54 = vmul.f32 %v2585_v46, %v462_v8  ;;  %v1041_v1 = vpack.c.bf16 %v928_v38, %v927_v39  ;;  %v992_v35 = vmax.f32 %v864_v3, 0.0  ;;  %v730_v26 = vmul.f32 %v2605_v6, %v595_v7 }
  0x70   : > { %v400_v11 = vsub.f32 %v262_v49, %v2385_v12  ;;  %v802_v13 = vadd.f32 %v2634_v10, %v667_v34  ;;  %v929_v0 = vmax.f32 %v801_v14, 0.0  ;;  %v533_v15 = vmul.f32 %v2585_v46, %v399_v45  ;;  %v330_v34 = vld [vmem:[%s2375_s30 + $0x328] sm:$0xff] }
  0x71   : > { %v731_v55 = vmul.f32 %v2605_v6, %v596_v54  ;;  %2194 = vmatprep.mubr.msk.bf16.mxu0 %vm1099_vm0, %v1041_v1  ;;  %v1073_v40 = vpack.c.bf16 %v992_v35, %v991_v9  ;;  %v865_v24 = vadd.f32 %v2634_v10, %v730_v26  ;;  %v463_v56 = vsub.f32 %v325_v53, %v2385_v12  ;;  %v267_v35 = vld [vmem:[%s2375_s30 + $0x130] sm:$0xff] }
  0x72   : > { %v534_v25 = vmul.f32 %v2585_v46, %v400_v11  ;;  %v930_v59 = vmax.f32 %v802_v13, 0.0  ;;  %v668_v27 = vmul.f32 %v2605_v6, %v533_v15  ;;  %v464_v61 = vsub.f32 %v326_v44, %v2385_v12 }
  0x73   : > { %v866_v41 = vadd.f32 %v2634_v10, %v731_v55  ;;  %2258 = vmatprep.mubr.msk.bf16.mxu1 %vm1099_vm0, %v1073_v40  ;;  %v993_v16 = vmax.f32 %v865_v24, 0.0  ;;  %v597_v42 = vmul.f32 %v2585_v46, %v463_v56  ;;  %v401_v17 = vsub.f32 %v263_v60, %v2385_v12  ;;  %v268_v40 = vld [vmem:[%s2375_s30 + $0x138] sm:$0xff] }
  0x74   : > { %v669_v29 = vmul.f32 %v2605_v6, %v534_v25  ;;  %v1042_v57 = vpack.c.bf16 %v930_v59, %v929_v0  ;;  %v803_v31 = vadd.f32 %v2634_v10, %v668_v27  ;;  %v598_v28 = vmul.f32 %v2585_v46, %v464_v61 }
  0x75   : > { %v994_v30 = vmax.f32 %v866_v41, 0.0  ;;  %v732_v63 = vmul.f32 %v2605_v6, %v597_v42  ;;  %v402_v47 = vsub.f32 %v264_v58, %v2385_v12  ;;  %v535_v32 = vmul.f32 %v2585_v46, %v401_v17  ;;  %v331_v41 = vld [vmem:[%s2375_s30 + $0x330] sm:$0xff] }
  0x76   : > { %v804_v18 = vadd.f32 %v2634_v10, %v669_v29  ;;  %2195 = vmatmul.mubr.msk.bf16.gmra.mrb[28].mxu0 %vm1099_vm0, %v1042_v57  ;;  %v931_v37 = vmax.f32 %v803_v31, 0.0  ;;  %v733_v4 = vmul.f32 %v2605_v6, %v598_v28  ;;  %v465_v48 = vsub.f32 %v327_v62, %v2385_v12  ;;  %v332_v57 = vld [vmem:[%s2375_s30 + $0x338] sm:$0xff] }
  0x77   : > { %v1074_v36 = vpack.c.bf16 %v994_v30, %v993_v16  ;;  %v867_v33 = vadd.f32 %v2634_v10, %v732_v63  ;;  %v536_v51 = vmul.f32 %v2585_v46, %v402_v47  ;;  %v670_v43 = vmul.f32 %v2605_v6, %v535_v32  ;;  %v269_v63 = vld [vmem:[%s2375_s30 + $0x140] sm:$0xff] }
  0x78   : > { %v932_v2 = vmax.f32 %v804_v18, 0.0  ;;  %v868_v21 = vadd.f32 %v2634_v10, %v733_v4  ;;  %v466_v39 = vsub.f32 %v328_v52, %v2385_v12  ;;  %v599_v50 = vmul.f32 %v2585_v46, %v465_v48 }
  0x79   : > { %2259 = vmatmul.mubr.msk.bf16.gmra.mrb[28].mxu1 %vm1099_vm0, %v1074_v36  ;;  %v403_v5 = vsub.f32 %v265_v19, %v2385_v12  ;;  %v995_v8 = vmax.f32 %v867_v33, 0.0  ;;  %v671_v49 = vmul.f32 %v2605_v6, %v536_v51  ;;  %v805_v38 = vadd.f32 %v2634_v10, %v670_v43  ;;  %v270_v36 = vld [vmem:[%s2375_s30 + $0x148] sm:$0xff]  ;;  %v333_v33 = vld [vmem:[%s2375_s30 + $0x340] sm:$0xff] }
  0x7a   : > { %v1043_v23 = vpack.c.bf16 %v932_v2, %v931_v37  ;;  %v996_v3 = vmax.f32 %v868_v21, 0.0  ;;  %v600_v7 = vmul.f32 %v2585_v46, %v466_v39  ;;  %v734_v45 = vmul.f32 %v2605_v6, %v599_v50 }
  0x7b   : > { %v404_v9 = vsub.f32 %v266_v20, %v2385_v12  ;;  %v806_v14 = vadd.f32 %v2634_v10, %v671_v49  ;;  %v933_v54 = vmax.f32 %v805_v38, 0.0  ;;  %v537_v53 = vmul.f32 %v2585_v46, %v403_v5 }
  0x7c   : > { %2198 = vmatprep.mubr.msk.bf16.mxu0 %vm1099_vm0, %v1043_v23  ;;  %v467_v1 = vsub.f32 %v329_v22, %v2385_v12  ;;  %v1075_v26 = vpack.c.bf16 %v996_v3, %v995_v8  ;;  %v735_v11 = vmul.f32 %v2605_v6, %v600_v7  ;;  %v869_v44 = vadd.f32 %v2634_v10, %v734_v45  ;;  %v334_v23 = vld [vmem:[%s2375_s30 + $0x348] sm:$0xff]  ;;  %v271_v7 = vld [vmem:[%s2375_s30 + $0x150] sm:$0xff] }
  0x7d   : > { %v538_v13 = vmul.f32 %v2585_v46, %v404_v9  ;;  %v934_v0 = vmax.f32 %v806_v14, 0.0  ;;  %v672_v55 = vmul.f32 %v2605_v6, %v537_v53  ;;  %v468_v15 = vsub.f32 %v330_v34, %v2385_v12 }
  0x7e   : > { %v601_v60 = vmul.f32 %v2585_v46, %v467_v1  ;;  %2262 = vmatprep.mubr.msk.bf16.mxu1 %vm1099_vm0, %v1075_v26  ;;  %v870_v24 = vadd.f32 %v2634_v10, %v735_v11  ;;  %v997_v25 = vmax.f32 %v869_v44, 0.0  ;;  %v405_v59 = vsub.f32 %v267_v35, %v2385_v12  ;;  %v272_v26 = vld [vmem:[%s2375_s30 + $0x158] sm:$0xff] }
  0x7f   : > { %v673_v56 = vmul.f32 %v2605_v6, %v538_v13  ;;  %v1044_v27 = vpack.c.bf16 %v934_v0, %v933_v54  ;;  %v807_v61 = vadd.f32 %v2634_v10, %v672_v55  ;;  %v602_v58 = vmul.f32 %v2585_v46, %v468_v15  ;;  %v335_v55 = vld [vmem:[%s2375_s30 + $0x350] sm:$0xff] }
  0x80   : > { %v736_v16 = vmul.f32 %v2605_v6, %v601_v60  ;;  %v998_v29 = vmax.f32 %v870_v24, 0.0  ;;  %v406_v17 = vsub.f32 %v268_v40, %v2385_v12  ;;  %v539_v62 = vmul.f32 %v2585_v46, %v405_v59 }
  0x81   : > { %v808_v42 = vadd.f32 %v2634_v10, %v673_v56  ;;  %2199 = vmatmul.mubr.msk.bf16.gmra.mrb[32].mxu0 %vm1099_vm0, %v1044_v27  ;;  %v935_v30 = vmax.f32 %v807_v61, 0.0  ;;  %v737_v31 = vmul.f32 %v2605_v6, %v602_v58  ;;  %v469_v18 = vsub.f32 %v331_v41, %v2385_v12  ;;  %v336_v27 = vld [vmem:[%s2375_s30 + $0x358] sm:$0xff] }
  0x82   : > { %v871_v28 = vadd.f32 %v2634_v10, %v736_v16  ;;  %v1076_v47 = vpack.c.bf16 %v998_v29, %v997_v25  ;;  %v540_v52 = vmul.f32 %v2585_v46, %v406_v17  ;;  %v674_v19 = vmul.f32 %v2605_v6, %v539_v62 }
  0x83   : > { %v936_v32 = vmax.f32 %v808_v42, 0.0  ;;  %v872_v37 = vadd.f32 %v2634_v10, %v737_v31  ;;  %v470_v48 = vsub.f32 %v332_v57, %v2385_v12  ;;  %v603_v2 = vmul.f32 %v2585_v46, %v469_v18  ;;  %v273_v42 = vld [vmem:[%s2375_s30 + $0x160] sm:$0xff]  ;;  %v274_v31 = vld [vmem:[%s2375_s30 + $0x168] sm:$0xff] }
  0x84   : > { %v999_v4 = vmax.f32 %v871_v28, 0.0  ;;  %2263 = vmatmul.mubr.msk.bf16.gmra.mrb[32].mxu1 %vm1099_vm0, %v1076_v47  ;;  %v675_v43 = vmul.f32 %v2605_v6, %v540_v52  ;;  %v809_v20 = vadd.f32 %v2634_v10, %v674_v19  ;;  %v407_v21 = vsub.f32 %v269_v63, %v2385_v12  ;;  %v3143_v19 = vld [vmem:[%s3519_s2] ss:$0 sm:$0xff] }
  0x85   : > { %v1045_v51 = vpack.c.bf16 %v936_v32, %v935_v30  ;;  %v1000_v39 = vmax.f32 %v872_v37, 0.0  ;;  %v604_v50 = vmul.f32 %v2585_v46, %v470_v48  ;;  %v738_v5 = vmul.f32 %v2605_v6, %v603_v2  ;;  %v337_v32 = vld [vmem:[%s2375_s30 + $0x360] sm:$0xff] }
  0x86   : > { %v408_v22 = vsub.f32 %v270_v36, %v2385_v12  ;;  %v810_v8 = vadd.f32 %v2634_v10, %v675_v43  ;;  %v937_v49 = vmax.f32 %v809_v20, 0.0  ;;  %v541_v38 = vmul.f32 %v2585_v46, %v407_v21  ;;  %v3156_v43 = vld [vmem:[%s3520_s3] ss:$0 sm:$0xff] }
  0x87   : > { %2202 = vmatprep.mubr.msk.bf16.mxu0 %vm1099_vm0, %v1045_v51  ;;  %v471_v3 = vsub.f32 %v333_v33, %v2385_v12  ;;  %v1077_v45 = vpack.c.bf16 %v1000_v39, %v999_v4  ;;  %v739_v9 = vmul.f32 %v2605_v6, %v604_v50  ;;  %v873_v34 = vadd.f32 %v2634_v10, %v738_v5  ;;  %v338_v51 = vld [vmem:[%s2375_s30 + $0x368] sm:$0xff]  ;;  %v275_v50 = vld [vmem:[%s2375_s30 + $0x170] sm:$0xff] }
  0x88   : > { %v542_v14 = vmul.f32 %v2585_v46, %v408_v22  ;;  %v938_v54 = vmax.f32 %v810_v8, 0.0  ;;  %v676_v53 = vmul.f32 %v2605_v6, %v541_v38  ;;  %v472_v1 = vsub.f32 %v334_v23, %v2385_v12 }
  0x89   : > { %v605_v35 = vmul.f32 %v2585_v46, %v471_v3  ;;  %2266 = vmatprep.mubr.msk.bf16.mxu1 %vm1099_vm0, %v1077_v45  ;;  %v874_v11 = vadd.f32 %v2634_v10, %v739_v9  ;;  %v1001_v44 = vmax.f32 %v873_v34, 0.0  ;;  %v409_v0 = vsub.f32 %v271_v7, %v2385_v12  ;;  %v276_v45 = vld [vmem:[%s2375_s30 + $0x178] sm:$0xff] }
  0x8a   : > { %v677_v13 = vmul.f32 %v2605_v6, %v542_v14  ;;  %v1046_v15 = vpack.c.bf16 %v938_v54, %v937_v49  ;;  %v811_v60 = vadd.f32 %v2634_v10, %v676_v53  ;;  %v606_v40 = vmul.f32 %v2585_v46, %v472_v1  ;;  %v339_v53 = vld [vmem:[%s2375_s30 + $0x370] sm:$0xff] }
  0x8b   : > { %v740_v24 = vmul.f32 %v2605_v6, %v605_v35  ;;  %v1002_v25 = vmax.f32 %v874_v11, 0.0  ;;  %v410_v59 = vsub.f32 %v272_v26, %v2385_v12  ;;  %v543_v41 = vmul.f32 %v2585_v46, %v409_v0 }
  0x8c   : > { %v812_v56 = vadd.f32 %v2634_v10, %v677_v13  ;;  %2203 = vmatmul.mubr.msk.bf16.gmra.mrb[36].mxu0 %vm1099_vm0, %v1046_v15  ;;  %v939_v61 = vmax.f32 %v811_v60, 0.0  ;;  %v741_v58 = vmul.f32 %v2605_v6, %v606_v40  ;;  %v473_v29 = vsub.f32 %v335_v55, %v2385_v12  ;;  %v340_v15 = vld [vmem:[%s2375_s30 + $0x378] sm:$0xff] }
  0x8d   : > { %v875_v16 = vadd.f32 %v2634_v10, %v740_v24  ;;  %v1078_v17 = vpack.c.bf16 %v1002_v25, %v1001_v44  ;;  %v544_v57 = vmul.f32 %v2585_v46, %v410_v59  ;;  %v678_v30 = vmul.f32 %v2605_v6, %v543_v41 }
  0x8e   : > { %v940_v62 = vmax.f32 %v812_v56, 0.0  ;;  %v876_v28 = vadd.f32 %v2634_v10, %v741_v58  ;;  %v474_v63 = vsub.f32 %v336_v27, %v2385_v12  ;;  %v607_v47 = vmul.f32 %v2585_v46, %v473_v29  ;;  %v277_v56 = vld [vmem:[%s2375_s30 + $0x180] sm:$0xff]  ;;  %v278_v58 = vld [vmem:[%s2375_s30 + $0x188] sm:$0xff] }
  0x8f   : > { %v1003_v18 = vmax.f32 %v875_v16, 0.0  ;;  %2267 = vmatmul.mubr.msk.bf16.gmra.mrb[36].mxu1 %vm1099_vm0, %v1078_v17  ;;  %v679_v6 = vmul.f32 %v3143_v19, %v544_v57  ;;  %v813_v36 = vadd.f32 %v2634_v10, %v678_v30  ;;  %v411_v37 = vsub.f32 %v273_v42, %v2385_v12 }
  0x90   : > { %v1047_v52 = vpack.c.bf16 %v940_v62, %v939_v61  ;;  %v1004_v4 = vmax.f32 %v876_v28, 0.0  ;;  %v608_v48 = vmul.f32 %v2585_v46, %v474_v63  ;;  %v742_v2 = vmul.f32 %v3143_v19, %v607_v47  ;;  %v341_v62 = vld [vmem:[%s2375_s30 + $0x380] sm:$0xff] }
  0x91   : > { %v412_v33 = vsub.f32 %v274_v31, %v2385_v12  ;;  %v814_v10 = vadd.f32 %v3156_v43, %v679_v6  ;;  %v941_v20 = vmax.f32 %v813_v36, 0.0  ;;  %v545_v21 = vmul.f32 %v2585_v46, %v411_v37 }
  0x92   : > { %2206 = vmatprep.mubr.msk.bf16.mxu0 %vm1099_vm0, %v1047_v52  ;;  %v475_v39 = vsub.f32 %v337_v32, %v2385_v12  ;;  %v1079_v5 = vpack.c.bf16 %v1004_v4, %v1003_v18  ;;  %v743_v22 = vmul.f32 %v3143_v19, %v608_v48  ;;  %v877_v23 = vadd.f32 %v3156_v43, %v742_v2  ;;  %v342_v52 = vld [vmem:[%s2375_s30 + $0x388] sm:$0xff]  ;;  %v279_v48 = vld [vmem:[%s2375_s30 + $0x190] sm:$0xff] }
  0x93   : > { %v546_v8 = vmul.f32 %v2585_v46, %v412_v33  ;;  %v942_v49 = vmax.f32 %v814_v10, 0.0  ;;  %v680_v38 = vmul.f32 %v3143_v19, %v545_v21  ;;  %v476_v3 = vsub.f32 %v338_v51, %v2385_v12 }
  0x94   : > { %v609_v7 = vmul.f32 %v2585_v46, %v475_v39  ;;  %2270 = vmatprep.mubr.msk.bf16.mxu1 %vm1099_vm0, %v1079_v5  ;;  %v878_v9 = vadd.f32 %v3156_v43, %v743_v22  ;;  %v1005_v34 = vmax.f32 %v877_v23, 0.0  ;;  %v413_v54 = vsub.f32 %v275_v50, %v2385_v12  ;;  %v280_v5 = vld [vmem:[%s2375_s30 + $0x198] sm:$0xff] }
  0x95   : > { %v681_v14 = vmul.f32 %v3143_v19, %v546_v8  ;;  %v1048_v1 = vpack.c.bf16 %v942_v49, %v941_v20  ;;  %v815_v35 = vadd.f32 %v3156_v43, %v680_v38  ;;  %v610_v26 = vmul.f32 %v2585_v46, %v476_v3  ;;  %v343_v38 = vld [vmem:[%s2375_s30 + $0x390] sm:$0xff] }
  0x96   : > { %v744_v11 = vmul.f32 %v3143_v19, %v609_v7  ;;  %v1006_v44 = vmax.f32 %v878_v9, 0.0  ;;  %v414_v0 = vsub.f32 %v276_v45, %v2385_v12  ;;  %v547_v55 = vmul.f32 %v2585_v46, %v413_v54 }
  0x97   : > { %v816_v13 = vadd.f32 %v3156_v43, %v681_v14  ;;  %2207 = vmatmul.mubr.msk.bf16.gmra.mrb[40].mxu0 %vm1099_vm0, %v1048_v1  ;;  %v943_v60 = vmax.f32 %v815_v35, 0.0  ;;  %v745_v40 = vmul.f32 %v3143_v19, %v610_v26  ;;  %v477_v25 = vsub.f32 %v339_v53, %v2385_v12  ;;  %v344_v1 = vld [vmem:[%s2375_s30 + $0x398] sm:$0xff] }
  0x98   : > { %v879_v24 = vadd.f32 %v3156_v43, %v744_v11  ;;  %v1080_v59 = vpack.c.bf16 %v1006_v44, %v1005_v34  ;;  %v548_v27 = vmul.f32 %v2585_v46, %v414_v0  ;;  %v682_v61 = vmul.f32 %v3143_v19, %v547_v55 }
  0x99   : > { %v944_v41 = vmax.f32 %v816_v13, 0.0  ;;  %v880_v16 = vadd.f32 %v3156_v43, %v745_v40  ;;  %v478_v42 = vsub.f32 %v340_v15, %v2385_v12  ;;  %v611_v17 = vmul.f32 %v2585_v46, %v477_v25  ;;  %v281_v13 = vld [vmem:[%s2375_s30 + $0x1a0] sm:$0xff]  ;;  %v282_v40 = vld [vmem:[%s2375_s30 + $0x1a8] sm:$0xff] }
  0x9a   : > { %v1007_v29 = vmax.f32 %v879_v24, 0.0  ;;  %2271 = vmatmul.mubr.msk.bf16.gmra.mrb[40].mxu1 %vm1099_vm0, %v1080_v59  ;;  %v683_v30 = vmul.f32 %v3143_v19, %v548_v27  ;;  %v817_v31 = vadd.f32 %v3156_v43, %v682_v61  ;;  %v415_v28 = vsub.f32 %v277_v56, %v2385_v12 }
  0x9b   : > { %v1049_v57 = vpack.c.bf16 %v944_v41, %v943_v60  ;;  %v1008_v18 = vmax.f32 %v880_v16, 0.0  ;;  %v612_v63 = vmul.f32 %v2585_v46, %v478_v42  ;;  %v746_v47 = vmul.f32 %v3143_v19, %v611_v17  ;;  %v345_v41 = vld [vmem:[%s2375_s30 + $0x3a0] sm:$0xff] }
  0x9c   : > { %v416_v32 = vsub.f32 %v278_v58, %v2385_v12  ;;  %v818_v6 = vadd.f32 %v3156_v43, %v683_v30  ;;  %v945_v36 = vmax.f32 %v817_v31, 0.0  ;;  %v549_v37 = vmul.f32 %v2585_v46, %v415_v28 }
  0x9d   : > { %2210 = vmatprep.mubr.msk.bf16.mxu0 %vm1099_vm0, %v1049_v57  ;;  %v479_v4 = vsub.f32 %v341_v62, %v2385_v12  ;;  %v1081_v2 = vpack.c.bf16 %v1008_v18, %v1007_v29  ;;  %v747_v33 = vmul.f32 %v3143_v19, %v612_v63  ;;  %v881_v51 = vadd.f32 %v3156_v43, %v746_v47  ;;  %v346_v57 = vld [vmem:[%s2375_s30 + $0x3a8] sm:$0xff]  ;;  %v283_v63 = vld [vmem:[%s2375_s30 + $0x1b0] sm:$0xff] }
  0x9e   : > { %v550_v10 = vmul.f32 %v2585_v46, %v416_v32  ;;  %v946_v20 = vmax.f32 %v818_v6, 0.0  ;;  %v684_v21 = vmul.f32 %v3143_v19, %v549_v37  ;;  %v480_v39 = vsub.f32 %v342_v52, %v2385_v12 }
  0x9f   : > { %v613_v50 = vmul.f32 %v2585_v46, %v479_v4  ;;  %2274 = vmatprep.mubr.msk.bf16.mxu1 %vm1099_vm0, %v1081_v2  ;;  %v882_v22 = vadd.f32 %v3156_v43, %v747_v33  ;;  %v1009_v23 = vmax.f32 %v881_v51, 0.0  ;;  %v417_v49 = vsub.f32 %v279_v48, %v2385_v12  ;;  %v284_v2 = vld [vmem:[%s2375_s30 + $0x1b8] sm:$0xff] }
  0xa0   : > { %v685_v8 = vmul.f32 %v3143_v19, %v550_v10  ;;  %v1050_v3 = vpack.c.bf16 %v946_v20, %v945_v36  ;;  %v819_v7 = vadd.f32 %v3156_v43, %v684_v21  ;;  %v614_v45 = vmul.f32 %v2585_v46, %v480_v39  ;;  %v347_v21 = vld [vmem:[%s2375_s30 + $0x3b0] sm:$0xff] }
  0xa1   : > { %v748_v9 = vmul.f32 %v3143_v19, %v613_v50  ;;  %v1010_v34 = vmax.f32 %v882_v22, 0.0  ;;  %v418_v54 = vsub.f32 %v280_v5, %v2385_v12  ;;  %v551_v53 = vmul.f32 %v2585_v46, %v417_v49 }
  0xa2   : > { %v820_v14 = vadd.f32 %v3156_v43, %v685_v8  ;;  %2211 = vmatmul.mubr.msk.bf16.gmra.mrb[44].mxu0 %vm1099_vm0, %v1050_v3  ;;  %v947_v35 = vmax.f32 %v819_v7, 0.0  ;;  %v749_v26 = vmul.f32 %v3143_v19, %v614_v45  ;;  %v481_v44 = vsub.f32 %v343_v38, %v2385_v12  ;;  %v348_v3 = vld [vmem:[%s2375_s30 + $0x3b8] sm:$0xff] }
  0xa3   : > { %v883_v11 = vadd.f32 %v3156_v43, %v748_v9  ;;  %v1082_v0 = vpack.c.bf16 %v1010_v34, %v1009_v23  ;;  %v552_v15 = vmul.f32 %v2585_v46, %v418_v54  ;;  %v686_v60 = vmul.f32 %v3143_v19, %v551_v53 }
  0xa4   : > { %v948_v55 = vmax.f32 %v820_v14, 0.0  ;;  %v884_v24 = vadd.f32 %v3156_v43, %v749_v26  ;;  %v482_v56 = vsub.f32 %v344_v1, %v2385_v12  ;;  %v615_v59 = vmul.f32 %v2585_v46, %v481_v44  ;;  %v285_v14 = vld [vmem:[%s2375_s30 + $0x1c0] sm:$0xff]  ;;  %v286_v26 = vld [vmem:[%s2375_s30 + $0x1c8] sm:$0xff] }
  0xa5   : > { %v1011_v25 = vmax.f32 %v883_v11, 0.0  ;;  %2275 = vmatmul.mubr.msk.bf16.gmra.mrb[44].mxu1 %vm1099_vm0, %v1082_v0  ;;  %v687_v61 = vmul.f32 %v3143_v19, %v552_v15  ;;  %v821_v58 = vadd.f32 %v3156_v43, %v686_v60  ;;  %v419_v16 = vsub.f32 %v281_v13, %v2385_v12 }
  0xa6   : > { %v1051_v27 = vpack.c.bf16 %v948_v55, %v947_v35  ;;  %v1012_v29 = vmax.f32 %v884_v24, 0.0  ;;  %v616_v42 = vmul.f32 %v2585_v46, %v482_v56  ;;  %v750_v17 = vmul.f32 %v3143_v19, %v615_v59  ;;  %v349_v55 = vld [vmem:[%s2375_s30 + $0x3c0] sm:$0xff] }
  0xa7   : > { %v420_v62 = vsub.f32 %v282_v40, %v2385_v12  ;;  %v822_v30 = vadd.f32 %v3156_v43, %v687_v61  ;;  %v949_v31 = vmax.f32 %v821_v58, 0.0  ;;  %v553_v28 = vmul.f32 %v2585_v46, %v419_v16 }
  0xa8   : > { %2214 = vmatprep.mubr.msk.bf16.mxu0 %vm1099_vm0, %v1051_v27  ;;  %v483_v18 = vsub.f32 %v345_v41, %v2385_v12  ;;  %v1083_v47 = vpack.c.bf16 %v1012_v29, %v1011_v25  ;;  %v751_v32 = vmul.f32 %v3143_v19, %v616_v42  ;;  %v885_v52 = vadd.f32 %v3156_v43, %v750_v17  ;;  %v350_v27 = vld [vmem:[%s2375_s30 + $0x3c8] sm:$0xff]  ;;  %v287_v42 = vld [vmem:[%s2375_s30 + $0x1d0] sm:$0xff] }
  0xa9   : > { %v554_v6 = vmul.f32 %v2585_v46, %v420_v62  ;;  %v950_v36 = vmax.f32 %v822_v30, 0.0  ;;  %v688_v37 = vmul.f32 %v3143_v19, %v553_v28  ;;  %v484_v4 = vsub.f32 %v346_v57, %v2385_v12 }
  0xaa   : > { %v617_v48 = vmul.f32 %v2585_v46, %v483_v18  ;;  %2278 = vmatprep.mubr.msk.bf16.mxu1 %vm1099_vm0, %v1083_v47  ;;  %v886_v33 = vadd.f32 %v3156_v43, %v751_v32  ;;  %v1013_v51 = vmax.f32 %v885_v52, 0.0  ;;  %v421_v20 = vsub.f32 %v283_v63, %v2385_v12  ;;  %v288_v47 = vld [vmem:[%s2375_s30 + $0x1d8] sm:$0xff] }
  0xab   : > { %v689_v10 = vmul.f32 %v3143_v19, %v554_v6  ;;  %v1052_v39 = vpack.c.bf16 %v950_v36, %v949_v31  ;;  %v823_v50 = vadd.f32 %v3156_v43, %v688_v37  ;;  %v618_v5 = vmul.f32 %v2585_v46, %v484_v4  ;;  %v351_v37 = vld [vmem:[%s2375_s30 + $0x3d0] sm:$0xff] }
  0xac   : > { %v752_v22 = vmul.f32 %v3143_v19, %v617_v48  ;;  %v1014_v23 = vmax.f32 %v886_v33, 0.0  ;;  %v422_v49 = vsub.f32 %v284_v2, %v2385_v12  ;;  %v555_v38 = vmul.f32 %v2585_v46, %v421_v20 }
  0xad   : > { %v824_v8 = vadd.f32 %v3156_v43, %v689_v10  ;;  %2215 = vmatmul.mubr.msk.bf16.gmra.mrb[48].mxu0 %vm1099_vm0, %v1052_v39  ;;  %v951_v7 = vmax.f32 %v823_v50, 0.0  ;;  %v753_v45 = vmul.f32 %v3143_v19, %v618_v5  ;;  %v485_v34 = vsub.f32 %v347_v21, %v2385_v12  ;;  %v352_v39 = vld [vmem:[%s2375_s30 + $0x3d8] sm:$0xff] }
  0xae   : > { %v887_v9 = vadd.f32 %v3156_v43, %v752_v22  ;;  %v1084_v54 = vpack.c.bf16 %v1014_v23, %v1013_v51  ;;  %v556_v1 = vmul.f32 %v2585_v46, %v422_v49  ;;  %v690_v35 = vmul.f32 %v3143_v19, %v555_v38 }
  0xaf   : > { %v952_v53 = vmax.f32 %v824_v8, 0.0  ;;  %v888_v11 = vadd.f32 %v3156_v43, %v753_v45  ;;  %v486_v13 = vsub.f32 %v348_v3, %v2385_v12  ;;  %v619_v0 = vmul.f32 %v2585_v46, %v485_v34  ;;  %v289_v8 = vld [vmem:[%s2375_s30 + $0x1e0] sm:$0xff]  ;;  %v290_v45 = vld [vmem:[%s2375_s30 + $0x1e8] sm:$0xff] }
  0xb0   : > { %v1015_v44 = vmax.f32 %v887_v9, 0.0  ;;  %2279 = vmatmul.mubr.msk.bf16.gmra.mrb[48].mxu1 %vm1099_vm0, %v1084_v54  ;;  %v691_v60 = vmul.f32 %v3143_v19, %v556_v1  ;;  %v825_v40 = vadd.f32 %v3156_v43, %v690_v35  ;;  %v423_v24 = vsub.f32 %v285_v14, %v2385_v12 }
  0xb1   : > { %v1053_v15 = vpack.c.bf16 %v952_v53, %v951_v7  ;;  %v1016_v25 = vmax.f32 %v888_v11, 0.0  ;;  %v620_v56 = vmul.f32 %v2585_v46, %v486_v13  ;;  %v754_v59 = vmul.f32 %v3143_v19, %v619_v0  ;;  %v353_v53 = vld [vmem:[%s2375_s30 + $0x3e0] sm:$0xff] }
  0xb2   : > { %v424_v41 = vsub.f32 %v286_v26, %v2385_v12  ;;  %v826_v61 = vadd.f32 %v3156_v43, %v691_v60  ;;  %v953_v58 = vmax.f32 %v825_v40, 0.0  ;;  %v557_v16 = vmul.f32 %v2585_v46, %v423_v24 }
  0xb3   : > { %2218 = vmatprep.mubr.msk.bf16.mxu0 %vm1099_vm0, %v1053_v15  ;;  %v487_v29 = vsub.f32 %v349_v55, %v2385_v12  ;;  %v1085_v17 = vpack.c.bf16 %v1016_v25, %v1015_v44  ;;  %v755_v62 = vmul.f32 %v3143_v19, %v620_v56  ;;  %v889_v57 = vadd.f32 %v3156_v43, %v754_v59  ;;  %v354_v15 = vld [vmem:[%s2375_s30 + $0x3e8] sm:$0xff]  ;;  %v291_v56 = vld [vmem:[%s2375_s30 + $0x1f0] sm:$0xff] }
  0xb4   : > { %v558_v30 = vmul.f32 %v2585_v46, %v424_v41  ;;  %v954_v31 = vmax.f32 %v826_v61, 0.0  ;;  %v692_v28 = vmul.f32 %v3143_v19, %v557_v16  ;;  %v488_v18 = vsub.f32 %v350_v27, %v2385_v12 }
  0xb5   : > { %v621_v63 = vmul.f32 %v2585_v46, %v487_v29  ;;  %2282 = vmatprep.mubr.msk.bf16.mxu1 %vm1099_vm0, %v1085_v17  ;;  %v890_v32 = vadd.f32 %v3156_v43, %v755_v62  ;;  %v1017_v52 = vmax.f32 %v889_v57, 0.0  ;;  %v425_v36 = vsub.f32 %v287_v42, %v2385_v12  ;;  %v292_v17 = vld [vmem:[%s2375_s30 + $0x1f8] sm:$0xff] }
  0xb6   : > { %v693_v6 = vmul.f32 %v3143_v19, %v558_v30  ;;  %v1054_v4 = vpack.c.bf16 %v954_v31, %v953_v58  ;;  %v827_v48 = vadd.f32 %v3156_v43, %v692_v28  ;;  %v622_v2 = vmul.f32 %v2585_v46, %v488_v18  ;;  %v355_v28 = vld [vmem:[%s2375_s30 + $0x3f0] sm:$0xff] }
  0xb7   : > { %v756_v33 = vmul.f32 %v3143_v19, %v621_v63  ;;  %v1018_v51 = vmax.f32 %v890_v32, 0.0  ;;  %v426_v20 = vsub.f32 %v288_v47, %v2385_v12  ;;  %v559_v21 = vmul.f32 %v2585_v46, %v425_v36 }
  0xb8   : > { %v828_v10 = vadd.f32 %v3156_v43, %v693_v6  ;;  %2219 = vmatmul.mubr.msk.bf16.gmra.mrb[52].mxu0 %vm1099_vm0, %v1054_v4  ;;  %v955_v50 = vmax.f32 %v827_v48, 0.0  ;;  %v757_v5 = vmul.f32 %v3143_v19, %v622_v2  ;;  %v489_v23 = vsub.f32 %v351_v37, %v2385_v12  ;;  %v356_v4 = vld [vmem:[%s2375_s30 + $0x3f8] sm:$0xff] }
  0xb9   : > { %v891_v22 = vadd.f32 %v3156_v43, %v756_v33  ;;  %v1086_v49 = vpack.c.bf16 %v1018_v51, %v1017_v52  ;;  %v560_v3 = vmul.f32 %v2585_v46, %v426_v20  ;;  %v694_v7 = vmul.f32 %v3143_v19, %v559_v21 }
  0xba   : > { %v956_v38 = vmax.f32 %v828_v10, 0.0  ;;  %v892_v9 = vadd.f32 %v3156_v43, %v757_v5  ;;  %v490_v14 = vsub.f32 %v352_v39, %v2385_v12  ;;  %v623_v54 = vmul.f32 %v2585_v46, %v489_v23 }
  0xbb   : > { %v1019_v34 = vmax.f32 %v891_v22, 0.0  ;;  %2283 = vmatmul.mubr.msk.bf16.gmra.mrb[52].mxu1 %vm1099_vm0, %v1086_v49  ;;  %v695_v35 = vmul.f32 %v3143_v19, %v560_v3  ;;  %v829_v26 = vadd.f32 %v3156_v43, %v694_v7  ;;  %v427_v11 = vsub.f32 %v289_v8, %v2385_v12 }
  0xbc   : > { %v1055_v1 = vpack.c.bf16 %v956_v38, %v955_v50  ;;  %v1020_v44 = vmax.f32 %v892_v9, 0.0  ;;  %v624_v13 = vmul.f32 %v2585_v46, %v490_v14  ;;  %v758_v0 = vmul.f32 %v3143_v19, %v623_v54 }
  0xbd   : > { %v428_v55 = vsub.f32 %v290_v45, %v2385_v12  ;;  %v830_v60 = vadd.f32 %v3156_v43, %v695_v35  ;;  %v957_v40 = vmax.f32 %v829_v26, 0.0  ;;  %v561_v24 = vmul.f32 %v2585_v46, %v427_v11 }
  0xbe   : > { %2222 = vmatprep.mubr.msk.bf16.mxu0 %vm1099_vm0, %v1055_v1  ;;  %v491_v25 = vsub.f32 %v353_v53, %v2385_v12  ;;  %v1087_v59 = vpack.c.bf16 %v1020_v44, %v1019_v34  ;;  %v759_v41 = vmul.f32 %v3143_v19, %v624_v13  ;;  %v893_v27 = vadd.f32 %v3156_v43, %v758_v0 }
  0xbf   : > { %v562_v61 = vmul.f32 %v2585_v46, %v428_v55  ;;  %v958_v58 = vmax.f32 %v830_v60, 0.0  ;;  %v696_v16 = vmul.f32 %v3143_v19, %v561_v24  ;;  %v492_v29 = vsub.f32 %v354_v15, %v2385_v12 }
  0xc0   : > { %v625_v42 = vmul.f32 %v2585_v46, %v491_v25  ;;  %2286 = vmatprep.mubr.msk.bf16.mxu1 %vm1099_vm0, %v1087_v59  ;;  %v894_v62 = vadd.f32 %v3156_v43, %v759_v41  ;;  %v1021_v57 = vmax.f32 %v893_v27, 0.0  ;;  %v429_v31 = vsub.f32 %v291_v56, %v2385_v12 }
  0xc1   : > { %v697_v30 = vmul.f32 %v3143_v19, %v562_v61  ;;  %v1056_v18 = vpack.c.bf16 %v958_v58, %v957_v40  ;;  %v831_v63 = vadd.f32 %v3156_v43, %v696_v16  ;;  %v626_v47 = vmul.f32 %v2585_v46, %v492_v29 }
  0xc2   : > { %v760_v32 = vmul.f32 %v3143_v19, %v625_v42  ;;  %v1022_v52 = vmax.f32 %v894_v62, 0.0  ;;  %v430_v36 = vsub.f32 %v292_v17, %v2385_v12  ;;  %v563_v37 = vmul.f32 %v2585_v46, %v429_v31 }
  0xc3   : > { %v832_v6 = vadd.f32 %v3156_v43, %v697_v30  ;;  %2223 = vmatmul.mubr.msk.bf16.gmra.mrb[56].mxu0 %vm1099_vm0, %v1056_v18  ;;  %v959_v48 = vmax.f32 %v831_v63, 0.0  ;;  %v761_v2 = vmul.f32 %v3143_v19, %v626_v47  ;;  %v493_v51 = vsub.f32 %v355_v28, %v2385_v12 }
  0xc4   : > { %v895_v33 = vadd.f32 %v3156_v43, %v760_v32  ;;  %v1088_v10 = vpack.c.bf16 %v1022_v52, %v1021_v57  ;;  %v564_v21 = vmul.f32 %v2585_v46, %v430_v36  ;;  %v698_v39 = vmul.f32 %v3143_v19, %v563_v37 }
  0xc5   : > { %v960_v20 = vmax.f32 %v832_v6, 0.0  ;;  %v896_v50 = vadd.f32 %v3156_v43, %v761_v2  ;;  %v494_v22 = vsub.f32 %v356_v4, %v2385_v12  ;;  %v627_v23 = vmul.f32 %v2585_v46, %v493_v51 }
  0xc6   : > { %v1023_v5 = vmax.f32 %v895_v33, 0.0  ;;  %2287 = vmatmul.mubr.msk.bf16.gmra.mrb[56].mxu1 %vm1099_vm0, %v1088_v10  ;;  %v699_v49 = vmul.f32 %v3143_v19, %v564_v21  ;;  %v833_v38 = vadd.f32 %v3156_v43, %v698_v39 }
  0xc7   : > { %v1057_v8 = vpack.c.bf16 %v960_v20, %v959_v48  ;;  %v1024_v3 = vmax.f32 %v896_v50, 0.0  ;;  %v628_v7 = vmul.f32 %v2585_v46, %v494_v22  ;;  %v762_v45 = vmul.f32 %v3143_v19, %v627_v23 }
  0xc8   : > { %v834_v9 = vadd.f32 %v3156_v43, %v699_v49  ;;  %v961_v12 = vmax.f32 %v833_v38, 0.0 }
  0xc9   : > { %2226 = vmatprep.mubr.msk.bf16.mxu0 %vm1099_vm0, %v1057_v8  ;;  %v1089_v34 = vpack.c.bf16 %v1024_v3, %v1023_v5  ;;  %v763_v14 = vmul.f32 %v3143_v19, %v628_v7  ;;  %v897_v54 = vadd.f32 %v3156_v43, %v762_v45 }
  0xca   : > { %v962_v53 = vmax.f32 %v834_v9, 0.0 }
  0xcb   : > { %2290 = vmatprep.mubr.msk.bf16.mxu1 %vm1099_vm0, %v1089_v34  ;;  %v898_v1 = vadd.f32 %v3156_v43, %v763_v14  ;;  %v1025_v35 = vmax.f32 %v897_v54, 0.0 }
  0xcc   : > { %v1058_v46 = vpack.c.bf16 %v962_v53, %v961_v12 }
  0xcd   : > { %v1026_v26 = vmax.f32 %v898_v1, 0.0 }
  0xce   : > { %2227 = vmatmul.mubr.msk.bf16.gmra.mrb[60].mxu0 %vm1099_vm0, %v1058_v46 }
  0xcf   : > { %v1090_v11 = vpack.c.bf16 %v1026_v26, %v1025_v35 }
  0xd1   : > { %2291 = vmatmul.mubr.msk.bf16.gmra.mrb[60].mxu1 %vm1099_vm0, %v1090_v11 }
  0xfa   : > { %v2168_v19 = vpop.f32.mrb[0].mxu0  ;;  %v2232_v43 = vpop.f32.mrb[0].mxu1 }
  0xfb   : > { %1839 = vst [vmem:[%s3384_s16 + $0x10] sm:$0xff] %v2168_v19  ;;  %1903 = vst [vmem:[%s3384_s16 + $0x210] sm:$0xff] %v2232_v43  ;;  %v1326_v44 = vpop.f32.mrb[1].mxu0  ;;  %v1582_v13 = vpop.f32.mrb[1].mxu1 }
  0xfc   : > { %1837 = vst [vmem:[%s3384_s16] sm:$0xff] %v1326_v44  ;;  %1901 = vst [vmem:[%s3384_s16 + $0x200] sm:$0xff] %v1582_v13  ;;  %v2169_v0 = vpop.f32.mrb[2].mxu0  ;;  %v2233_v55 = vpop.f32.mrb[2].mxu1 }
  0xfd   : > { %1840 = vst [vmem:[%s3384_s16 + $0x18] sm:$0xff] %v2169_v0  ;;  %1904 = vst [vmem:[%s3384_s16 + $0x218] sm:$0xff] %v2233_v55  ;;  %v1329_v15 = vpop.f32.mrb[3].mxu0  ;;  %v1585_v60 = vpop.f32.mrb[3].mxu1 }
  0xfe   : > { %1838 = vst [vmem:[%s3384_s16 + $0x8] sm:$0xff] %v1329_v15  ;;  %1902 = vst [vmem:[%s3384_s16 + $0x208] sm:$0xff] %v1585_v60 }
 0x106   : > { %v2172_v40 = vpop.f32.mrb[4].mxu0 }
 0x107   : > { %1843 = vst [vmem:[%s3384_s16 + $0x30] sm:$0xff] %v2172_v40  ;;  %v1342_v24 = vpop.f32.mrb[5].mxu0 }
 0x108   : > { %v2236_v25 = vpop.f32.mrb[4].mxu1  ;;  %1841 = vst [vmem:[%s3384_s16 + $0x20] sm:$0xff] %v1342_v24  ;;  %v2173_v56 = vpop.f32.mrb[6].mxu0 }
 0x109   : > { %1907 = vst [vmem:[%s3384_s16 + $0x230] sm:$0xff] %v2236_v25  ;;  %v1598_v59 = vpop.f32.mrb[5].mxu1  ;;  %1844 = vst [vmem:[%s3384_s16 + $0x38] sm:$0xff] %v2173_v56  ;;  %v1345_v41 = vpop.f32.mrb[7].mxu0 }
 0x10a   : > { %1905 = vst [vmem:[%s3384_s16 + $0x220] sm:$0xff] %v1598_v59  ;;  %v2237_v27 = vpop.f32.mrb[6].mxu1  ;;  %1842 = vst [vmem:[%s3384_s16 + $0x28] sm:$0xff] %v1345_v41 }
 0x10b   : > { %1908 = vst [vmem:[%s3384_s16 + $0x238] sm:$0xff] %v2237_v27  ;;  %v1601_v61 = vpop.f32.mrb[7].mxu1 }
 0x10c   : > { %1906 = vst [vmem:[%s3384_s16 + $0x228] sm:$0xff] %v1601_v61 }
 0x111   : > { %v2176_v58 = vpop.f32.mrb[8].mxu0 }
 0x112   : > { %1847 = vst [vmem:[%s3384_s16 + $0x50] sm:$0xff] %v2176_v58  ;;  %v1358_v16 = vpop.f32.mrb[9].mxu0 }
 0x113   : > { %1845 = vst [vmem:[%s3384_s16 + $0x40] sm:$0xff] %v1358_v16  ;;  %v2177_v29 = vpop.f32.mrb[10].mxu0 }
 0x114   : > { %v2240_v42 = vpop.f32.mrb[8].mxu1  ;;  %1848 = vst [vmem:[%s3384_s16 + $0x58] sm:$0xff] %v2177_v29  ;;  %v1361_v17 = vpop.f32.mrb[11].mxu0 }
 0x115   : > { %1911 = vst [vmem:[%s3384_s16 + $0x250] sm:$0xff] %v2240_v42  ;;  %v1614_v62 = vpop.f32.mrb[9].mxu1  ;;  %1846 = vst [vmem:[%s3384_s16 + $0x48] sm:$0xff] %v1361_v17 }
 0x116   : > { %1909 = vst [vmem:[%s3384_s16 + $0x240] sm:$0xff] %v1614_v62  ;;  %v2241_v57 = vpop.f32.mrb[10].mxu1 }
 0x117   : > { %1912 = vst [vmem:[%s3384_s16 + $0x258] sm:$0xff] %v2241_v57  ;;  %v1617_v30 = vpop.f32.mrb[11].mxu1 }
 0x118   : > { %1910 = vst [vmem:[%s3384_s16 + $0x248] sm:$0xff] %v1617_v30 }
 0x11c   : > { %v2180_v31 = vpop.f32.mrb[12].mxu0 }
 0x11d   : > { %1851 = vst [vmem:[%s3384_s16 + $0x70] sm:$0xff] %v2180_v31  ;;  %v1374_v28 = vpop.f32.mrb[13].mxu0 }
 0x11e   : > { %1849 = vst [vmem:[%s3384_s16 + $0x60] sm:$0xff] %v1374_v28  ;;  %v2181_v18 = vpop.f32.mrb[14].mxu0 }
 0x11f   : > { %1852 = vst [vmem:[%s3384_s16 + $0x78] sm:$0xff] %v2181_v18  ;;  %v1377_v47 = vpop.f32.mrb[15].mxu0 }
 0x120   : > { %v2244_v63 = vpop.f32.mrb[12].mxu1  ;;  %1850 = vst [vmem:[%s3384_s16 + $0x68] sm:$0xff] %v1377_v47 }
 0x121   : > { %1915 = vst [vmem:[%s3384_s16 + $0x270] sm:$0xff] %v2244_v63  ;;  %v1630_v32 = vpop.f32.mrb[13].mxu1 }
 0x122   : > { %1913 = vst [vmem:[%s3384_s16 + $0x260] sm:$0xff] %v1630_v32  ;;  %v2245_v52 = vpop.f32.mrb[14].mxu1 }
 0x123   : > { %1916 = vst [vmem:[%s3384_s16 + $0x278] sm:$0xff] %v2245_v52  ;;  %v1633_v6 = vpop.f32.mrb[15].mxu1 }
 0x124   : > { %1914 = vst [vmem:[%s3384_s16 + $0x268] sm:$0xff] %v1633_v6 }
 0x127   : > { %v2184_v36 = vpop.f32.mrb[16].mxu0 }
 0x128   : > { %1855 = vst [vmem:[%s3384_s16 + $0x90] sm:$0xff] %v2184_v36  ;;  %v1390_v37 = vpop.f32.mrb[17].mxu0 }
 0x129   : > { %1853 = vst [vmem:[%s3384_s16 + $0x80] sm:$0xff] %v1390_v37  ;;  %v2185_v4 = vpop.f32.mrb[18].mxu0 }
 0x12a   : > { %1856 = vst [vmem:[%s3384_s16 + $0x98] sm:$0xff] %v2185_v4  ;;  %v1393_v2 = vpop.f32.mrb[19].mxu0 }
 0x12b   : > { %v2248_v48 = vpop.f32.mrb[16].mxu1  ;;  %1854 = vst [vmem:[%s3384_s16 + $0x88] sm:$0xff] %v1393_v2 }
 0x12c   : > { %1919 = vst [vmem:[%s3384_s16 + $0x290] sm:$0xff] %v2248_v48  ;;  %v1646_v33 = vpop.f32.mrb[17].mxu1 }
 0x12d   : > { %1917 = vst [vmem:[%s3384_s16 + $0x280] sm:$0xff] %v1646_v33  ;;  %v2249_v51 = vpop.f32.mrb[18].mxu1 }
 0x12e   : > { %1920 = vst [vmem:[%s3384_s16 + $0x298] sm:$0xff] %v2249_v51  ;;  %v1649_v10 = vpop.f32.mrb[19].mxu1 }
 0x12f   : > { %1918 = vst [vmem:[%s3384_s16 + $0x288] sm:$0xff] %v1649_v10 }
 0x132   : > { %v2188_v20 = vpop.f32.mrb[20].mxu0 }
 0x133   : > { %1859 = vst [vmem:[%s3384_s16 + $0xb0] sm:$0xff] %v2188_v20  ;;  %v1406_v21 = vpop.f32.mrb[21].mxu0 }
 0x134   : > { %1857 = vst [vmem:[%s3384_s16 + $0xa0] sm:$0xff] %v1406_v21  ;;  %v2189_v39 = vpop.f32.mrb[22].mxu0 }
 0x135   : > { %1860 = vst [vmem:[%s3384_s16 + $0xb8] sm:$0xff] %v2189_v39  ;;  %v1409_v50 = vpop.f32.mrb[23].mxu0 }
 0x136   : > { %v2252_v5 = vpop.f32.mrb[20].mxu1  ;;  %1858 = vst [vmem:[%s3384_s16 + $0xa8] sm:$0xff] %v1409_v50 }
 0x137   : > { %1923 = vst [vmem:[%s3384_s16 + $0x2b0] sm:$0xff] %v2252_v5  ;;  %v1662_v22 = vpop.f32.mrb[21].mxu1 }
 0x138   : > { %1921 = vst [vmem:[%s3384_s16 + $0x2a0] sm:$0xff] %v1662_v22  ;;  %v2253_v23 = vpop.f32.mrb[22].mxu1 }
 0x139   : > { %1924 = vst [vmem:[%s3384_s16 + $0x2b8] sm:$0xff] %v2253_v23  ;;  %v1665_v8 = vpop.f32.mrb[23].mxu1 }
 0x13a   : > { %1922 = vst [vmem:[%s3384_s16 + $0x2a8] sm:$0xff] %v1665_v8 }
 0x13e   : > { %v2192_v49 = vpop.f32.mrb[24].mxu0 }
 0x13f   : > { %1863 = vst [vmem:[%s3384_s16 + $0xd0] sm:$0xff] %v2192_v49  ;;  %v1422_v38 = vpop.f32.mrb[25].mxu0 }
 0x140   : > { %1861 = vst [vmem:[%s3384_s16 + $0xc0] sm:$0xff] %v1422_v38  ;;  %v2193_v3 = vpop.f32.mrb[26].mxu0  ;;  %v2256_v7 = vpop.f32.mrb[24].mxu1 }
 0x141   : > { %1864 = vst [vmem:[%s3384_s16 + $0xd8] sm:$0xff] %v2193_v3  ;;  %v1425_v45 = vpop.f32.mrb[27].mxu0  ;;  %1927 = vst [vmem:[%s3384_s16 + $0x2d0] sm:$0xff] %v2256_v7  ;;  %v1678_v9 = vpop.f32.mrb[25].mxu1 }
 0x142   : > { %1862 = vst [vmem:[%s3384_s16 + $0xc8] sm:$0xff] %v1425_v45  ;;  %1925 = vst [vmem:[%s3384_s16 + $0x2c0] sm:$0xff] %v1678_v9  ;;  %v2257_v12 = vpop.f32.mrb[26].mxu1 }
 0x143   : > { %1928 = vst [vmem:[%s3384_s16 + $0x2d8] sm:$0xff] %v2257_v12  ;;  %v1681_v34 = vpop.f32.mrb[27].mxu1 }
 0x144   : > { %1926 = vst [vmem:[%s3384_s16 + $0x2c8] sm:$0xff] %v1681_v34 }
 0x149   : > { %v2196_v14 = vpop.f32.mrb[28].mxu0 }
 0x14a   : > { %1867 = vst [vmem:[%s3384_s16 + $0xf0] sm:$0xff] %v2196_v14  ;;  %v1438_v54 = vpop.f32.mrb[29].mxu0 }
 0x14b   : > { %1865 = vst [vmem:[%s3384_s16 + $0xe0] sm:$0xff] %v1438_v54  ;;  %v2197_v1 = vpop.f32.mrb[30].mxu0 }
 0x14c   : > { %v2260_v53 = vpop.f32.mrb[28].mxu1  ;;  %1868 = vst [vmem:[%s3384_s16 + $0xf8] sm:$0xff] %v2197_v1  ;;  %v1441_v46 = vpop.f32.mrb[31].mxu0 }
 0x14d   : > { %1931 = vst [vmem:[%s3384_s16 + $0x2f0] sm:$0xff] %v2260_v53  ;;  %v1694_v35 = vpop.f32.mrb[29].mxu1  ;;  %1866 = vst [vmem:[%s3384_s16 + $0xe8] sm:$0xff] %v1441_v46 }
 0x14e   : > { %1929 = vst [vmem:[%s3384_s16 + $0x2e0] sm:$0xff] %v1694_v35  ;;  %v2261_v26 = vpop.f32.mrb[30].mxu1 }
 0x14f   : > { %1932 = vst [vmem:[%s3384_s16 + $0x2f8] sm:$0xff] %v2261_v26  ;;  %v1697_v11 = vpop.f32.mrb[31].mxu1 }
 0x150   : > { %1930 = vst [vmem:[%s3384_s16 + $0x2e8] sm:$0xff] %v1697_v11 }
 0x154   : > { %v2200_v19 = vpop.f32.mrb[32].mxu0 }
 0x155   : > { %1871 = vst [vmem:[%s3384_s16 + $0x110] sm:$0xff] %v2200_v19  ;;  %v1454_v43 = vpop.f32.mrb[33].mxu0 }
 0x156   : > { %1869 = vst [vmem:[%s3384_s16 + $0x100] sm:$0xff] %v1454_v43  ;;  %v2201_v44 = vpop.f32.mrb[34].mxu0 }
 0x157   : > { %v2264_v13 = vpop.f32.mrb[32].mxu1  ;;  %1872 = vst [vmem:[%s3384_s16 + $0x118] sm:$0xff] %v2201_v44  ;;  %v1457_v0 = vpop.f32.mrb[35].mxu0 }
 0x158   : > { %1935 = vst [vmem:[%s3384_s16 + $0x310] sm:$0xff] %v2264_v13  ;;  %v1710_v55 = vpop.f32.mrb[33].mxu1  ;;  %1870 = vst [vmem:[%s3384_s16 + $0x108] sm:$0xff] %v1457_v0 }
 0x159   : > { %1933 = vst [vmem:[%s3384_s16 + $0x300] sm:$0xff] %v1710_v55  ;;  %v2265_v15 = vpop.f32.mrb[34].mxu1 }
 0x15a   : > { %1936 = vst [vmem:[%s3384_s16 + $0x318] sm:$0xff] %v2265_v15  ;;  %v1713_v60 = vpop.f32.mrb[35].mxu1 }
 0x15b   : > { %1934 = vst [vmem:[%s3384_s16 + $0x308] sm:$0xff] %v1713_v60 }
 0x15f   : > { %v2204_v40 = vpop.f32.mrb[36].mxu0 }
 0x160   : > { %1875 = vst [vmem:[%s3384_s16 + $0x130] sm:$0xff] %v2204_v40  ;;  %v1470_v24 = vpop.f32.mrb[37].mxu0 }
 0x161   : > { %1873 = vst [vmem:[%s3384_s16 + $0x120] sm:$0xff] %v1470_v24  ;;  %v2205_v25 = vpop.f32.mrb[38].mxu0 }
 0x162   : > { %v2268_v56 = vpop.f32.mrb[36].mxu1  ;;  %1876 = vst [vmem:[%s3384_s16 + $0x138] sm:$0xff] %v2205_v25  ;;  %v1473_v59 = vpop.f32.mrb[39].mxu0 }
 0x163   : > { %1939 = vst [vmem:[%s3384_s16 + $0x330] sm:$0xff] %v2268_v56  ;;  %v1726_v41 = vpop.f32.mrb[37].mxu1  ;;  %1874 = vst [vmem:[%s3384_s16 + $0x128] sm:$0xff] %v1473_v59 }
 0x164   : > { %1937 = vst [vmem:[%s3384_s16 + $0x320] sm:$0xff] %v1726_v41  ;;  %v2269_v27 = vpop.f32.mrb[38].mxu1 }
 0x165   : > { %1940 = vst [vmem:[%s3384_s16 + $0x338] sm:$0xff] %v2269_v27  ;;  %v1729_v61 = vpop.f32.mrb[39].mxu1 }
 0x166   : > { %1938 = vst [vmem:[%s3384_s16 + $0x328] sm:$0xff] %v1729_v61 }
 0x16a   : > { %v2208_v58 = vpop.f32.mrb[40].mxu0 }
 0x16b   : > { %1879 = vst [vmem:[%s3384_s16 + $0x150] sm:$0xff] %v2208_v58  ;;  %v1486_v16 = vpop.f32.mrb[41].mxu0 }
 0x16c   : > { %1877 = vst [vmem:[%s3384_s16 + $0x140] sm:$0xff] %v1486_v16  ;;  %v2209_v29 = vpop.f32.mrb[42].mxu0 }
 0x16d   : > { %v2272_v42 = vpop.f32.mrb[40].mxu1  ;;  %1880 = vst [vmem:[%s3384_s16 + $0x158] sm:$0xff] %v2209_v29  ;;  %v1489_v17 = vpop.f32.mrb[43].mxu0 }
 0x16e   : > { %1943 = vst [vmem:[%s3384_s16 + $0x350] sm:$0xff] %v2272_v42  ;;  %v1742_v62 = vpop.f32.mrb[41].mxu1  ;;  %1878 = vst [vmem:[%s3384_s16 + $0x148] sm:$0xff] %v1489_v17 }
 0x16f   : > { %1941 = vst [vmem:[%s3384_s16 + $0x340] sm:$0xff] %v1742_v62  ;;  %v2273_v57 = vpop.f32.mrb[42].mxu1 }
 0x170   : > { %1944 = vst [vmem:[%s3384_s16 + $0x358] sm:$0xff] %v2273_v57  ;;  %v1745_v30 = vpop.f32.mrb[43].mxu1 }
 0x171   : > { %1942 = vst [vmem:[%s3384_s16 + $0x348] sm:$0xff] %v1745_v30 }
 0x175   : > { %v2212_v31 = vpop.f32.mrb[44].mxu0 }
 0x176   : > { %1883 = vst [vmem:[%s3384_s16 + $0x170] sm:$0xff] %v2212_v31  ;;  %v1502_v28 = vpop.f32.mrb[45].mxu0 }
 0x177   : > { %1881 = vst [vmem:[%s3384_s16 + $0x160] sm:$0xff] %v1502_v28  ;;  %v2213_v18 = vpop.f32.mrb[46].mxu0 }
 0x178   : > { %v2276_v63 = vpop.f32.mrb[44].mxu1  ;;  %1884 = vst [vmem:[%s3384_s16 + $0x178] sm:$0xff] %v2213_v18  ;;  %v1505_v47 = vpop.f32.mrb[47].mxu0 }
 0x179   : > { %1947 = vst [vmem:[%s3384_s16 + $0x370] sm:$0xff] %v2276_v63  ;;  %v1758_v32 = vpop.f32.mrb[45].mxu1  ;;  %1882 = vst [vmem:[%s3384_s16 + $0x168] sm:$0xff] %v1505_v47 }
 0x17a   : > { %1945 = vst [vmem:[%s3384_s16 + $0x360] sm:$0xff] %v1758_v32  ;;  %v2277_v52 = vpop.f32.mrb[46].mxu1 }
 0x17b   : > { %1948 = vst [vmem:[%s3384_s16 + $0x378] sm:$0xff] %v2277_v52  ;;  %v1761_v6 = vpop.f32.mrb[47].mxu1 }
 0x17c   : > { %1946 = vst [vmem:[%s3384_s16 + $0x368] sm:$0xff] %v1761_v6 }
 0x180   : > { %v2216_v36 = vpop.f32.mrb[48].mxu0 }
 0x181   : > { %1887 = vst [vmem:[%s3384_s16 + $0x190] sm:$0xff] %v2216_v36  ;;  %v1518_v37 = vpop.f32.mrb[49].mxu0 }
 0x182   : > { %1885 = vst [vmem:[%s3384_s16 + $0x180] sm:$0xff] %v1518_v37  ;;  %v2217_v4 = vpop.f32.mrb[50].mxu0 }
 0x183   : > { %v2280_v48 = vpop.f32.mrb[48].mxu1  ;;  %1888 = vst [vmem:[%s3384_s16 + $0x198] sm:$0xff] %v2217_v4  ;;  %v1521_v2 = vpop.f32.mrb[51].mxu0 }
 0x184   : > { %1951 = vst [vmem:[%s3384_s16 + $0x390] sm:$0xff] %v2280_v48  ;;  %v1774_v33 = vpop.f32.mrb[49].mxu1  ;;  %1886 = vst [vmem:[%s3384_s16 + $0x188] sm:$0xff] %v1521_v2 }
 0x185   : > { %1949 = vst [vmem:[%s3384_s16 + $0x380] sm:$0xff] %v1774_v33  ;;  %v2281_v51 = vpop.f32.mrb[50].mxu1 }
 0x186   : > { %1952 = vst [vmem:[%s3384_s16 + $0x398] sm:$0xff] %v2281_v51  ;;  %v1777_v10 = vpop.f32.mrb[51].mxu1 }
 0x187   : > { %1950 = vst [vmem:[%s3384_s16 + $0x388] sm:$0xff] %v1777_v10 }
 0x18b   : > { %v2220_v20 = vpop.f32.mrb[52].mxu0 }
 0x18c   : > { %1891 = vst [vmem:[%s3384_s16 + $0x1b0] sm:$0xff] %v2220_v20  ;;  %v1534_v21 = vpop.f32.mrb[53].mxu0 }
 0x18d   : > { %1889 = vst [vmem:[%s3384_s16 + $0x1a0] sm:$0xff] %v1534_v21  ;;  %v2221_v39 = vpop.f32.mrb[54].mxu0 }
 0x18e   : > { %v2284_v50 = vpop.f32.mrb[52].mxu1  ;;  %1892 = vst [vmem:[%s3384_s16 + $0x1b8] sm:$0xff] %v2221_v39  ;;  %v1537_v5 = vpop.f32.mrb[55].mxu0 }
 0x18f   : > { %1955 = vst [vmem:[%s3384_s16 + $0x3b0] sm:$0xff] %v2284_v50  ;;  %v1790_v22 = vpop.f32.mrb[53].mxu1  ;;  %1890 = vst [vmem:[%s3384_s16 + $0x1a8] sm:$0xff] %v1537_v5 }
 0x190   : > { %1953 = vst [vmem:[%s3384_s16 + $0x3a0] sm:$0xff] %v1790_v22  ;;  %v2285_v23 = vpop.f32.mrb[54].mxu1 }
 0x191   : > { %1956 = vst [vmem:[%s3384_s16 + $0x3b8] sm:$0xff] %v2285_v23  ;;  %v1793_v8 = vpop.f32.mrb[55].mxu1 }
 0x192   : > { %1954 = vst [vmem:[%s3384_s16 + $0x3a8] sm:$0xff] %v1793_v8 }
 0x196   : > { %v2224_v49 = vpop.f32.mrb[56].mxu0 }
 0x197   : > { %1895 = vst [vmem:[%s3384_s16 + $0x1d0] sm:$0xff] %v2224_v49  ;;  %v1550_v38 = vpop.f32.mrb[57].mxu0 }
 0x198   : > { %1893 = vst [vmem:[%s3384_s16 + $0x1c0] sm:$0xff] %v1550_v38  ;;  %v2225_v3 = vpop.f32.mrb[58].mxu0 }
 0x199   : > { %v2288_v7 = vpop.f32.mrb[56].mxu1  ;;  %1896 = vst [vmem:[%s3384_s16 + $0x1d8] sm:$0xff] %v2225_v3  ;;  %v1553_v45 = vpop.f32.mrb[59].mxu0 }
 0x19a   : > { %1959 = vst [vmem:[%s3384_s16 + $0x3d0] sm:$0xff] %v2288_v7  ;;  %v1806_v9 = vpop.f32.mrb[57].mxu1  ;;  %1894 = vst [vmem:[%s3384_s16 + $0x1c8] sm:$0xff] %v1553_v45 }
 0x19b   : > { %1957 = vst [vmem:[%s3384_s16 + $0x3c0] sm:$0xff] %v1806_v9  ;;  %v2289_v12 = vpop.f32.mrb[58].mxu1 }
 0x19c   : > { %1960 = vst [vmem:[%s3384_s16 + $0x3d8] sm:$0xff] %v2289_v12  ;;  %v1809_v34 = vpop.f32.mrb[59].mxu1 }
 0x19d   : > { %1958 = vst [vmem:[%s3384_s16 + $0x3c8] sm:$0xff] %v1809_v34 }
 0x1a1   : > { %v2228_v14 = vpop.f32.mrb[60].mxu0 }
 0x1a2   : > { %1899 = vst [vmem:[%s3384_s16 + $0x1f0] sm:$0xff] %v2228_v14  ;;  %v1566_v54 = vpop.f32.mrb[61].mxu0 }
 0x1a3   : > { %1897 = vst [vmem:[%s3384_s16 + $0x1e0] sm:$0xff] %v1566_v54  ;;  %v2229_v53 = vpop.f32.mrb[62].mxu0 }
 0x1a4   : > { %v2292_v1 = vpop.f32.mrb[60].mxu1  ;;  %1900 = vst [vmem:[%s3384_s16 + $0x1f8] sm:$0xff] %v2229_v53  ;;  %v1569_v35 = vpop.f32.mrb[63].mxu0 }
 0x1a5   : > { %1963 = vst [vmem:[%s3384_s16 + $0x3f0] sm:$0xff] %v2292_v1  ;;  %v1822_v46 = vpop.f32.mrb[61].mxu1  ;;  %1898 = vst [vmem:[%s3384_s16 + $0x1e8] sm:$0xff] %v1569_v35 }
 0x1a6   : > { %1961 = vst [vmem:[%s3384_s16 + $0x3e0] sm:$0xff] %v1822_v46  ;;  %v2293_v26 = vpop.f32.mrb[62].mxu1 }
 0x1a7   : > { %1964 = vst [vmem:[%s3384_s16 + $0x3f8] sm:$0xff] %v2293_v26  ;;  %v1825_v11 = vpop.f32.mrb[63].mxu1 }
 0x1a8   : > { %1962 = vst [vmem:[%s3384_s16 + $0x3e8] sm:$0xff] %v1825_v11 }
 0x1a9 PF: > { %s15_s18 = sadd.s32 1, %s2315_s18  }
 0x1aa   : > { %p12_p4 = scmp.ge.s32.totalorder %s15_s18, 4  }
 0x1ac   :  { %14 = sbr.rel (!%p12_p4) target bundleno = 1 (0x1), region = 70 }

// kernel: tile.8
= control target key start
LH: loop header
LB: loop body
LE: loop exit
PB: predicated region body
PF: predicated region fallthrough
CT: control target
= control target key end

     0   :  { %s64_s0 = inlined_call_operand.vmem [shape: f32[8], index: 0, kind: input, shape index: {}]   ;;  %s65_s1 = inlined_call_operand.vmem [shape: f32[64,8], index: 1, kind: output, shape index: {}]  }
   0x1   :  { %v4_v0 = vld [vmem:[%s64_s0] ss:$0 sm:$0xff] }
   0x2   :  { %5 = vst [vmem:[%s65_s1] sm:$0xff] %v4_v0  ;;  %20 = vst [vmem:[%s65_s1 + $0x8] sm:$0xff] %v4_v0 }
   0x3   :  { %21 = vst [vmem:[%s65_s1 + $0x10] sm:$0xff] %v4_v0  ;;  %22 = vst [vmem:[%s65_s1 + $0x18] sm:$0xff] %v4_v0 }
   0x4   :  { %23 = vst [vmem:[%s65_s1 + $0x20] sm:$0xff] %v4_v0  ;;  %24 = vst [vmem:[%s65_s1 + $0x28] sm:$0xff] %v4_v0 }
   0x5   :  { %25 = vst [vmem:[%s65_s1 + $0x30] sm:$0xff] %v4_v0  ;;  %26 = vst [vmem:[%s65_s1 + $0x38] sm:$0xff] %v4_v0 }

// kernel: tile.9
= control target key start
LH: loop header
LB: loop body
LE: loop exit
PB: predicated region body
PF: predicated region fallthrough
CT: control target
= control target key end

     0   :  { %vm6_vm0 = vcmask 1043458   ;;  %s11_s6 = smov 3  ;;  %s14_s7 = smov 12  ;;  %vm8_vm1 = vcmask 64512   ;;  %vm20_vm2 = vcmask 1048512   ;;  %vm32_vm3 = vcmask 982912   ;;  %s412_s0 = inlined_call_operand.vmem [shape: f32[64,8], index: 0, kind: input, shape index: {}]   ;;  %s413_s1 = inlined_call_operand.vmem [shape: f32[1,512], index: 1, kind: output, shape index: {}]  }
   0x1   :  { %v215_v0 = vld [vmem:[%s412_s0 + $0xf] ss:$16 sm:%s11_s6]   ;;  %s35_s12 = smov 3  ;;  %s38_s15 = smov 12  ;;  %vm44_vm4 = vcmask 917312   ;;  %vm56_vm5 = vcmask 851712  }
   0x2   :  { %v216_v1 = vld [vmem:[%s412_s0 + $0xf] ss:$16 sm:%s14_s7]   ;;  %v219_v3 = vld [vmem:[%s412_s0 + $0xd] ss:$16 sm:%s35_s12]   ;;  %s263_s16 = smov 120   ;;  %s23_s19 = smov 3 }
   0x3   :  { %v17_v2 = vsel %vm6_vm0, %v216_v1, %v215_v0  ;;  %v220_v4 = vld [vmem:[%s412_s0 + $0xd] ss:$16 sm:%s38_s15]   ;;  %s26_s20 = smov 12  ;;  %v217_v6 = vld [vmem:[%s412_s0 + $0xe] ss:$16 sm:%s23_s19]   ;;  %s47_s25 = smov 3 }
   0x4   :  { %18 = vrot.lane.b32.xlu0 %v17_v2, %s263_s16  ;;  %v41_v5 = vsel %vm6_vm0, %v220_v4, %v219_v3  ;;  %v218_v7 = vld [vmem:[%s412_s0 + $0xe] ss:$16 sm:%s26_s20]   ;;  %s264_s26 = smov 104   ;;  %s50_s29 = smov 12  ;;  %vm68_vm6 = vcmask 786112   ;;  %vm80_vm7 = vcmask 720512  }
   0x5   :  { %42 = vrot.lane.b32.xlu1 %v41_v5, %s264_s26  ;;  %v29_v8 = vsel %vm6_vm0, %v218_v7, %v217_v6  ;;  %v221_v9 = vld [vmem:[%s412_s0 + $0xc] ss:$16 sm:%s47_s25]   ;;  %s59_s3 = smov 3  ;;  %s62_s4 = smov 12  ;;  %vm92_vm8 = vcmask 654912   ;;  %vm104_vm9 = vcmask 589312  }
   0x6   :  { %v222_v10 = vld [vmem:[%s412_s0 + $0xc] ss:$16 sm:%s50_s29]   ;;  %s265_s5 = smov 112   ;;  %v223_v12 = vld [vmem:[%s412_s0 + $0xb] ss:$16 sm:%s59_s3]   ;;  %s71_s8 = smov 3 }
   0x7   :  { %v53_v11 = vsel %vm6_vm0, %v222_v10, %v221_v9  ;;  %v224_v13 = vld [vmem:[%s412_s0 + $0xb] ss:$16 sm:%s62_s4]   ;;  %v225_v14 = vld [vmem:[%s412_s0 + $0xa] ss:$16 sm:%s71_s8]   ;;  %s74_s13 = smov 12  ;;  %s266_s14 = smov 96  }
   0x8   :  { %30 = vrot.lane.b32.xlu0 %v29_v8, %s265_s5  ;;  %v65_v15 = vsel %vm6_vm0, %v224_v13, %v223_v12  ;;  %v226_v16 = vld [vmem:[%s412_s0 + $0xa] ss:$16 sm:%s74_s13]   ;;  %s83_s17 = smov 3  ;;  %s86_s18 = smov 12  ;;  %vm116_vm10 = vcmask 523712   ;;  %vm128_vm11 = vcmask 458112  }
   0x9   :  { %54 = vrot.lane.b32.xlu1 %v53_v11, %s266_s14  ;;  %v77_v17 = vsel %vm6_vm0, %v226_v16, %v225_v14  ;;  %v227_v18 = vld [vmem:[%s412_s0 + $0x9] ss:$16 sm:%s83_s17]   ;;  %s95_s23 = smov 3  ;;  %s267_s24 = smov 88   ;;  %vm140_vm12 = vcmask 392512   ;;  %vm152_vm13 = vcmask 326912  }
   0xa   :  { %v228_v19 = vld [vmem:[%s412_s0 + $0x9] ss:$16 sm:%s86_s18]   ;;  %v229_v20 = vld [vmem:[%s412_s0 + $0x8] ss:$16 sm:%s95_s23]   ;;  %s98_s27 = smov 12  ;;  %s107_s30 = smov 3 }
   0xb   :  { %v89_v21 = vsel %vm6_vm0, %v228_v19, %v227_v18  ;;  %v230_v22 = vld [vmem:[%s412_s0 + $0x8] ss:$16 sm:%s98_s27]   ;;  %s110_s2 = smov 12  ;;  %s268_s3 = smov 80   ;;  %v231_v23 = vld [vmem:[%s412_s0 + $0x7] ss:$16 sm:%s107_s30]  }
   0xc   :  { %66 = vrot.lane.b32.xlu0 %v65_v15, %s267_s24  ;;  %s119_s6 = smov 3  ;;  %v101_v24 = vsel %vm6_vm0, %v230_v22, %v229_v20  ;;  %v232_v25 = vld [vmem:[%s412_s0 + $0x7] ss:$16 sm:%s110_s2]   ;;  %s122_s11 = smov 12  ;;  %vm164_vm14 = vcmask 261312   ;;  %vm176_vm15 = vcmask 195712  }
   0xd   :  { %78 = vrot.lane.b32.xlu1 %v77_v17, %s268_s3  ;;  %v233_v26 = vld [vmem:[%s412_s0 + $0x6] ss:$16 sm:%s119_s6]   ;;  %s269_s12 = smov 72   ;;  %s131_s15 = smov 3  ;;  %v113_v28 = vsel %vm6_vm0, %v232_v25, %v231_v23 }
   0xe   :  { %v234_v27 = vld [vmem:[%s412_s0 + $0x6] ss:$16 sm:%s122_s11]   ;;  %s134_s16 = smov 12  ;;  %v235_v29 = vld [vmem:[%s412_s0 + $0x5] ss:$16 sm:%s131_s15]   ;;  %s143_s19 = smov 3 }
   0xf   :  { %s270_s20 = smov 64   ;;  %v236_v30 = vld [vmem:[%s412_s0 + $0x5] ss:$16 sm:%s134_s16]   ;;  %s146_s23 = smov 12  ;;  %v125_v31 = vsel %vm6_vm0, %v234_v27, %v233_v26  ;;  %v237_v32 = vld [vmem:[%s412_s0 + $0x4] ss:$16 sm:%s143_s19]  }
  0x10   :  { %90 = vrot.lane.b32.xlu0 %v89_v21, %s269_s12  ;;  %s155_s26 = smov 3  ;;  %s158_s27 = smov 12  ;;  %v238_v33 = vld [vmem:[%s412_s0 + $0x4] ss:$16 sm:%s146_s23]   ;;  %v137_v34 = vsel %vm6_vm0, %v236_v30, %v235_v29 }
  0x11   :  { %102 = vrot.lane.b32.xlu1 %v101_v24, %s270_s20  ;;  %s271_s28 = smov 56   ;;  %s167_s2 = smov 3  ;;  %v239_v35 = vld [vmem:[%s412_s0 + $0x3] ss:$16 sm:%s155_s26]   ;;  %v149_v37 = vsel %vm6_vm0, %v238_v33, %v237_v32 }
  0x12   :  { %s170_s5 = smov 12  ;;  %s272_s6 = smov 48   ;;  %v240_v36 = vld [vmem:[%s412_s0 + $0x3] ss:$16 sm:%s158_s27]   ;;  %v241_v38 = vld [vmem:[%s412_s0 + $0x2] ss:$16 sm:%s167_s2]  }
  0x13   :  { %s179_s9 = smov 3  ;;  %v242_v39 = vld [vmem:[%s412_s0 + $0x2] ss:$16 sm:%s170_s5]   ;;  %s182_s14 = smov 12  ;;  %v161_v41 = vsel %vm6_vm0, %v240_v36, %v239_v35 }
  0x14   :  { %114 = vrot.lane.b32.xlu0 %v113_v28, %s271_s28  ;;  %s2_s15 = smov 3  ;;  %s273_s16 = smov 40   ;;  %v243_v42 = vld [vmem:[%s412_s0 + $0x1] ss:$16 sm:%s179_s9]   ;;  %v173_v46 = vsel %vm6_vm0, %v242_v39, %v241_v38 }
  0x15   :  { %126 = vrot.lane.b32.xlu1 %v125_v31, %s272_s6  ;;  %v3_v40 = vld [vmem:[%s412_s0] ss:$16 sm:%s2_s15]   ;;  %s4_s19 = smov 12  ;;  %s274_s24 = smov 32  }
  0x16   :  { %v5_v43 = vld [vmem:[%s412_s0] ss:$16 sm:%s4_s19]   ;;  %v244_v44 = vld [vmem:[%s412_s0 + $0x1] ss:$16 sm:%s182_s14]   ;;  %s275_s0 = smov 24   ;;  %s276_s27 = smov 16  }
  0x17   :  { %v7_v45 = vsel %vm6_vm0, %v5_v43, %v3_v40  ;;  %v185_v47 = vsel %vm6_vm0, %v244_v44, %v243_v42  ;;  %s277_s28 = smov 8   ;;  %vm188_vm0 = vcmask 130112  }
  0x18   :  { %138 = vrot.lane.b32.xlu0 %v137_v34, %s273_s16  ;;  %9 = vst.msk [vmem:[#allocation0] ss:$8 sm:$0xf] %vm8_vm1, %v7_v45  }
  0x19   :  { %150 = vrot.lane.b32.xlu1 %v149_v37, %s274_s24 }
  0x1c   :  { %162 = vrot.lane.b32.xlu0 %v161_v41, %s275_s0 }
  0x1d   :  { %174 = vrot.lane.b32.xlu1 %v173_v46, %s276_s27 }
  0x20   :  { %186 = vrot.lane.b32.xlu0 %v185_v47, %s277_s28 }
  0x76   :  { %v19_v48 = vpop.permute.xlu0 %18  }
  0x77   :  { %21 = vst.msk [vmem:[#allocation0] ss:$8 sm:$0xf] %vm20_vm2, %v19_v48   ;;  %v43_v49 = vpop.permute.xlu1 %42  }
  0x7a   :  { %v31_v50 = vpop.permute.xlu0 %30  }
  0x7b   :  { %33 = vst.msk [vmem:[#allocation0] ss:$8 sm:$0xf] %vm32_vm3, %v31_v50   ;;  %v55_v51 = vpop.permute.xlu1 %54  }
  0x7c   :  { %45 = vst.msk [vmem:[#allocation0] ss:$8 sm:$0xf] %vm44_vm4, %v43_v49  }
  0x7d   :  { %57 = vst.msk [vmem:[#allocation0] ss:$8 sm:$0xf] %vm56_vm5, %v55_v51  }
  0x7e   :  { %v67_v52 = vpop.permute.xlu0 %66  }
  0x7f   :  { %69 = vst.msk [vmem:[#allocation0] ss:$8 sm:$0xf] %vm68_vm6, %v67_v52   ;;  %v79_v53 = vpop.permute.xlu1 %78  }
  0x80   :  { %81 = vst.msk [vmem:[#allocation0] ss:$8 sm:$0xf] %vm80_vm7, %v79_v53  }
  0x82   :  { %v91_v54 = vpop.permute.xlu0 %90  }
  0x83   :  { %93 = vst.msk [vmem:[#allocation0] ss:$8 sm:$0xf] %vm92_vm8, %v91_v54   ;;  %v103_v55 = vpop.permute.xlu1 %102  }
  0x84   :  { %105 = vst.msk [vmem:[#allocation0] ss:$8 sm:$0xf] %vm104_vm9, %v103_v55  }
  0x86   :  { %v115_v56 = vpop.permute.xlu0 %114  }
  0x87   :  { %117 = vst.msk [vmem:[#allocation0] ss:$8 sm:$0xf] %vm116_vm10, %v115_v56   ;;  %v127_v57 = vpop.permute.xlu1 %126  }
  0x88   :  { %129 = vst.msk [vmem:[#allocation0] ss:$8 sm:$0xf] %vm128_vm11, %v127_v57  }
  0x8a   :  { %v139_v58 = vpop.permute.xlu0 %138  }
  0x8b   :  { %141 = vst.msk [vmem:[#allocation0] ss:$8 sm:$0xf] %vm140_vm12, %v139_v58   ;;  %v151_v59 = vpop.permute.xlu1 %150  }
  0x8c   :  { %153 = vst.msk [vmem:[#allocation0] ss:$8 sm:$0xf] %vm152_vm13, %v151_v59  }
  0x8e   :  { %v163_v60 = vpop.permute.xlu0 %162  }
  0x8f   :  { %165 = vst.msk [vmem:[#allocation0] ss:$8 sm:$0xf] %vm164_vm14, %v163_v60   ;;  %v175_v61 = vpop.permute.xlu1 %174  }
  0x90   :  { %177 = vst.msk [vmem:[#allocation0] ss:$8 sm:$0xf] %vm176_vm15, %v175_v61  }
  0x92   :  { %v187_v62 = vpop.permute.xlu0 %186  }
  0x93   :  { %189 = vst.msk [vmem:[#allocation0] ss:$8 sm:$0xf] %vm188_vm0, %v187_v62  }
  0x9a   :  { %v193_v63 = vld [vmem:[#allocation0] sm:$0x1]  ;;  %v197_v0 = vld [vmem:[#allocation0 + $0x8] sm:$0x1]  ;;  %v202_v1 = vld [vmem:[#allocation0 + $0x10] sm:$0x1] }
  0x9b   :  { %195 = vst [vmem:[%s413_s1] sm:$0x1] %v193_v63  ;;  %245 = vst [vmem:[%s413_s1 + $0x1] sm:$0x1] %v197_v0  ;;  %v208_v2 = vld [vmem:[#allocation0 + $0x18] sm:$0x1] }
  0x9c   :  { %246 = vst [vmem:[%s413_s1 + $0x2] sm:$0x1] %v202_v1  ;;  %247 = vst [vmem:[%s413_s1 + $0x3] sm:$0x1] %v208_v2 }

// kernel: generator_forward.19
= control target key start
LH: loop header
LB: loop body
LE: loop exit
PB: predicated region body
PF: predicated region fallthrough
CT: control target
= control target key end

     0   :  { %s470_s9 = smov 0   ;;  %s605_s0 = inlined_call_operand.vmem [shape: f32[128,512], index: 0, kind: input, shape index: {}]   ;;  %s606_s1 = inlined_call_operand.vmem [shape: f32[1,512], index: 1, kind: input, shape index: {}]   ;;  %s607_s2 = inlined_call_operand.vmem [shape: f32[128,512], index: 2, kind: output, shape index: {}]  }
   0x1 LB: > { %s360_s10 = sadd.s32 4294967295, %s453_s9   ;;  %p364_p0 = scmp.ge.s32.totalorder %s453_s9, 1  ;;  %s453_s9 = sphi %s470_s9, %s12_s9  }
   0x2   : > { %p114_p1 = scmp.lt.s32.totalorder %s453_s9, 3 }
   0x4   : > { %p115_p2 = pnand %p364_p0, %p114_p1 }
   0x5   : > { %s365_s11 = sshll.u32 (!%p115_p2), %s360_s10, 3  ;;  %v186_v0 = vlaneseq (!%p115_p2)  ;;  %v184_v2 = vld [vmem:[%s606_s1] sm:$0xf] (!%p115_p2) }
   0x6   : > { %118 = sbr.rel (%p115_p2) target bundleno = 62 (0x3e), region = 28  ;;  %p139_p3 = scmp.lt.s32.totalorder (!%p115_p2), %s365_s11, 15 }
   0x7   : > { %v187_v1 = vshrl.u32 (!%p115_p2), %v186_v0, 7 }
   0x9   : > { %v188_v3 = vsub.s32 (!%p115_p2), 0, %v187_v1  ;;  %v192_v4 = vsub.s32 (!%p115_p2), 1, %v187_v1  ;;  %v196_v5 = vsub.s32 (!%p115_p2), 2, %v187_v1  ;;  %v200_v6 = vsub.s32 (!%p115_p2), 3, %v187_v1 }
   0xb   : > { %v491_v7 = vrot.slane (!%p115_p2), %v184_v2, %v188_v3  ;;  %v493_v8 = vrot.slane (!%p115_p2), %v184_v2, %v192_v4  ;;  %v495_v9 = vrot.slane (!%p115_p2), %v184_v2, %v196_v5  ;;  %v497_v10 = vrot.slane (!%p115_p2), %v184_v2, %v200_v6 }
   0xd   : > { %s609_s11 = smov (!%p139_p3, %s365_s11), 15 }
   0xe   : > { %s373_s14 = sshll.u32 %s609_s11, 5 }
   0xf   : > { %s489_s17 = scalar_lea.vmem %s605_s0, %s373_s14  ;;  %s531_s20 = scalar_lea.vmem %s607_s2, %s373_s14 }
  0x10   : > { %v152_v11 = vld [vmem:[%s489_s17] sm:$0xff]  ;;  %v153_v12 = vld [vmem:[%s489_s17 + $0x8] sm:$0xff]  ;;  %v154_v13 = vld [vmem:[%s489_s17 + $0x10] sm:$0xff] }
  0x11   : > { %v206_v14 = vadd.f32 %v491_v7, %v152_v11  ;;  %v207_v15 = vadd.f32 %v493_v8, %v153_v12  ;;  %v208_v16 = vadd.f32 %v495_v9, %v154_v13  ;;  %v155_v17 = vld [vmem:[%s489_s17 + $0x18] sm:$0xff]  ;;  %v156_v18 = vld [vmem:[%s489_s17 + $0x20] sm:$0xff]  ;;  %v157_v19 = vld [vmem:[%s489_s17 + $0x28] sm:$0xff] }
  0x12   : > { %v209_v20 = vadd.f32 %v497_v10, %v155_v17  ;;  %v158_v21 = vld [vmem:[%s489_s17 + $0x30] sm:$0xff]  ;;  %v210_v22 = vadd.f32 %v491_v7, %v156_v18  ;;  %v159_v23 = vld [vmem:[%s489_s17 + $0x38] sm:$0xff]  ;;  %v211_v24 = vadd.f32 %v493_v8, %v157_v19  ;;  %v160_v25 = vld [vmem:[%s489_s17 + $0x40] sm:$0xff] }
  0x13   : > { %383 = vtanh.f32 %v206_v14  ;;  %v212_v26 = vadd.f32 %v495_v9, %v158_v21  ;;  %v161_v27 = vld [vmem:[%s489_s17 + $0x48] sm:$0xff]  ;;  %v213_v28 = vadd.f32 %v497_v10, %v159_v23  ;;  %v162_v29 = vld [vmem:[%s489_s17 + $0x50] sm:$0xff]  ;;  %v214_v30 = vadd.f32 %v491_v7, %v160_v25  ;;  %v163_v31 = vld [vmem:[%s489_s17 + $0x58] sm:$0xff] }
  0x14   : > { %385 = vtanh.f32 %v207_v15  ;;  %v215_v32 = vadd.f32 %v493_v8, %v161_v27  ;;  %v164_v33 = vld [vmem:[%s489_s17 + $0x60] sm:$0xff]  ;;  %v216_v34 = vadd.f32 %v495_v9, %v162_v29  ;;  %v165_v35 = vld [vmem:[%s489_s17 + $0x68] sm:$0xff]  ;;  %v217_v36 = vadd.f32 %v497_v10, %v163_v31  ;;  %v166_v37 = vld [vmem:[%s489_s17 + $0x70] sm:$0xff] }
  0x15   : > { %387 = vtanh.f32 %v208_v16  ;;  %v218_v38 = vadd.f32 %v491_v7, %v164_v33  ;;  %v167_v39 = vld [vmem:[%s489_s17 + $0x78] sm:$0xff]  ;;  %v219_v40 = vadd.f32 %v493_v8, %v165_v35  ;;  %v168_v41 = vld [vmem:[%s489_s17 + $0x80] sm:$0xff]  ;;  %v220_v43 = vadd.f32 %v495_v9, %v166_v37  ;;  %v169_v44 = vld [vmem:[%s489_s17 + $0x88] sm:$0xff] }
  0x16   : > { %389 = vtanh.f32 %v209_v20  ;;  %v221_v46 = vadd.f32 %v497_v10, %v167_v39  ;;  %v170_v47 = vld [vmem:[%s489_s17 + $0x90] sm:$0xff]  ;;  %v222_v49 = vadd.f32 %v491_v7, %v168_v41  ;;  %v171_v50 = vld [vmem:[%s489_s17 + $0x98] sm:$0xff]  ;;  %v223_v52 = vadd.f32 %v493_v8, %v169_v44  ;;  %v172_v53 = vld [vmem:[%s489_s17 + $0xa0] sm:$0xff] }
  0x17   : > { %391 = vtanh.f32 %v210_v22  ;;  %v224_v55 = vadd.f32 %v495_v9, %v170_v47  ;;  %v173_v56 = vld [vmem:[%s489_s17 + $0xa8] sm:$0xff]  ;;  %v225_v58 = vadd.f32 %v497_v10, %v171_v50  ;;  %v174_v59 = vld [vmem:[%s489_s17 + $0xb0] sm:$0xff]  ;;  %v226_v61 = vadd.f32 %v491_v7, %v172_v53  ;;  %v175_v62 = vld [vmem:[%s489_s17 + $0xb8] sm:$0xff] }
  0x18   : > { %393 = vtanh.f32 %v211_v24  ;;  %v227_v0 = vadd.f32 %v493_v8, %v173_v56  ;;  %v176_v1 = vld [vmem:[%s489_s17 + $0xc0] sm:$0xff]  ;;  %v228_v3 = vadd.f32 %v495_v9, %v174_v59  ;;  %v177_v4 = vld [vmem:[%s489_s17 + $0xc8] sm:$0xff]  ;;  %v229_v6 = vadd.f32 %v497_v10, %v175_v62  ;;  %v178_v11 = vld [vmem:[%s489_s17 + $0xd0] sm:$0xff] }
  0x19   : > { %395 = vtanh.f32 %v212_v26  ;;  %v230_v13 = vadd.f32 %v491_v7, %v176_v1  ;;  %v179_v14 = vld [vmem:[%s489_s17 + $0xd8] sm:$0xff]  ;;  %v231_v16 = vadd.f32 %v493_v8, %v177_v4  ;;  %v180_v17 = vld [vmem:[%s489_s17 + $0xe0] sm:$0xff]  ;;  %v232_v19 = vadd.f32 %v495_v9, %v178_v11  ;;  %v181_v20 = vld [vmem:[%s489_s17 + $0xe8] sm:$0xff] }
  0x1a   : > { %397 = vtanh.f32 %v213_v28  ;;  %v233_v22 = vadd.f32 %v497_v10, %v179_v14  ;;  %v182_v23 = vld [vmem:[%s489_s17 + $0xf0] sm:$0xff]  ;;  %v234_v25 = vadd.f32 %v491_v7, %v180_v17  ;;  %v183_v26 = vld [vmem:[%s489_s17 + $0xf8] sm:$0xff]  ;;  %v235_v28 = vadd.f32 %v493_v8, %v181_v20 }
  0x1b   : > { %399 = vtanh.f32 %v214_v30  ;;  %v236_v30 = vadd.f32 %v495_v9, %v182_v23  ;;  %v237_v7 = vadd.f32 %v497_v10, %v183_v26 }
  0x1c   : > { %401 = vtanh.f32 %v215_v32 }
  0x1d   : > { %v384_v42 = vpop.eup %383  ;;  %403 = vtanh.f32 %v216_v34 }
  0x1e   : > { %v386_v45 = vpop.eup %385  ;;  %270 = vst [vmem:[%s531_s20] sm:$0xff] %v384_v42  ;;  %405 = vtanh.f32 %v217_v36 }
  0x1f   : > { %v388_v48 = vpop.eup %387  ;;  %271 = vst [vmem:[%s531_s20 + $0x8] sm:$0xff] %v386_v45  ;;  %407 = vtanh.f32 %v218_v38 }
  0x20   : > { %v390_v51 = vpop.eup %389  ;;  %272 = vst [vmem:[%s531_s20 + $0x10] sm:$0xff] %v388_v48  ;;  %409 = vtanh.f32 %v219_v40 }
  0x21   : > { %v392_v54 = vpop.eup %391  ;;  %273 = vst [vmem:[%s531_s20 + $0x18] sm:$0xff] %v390_v51  ;;  %411 = vtanh.f32 %v220_v43 }
  0x22   : > { %v394_v57 = vpop.eup %393  ;;  %274 = vst [vmem:[%s531_s20 + $0x20] sm:$0xff] %v392_v54  ;;  %413 = vtanh.f32 %v221_v46 }
  0x23   : > { %v396_v60 = vpop.eup %395  ;;  %275 = vst [vmem:[%s531_s20 + $0x28] sm:$0xff] %v394_v57  ;;  %415 = vtanh.f32 %v222_v49 }
  0x24   : > { %v398_v63 = vpop.eup %397  ;;  %276 = vst [vmem:[%s531_s20 + $0x30] sm:$0xff] %v396_v60  ;;  %417 = vtanh.f32 %v223_v52 }
  0x25   : > { %v400_v2 = vpop.eup %399  ;;  %277 = vst [vmem:[%s531_s20 + $0x38] sm:$0xff] %v398_v63  ;;  %419 = vtanh.f32 %v224_v55 }
  0x26   : > { %v402_v5 = vpop.eup %401  ;;  %278 = vst [vmem:[%s531_s20 + $0x40] sm:$0xff] %v400_v2  ;;  %421 = vtanh.f32 %v225_v58 }
  0x27   : > { %v404_v12 = vpop.eup %403  ;;  %279 = vst [vmem:[%s531_s20 + $0x48] sm:$0xff] %v402_v5  ;;  %423 = vtanh.f32 %v226_v61 }
  0x28   : > { %v406_v15 = vpop.eup %405  ;;  %280 = vst [vmem:[%s531_s20 + $0x50] sm:$0xff] %v404_v12  ;;  %425 = vtanh.f32 %v227_v0 }
  0x29   : > { %v408_v18 = vpop.eup %407  ;;  %281 = vst [vmem:[%s531_s20 + $0x58] sm:$0xff] %v406_v15  ;;  %427 = vtanh.f32 %v228_v3 }
  0x2a   : > { %v410_v21 = vpop.eup %409  ;;  %282 = vst [vmem:[%s531_s20 + $0x60] sm:$0xff] %v408_v18  ;;  %429 = vtanh.f32 %v229_v6 }
  0x2b   : > { %v412_v24 = vpop.eup %411  ;;  %283 = vst [vmem:[%s531_s20 + $0x68] sm:$0xff] %v410_v21  ;;  %431 = vtanh.f32 %v230_v13 }
  0x2c   : > { %v414_v27 = vpop.eup %413  ;;  %284 = vst [vmem:[%s531_s20 + $0x70] sm:$0xff] %v412_v24  ;;  %433 = vtanh.f32 %v231_v16 }
  0x2d   : > { %v416_v29 = vpop.eup %415  ;;  %285 = vst [vmem:[%s531_s20 + $0x78] sm:$0xff] %v414_v27  ;;  %435 = vtanh.f32 %v232_v19 }
  0x2e   : > { %v418_v31 = vpop.eup %417  ;;  %286 = vst [vmem:[%s531_s20 + $0x80] sm:$0xff] %v416_v29  ;;  %437 = vtanh.f32 %v233_v22 }
  0x2f   : > { %v420_v32 = vpop.eup %419  ;;  %287 = vst [vmem:[%s531_s20 + $0x88] sm:$0xff] %v418_v31  ;;  %439 = vtanh.f32 %v234_v25 }
  0x30   : > { %v422_v33 = vpop.eup %421  ;;  %288 = vst [vmem:[%s531_s20 + $0x90] sm:$0xff] %v420_v32  ;;  %441 = vtanh.f32 %v235_v28 }
  0x31   : > { %v424_v8 = vpop.eup %423  ;;  %289 = vst [vmem:[%s531_s20 + $0x98] sm:$0xff] %v422_v33  ;;  %443 = vtanh.f32 %v236_v30 }
  0x32   : > { %v426_v9 = vpop.eup %425  ;;  %290 = vst [vmem:[%s531_s20 + $0xa0] sm:$0xff] %v424_v8  ;;  %445 = vtanh.f32 %v237_v7 }
  0x33   : > { %v428_v10 = vpop.eup %427  ;;  %291 = vst [vmem:[%s531_s20 + $0xa8] sm:$0xff] %v426_v9 }
  0x34   : > { %v430_v34 = vpop.eup %429  ;;  %292 = vst [vmem:[%s531_s20 + $0xb0] sm:$0xff] %v428_v10 }
  0x35   : > { %v432_v35 = vpop.eup %431  ;;  %293 = vst [vmem:[%s531_s20 + $0xb8] sm:$0xff] %v430_v34 }
  0x36   : > { %v434_v36 = vpop.eup %433  ;;  %294 = vst [vmem:[%s531_s20 + $0xc0] sm:$0xff] %v432_v35 }
  0x37   : > { %v436_v37 = vpop.eup %435  ;;  %295 = vst [vmem:[%s531_s20 + $0xc8] sm:$0xff] %v434_v36 }
  0x38   : > { %v438_v38 = vpop.eup %437  ;;  %296 = vst [vmem:[%s531_s20 + $0xd0] sm:$0xff] %v436_v37 }
  0x39   : > { %v440_v39 = vpop.eup %439  ;;  %297 = vst [vmem:[%s531_s20 + $0xd8] sm:$0xff] %v438_v38 }
  0x3a   : > { %v442_v40 = vpop.eup %441  ;;  %298 = vst [vmem:[%s531_s20 + $0xe0] sm:$0xff] %v440_v39 }
  0x3b   : > { %v444_v41 = vpop.eup %443  ;;  %299 = vst [vmem:[%s531_s20 + $0xe8] sm:$0xff] %v442_v40 }
  0x3c   : > { %v446_v42 = vpop.eup %445  ;;  %300 = vst [vmem:[%s531_s20 + $0xf0] sm:$0xff] %v444_v41 }
  0x3d   : > { %301 = vst [vmem:[%s531_s20 + $0xf8] sm:$0xff] %v446_v42 }
  0x3e PF: > { %s12_s9 = sadd.s32 1, %s453_s9  }
  0x3f   : > { %p9_p4 = scmp.ge.s32.totalorder %s12_s9, 4  }
  0x41   :  { %11 = sbr.rel (!%p9_p4) target bundleno = 1 (0x1), region = 58 }

</bundles_post_ra>
